<compile_context>
chip_gen: v5e
topology: v5e:2x2
jax: 0.10.0
libtpu: 0.0.40
codegen_flags: <defaults>
</compile_context>

<pallas_src>
import functools
import numpy as np
import jax
import jax.numpy as jnp
from jax.experimental import pallas as pl
from jax.experimental.pallas import tpu as pltpu

BN_EPS = 1e-5                      # torch BatchNorm default eps
ASP_EPS = 1e-12                    # AttentiveStatisticsPooling eps
S_BN = float(1.0 / np.sqrt(1.0 + BN_EPS))   # BN inference: gamma=1,beta=0,rm=0,rv=1

PARAM_ORDER = [
    "w_c1", "b_c1", "w_c2", "b_c2", "w_r2d", "b_r2d",
    "w_fa1", "b_fa1", "w_fa2", "b_fa2", "w_fatd", "b_fatd", "w_fac", "b_fac",
    "w_td1", "b_td1", "w_r2", "b_r2", "w_td2", "b_td2",
    "w_se1", "b_se1", "w_se2", "b_se2",
    "w_mfa", "b_mfa", "w_atd", "b_atd", "w_ac", "b_ac", "w_fc", "b_fc",
]


# ----------------------------------------------------------------------------
# The fused kernel (one batch element per grid step)
# ----------------------------------------------------------------------------
def _ecapa_kernel(x_ref,
                  w_c1, b_c1, w_c2, b_c2, w_r2d, b_r2d,
                  w_fa1, b_fa1, w_fa2, b_fa2, w_fatd, b_fatd, w_fac, b_fac,
                  w_td1, b_td1, w_r2, b_r2, w_td2, b_td2,
                  w_se1, b_se1, w_se2, b_se2,
                  w_mfa, b_mfa, w_atd, b_atd, w_ac, b_ac, w_fc, b_fc,
                  o_ref, *, irs, r2s, dilations):
    f32 = jnp.float32
    x = x_ref[0]                                   # (T, F): time x flat-channels
    T = x.shape[0]
    row = jax.lax.broadcasted_iota(jnp.int32, (T, 1), 0)   # hoisted row index

    def mm(a, b):
        return jnp.dot(a, b, preferred_element_type=f32)

    def relu(v):
        return jnp.maximum(v, 0.0)

    # ---- time-shift helpers: pltpu.roll (== jnp.roll semantics) on sublanes --
    def taps_zero(z, d):
        # zm[t] = z[t-d] (0 for t<d), zp[t] = z[t+d] (0 for t>=T-d): zero 'same' pad
        zm = jnp.where(row >= d, pltpu.roll(z, d, axis=0), 0.0)
        zp = jnp.where(row < T - d, pltpu.roll(z, (T - d) % T, axis=0), 0.0)
        return zm, zp

    def taps_reflect(z, d):
        # SpeechBrain reflect 'same' pad: boundary rows take mirrored samples.
        rolls = {}

        def rolled(s):          # rolled(s)[t] = z[(t - s) % T]
            s = s % T
            if s == 0:
                return z
            if s not in rolls:
                rolls[s] = pltpu.roll(z, s, axis=0)
            return rolls[s]

        zm, zp = rolled(d), rolled(-d)
        for t in range(d):                 # top rows of zm want z[d - t]
            zm = jnp.where(row == t, rolled(2 * t - d), zm)
        for t in range(T - d, T):          # bottom rows of zp want z[2(T-1)-d-t]
            zp = jnp.where(row == t, rolled(2 * t + 2 + d - 2 * T), zp)
        return zm, zp

    def conv_k3(z, w, b, d, reflect):
        # w: (3*Cin, Cout) packed taps [x(t-d), x(t), x(t+d)]; b: (1, Cout)
        zm, zp = (taps_reflect if reflect else taps_zero)(z, d)
        cat = jnp.concatenate([zm, z, zp], axis=1)          # (T, 3*Cin)
        return mm(cat, w) + b                               # single MXU push

    # ---- first_conv + res2conv2D (2-D convs as structured 1-D convs) --------
    h = relu(conv_k3(x, w_c1[...], b_c1[...], 1, False))          # (T, c1*H1)
    h = relu(conv_k3(h, w_c2[...], b_c2[...], 1, False))          # (T, c1*H2)

    sub = h.shape[1] // irs
    xs = []
    y = None
    for i in range(irs):
        ci = h[:, sub * i: sub * (i + 1)]
        if i == 0:
            y = ci
        else:
            inp = ci if i == 1 else ci + y
            y = relu(conv_k3(inp, w_r2d[i - 1], b_r2d[i - 1], 1, False))
        xs.append(y)                                              # each (T, sub)

    # ---- Freq_att_Block (last_layer=True, res=True) --------------------------
    ylist = []
    yprev = None
    for i in range(irs):
        inp = xs[i] if i == 0 else xs[i] + yprev
        s = jnp.mean(inp, axis=0, keepdims=True)                  # avg-pool (1,sub)
        s = relu(mm(s, w_fa1[i]) + b_fa1[i])
        s = jax.nn.sigmoid(mm(s, w_fa2[i]) + b_fa2[i])
        g = inp * s                                               # channel gate
        yprev = relu(conv_k3(g, w_fatd[i], b_fatd[i], 1, True))
        ylist.append(yprev)
    ycat = jnp.concatenate(ylist, axis=1)                         # (T, att)
    xcat = jnp.concatenate(xs, axis=1)                            # (T, att) residual
    h = mm(ycat, w_fac[...]) + b_fac[...] + xcat                  # conv1D k=1 + res

    # ---- SERes2NetBlocks ------------------------------------------------------
    nblk = len(dilations)
    C = h.shape[1]
    csub = C // r2s
    xl = []
    for bi in range(nblk):
        residual = h          # TODO(synk): shortcut Conv1d (in!=out) not needed here
        z = relu(mm(h, w_td1[bi]) + b_td1[bi])                    # tdnn1 (T, C)
        ys = [z[:, 0:csub]]
        yy = None
        for j in range(1, r2s):
            cj = z[:, csub * j: csub * (j + 1)]
            inp = cj if j == 1 else cj + yy
            k = (r2s - 1) * bi + (j - 1)
            yy = relu(conv_k3(inp, w_r2[k], b_r2[k], dilations[bi], True))
            ys.append(yy)
        z2 = relu(mm(jnp.concatenate(ys, axis=1), w_td2[bi]) + b_td2[bi])  # tdnn2
        s = jnp.mean(z2, axis=0, keepdims=True)                   # SE squeeze
        s = relu(mm(s, w_se1[bi]) + b_se1[bi])
        s = jax.nn.sigmoid(mm(s, w_se2[bi]) + b_se2[bi])
        h = z2 * s + residual
        xl.append(h)

    # ---- MFA over concat(xl) (single wide-K matmul) ---------------------------
    hm = relu(mm(jnp.concatenate(xl, axis=1), w_mfa[...]) + b_mfa[...])   # (T, Clast)

    # ---- AttentiveStatisticsPooling + asp_bn (folded) + fc --------------------
    Cl = hm.shape[1]
    inv_t = 1.0 / T
    mean1 = jnp.sum(hm, axis=0, keepdims=True) * inv_t            # uniform stats
    d1 = hm - mean1
    var1 = jnp.sum(d1 * d1, axis=0, keepdims=True) * inv_t
    std1 = jnp.sqrt(jnp.maximum(var1, ASP_EPS))

    w_atd_v = w_atd[...]                                          # (3*Cl, att_ch)
    a = mm(hm, w_atd_v[0:Cl, :]) + (
        mm(jnp.concatenate([mean1, std1], axis=1), w_atd_v[Cl:, :]) + b_atd[...])
    a = jnp.tanh(relu(a))                                         # TDNN(ReLU) -> tanh
    a = mm(a, w_ac[...]) + b_ac[...]                              # (T, Cl)
    amax = jnp.max(a, axis=0, keepdims=True)
    e = jnp.exp(a - amax)
    attn = e * (1.0 / jnp.sum(e, axis=0, keepdims=True))          # exact reciprocal

    mean2 = jnp.sum(attn * hm, axis=0, keepdims=True)
    d2 = hm - mean2
    std2 = jnp.sqrt(jnp.maximum(jnp.sum(attn * d2 * d2, axis=0, keepdims=True),
                                ASP_EPS))

    # asp_bn folded into w_fc; single wide-K matmul on [mean2, std2]
    out = mm(jnp.concatenate([mean2, std2], axis=1), w_fc[...]) + b_fc[...]
    o_ref[0] = out                                                # (1, lin_neurons)


# ----------------------------------------------------------------------------
# Deterministic parameter construction (BN + bias folded into weights)
# ----------------------------------------------------------------------------
class _Rng:
    def __init__(self, seed):
        self._key = jax.random.PRNGKey(seed)

    def normal(self, shape, scale=1.0):
        self._key, k = jax.random.split(self._key)
        return np.asarray(scale * jax.random.normal(k, shape, jnp.float32))


def _lin(rng, cin, cout, fold_bn=False):
    w = rng.normal((cin, cout), 1.0 / np.sqrt(cin))
    b = rng.normal((cout,), 0.01)
    if fold_bn:
        w = w * S_BN
        b = b * S_BN
    return w.astype(np.float32), b.reshape(1, cout).astype(np.float32)


def _conv1d_k3(rng, cin, cout, fold_bn=True):
    w = rng.normal((3, cin, cout), 1.0 / np.sqrt(3 * cin))
    b = rng.normal((cout,), 0.01)
    ws = np.concatenate([w[0], w[1], w[2]], axis=0)      # taps [t-d, t, t+d]
    if fold_bn:
        ws = ws * S_BN
        b = b * S_BN
    return ws.astype(np.float32), b.reshape(1, cout).astype(np.float32)


def _conv2d_struct(rng, cin, hin, cout, hout, stride_h):
    """3x3 Conv2d (pad (1,1), stride (stride_h,1)) + folded BN2d rewritten as a
    k=3 conv over W(=time) on flattened (C,H) channels (flat index = c*H + h)."""
    w4 = rng.normal((3, 3, cin, cout), 1.0 / np.sqrt(9 * cin))    # (kh, kw, ci, co)
    b = rng.normal((cout,), 0.01)
    taps = np.zeros((3, hin * cin, hout * cout), np.float32)
    for kw in range(3):
        for kh in range(3):
            for ho in range(hout):
                hi = stride_h * ho + kh - 1                       # H zero padding
                if 0 <= hi < hin:
                    rows = np.arange(cin) * hin + hi
                    cols = np.arange(cout) * hout + ho
                    taps[kw][np.ix_(rows, cols)] = w4[kh, kw]
    ws = np.concatenate([taps[0], taps[1], taps[2]], axis=0) * S_BN
    bflat = np.repeat(b, hout) * S_BN
    return ws.astype(np.float32), bflat.reshape(1, hout * cout).astype(np.float32)


def make_params(cfg, seed=0):
    rng = _Rng(seed)
    F = cfg["input_size"]
    c1 = cfg["c_1st_conv"]
    irs = cfg["input_res2net_scale"]
    att = cfg["att_channel"]
    channels = cfg["channels"]
    r2s = cfg["res2net_scale"]
    se_ch = cfg["se_channels"]
    attn_ch = cfg["attention_channels"]
    lin = cfg["lin_neurons"]

    H1 = (F + 2 - 3) // 2 + 1
    H2 = (H1 + 2 - 3) // 2 + 1
    sub2d = c1 // irs
    sub_att = att // irs
    assert sub2d * H2 == sub_att and c1 * H2 == att, "inconsistent config"
    se_neur = int(20 * c1 / irs // 5)

    p = {}
    p["w_c1"], p["b_c1"] = _conv2d_struct(rng, 1, F, c1, H1, 2)
    p["w_c2"], p["b_c2"] = _conv2d_struct(rng, c1, H1, c1, H2, 2)
    wr, br = [], []
    for _ in range(irs - 1):
        w, b = _conv2d_struct(rng, sub2d, H2, sub2d, H2, 1)
        wr.append(w)
        br.append(b)
    p["w_r2d"], p["b_r2d"] = np.stack(wr), np.stack(br)

    fa1w, fa1b, fa2w, fa2b, fatw, fatb = [], [], [], [], [], []
    for _ in range(irs):
        w, b = _lin(rng, sub_att, se_neur); fa1w.append(w); fa1b.append(b)
        w, b = _lin(rng, se_neur, sub_att); fa2w.append(w); fa2b.append(b)
    for _ in range(irs):
        w, b = _conv1d_k3(rng, sub_att, sub_att, fold_bn=True)
        fatw.append(w); fatb.append(b)
    p["w_fa1"], p["b_fa1"] = np.stack(fa1w), np.stack(fa1b)
    p["w_fa2"], p["b_fa2"] = np.stack(fa2w), np.stack(fa2b)
    p["w_fatd"], p["b_fatd"] = np.stack(fatw), np.stack(fatb)
    p["w_fac"], p["b_fac"] = _lin(rng, att, att)                  # conv1D: bias only

    t1w, t1b, r2w, r2b, t2w, t2b, s1w, s1b, s2w, s2b = ([] for _ in range(10))
    for i in range(1, len(channels) - 1):
        cin, cout = channels[i - 1], channels[i]
        # TODO(synk): shortcut Conv1d for cin != cout not implemented (unused here).
        assert cin == cout
        sub = cout // r2s
        w, b = _lin(rng, cin, cout, fold_bn=True);  t1w.append(w); t1b.append(b)
        for _ in range(r2s - 1):
            w, b = _conv1d_k3(rng, sub, sub, fold_bn=True)
            r2w.append(w); r2b.append(b)
        w, b = _lin(rng, cout, cout, fold_bn=True); t2w.append(w); t2b.append(b)
        w, b = _lin(rng, cout, se_ch);              s1w.append(w); s1b.append(b)
        w, b = _lin(rng, se_ch, cout);              s2w.append(w); s2b.append(b)
    p["w_td1"], p["b_td1"] = np.stack(t1w), np.stack(t1b)
    p["w_r2"], p["b_r2"] = np.stack(r2w), np.stack(r2b)
    p["w_td2"], p["b_td2"] = np.stack(t2w), np.stack(t2b)
    p["w_se1"], p["b_se1"] = np.stack(s1w), np.stack(s1b)
    p["w_se2"], p["b_se2"] = np.stack(s2w), np.stack(s2b)

    clast = channels[-1]
    assert clast == sum(channels[1:-1])
    p["w_mfa"], p["b_mfa"] = _lin(rng, clast, clast, fold_bn=True)
    p["w_atd"], p["b_atd"] = _lin(rng, 3 * clast, attn_ch, fold_bn=True)
    p["w_ac"], p["b_ac"] = _lin(rng, attn_ch, clast)
    wfc, bfc = _lin(rng, 2 * clast, lin)
    p["w_fc"] = (wfc * S_BN).astype(np.float32)   # asp_bn (inference defaults) folded
    p["b_fc"] = bfc
    return {k: jnp.asarray(v) for k, v in p.items()}


# ----------------------------------------------------------------------------
# pallas_call wrapper
# ----------------------------------------------------------------------------
def build_forward(cfg, params, batch, time_steps):
    feat = cfg["input_size"]
    lin = cfg["lin_neurons"]
    nblk = len(cfg["channels"]) - 2
    dil = tuple(cfg["dilations"][1:1 + nblk])
    # Reflect 'same' padding / roll-based shifts require d < T; keep T sublane-aligned.
    assert max(dil) < time_steps, "dilation must be smaller than sequence length"
    assert time_steps % 8 == 0, "time axis should be a multiple of 8 sublanes"
    flat = [params[k] for k in PARAM_ORDER]

    kernel = functools.partial(
        _ecapa_kernel,
        irs=cfg["input_res2net_scale"],
        r2s=cfg["res2net_scale"],
        dilations=dil,
    )

    in_specs = [pl.BlockSpec((1, time_steps, feat), lambda b: (b, 0, 0))]
    # Weights: constant index_map -> each block is DMA'd into VMEM once and
    # stays resident across all grid steps.
    for a in flat:
        in_specs.append(pl.BlockSpec(a.shape, (lambda b, _n=a.ndim: (0,) * _n)))

    call = pl.pallas_call(
        kernel,
        out_shape=jax.ShapeDtypeStruct((batch, 1, lin), jnp.float32),
        grid=(batch,),
        in_specs=in_specs,
        out_specs=pl.BlockSpec((1, 1, lin), lambda b: (b, 0, 0)),
        compiler_params=pltpu.CompilerParams(
            dimension_semantics=("parallel",)),   # v7x: 2nd TC takes the 2nd batch
    )

    def forward(x):
        return call(x, *flat)

    return forward


# ----------------------------------------------------------------------------
# Small, mutually consistent configuration
#   input_size=16 -> two stride-2 convs -> H=4;  (c_1st_conv/irs)*H = 2*4 = 8
#   = att_channel/irs = 32/4, matching the Freq_att_layer Linear dims.
# ----------------------------------------------------------------------------
CFG = dict(
    input_size=16,
    lin_neurons=24,
    channels=[32, 32, 32, 32, 96],
    kernel_sizes=[5, 3, 3, 3, 1],
    dilations=[1, 2, 3, 4, 1],
    attention_channels=16,
    res2net_scale=4,
    se_channels=16,
    c_1st_conv=8,
    input_res2net_scale=4,
    att_channel=32,
)


if __name__ == "__main__":
    B, T = 2, 16
    x = jax.random.normal(jax.random.PRNGKey(0), (B, T, CFG["input_size"]),
                          jnp.float32)
    params = make_params(CFG, seed=0)
    fwd = jax.jit(build_forward(CFG, params, B, T))
    out = jax.block_until_ready(fwd(x))

    assert out.shape == (B, 1, CFG["lin_neurons"]), out.shape
    assert bool(jnp.all(jnp.isfinite(out)))
    print("KERNEL_OK")
</pallas_src>

<mosaic_0001>
module attributes {stable_mosaic.version = 11 : i64} {
  func.func @_ecapa_kernel(%arg0: i32, %arg1: memref<1x16x16xf32, #tpu.memory_space<vmem>>, %arg2: memref<48x64xf32, #tpu.memory_space<vmem>>, %arg3: memref<1x64xf32, #tpu.memory_space<vmem>>, %arg4: memref<192x32xf32, #tpu.memory_space<vmem>>, %arg5: memref<1x32xf32, #tpu.memory_space<vmem>>, %arg6: memref<3x24x8xf32, #tpu.memory_space<vmem>>, %arg7: memref<3x1x8xf32, #tpu.memory_space<vmem>>, %arg8: memref<4x8x8xf32, #tpu.memory_space<vmem>>, %arg9: memref<4x1x8xf32, #tpu.memory_space<vmem>>, %arg10: memref<4x8x8xf32, #tpu.memory_space<vmem>>, %arg11: memref<4x1x8xf32, #tpu.memory_space<vmem>>, %arg12: memref<4x24x8xf32, #tpu.memory_space<vmem>>, %arg13: memref<4x1x8xf32, #tpu.memory_space<vmem>>, %arg14: memref<32x32xf32, #tpu.memory_space<vmem>>, %arg15: memref<1x32xf32, #tpu.memory_space<vmem>>, %arg16: memref<3x32x32xf32, #tpu.memory_space<vmem>>, %arg17: memref<3x1x32xf32, #tpu.memory_space<vmem>>, %arg18: memref<9x24x8xf32, #tpu.memory_space<vmem>>, %arg19: memref<9x1x8xf32, #tpu.memory_space<vmem>>, %arg20: memref<3x32x32xf32, #tpu.memory_space<vmem>>, %arg21: memref<3x1x32xf32, #tpu.memory_space<vmem>>, %arg22: memref<3x32x16xf32, #tpu.memory_space<vmem>>, %arg23: memref<3x1x16xf32, #tpu.memory_space<vmem>>, %arg24: memref<3x16x32xf32, #tpu.memory_space<vmem>>, %arg25: memref<3x1x32xf32, #tpu.memory_space<vmem>>, %arg26: memref<96x96xf32, #tpu.memory_space<vmem>>, %arg27: memref<1x96xf32, #tpu.memory_space<vmem>>, %arg28: memref<288x16xf32, #tpu.memory_space<vmem>>, %arg29: memref<1x16xf32, #tpu.memory_space<vmem>>, %arg30: memref<16x96xf32, #tpu.memory_space<vmem>>, %arg31: memref<1x96xf32, #tpu.memory_space<vmem>>, %arg32: memref<192x24xf32, #tpu.memory_space<vmem>>, %arg33: memref<1x24xf32, #tpu.memory_space<vmem>>, %arg34: memref<1x1x24xf32, #tpu.memory_space<vmem>>) attributes {dimension_semantics = [#tpu.dimension_semantics<parallel>], iteration_bounds = array<i64: 2>, scalar_prefetch = 0 : i64, scratch_operands = 0 : i64, tpu.core_type = #tpu.core_type<tc>, window_params = [{transform_indices = @transform_0, window_bounds = array<i64: 1, 16, 16>}, {pipeline_mode = #tpu.pipeline_mode<synchronous>, transform_indices = @transform_1, window_bounds = array<i64: 48, 64>}, {pipeline_mode = #tpu.pipeline_mode<synchronous>, transform_indices = @transform_2, window_bounds = array<i64: 1, 64>}, {pipeline_mode = #tpu.pipeline_mode<synchronous>, transform_indices = @transform_3, window_bounds = array<i64: 192, 32>}, {pipeline_mode = #tpu.pipeline_mode<synchronous>, transform_indices = @transform_4, window_bounds = array<i64: 1, 32>}, {pipeline_mode = #tpu.pipeline_mode<synchronous>, transform_indices = @transform_5, window_bounds = array<i64: 3, 24, 8>}, {pipeline_mode = #tpu.pipeline_mode<synchronous>, transform_indices = @transform_6, window_bounds = array<i64: 3, 1, 8>}, {pipeline_mode = #tpu.pipeline_mode<synchronous>, transform_indices = @transform_7, window_bounds = array<i64: 4, 8, 8>}, {pipeline_mode = #tpu.pipeline_mode<synchronous>, transform_indices = @transform_8, window_bounds = array<i64: 4, 1, 8>}, {pipeline_mode = #tpu.pipeline_mode<synchronous>, transform_indices = @transform_9, window_bounds = array<i64: 4, 8, 8>}, {pipeline_mode = #tpu.pipeline_mode<synchronous>, transform_indices = @transform_10, window_bounds = array<i64: 4, 1, 8>}, {pipeline_mode = #tpu.pipeline_mode<synchronous>, transform_indices = @transform_11, window_bounds = array<i64: 4, 24, 8>}, {pipeline_mode = #tpu.pipeline_mode<synchronous>, transform_indices = @transform_12, window_bounds = array<i64: 4, 1, 8>}, {pipeline_mode = #tpu.pipeline_mode<synchronous>, transform_indices = @transform_13, window_bounds = array<i64: 32, 32>}, {pipeline_mode = #tpu.pipeline_mode<synchronous>, transform_indices = @transform_14, window_bounds = array<i64: 1, 32>}, {pipeline_mode = #tpu.pipeline_mode<synchronous>, transform_indices = @transform_15, window_bounds = array<i64: 3, 32, 32>}, {pipeline_mode = #tpu.pipeline_mode<synchronous>, transform_indices = @transform_16, window_bounds = array<i64: 3, 1, 32>}, {pipeline_mode = #tpu.pipeline_mode<synchronous>, transform_indices = @transform_17, window_bounds = array<i64: 9, 24, 8>}, {pipeline_mode = #tpu.pipeline_mode<synchronous>, transform_indices = @transform_18, window_bounds = array<i64: 9, 1, 8>}, {pipeline_mode = #tpu.pipeline_mode<synchronous>, transform_indices = @transform_19, window_bounds = array<i64: 3, 32, 32>}, {pipeline_mode = #tpu.pipeline_mode<synchronous>, transform_indices = @transform_20, window_bounds = array<i64: 3, 1, 32>}, {pipeline_mode = #tpu.pipeline_mode<synchronous>, transform_indices = @transform_21, window_bounds = array<i64: 3, 32, 16>}, {pipeline_mode = #tpu.pipeline_mode<synchronous>, transform_indices = @transform_22, window_bounds = array<i64: 3, 1, 16>}, {pipeline_mode = #tpu.pipeline_mode<synchronous>, transform_indices = @transform_23, window_bounds = array<i64: 3, 16, 32>}, {pipeline_mode = #tpu.pipeline_mode<synchronous>, transform_indices = @transform_24, window_bounds = array<i64: 3, 1, 32>}, {pipeline_mode = #tpu.pipeline_mode<synchronous>, transform_indices = @transform_25, window_bounds = array<i64: 96, 96>}, {pipeline_mode = #tpu.pipeline_mode<synchronous>, transform_indices = @transform_26, window_bounds = array<i64: 1, 96>}, {pipeline_mode = #tpu.pipeline_mode<synchronous>, transform_indices = @transform_27, window_bounds = array<i64: 288, 16>}, {pipeline_mode = #tpu.pipeline_mode<synchronous>, transform_indices = @transform_28, window_bounds = array<i64: 1, 16>}, {pipeline_mode = #tpu.pipeline_mode<synchronous>, transform_indices = @transform_29, window_bounds = array<i64: 16, 96>}, {pipeline_mode = #tpu.pipeline_mode<synchronous>, transform_indices = @transform_30, window_bounds = array<i64: 1, 96>}, {pipeline_mode = #tpu.pipeline_mode<synchronous>, transform_indices = @transform_31, window_bounds = array<i64: 192, 24>}, {pipeline_mode = #tpu.pipeline_mode<synchronous>, transform_indices = @transform_32, window_bounds = array<i64: 1, 24>}, {transform_indices = @transform_33, window_bounds = array<i64: 1, 1, 24>}]} {
    %c0 = arith.constant 0 : index
    %c0_0 = arith.constant 0 : index
    %c0_1 = arith.constant 0 : index
    %0 = vector.load %arg1[%c0, %c0_0, %c0_1] : memref<1x16x16xf32, #tpu.memory_space<vmem>>, vector<1x16x16xf32>
    %1 = vector.shape_cast %0 : vector<1x16x16xf32> to vector<16x16xf32>
    %2 = tpu.iota {dimensions = array<i32: 0>} : vector<16x1xi32>
    %c0_2 = arith.constant 0 : index
    %c0_3 = arith.constant 0 : index
    %3 = vector.load %arg2[%c0_2, %c0_3] : memref<48x64xf32, #tpu.memory_space<vmem>>, vector<48x64xf32>
    %c0_4 = arith.constant 0 : index
    %c0_5 = arith.constant 0 : index
    %4 = vector.load %arg3[%c0_4, %c0_5] : memref<1x64xf32, #tpu.memory_space<vmem>>, vector<1x64xf32>
    %c1_i32 = arith.constant 1 : i32
    %5 = vector.broadcast %c1_i32 : i32 to vector<16x1xi32>
    %6 = arith.cmpi sge, %2, %5 : vector<16x1xi32>
    %c1_i32_6 = arith.constant 1 : i32
    %7 = tpu.dynamic_rotate %1 by %c1_i32_6 dim 0 : vector<16x16xf32>, i32 -> vector<16x16xf32>
    %cst = arith.constant 0.000000e+00 : f32
    %8 = vector.shape_cast %6 : vector<16x1xi1> to vector<16x1xi1>
    %9 = vector.broadcast %8 : vector<16x1xi1> to vector<16x16xi1>
    %10 = vector.broadcast %cst : f32 to vector<16x16xf32>
    %11 = arith.select %9, %7, %10 : vector<16x16xi1>, vector<16x16xf32>
    %c15_i32 = arith.constant 15 : i32
    %12 = vector.broadcast %c15_i32 : i32 to vector<16x1xi32>
    %13 = arith.cmpi slt, %2, %12 : vector<16x1xi32>
    %c15_i32_7 = arith.constant 15 : i32
    %14 = tpu.dynamic_rotate %1 by %c15_i32_7 dim 0 : vector<16x16xf32>, i32 -> vector<16x16xf32>
    %cst_8 = arith.constant 0.000000e+00 : f32
    %15 = vector.shape_cast %13 : vector<16x1xi1> to vector<16x1xi1>
    %16 = vector.broadcast %15 : vector<16x1xi1> to vector<16x16xi1>
    %17 = vector.broadcast %cst_8 : f32 to vector<16x16xf32>
    %18 = arith.select %16, %14, %17 : vector<16x16xi1>, vector<16x16xf32>
    %19 = tpu.concatenate %11, %1, %18 in 1 : vector<16x16xf32>, vector<16x16xf32>, vector<16x16xf32> -> vector<16x48xf32>
    %cst_9 = arith.constant dense<0.000000e+00> : vector<16x64xf32>
    %20 = tpu.matmul %19, %3, %cst_9 {dimension_numbers = #tpu.dot_dimension_numbers<[1], [0], [0], [1], [0, 0, 1, 1], [], []>} : vector<16x48xf32>, vector<48x64xf32>, vector<16x64xf32> -> vector<16x64xf32>
    %21 = vector.broadcast %4 : vector<1x64xf32> to vector<16x64xf32>
    %22 = arith.addf %20, %21 : vector<16x64xf32>
    %cst_10 = arith.constant 0.000000e+00 : f32
    %23 = vector.broadcast %cst_10 : f32 to vector<16x64xf32>
    %24 = arith.maximumf %22, %23 : vector<16x64xf32>
    %c0_11 = arith.constant 0 : index
    %c0_12 = arith.constant 0 : index
    %25 = vector.load %arg4[%c0_11, %c0_12] : memref<192x32xf32, #tpu.memory_space<vmem>>, vector<192x32xf32>
    %c0_13 = arith.constant 0 : index
    %c0_14 = arith.constant 0 : index
    %26 = vector.load %arg5[%c0_13, %c0_14] : memref<1x32xf32, #tpu.memory_space<vmem>>, vector<1x32xf32>
    %c1_i32_15 = arith.constant 1 : i32
    %27 = vector.broadcast %c1_i32_15 : i32 to vector<16x1xi32>
    %28 = arith.cmpi sge, %2, %27 : vector<16x1xi32>
    %c1_i32_16 = arith.constant 1 : i32
    %29 = tpu.dynamic_rotate %24 by %c1_i32_16 dim 0 : vector<16x64xf32>, i32 -> vector<16x64xf32>
    %cst_17 = arith.constant 0.000000e+00 : f32
    %30 = vector.shape_cast %28 : vector<16x1xi1> to vector<16x1xi1>
    %31 = vector.broadcast %30 : vector<16x1xi1> to vector<16x64xi1>
    %32 = vector.broadcast %cst_17 : f32 to vector<16x64xf32>
    %33 = arith.select %31, %29, %32 : vector<16x64xi1>, vector<16x64xf32>
    %c15_i32_18 = arith.constant 15 : i32
    %34 = vector.broadcast %c15_i32_18 : i32 to vector<16x1xi32>
    %35 = arith.cmpi slt, %2, %34 : vector<16x1xi32>
    %c15_i32_19 = arith.constant 15 : i32
    %36 = tpu.dynamic_rotate %24 by %c15_i32_19 dim 0 : vector<16x64xf32>, i32 -> vector<16x64xf32>
    %cst_20 = arith.constant 0.000000e+00 : f32
    %37 = vector.shape_cast %35 : vector<16x1xi1> to vector<16x1xi1>
    %38 = vector.broadcast %37 : vector<16x1xi1> to vector<16x64xi1>
    %39 = vector.broadcast %cst_20 : f32 to vector<16x64xf32>
    %40 = arith.select %38, %36, %39 : vector<16x64xi1>, vector<16x64xf32>
    %41 = tpu.concatenate %33, %24, %40 in 1 : vector<16x64xf32>, vector<16x64xf32>, vector<16x64xf32> -> vector<16x192xf32>
    %cst_21 = arith.constant dense<0.000000e+00> : vector<16x32xf32>
    %42 = tpu.matmul %41, %25, %cst_21 {dimension_numbers = #tpu.dot_dimension_numbers<[1], [0], [0], [1], [0, 0, 1, 1], [], []>} : vector<16x192xf32>, vector<192x32xf32>, vector<16x32xf32> -> vector<16x32xf32>
    %43 = vector.broadcast %26 : vector<1x32xf32> to vector<16x32xf32>
    %44 = arith.addf %42, %43 : vector<16x32xf32>
    %cst_22 = arith.constant 0.000000e+00 : f32
    %45 = vector.broadcast %cst_22 : f32 to vector<16x32xf32>
    %46 = arith.maximumf %44, %45 : vector<16x32xf32>
    %47 = vector.extract_strided_slice %46 {offsets = [0, 0], sizes = [16, 8], strides = [1, 1]} : vector<16x32xf32> to vector<16x8xf32>
    %48 = vector.extract_strided_slice %46 {offsets = [0, 8], sizes = [16, 8], strides = [1, 1]} : vector<16x32xf32> to vector<16x8xf32>
    %c0_23 = arith.constant 0 : index
    %c0_24 = arith.constant 0 : index
    %c0_25 = arith.constant 0 : index
    %49 = vector.load %arg6[%c0_23, %c0_24, %c0_25] : memref<3x24x8xf32, #tpu.memory_space<vmem>>, vector<1x24x8xf32>
    %50 = vector.shape_cast %49 : vector<1x24x8xf32> to vector<24x8xf32>
    %c0_26 = arith.constant 0 : index
    %c0_27 = arith.constant 0 : index
    %c0_28 = arith.constant 0 : index
    %51 = vector.load %arg7[%c0_26, %c0_27, %c0_28] : memref<3x1x8xf32, #tpu.memory_space<vmem>>, vector<1x1x8xf32>
    %52 = vector.shape_cast %51 : vector<1x1x8xf32> to vector<1x8xf32>
    %c1_i32_29 = arith.constant 1 : i32
    %53 = vector.broadcast %c1_i32_29 : i32 to vector<16x1xi32>
    %54 = arith.cmpi sge, %2, %53 : vector<16x1xi32>
    %c1_i32_30 = arith.constant 1 : i32
    %55 = tpu.dynamic_rotate %48 by %c1_i32_30 dim 0 : vector<16x8xf32>, i32 -> vector<16x8xf32>
    %cst_31 = arith.constant 0.000000e+00 : f32
    %56 = vector.shape_cast %54 : vector<16x1xi1> to vector<16x1xi1>
    %57 = vector.broadcast %56 : vector<16x1xi1> to vector<16x8xi1>
    %58 = vector.broadcast %cst_31 : f32 to vector<16x8xf32>
    %59 = arith.select %57, %55, %58 : vector<16x8xi1>, vector<16x8xf32>
    %c15_i32_32 = arith.constant 15 : i32
    %60 = vector.broadcast %c15_i32_32 : i32 to vector<16x1xi32>
    %61 = arith.cmpi slt, %2, %60 : vector<16x1xi32>
    %c15_i32_33 = arith.constant 15 : i32
    %62 = tpu.dynamic_rotate %48 by %c15_i32_33 dim 0 : vector<16x8xf32>, i32 -> vector<16x8xf32>
    %cst_34 = arith.constant 0.000000e+00 : f32
    %63 = vector.shape_cast %61 : vector<16x1xi1> to vector<16x1xi1>
    %64 = vector.broadcast %63 : vector<16x1xi1> to vector<16x8xi1>
    %65 = vector.broadcast %cst_34 : f32 to vector<16x8xf32>
    %66 = arith.select %64, %62, %65 : vector<16x8xi1>, vector<16x8xf32>
    %67 = tpu.concatenate %59, %48, %66 in 1 : vector<16x8xf32>, vector<16x8xf32>, vector<16x8xf32> -> vector<16x24xf32>
    %cst_35 = arith.constant dense<0.000000e+00> : vector<16x8xf32>
    %68 = tpu.matmul %67, %50, %cst_35 {dimension_numbers = #tpu.dot_dimension_numbers<[1], [0], [0], [1], [0, 0, 1, 1], [], []>} : vector<16x24xf32>, vector<24x8xf32>, vector<16x8xf32> -> vector<16x8xf32>
    %69 = vector.broadcast %52 : vector<1x8xf32> to vector<16x8xf32>
    %70 = arith.addf %68, %69 : vector<16x8xf32>
    %cst_36 = arith.constant 0.000000e+00 : f32
    %71 = vector.broadcast %cst_36 : f32 to vector<16x8xf32>
    %72 = arith.maximumf %70, %71 : vector<16x8xf32>
    %73 = vector.extract_strided_slice %46 {offsets = [0, 16], sizes = [16, 8], strides = [1, 1]} : vector<16x32xf32> to vector<16x8xf32>
    %74 = arith.addf %73, %72 : vector<16x8xf32>
    %c1 = arith.constant 1 : index
    %c0_37 = arith.constant 0 : index
    %c0_38 = arith.constant 0 : index
    %75 = vector.load %arg6[%c1, %c0_37, %c0_38] : memref<3x24x8xf32, #tpu.memory_space<vmem>>, vector<1x24x8xf32>
    %76 = vector.shape_cast %75 : vector<1x24x8xf32> to vector<24x8xf32>
    %c1_39 = arith.constant 1 : index
    %c0_40 = arith.constant 0 : index
    %c0_41 = arith.constant 0 : index
    %77 = vector.load %arg7[%c1_39, %c0_40, %c0_41] : memref<3x1x8xf32, #tpu.memory_space<vmem>>, vector<1x1x8xf32>
    %78 = vector.shape_cast %77 : vector<1x1x8xf32> to vector<1x8xf32>
    %c1_i32_42 = arith.constant 1 : i32
    %79 = vector.broadcast %c1_i32_42 : i32 to vector<16x1xi32>
    %80 = arith.cmpi sge, %2, %79 : vector<16x1xi32>
    %c1_i32_43 = arith.constant 1 : i32
    %81 = tpu.dynamic_rotate %74 by %c1_i32_43 dim 0 : vector<16x8xf32>, i32 -> vector<16x8xf32>
    %cst_44 = arith.constant 0.000000e+00 : f32
    %82 = vector.shape_cast %80 : vector<16x1xi1> to vector<16x1xi1>
    %83 = vector.broadcast %82 : vector<16x1xi1> to vector<16x8xi1>
    %84 = vector.broadcast %cst_44 : f32 to vector<16x8xf32>
    %85 = arith.select %83, %81, %84 : vector<16x8xi1>, vector<16x8xf32>
    %c15_i32_45 = arith.constant 15 : i32
    %86 = vector.broadcast %c15_i32_45 : i32 to vector<16x1xi32>
    %87 = arith.cmpi slt, %2, %86 : vector<16x1xi32>
    %c15_i32_46 = arith.constant 15 : i32
    %88 = tpu.dynamic_rotate %74 by %c15_i32_46 dim 0 : vector<16x8xf32>, i32 -> vector<16x8xf32>
    %cst_47 = arith.constant 0.000000e+00 : f32
    %89 = vector.shape_cast %87 : vector<16x1xi1> to vector<16x1xi1>
    %90 = vector.broadcast %89 : vector<16x1xi1> to vector<16x8xi1>
    %91 = vector.broadcast %cst_47 : f32 to vector<16x8xf32>
    %92 = arith.select %90, %88, %91 : vector<16x8xi1>, vector<16x8xf32>
    %93 = tpu.concatenate %85, %74, %92 in 1 : vector<16x8xf32>, vector<16x8xf32>, vector<16x8xf32> -> vector<16x24xf32>
    %cst_48 = arith.constant dense<0.000000e+00> : vector<16x8xf32>
    %94 = tpu.matmul %93, %76, %cst_48 {dimension_numbers = #tpu.dot_dimension_numbers<[1], [0], [0], [1], [0, 0, 1, 1], [], []>} : vector<16x24xf32>, vector<24x8xf32>, vector<16x8xf32> -> vector<16x8xf32>
    %95 = vector.broadcast %78 : vector<1x8xf32> to vector<16x8xf32>
    %96 = arith.addf %94, %95 : vector<16x8xf32>
    %cst_49 = arith.constant 0.000000e+00 : f32
    %97 = vector.broadcast %cst_49 : f32 to vector<16x8xf32>
    %98 = arith.maximumf %96, %97 : vector<16x8xf32>
    %99 = vector.extract_strided_slice %46 {offsets = [0, 24], sizes = [16, 8], strides = [1, 1]} : vector<16x32xf32> to vector<16x8xf32>
    %100 = arith.addf %99, %98 : vector<16x8xf32>
    %c2 = arith.constant 2 : index
    %c0_50 = arith.constant 0 : index
    %c0_51 = arith.constant 0 : index
    %101 = vector.load %arg6[%c2, %c0_50, %c0_51] : memref<3x24x8xf32, #tpu.memory_space<vmem>>, vector<1x24x8xf32>
    %102 = vector.shape_cast %101 : vector<1x24x8xf32> to vector<24x8xf32>
    %c2_52 = arith.constant 2 : index
    %c0_53 = arith.constant 0 : index
    %c0_54 = arith.constant 0 : index
    %103 = vector.load %arg7[%c2_52, %c0_53, %c0_54] : memref<3x1x8xf32, #tpu.memory_space<vmem>>, vector<1x1x8xf32>
    %104 = vector.shape_cast %103 : vector<1x1x8xf32> to vector<1x8xf32>
    %c1_i32_55 = arith.constant 1 : i32
    %105 = vector.broadcast %c1_i32_55 : i32 to vector<16x1xi32>
    %106 = arith.cmpi sge, %2, %105 : vector<16x1xi32>
    %c1_i32_56 = arith.constant 1 : i32
    %107 = tpu.dynamic_rotate %100 by %c1_i32_56 dim 0 : vector<16x8xf32>, i32 -> vector<16x8xf32>
    %cst_57 = arith.constant 0.000000e+00 : f32
    %108 = vector.shape_cast %106 : vector<16x1xi1> to vector<16x1xi1>
    %109 = vector.broadcast %108 : vector<16x1xi1> to vector<16x8xi1>
    %110 = vector.broadcast %cst_57 : f32 to vector<16x8xf32>
    %111 = arith.select %109, %107, %110 : vector<16x8xi1>, vector<16x8xf32>
    %c15_i32_58 = arith.constant 15 : i32
    %112 = vector.broadcast %c15_i32_58 : i32 to vector<16x1xi32>
    %113 = arith.cmpi slt, %2, %112 : vector<16x1xi32>
    %c15_i32_59 = arith.constant 15 : i32
    %114 = tpu.dynamic_rotate %100 by %c15_i32_59 dim 0 : vector<16x8xf32>, i32 -> vector<16x8xf32>
    %cst_60 = arith.constant 0.000000e+00 : f32
    %115 = vector.shape_cast %113 : vector<16x1xi1> to vector<16x1xi1>
    %116 = vector.broadcast %115 : vector<16x1xi1> to vector<16x8xi1>
    %117 = vector.broadcast %cst_60 : f32 to vector<16x8xf32>
    %118 = arith.select %116, %114, %117 : vector<16x8xi1>, vector<16x8xf32>
    %119 = tpu.concatenate %111, %100, %118 in 1 : vector<16x8xf32>, vector<16x8xf32>, vector<16x8xf32> -> vector<16x24xf32>
    %cst_61 = arith.constant dense<0.000000e+00> : vector<16x8xf32>
    %120 = tpu.matmul %119, %102, %cst_61 {dimension_numbers = #tpu.dot_dimension_numbers<[1], [0], [0], [1], [0, 0, 1, 1], [], []>} : vector<16x24xf32>, vector<24x8xf32>, vector<16x8xf32> -> vector<16x8xf32>
    %121 = vector.broadcast %104 : vector<1x8xf32> to vector<16x8xf32>
    %122 = arith.addf %120, %121 : vector<16x8xf32>
    %cst_62 = arith.constant 0.000000e+00 : f32
    %123 = vector.broadcast %cst_62 : f32 to vector<16x8xf32>
    %124 = arith.maximumf %122, %123 : vector<16x8xf32>
    %cst_63 = arith.constant dense<0.000000e+00> : vector<8xf32>
    %125 = vector.multi_reduction <add>, %47, %cst_63 [0] : vector<16x8xf32> to vector<8xf32>
    %126 = vector.shape_cast %125 : vector<8xf32> to vector<1x8xf32>
    %cst_64 = arith.constant 1.600000e+01 : f32
    %127 = vector.broadcast %cst_64 : f32 to vector<1x8xf32>
    %128 = arith.divf %126, %127 : vector<1x8xf32>
    %c0_65 = arith.constant 0 : index
    %c0_66 = arith.constant 0 : index
    %c0_67 = arith.constant 0 : index
    %129 = vector.load %arg8[%c0_65, %c0_66, %c0_67] : memref<4x8x8xf32, #tpu.memory_space<vmem>>, vector<1x8x8xf32>
    %130 = vector.shape_cast %129 : vector<1x8x8xf32> to vector<8x8xf32>
    %cst_68 = arith.constant dense<0.000000e+00> : vector<1x8xf32>
    %131 = tpu.matmul %128, %130, %cst_68 {dimension_numbers = #tpu.dot_dimension_numbers<[1], [0], [0], [1], [0, 0, 1, 1], [], []>} : vector<1x8xf32>, vector<8x8xf32>, vector<1x8xf32> -> vector<1x8xf32>
    %c0_69 = arith.constant 0 : index
    %c0_70 = arith.constant 0 : index
    %c0_71 = arith.constant 0 : index
    %132 = vector.load %arg9[%c0_69, %c0_70, %c0_71] : memref<4x1x8xf32, #tpu.memory_space<vmem>>, vector<1x1x8xf32>
    %133 = vector.shape_cast %132 : vector<1x1x8xf32> to vector<1x8xf32>
    %134 = arith.addf %131, %133 : vector<1x8xf32>
    %cst_72 = arith.constant 0.000000e+00 : f32
    %135 = vector.broadcast %cst_72 : f32 to vector<1x8xf32>
    %136 = arith.maximumf %134, %135 : vector<1x8xf32>
    %c0_73 = arith.constant 0 : index
    %c0_74 = arith.constant 0 : index
    %c0_75 = arith.constant 0 : index
    %137 = vector.load %arg10[%c0_73, %c0_74, %c0_75] : memref<4x8x8xf32, #tpu.memory_space<vmem>>, vector<1x8x8xf32>
    %138 = vector.shape_cast %137 : vector<1x8x8xf32> to vector<8x8xf32>
    %cst_76 = arith.constant dense<0.000000e+00> : vector<1x8xf32>
    %139 = tpu.matmul %136, %138, %cst_76 {dimension_numbers = #tpu.dot_dimension_numbers<[1], [0], [0], [1], [0, 0, 1, 1], [], []>} : vector<1x8xf32>, vector<8x8xf32>, vector<1x8xf32> -> vector<1x8xf32>
    %c0_77 = arith.constant 0 : index
    %c0_78 = arith.constant 0 : index
    %c0_79 = arith.constant 0 : index
    %140 = vector.load %arg11[%c0_77, %c0_78, %c0_79] : memref<4x1x8xf32, #tpu.memory_space<vmem>>, vector<1x1x8xf32>
    %141 = vector.shape_cast %140 : vector<1x1x8xf32> to vector<1x8xf32>
    %142 = arith.addf %139, %141 : vector<1x8xf32>
    %143 = arith.negf %142 : vector<1x8xf32>
    %144 = math.exp %143 : vector<1x8xf32>
    %cst_80 = arith.constant 1.000000e+00 : f32
    %145 = vector.broadcast %cst_80 : f32 to vector<1x8xf32>
    %146 = arith.addf %145, %144 : vector<1x8xf32>
    %147 = arith.divf %145, %146 : vector<1x8xf32>
    %148 = vector.broadcast %147 : vector<1x8xf32> to vector<16x8xf32>
    %149 = arith.mulf %47, %148 : vector<16x8xf32>
    %c0_81 = arith.constant 0 : index
    %c0_82 = arith.constant 0 : index
    %c0_83 = arith.constant 0 : index
    %150 = vector.load %arg12[%c0_81, %c0_82, %c0_83] : memref<4x24x8xf32, #tpu.memory_space<vmem>>, vector<1x24x8xf32>
    %151 = vector.shape_cast %150 : vector<1x24x8xf32> to vector<24x8xf32>
    %c0_84 = arith.constant 0 : index
    %c0_85 = arith.constant 0 : index
    %c0_86 = arith.constant 0 : index
    %152 = vector.load %arg13[%c0_84, %c0_85, %c0_86] : memref<4x1x8xf32, #tpu.memory_space<vmem>>, vector<1x1x8xf32>
    %153 = vector.shape_cast %152 : vector<1x1x8xf32> to vector<1x8xf32>
    %c1_i32_87 = arith.constant 1 : i32
    %154 = tpu.dynamic_rotate %149 by %c1_i32_87 dim 0 : vector<16x8xf32>, i32 -> vector<16x8xf32>
    %c15_i32_88 = arith.constant 15 : i32
    %155 = tpu.dynamic_rotate %149 by %c15_i32_88 dim 0 : vector<16x8xf32>, i32 -> vector<16x8xf32>
    %c0_i32 = arith.constant 0 : i32
    %156 = vector.broadcast %c0_i32 : i32 to vector<16x1xi32>
    %157 = arith.cmpi eq, %2, %156 : vector<16x1xi32>
    %158 = vector.shape_cast %157 : vector<16x1xi1> to vector<16x1xi1>
    %159 = vector.broadcast %158 : vector<16x1xi1> to vector<16x8xi1>
    %160 = arith.select %159, %155, %154 : vector<16x8xi1>, vector<16x8xf32>
    %c15_i32_89 = arith.constant 15 : i32
    %161 = vector.broadcast %c15_i32_89 : i32 to vector<16x1xi32>
    %162 = arith.cmpi eq, %2, %161 : vector<16x1xi32>
    %163 = vector.shape_cast %162 : vector<16x1xi1> to vector<16x1xi1>
    %164 = vector.broadcast %163 : vector<16x1xi1> to vector<16x8xi1>
    %165 = arith.select %164, %154, %155 : vector<16x8xi1>, vector<16x8xf32>
    %166 = tpu.concatenate %160, %149, %165 in 1 : vector<16x8xf32>, vector<16x8xf32>, vector<16x8xf32> -> vector<16x24xf32>
    %cst_90 = arith.constant dense<0.000000e+00> : vector<16x8xf32>
    %167 = tpu.matmul %166, %151, %cst_90 {dimension_numbers = #tpu.dot_dimension_numbers<[1], [0], [0], [1], [0, 0, 1, 1], [], []>} : vector<16x24xf32>, vector<24x8xf32>, vector<16x8xf32> -> vector<16x8xf32>
    %168 = vector.broadcast %153 : vector<1x8xf32> to vector<16x8xf32>
    %169 = arith.addf %167, %168 : vector<16x8xf32>
    %cst_91 = arith.constant 0.000000e+00 : f32
    %170 = vector.broadcast %cst_91 : f32 to vector<16x8xf32>
    %171 = arith.maximumf %169, %170 : vector<16x8xf32>
    %172 = arith.addf %72, %171 : vector<16x8xf32>
    %cst_92 = arith.constant dense<0.000000e+00> : vector<8xf32>
    %173 = vector.multi_reduction <add>, %172, %cst_92 [0] : vector<16x8xf32> to vector<8xf32>
    %174 = vector.shape_cast %173 : vector<8xf32> to vector<1x8xf32>
    %cst_93 = arith.constant 1.600000e+01 : f32
    %175 = vector.broadcast %cst_93 : f32 to vector<1x8xf32>
    %176 = arith.divf %174, %175 : vector<1x8xf32>
    %c1_94 = arith.constant 1 : index
    %c0_95 = arith.constant 0 : index
    %c0_96 = arith.constant 0 : index
    %177 = vector.load %arg8[%c1_94, %c0_95, %c0_96] : memref<4x8x8xf32, #tpu.memory_space<vmem>>, vector<1x8x8xf32>
    %178 = vector.shape_cast %177 : vector<1x8x8xf32> to vector<8x8xf32>
    %cst_97 = arith.constant dense<0.000000e+00> : vector<1x8xf32>
    %179 = tpu.matmul %176, %178, %cst_97 {dimension_numbers = #tpu.dot_dimension_numbers<[1], [0], [0], [1], [0, 0, 1, 1], [], []>} : vector<1x8xf32>, vector<8x8xf32>, vector<1x8xf32> -> vector<1x8xf32>
    %c1_98 = arith.constant 1 : index
    %c0_99 = arith.constant 0 : index
    %c0_100 = arith.constant 0 : index
    %180 = vector.load %arg9[%c1_98, %c0_99, %c0_100] : memref<4x1x8xf32, #tpu.memory_space<vmem>>, vector<1x1x8xf32>
    %181 = vector.shape_cast %180 : vector<1x1x8xf32> to vector<1x8xf32>
    %182 = arith.addf %179, %181 : vector<1x8xf32>
    %cst_101 = arith.constant 0.000000e+00 : f32
    %183 = vector.broadcast %cst_101 : f32 to vector<1x8xf32>
    %184 = arith.maximumf %182, %183 : vector<1x8xf32>
    %c1_102 = arith.constant 1 : index
    %c0_103 = arith.constant 0 : index
    %c0_104 = arith.constant 0 : index
    %185 = vector.load %arg10[%c1_102, %c0_103, %c0_104] : memref<4x8x8xf32, #tpu.memory_space<vmem>>, vector<1x8x8xf32>
    %186 = vector.shape_cast %185 : vector<1x8x8xf32> to vector<8x8xf32>
    %cst_105 = arith.constant dense<0.000000e+00> : vector<1x8xf32>
    %187 = tpu.matmul %184, %186, %cst_105 {dimension_numbers = #tpu.dot_dimension_numbers<[1], [0], [0], [1], [0, 0, 1, 1], [], []>} : vector<1x8xf32>, vector<8x8xf32>, vector<1x8xf32> -> vector<1x8xf32>
    %c1_106 = arith.constant 1 : index
    %c0_107 = arith.constant 0 : index
    %c0_108 = arith.constant 0 : index
    %188 = vector.load %arg11[%c1_106, %c0_107, %c0_108] : memref<4x1x8xf32, #tpu.memory_space<vmem>>, vector<1x1x8xf32>
    %189 = vector.shape_cast %188 : vector<1x1x8xf32> to vector<1x8xf32>
    %190 = arith.addf %187, %189 : vector<1x8xf32>
    %191 = arith.negf %190 : vector<1x8xf32>
    %192 = math.exp %191 : vector<1x8xf32>
    %cst_109 = arith.constant 1.000000e+00 : f32
    %193 = vector.broadcast %cst_109 : f32 to vector<1x8xf32>
    %194 = arith.addf %193, %192 : vector<1x8xf32>
    %195 = arith.divf %193, %194 : vector<1x8xf32>
    %196 = vector.broadcast %195 : vector<1x8xf32> to vector<16x8xf32>
    %197 = arith.mulf %172, %196 : vector<16x8xf32>
    %c1_110 = arith.constant 1 : index
    %c0_111 = arith.constant 0 : index
    %c0_112 = arith.constant 0 : index
    %198 = vector.load %arg12[%c1_110, %c0_111, %c0_112] : memref<4x24x8xf32, #tpu.memory_space<vmem>>, vector<1x24x8xf32>
    %199 = vector.shape_cast %198 : vector<1x24x8xf32> to vector<24x8xf32>
    %c1_113 = arith.constant 1 : index
    %c0_114 = arith.constant 0 : index
    %c0_115 = arith.constant 0 : index
    %200 = vector.load %arg13[%c1_113, %c0_114, %c0_115] : memref<4x1x8xf32, #tpu.memory_space<vmem>>, vector<1x1x8xf32>
    %201 = vector.shape_cast %200 : vector<1x1x8xf32> to vector<1x8xf32>
    %c1_i32_116 = arith.constant 1 : i32
    %202 = tpu.dynamic_rotate %197 by %c1_i32_116 dim 0 : vector<16x8xf32>, i32 -> vector<16x8xf32>
    %c15_i32_117 = arith.constant 15 : i32
    %203 = tpu.dynamic_rotate %197 by %c15_i32_117 dim 0 : vector<16x8xf32>, i32 -> vector<16x8xf32>
    %c0_i32_118 = arith.constant 0 : i32
    %204 = vector.broadcast %c0_i32_118 : i32 to vector<16x1xi32>
    %205 = arith.cmpi eq, %2, %204 : vector<16x1xi32>
    %206 = vector.shape_cast %205 : vector<16x1xi1> to vector<16x1xi1>
    %207 = vector.broadcast %206 : vector<16x1xi1> to vector<16x8xi1>
    %208 = arith.select %207, %203, %202 : vector<16x8xi1>, vector<16x8xf32>
    %c15_i32_119 = arith.constant 15 : i32
    %209 = vector.broadcast %c15_i32_119 : i32 to vector<16x1xi32>
    %210 = arith.cmpi eq, %2, %209 : vector<16x1xi32>
    %211 = vector.shape_cast %210 : vector<16x1xi1> to vector<16x1xi1>
    %212 = vector.broadcast %211 : vector<16x1xi1> to vector<16x8xi1>
    %213 = arith.select %212, %202, %203 : vector<16x8xi1>, vector<16x8xf32>
    %214 = tpu.concatenate %208, %197, %213 in 1 : vector<16x8xf32>, vector<16x8xf32>, vector<16x8xf32> -> vector<16x24xf32>
    %cst_120 = arith.constant dense<0.000000e+00> : vector<16x8xf32>
    %215 = tpu.matmul %214, %199, %cst_120 {dimension_numbers = #tpu.dot_dimension_numbers<[1], [0], [0], [1], [0, 0, 1, 1], [], []>} : vector<16x24xf32>, vector<24x8xf32>, vector<16x8xf32> -> vector<16x8xf32>
    %216 = vector.broadcast %201 : vector<1x8xf32> to vector<16x8xf32>
    %217 = arith.addf %215, %216 : vector<16x8xf32>
    %cst_121 = arith.constant 0.000000e+00 : f32
    %218 = vector.broadcast %cst_121 : f32 to vector<16x8xf32>
    %219 = arith.maximumf %217, %218 : vector<16x8xf32>
    %220 = arith.addf %98, %219 : vector<16x8xf32>
    %cst_122 = arith.constant dense<0.000000e+00> : vector<8xf32>
    %221 = vector.multi_reduction <add>, %220, %cst_122 [0] : vector<16x8xf32> to vector<8xf32>
    %222 = vector.shape_cast %221 : vector<8xf32> to vector<1x8xf32>
    %cst_123 = arith.constant 1.600000e+01 : f32
    %223 = vector.broadcast %cst_123 : f32 to vector<1x8xf32>
    %224 = arith.divf %222, %223 : vector<1x8xf32>
    %c2_124 = arith.constant 2 : index
    %c0_125 = arith.constant 0 : index
    %c0_126 = arith.constant 0 : index
    %225 = vector.load %arg8[%c2_124, %c0_125, %c0_126] : memref<4x8x8xf32, #tpu.memory_space<vmem>>, vector<1x8x8xf32>
    %226 = vector.shape_cast %225 : vector<1x8x8xf32> to vector<8x8xf32>
    %cst_127 = arith.constant dense<0.000000e+00> : vector<1x8xf32>
    %227 = tpu.matmul %224, %226, %cst_127 {dimension_numbers = #tpu.dot_dimension_numbers<[1], [0], [0], [1], [0, 0, 1, 1], [], []>} : vector<1x8xf32>, vector<8x8xf32>, vector<1x8xf32> -> vector<1x8xf32>
    %c2_128 = arith.constant 2 : index
    %c0_129 = arith.constant 0 : index
    %c0_130 = arith.constant 0 : index
    %228 = vector.load %arg9[%c2_128, %c0_129, %c0_130] : memref<4x1x8xf32, #tpu.memory_space<vmem>>, vector<1x1x8xf32>
    %229 = vector.shape_cast %228 : vector<1x1x8xf32> to vector<1x8xf32>
    %230 = arith.addf %227, %229 : vector<1x8xf32>
    %cst_131 = arith.constant 0.000000e+00 : f32
    %231 = vector.broadcast %cst_131 : f32 to vector<1x8xf32>
    %232 = arith.maximumf %230, %231 : vector<1x8xf32>
    %c2_132 = arith.constant 2 : index
    %c0_133 = arith.constant 0 : index
    %c0_134 = arith.constant 0 : index
    %233 = vector.load %arg10[%c2_132, %c0_133, %c0_134] : memref<4x8x8xf32, #tpu.memory_space<vmem>>, vector<1x8x8xf32>
    %234 = vector.shape_cast %233 : vector<1x8x8xf32> to vector<8x8xf32>
    %cst_135 = arith.constant dense<0.000000e+00> : vector<1x8xf32>
    %235 = tpu.matmul %232, %234, %cst_135 {dimension_numbers = #tpu.dot_dimension_numbers<[1], [0], [0], [1], [0, 0, 1, 1], [], []>} : vector<1x8xf32>, vector<8x8xf32>, vector<1x8xf32> -> vector<1x8xf32>
    %c2_136 = arith.constant 2 : index
    %c0_137 = arith.constant 0 : index
    %c0_138 = arith.constant 0 : index
    %236 = vector.load %arg11[%c2_136, %c0_137, %c0_138] : memref<4x1x8xf32, #tpu.memory_space<vmem>>, vector<1x1x8xf32>
    %237 = vector.shape_cast %236 : vector<1x1x8xf32> to vector<1x8xf32>
    %238 = arith.addf %235, %237 : vector<1x8xf32>
    %239 = arith.negf %238 : vector<1x8xf32>
    %240 = math.exp %239 : vector<1x8xf32>
    %cst_139 = arith.constant 1.000000e+00 : f32
    %241 = vector.broadcast %cst_139 : f32 to vector<1x8xf32>
    %242 = arith.addf %241, %240 : vector<1x8xf32>
    %243 = arith.divf %241, %242 : vector<1x8xf32>
    %244 = vector.broadcast %243 : vector<1x8xf32> to vector<16x8xf32>
    %245 = arith.mulf %220, %244 : vector<16x8xf32>
    %c2_140 = arith.constant 2 : index
    %c0_141 = arith.constant 0 : index
    %c0_142 = arith.constant 0 : index
    %246 = vector.load %arg12[%c2_140, %c0_141, %c0_142] : memref<4x24x8xf32, #tpu.memory_space<vmem>>, vector<1x24x8xf32>
    %247 = vector.shape_cast %246 : vector<1x24x8xf32> to vector<24x8xf32>
    %c2_143 = arith.constant 2 : index
    %c0_144 = arith.constant 0 : index
    %c0_145 = arith.constant 0 : index
    %248 = vector.load %arg13[%c2_143, %c0_144, %c0_145] : memref<4x1x8xf32, #tpu.memory_space<vmem>>, vector<1x1x8xf32>
    %249 = vector.shape_cast %248 : vector<1x1x8xf32> to vector<1x8xf32>
    %c1_i32_146 = arith.constant 1 : i32
    %250 = tpu.dynamic_rotate %245 by %c1_i32_146 dim 0 : vector<16x8xf32>, i32 -> vector<16x8xf32>
    %c15_i32_147 = arith.constant 15 : i32
    %251 = tpu.dynamic_rotate %245 by %c15_i32_147 dim 0 : vector<16x8xf32>, i32 -> vector<16x8xf32>
    %c0_i32_148 = arith.constant 0 : i32
    %252 = vector.broadcast %c0_i32_148 : i32 to vector<16x1xi32>
    %253 = arith.cmpi eq, %2, %252 : vector<16x1xi32>
    %254 = vector.shape_cast %253 : vector<16x1xi1> to vector<16x1xi1>
    %255 = vector.broadcast %254 : vector<16x1xi1> to vector<16x8xi1>
    %256 = arith.select %255, %251, %250 : vector<16x8xi1>, vector<16x8xf32>
    %c15_i32_149 = arith.constant 15 : i32
    %257 = vector.broadcast %c15_i32_149 : i32 to vector<16x1xi32>
    %258 = arith.cmpi eq, %2, %257 : vector<16x1xi32>
    %259 = vector.shape_cast %258 : vector<16x1xi1> to vector<16x1xi1>
    %260 = vector.broadcast %259 : vector<16x1xi1> to vector<16x8xi1>
    %261 = arith.select %260, %250, %251 : vector<16x8xi1>, vector<16x8xf32>
    %262 = tpu.concatenate %256, %245, %261 in 1 : vector<16x8xf32>, vector<16x8xf32>, vector<16x8xf32> -> vector<16x24xf32>
    %cst_150 = arith.constant dense<0.000000e+00> : vector<16x8xf32>
    %263 = tpu.matmul %262, %247, %cst_150 {dimension_numbers = #tpu.dot_dimension_numbers<[1], [0], [0], [1], [0, 0, 1, 1], [], []>} : vector<16x24xf32>, vector<24x8xf32>, vector<16x8xf32> -> vector<16x8xf32>
    %264 = vector.broadcast %249 : vector<1x8xf32> to vector<16x8xf32>
    %265 = arith.addf %263, %264 : vector<16x8xf32>
    %cst_151 = arith.constant 0.000000e+00 : f32
    %266 = vector.broadcast %cst_151 : f32 to vector<16x8xf32>
    %267 = arith.maximumf %265, %266 : vector<16x8xf32>
    %268 = arith.addf %124, %267 : vector<16x8xf32>
    %cst_152 = arith.constant dense<0.000000e+00> : vector<8xf32>
    %269 = vector.multi_reduction <add>, %268, %cst_152 [0] : vector<16x8xf32> to vector<8xf32>
    %270 = vector.shape_cast %269 : vector<8xf32> to vector<1x8xf32>
    %cst_153 = arith.constant 1.600000e+01 : f32
    %271 = vector.broadcast %cst_153 : f32 to vector<1x8xf32>
    %272 = arith.divf %270, %271 : vector<1x8xf32>
    %c3 = arith.constant 3 : index
    %c0_154 = arith.constant 0 : index
    %c0_155 = arith.constant 0 : index
    %273 = vector.load %arg8[%c3, %c0_154, %c0_155] : memref<4x8x8xf32, #tpu.memory_space<vmem>>, vector<1x8x8xf32>
    %274 = vector.shape_cast %273 : vector<1x8x8xf32> to vector<8x8xf32>
    %cst_156 = arith.constant dense<0.000000e+00> : vector<1x8xf32>
    %275 = tpu.matmul %272, %274, %cst_156 {dimension_numbers = #tpu.dot_dimension_numbers<[1], [0], [0], [1], [0, 0, 1, 1], [], []>} : vector<1x8xf32>, vector<8x8xf32>, vector<1x8xf32> -> vector<1x8xf32>
    %c3_157 = arith.constant 3 : index
    %c0_158 = arith.constant 0 : index
    %c0_159 = arith.constant 0 : index
    %276 = vector.load %arg9[%c3_157, %c0_158, %c0_159] : memref<4x1x8xf32, #tpu.memory_space<vmem>>, vector<1x1x8xf32>
    %277 = vector.shape_cast %276 : vector<1x1x8xf32> to vector<1x8xf32>
    %278 = arith.addf %275, %277 : vector<1x8xf32>
    %cst_160 = arith.constant 0.000000e+00 : f32
    %279 = vector.broadcast %cst_160 : f32 to vector<1x8xf32>
    %280 = arith.maximumf %278, %279 : vector<1x8xf32>
    %c3_161 = arith.constant 3 : index
    %c0_162 = arith.constant 0 : index
    %c0_163 = arith.constant 0 : index
    %281 = vector.load %arg10[%c3_161, %c0_162, %c0_163] : memref<4x8x8xf32, #tpu.memory_space<vmem>>, vector<1x8x8xf32>
    %282 = vector.shape_cast %281 : vector<1x8x8xf32> to vector<8x8xf32>
    %cst_164 = arith.constant dense<0.000000e+00> : vector<1x8xf32>
    %283 = tpu.matmul %280, %282, %cst_164 {dimension_numbers = #tpu.dot_dimension_numbers<[1], [0], [0], [1], [0, 0, 1, 1], [], []>} : vector<1x8xf32>, vector<8x8xf32>, vector<1x8xf32> -> vector<1x8xf32>
    %c3_165 = arith.constant 3 : index
    %c0_166 = arith.constant 0 : index
    %c0_167 = arith.constant 0 : index
    %284 = vector.load %arg11[%c3_165, %c0_166, %c0_167] : memref<4x1x8xf32, #tpu.memory_space<vmem>>, vector<1x1x8xf32>
    %285 = vector.shape_cast %284 : vector<1x1x8xf32> to vector<1x8xf32>
    %286 = arith.addf %283, %285 : vector<1x8xf32>
    %287 = arith.negf %286 : vector<1x8xf32>
    %288 = math.exp %287 : vector<1x8xf32>
    %cst_168 = arith.constant 1.000000e+00 : f32
    %289 = vector.broadcast %cst_168 : f32 to vector<1x8xf32>
    %290 = arith.addf %289, %288 : vector<1x8xf32>
    %291 = arith.divf %289, %290 : vector<1x8xf32>
    %292 = vector.broadcast %291 : vector<1x8xf32> to vector<16x8xf32>
    %293 = arith.mulf %268, %292 : vector<16x8xf32>
    %c3_169 = arith.constant 3 : index
    %c0_170 = arith.constant 0 : index
    %c0_171 = arith.constant 0 : index
    %294 = vector.load %arg12[%c3_169, %c0_170, %c0_171] : memref<4x24x8xf32, #tpu.memory_space<vmem>>, vector<1x24x8xf32>
    %295 = vector.shape_cast %294 : vector<1x24x8xf32> to vector<24x8xf32>
    %c3_172 = arith.constant 3 : index
    %c0_173 = arith.constant 0 : index
    %c0_174 = arith.constant 0 : index
    %296 = vector.load %arg13[%c3_172, %c0_173, %c0_174] : memref<4x1x8xf32, #tpu.memory_space<vmem>>, vector<1x1x8xf32>
    %297 = vector.shape_cast %296 : vector<1x1x8xf32> to vector<1x8xf32>
    %c1_i32_175 = arith.constant 1 : i32
    %298 = tpu.dynamic_rotate %293 by %c1_i32_175 dim 0 : vector<16x8xf32>, i32 -> vector<16x8xf32>
    %c15_i32_176 = arith.constant 15 : i32
    %299 = tpu.dynamic_rotate %293 by %c15_i32_176 dim 0 : vector<16x8xf32>, i32 -> vector<16x8xf32>
    %c0_i32_177 = arith.constant 0 : i32
    %300 = vector.broadcast %c0_i32_177 : i32 to vector<16x1xi32>
    %301 = arith.cmpi eq, %2, %300 : vector<16x1xi32>
    %302 = vector.shape_cast %301 : vector<16x1xi1> to vector<16x1xi1>
    %303 = vector.broadcast %302 : vector<16x1xi1> to vector<16x8xi1>
    %304 = arith.select %303, %299, %298 : vector<16x8xi1>, vector<16x8xf32>
    %c15_i32_178 = arith.constant 15 : i32
    %305 = vector.broadcast %c15_i32_178 : i32 to vector<16x1xi32>
    %306 = arith.cmpi eq, %2, %305 : vector<16x1xi32>
    %307 = vector.shape_cast %306 : vector<16x1xi1> to vector<16x1xi1>
    %308 = vector.broadcast %307 : vector<16x1xi1> to vector<16x8xi1>
    %309 = arith.select %308, %298, %299 : vector<16x8xi1>, vector<16x8xf32>
    %310 = tpu.concatenate %304, %293, %309 in 1 : vector<16x8xf32>, vector<16x8xf32>, vector<16x8xf32> -> vector<16x24xf32>
    %cst_179 = arith.constant dense<0.000000e+00> : vector<16x8xf32>
    %311 = tpu.matmul %310, %295, %cst_179 {dimension_numbers = #tpu.dot_dimension_numbers<[1], [0], [0], [1], [0, 0, 1, 1], [], []>} : vector<16x24xf32>, vector<24x8xf32>, vector<16x8xf32> -> vector<16x8xf32>
    %312 = vector.broadcast %297 : vector<1x8xf32> to vector<16x8xf32>
    %313 = arith.addf %311, %312 : vector<16x8xf32>
    %cst_180 = arith.constant 0.000000e+00 : f32
    %314 = vector.broadcast %cst_180 : f32 to vector<16x8xf32>
    %315 = arith.maximumf %313, %314 : vector<16x8xf32>
    %316 = tpu.concatenate %171, %219, %267, %315 in 1 : vector<16x8xf32>, vector<16x8xf32>, vector<16x8xf32>, vector<16x8xf32> -> vector<16x32xf32>
    %317 = tpu.concatenate %47, %72, %98, %124 in 1 : vector<16x8xf32>, vector<16x8xf32>, vector<16x8xf32>, vector<16x8xf32> -> vector<16x32xf32>
    %c0_181 = arith.constant 0 : index
    %c0_182 = arith.constant 0 : index
    %318 = vector.load %arg14[%c0_181, %c0_182] : memref<32x32xf32, #tpu.memory_space<vmem>>, vector<32x32xf32>
    %cst_183 = arith.constant dense<0.000000e+00> : vector<16x32xf32>
    %319 = tpu.matmul %316, %318, %cst_183 {dimension_numbers = #tpu.dot_dimension_numbers<[1], [0], [0], [1], [0, 0, 1, 1], [], []>} : vector<16x32xf32>, vector<32x32xf32>, vector<16x32xf32> -> vector<16x32xf32>
    %c0_184 = arith.constant 0 : index
    %c0_185 = arith.constant 0 : index
    %320 = vector.load %arg15[%c0_184, %c0_185] : memref<1x32xf32, #tpu.memory_space<vmem>>, vector<1x32xf32>
    %321 = vector.broadcast %320 : vector<1x32xf32> to vector<16x32xf32>
    %322 = arith.addf %319, %321 : vector<16x32xf32>
    %323 = arith.addf %322, %317 : vector<16x32xf32>
    %c0_186 = arith.constant 0 : index
    %c0_187 = arith.constant 0 : index
    %c0_188 = arith.constant 0 : index
    %324 = vector.load %arg16[%c0_186, %c0_187, %c0_188] : memref<3x32x32xf32, #tpu.memory_space<vmem>>, vector<1x32x32xf32>
    %325 = vector.shape_cast %324 : vector<1x32x32xf32> to vector<32x32xf32>
    %cst_189 = arith.constant dense<0.000000e+00> : vector<16x32xf32>
    %326 = tpu.matmul %323, %325, %cst_189 {dimension_numbers = #tpu.dot_dimension_numbers<[1], [0], [0], [1], [0, 0, 1, 1], [], []>} : vector<16x32xf32>, vector<32x32xf32>, vector<16x32xf32> -> vector<16x32xf32>
    %c0_190 = arith.constant 0 : index
    %c0_191 = arith.constant 0 : index
    %c0_192 = arith.constant 0 : index
    %327 = vector.load %arg17[%c0_190, %c0_191, %c0_192] : memref<3x1x32xf32, #tpu.memory_space<vmem>>, vector<1x1x32xf32>
    %328 = vector.shape_cast %327 : vector<1x1x32xf32> to vector<1x32xf32>
    %329 = vector.broadcast %328 : vector<1x32xf32> to vector<16x32xf32>
    %330 = arith.addf %326, %329 : vector<16x32xf32>
    %cst_193 = arith.constant 0.000000e+00 : f32
    %331 = vector.broadcast %cst_193 : f32 to vector<16x32xf32>
    %332 = arith.maximumf %330, %331 : vector<16x32xf32>
    %333 = vector.extract_strided_slice %332 {offsets = [0, 0], sizes = [16, 8], strides = [1, 1]} : vector<16x32xf32> to vector<16x8xf32>
    %334 = vector.extract_strided_slice %332 {offsets = [0, 8], sizes = [16, 8], strides = [1, 1]} : vector<16x32xf32> to vector<16x8xf32>
    %c0_194 = arith.constant 0 : index
    %c0_195 = arith.constant 0 : index
    %c0_196 = arith.constant 0 : index
    %335 = vector.load %arg18[%c0_194, %c0_195, %c0_196] : memref<9x24x8xf32, #tpu.memory_space<vmem>>, vector<1x24x8xf32>
    %336 = vector.shape_cast %335 : vector<1x24x8xf32> to vector<24x8xf32>
    %c0_197 = arith.constant 0 : index
    %c0_198 = arith.constant 0 : index
    %c0_199 = arith.constant 0 : index
    %337 = vector.load %arg19[%c0_197, %c0_198, %c0_199] : memref<9x1x8xf32, #tpu.memory_space<vmem>>, vector<1x1x8xf32>
    %338 = vector.shape_cast %337 : vector<1x1x8xf32> to vector<1x8xf32>
    %c2_i32 = arith.constant 2 : i32
    %339 = tpu.dynamic_rotate %334 by %c2_i32 dim 0 : vector<16x8xf32>, i32 -> vector<16x8xf32>
    %c14_i32 = arith.constant 14 : i32
    %340 = tpu.dynamic_rotate %334 by %c14_i32 dim 0 : vector<16x8xf32>, i32 -> vector<16x8xf32>
    %c0_i32_200 = arith.constant 0 : i32
    %341 = vector.broadcast %c0_i32_200 : i32 to vector<16x1xi32>
    %342 = arith.cmpi eq, %2, %341 : vector<16x1xi32>
    %343 = vector.shape_cast %342 : vector<16x1xi1> to vector<16x1xi1>
    %344 = vector.broadcast %343 : vector<16x1xi1> to vector<16x8xi1>
    %345 = arith.select %344, %340, %339 : vector<16x8xi1>, vector<16x8xf32>
    %c1_i32_201 = arith.constant 1 : i32
    %346 = vector.broadcast %c1_i32_201 : i32 to vector<16x1xi32>
    %347 = arith.cmpi eq, %2, %346 : vector<16x1xi32>
    %348 = vector.shape_cast %347 : vector<16x1xi1> to vector<16x1xi1>
    %349 = vector.broadcast %348 : vector<16x1xi1> to vector<16x8xi1>
    %350 = arith.select %349, %334, %345 : vector<16x8xi1>, vector<16x8xf32>
    %c14_i32_202 = arith.constant 14 : i32
    %351 = vector.broadcast %c14_i32_202 : i32 to vector<16x1xi32>
    %352 = arith.cmpi eq, %2, %351 : vector<16x1xi32>
    %353 = vector.shape_cast %352 : vector<16x1xi1> to vector<16x1xi1>
    %354 = vector.broadcast %353 : vector<16x1xi1> to vector<16x8xi1>
    %355 = arith.select %354, %334, %340 : vector<16x8xi1>, vector<16x8xf32>
    %c15_i32_203 = arith.constant 15 : i32
    %356 = vector.broadcast %c15_i32_203 : i32 to vector<16x1xi32>
    %357 = arith.cmpi eq, %2, %356 : vector<16x1xi32>
    %358 = vector.shape_cast %357 : vector<16x1xi1> to vector<16x1xi1>
    %359 = vector.broadcast %358 : vector<16x1xi1> to vector<16x8xi1>
    %360 = arith.select %359, %339, %355 : vector<16x8xi1>, vector<16x8xf32>
    %361 = tpu.concatenate %350, %334, %360 in 1 : vector<16x8xf32>, vector<16x8xf32>, vector<16x8xf32> -> vector<16x24xf32>
    %cst_204 = arith.constant dense<0.000000e+00> : vector<16x8xf32>
    %362 = tpu.matmul %361, %336, %cst_204 {dimension_numbers = #tpu.dot_dimension_numbers<[1], [0], [0], [1], [0, 0, 1, 1], [], []>} : vector<16x24xf32>, vector<24x8xf32>, vector<16x8xf32> -> vector<16x8xf32>
    %363 = vector.broadcast %338 : vector<1x8xf32> to vector<16x8xf32>
    %364 = arith.addf %362, %363 : vector<16x8xf32>
    %cst_205 = arith.constant 0.000000e+00 : f32
    %365 = vector.broadcast %cst_205 : f32 to vector<16x8xf32>
    %366 = arith.maximumf %364, %365 : vector<16x8xf32>
    %367 = vector.extract_strided_slice %332 {offsets = [0, 16], sizes = [16, 8], strides = [1, 1]} : vector<16x32xf32> to vector<16x8xf32>
    %368 = arith.addf %367, %366 : vector<16x8xf32>
    %c1_206 = arith.constant 1 : index
    %c0_207 = arith.constant 0 : index
    %c0_208 = arith.constant 0 : index
    %369 = vector.load %arg18[%c1_206, %c0_207, %c0_208] : memref<9x24x8xf32, #tpu.memory_space<vmem>>, vector<1x24x8xf32>
    %370 = vector.shape_cast %369 : vector<1x24x8xf32> to vector<24x8xf32>
    %c1_209 = arith.constant 1 : index
    %c0_210 = arith.constant 0 : index
    %c0_211 = arith.constant 0 : index
    %371 = vector.load %arg19[%c1_209, %c0_210, %c0_211] : memref<9x1x8xf32, #tpu.memory_space<vmem>>, vector<1x1x8xf32>
    %372 = vector.shape_cast %371 : vector<1x1x8xf32> to vector<1x8xf32>
    %c2_i32_212 = arith.constant 2 : i32
    %373 = tpu.dynamic_rotate %368 by %c2_i32_212 dim 0 : vector<16x8xf32>, i32 -> vector<16x8xf32>
    %c14_i32_213 = arith.constant 14 : i32
    %374 = tpu.dynamic_rotate %368 by %c14_i32_213 dim 0 : vector<16x8xf32>, i32 -> vector<16x8xf32>
    %c0_i32_214 = arith.constant 0 : i32
    %375 = vector.broadcast %c0_i32_214 : i32 to vector<16x1xi32>
    %376 = arith.cmpi eq, %2, %375 : vector<16x1xi32>
    %377 = vector.shape_cast %376 : vector<16x1xi1> to vector<16x1xi1>
    %378 = vector.broadcast %377 : vector<16x1xi1> to vector<16x8xi1>
    %379 = arith.select %378, %374, %373 : vector<16x8xi1>, vector<16x8xf32>
    %c1_i32_215 = arith.constant 1 : i32
    %380 = vector.broadcast %c1_i32_215 : i32 to vector<16x1xi32>
    %381 = arith.cmpi eq, %2, %380 : vector<16x1xi32>
    %382 = vector.shape_cast %381 : vector<16x1xi1> to vector<16x1xi1>
    %383 = vector.broadcast %382 : vector<16x1xi1> to vector<16x8xi1>
    %384 = arith.select %383, %368, %379 : vector<16x8xi1>, vector<16x8xf32>
    %c14_i32_216 = arith.constant 14 : i32
    %385 = vector.broadcast %c14_i32_216 : i32 to vector<16x1xi32>
    %386 = arith.cmpi eq, %2, %385 : vector<16x1xi32>
    %387 = vector.shape_cast %386 : vector<16x1xi1> to vector<16x1xi1>
    %388 = vector.broadcast %387 : vector<16x1xi1> to vector<16x8xi1>
    %389 = arith.select %388, %368, %374 : vector<16x8xi1>, vector<16x8xf32>
    %c15_i32_217 = arith.constant 15 : i32
    %390 = vector.broadcast %c15_i32_217 : i32 to vector<16x1xi32>
    %391 = arith.cmpi eq, %2, %390 : vector<16x1xi32>
    %392 = vector.shape_cast %391 : vector<16x1xi1> to vector<16x1xi1>
    %393 = vector.broadcast %392 : vector<16x1xi1> to vector<16x8xi1>
    %394 = arith.select %393, %373, %389 : vector<16x8xi1>, vector<16x8xf32>
    %395 = tpu.concatenate %384, %368, %394 in 1 : vector<16x8xf32>, vector<16x8xf32>, vector<16x8xf32> -> vector<16x24xf32>
    %cst_218 = arith.constant dense<0.000000e+00> : vector<16x8xf32>
    %396 = tpu.matmul %395, %370, %cst_218 {dimension_numbers = #tpu.dot_dimension_numbers<[1], [0], [0], [1], [0, 0, 1, 1], [], []>} : vector<16x24xf32>, vector<24x8xf32>, vector<16x8xf32> -> vector<16x8xf32>
    %397 = vector.broadcast %372 : vector<1x8xf32> to vector<16x8xf32>
    %398 = arith.addf %396, %397 : vector<16x8xf32>
    %cst_219 = arith.constant 0.000000e+00 : f32
    %399 = vector.broadcast %cst_219 : f32 to vector<16x8xf32>
    %400 = arith.maximumf %398, %399 : vector<16x8xf32>
    %401 = vector.extract_strided_slice %332 {offsets = [0, 24], sizes = [16, 8], strides = [1, 1]} : vector<16x32xf32> to vector<16x8xf32>
    %402 = arith.addf %401, %400 : vector<16x8xf32>
    %c2_220 = arith.constant 2 : index
    %c0_221 = arith.constant 0 : index
    %c0_222 = arith.constant 0 : index
    %403 = vector.load %arg18[%c2_220, %c0_221, %c0_222] : memref<9x24x8xf32, #tpu.memory_space<vmem>>, vector<1x24x8xf32>
    %404 = vector.shape_cast %403 : vector<1x24x8xf32> to vector<24x8xf32>
    %c2_223 = arith.constant 2 : index
    %c0_224 = arith.constant 0 : index
    %c0_225 = arith.constant 0 : index
    %405 = vector.load %arg19[%c2_223, %c0_224, %c0_225] : memref<9x1x8xf32, #tpu.memory_space<vmem>>, vector<1x1x8xf32>
    %406 = vector.shape_cast %405 : vector<1x1x8xf32> to vector<1x8xf32>
    %c2_i32_226 = arith.constant 2 : i32
    %407 = tpu.dynamic_rotate %402 by %c2_i32_226 dim 0 : vector<16x8xf32>, i32 -> vector<16x8xf32>
    %c14_i32_227 = arith.constant 14 : i32
    %408 = tpu.dynamic_rotate %402 by %c14_i32_227 dim 0 : vector<16x8xf32>, i32 -> vector<16x8xf32>
    %c0_i32_228 = arith.constant 0 : i32
    %409 = vector.broadcast %c0_i32_228 : i32 to vector<16x1xi32>
    %410 = arith.cmpi eq, %2, %409 : vector<16x1xi32>
    %411 = vector.shape_cast %410 : vector<16x1xi1> to vector<16x1xi1>
    %412 = vector.broadcast %411 : vector<16x1xi1> to vector<16x8xi1>
    %413 = arith.select %412, %408, %407 : vector<16x8xi1>, vector<16x8xf32>
    %c1_i32_229 = arith.constant 1 : i32
    %414 = vector.broadcast %c1_i32_229 : i32 to vector<16x1xi32>
    %415 = arith.cmpi eq, %2, %414 : vector<16x1xi32>
    %416 = vector.shape_cast %415 : vector<16x1xi1> to vector<16x1xi1>
    %417 = vector.broadcast %416 : vector<16x1xi1> to vector<16x8xi1>
    %418 = arith.select %417, %402, %413 : vector<16x8xi1>, vector<16x8xf32>
    %c14_i32_230 = arith.constant 14 : i32
    %419 = vector.broadcast %c14_i32_230 : i32 to vector<16x1xi32>
    %420 = arith.cmpi eq, %2, %419 : vector<16x1xi32>
    %421 = vector.shape_cast %420 : vector<16x1xi1> to vector<16x1xi1>
    %422 = vector.broadcast %421 : vector<16x1xi1> to vector<16x8xi1>
    %423 = arith.select %422, %402, %408 : vector<16x8xi1>, vector<16x8xf32>
    %c15_i32_231 = arith.constant 15 : i32
    %424 = vector.broadcast %c15_i32_231 : i32 to vector<16x1xi32>
    %425 = arith.cmpi eq, %2, %424 : vector<16x1xi32>
    %426 = vector.shape_cast %425 : vector<16x1xi1> to vector<16x1xi1>
    %427 = vector.broadcast %426 : vector<16x1xi1> to vector<16x8xi1>
    %428 = arith.select %427, %407, %423 : vector<16x8xi1>, vector<16x8xf32>
    %429 = tpu.concatenate %418, %402, %428 in 1 : vector<16x8xf32>, vector<16x8xf32>, vector<16x8xf32> -> vector<16x24xf32>
    %cst_232 = arith.constant dense<0.000000e+00> : vector<16x8xf32>
    %430 = tpu.matmul %429, %404, %cst_232 {dimension_numbers = #tpu.dot_dimension_numbers<[1], [0], [0], [1], [0, 0, 1, 1], [], []>} : vector<16x24xf32>, vector<24x8xf32>, vector<16x8xf32> -> vector<16x8xf32>
    %431 = vector.broadcast %406 : vector<1x8xf32> to vector<16x8xf32>
    %432 = arith.addf %430, %431 : vector<16x8xf32>
    %cst_233 = arith.constant 0.000000e+00 : f32
    %433 = vector.broadcast %cst_233 : f32 to vector<16x8xf32>
    %434 = arith.maximumf %432, %433 : vector<16x8xf32>
    %435 = tpu.concatenate %333, %366, %400, %434 in 1 : vector<16x8xf32>, vector<16x8xf32>, vector<16x8xf32>, vector<16x8xf32> -> vector<16x32xf32>
    %c0_234 = arith.constant 0 : index
    %c0_235 = arith.constant 0 : index
    %c0_236 = arith.constant 0 : index
    %436 = vector.load %arg20[%c0_234, %c0_235, %c0_236] : memref<3x32x32xf32, #tpu.memory_space<vmem>>, vector<1x32x32xf32>
    %437 = vector.shape_cast %436 : vector<1x32x32xf32> to vector<32x32xf32>
    %cst_237 = arith.constant dense<0.000000e+00> : vector<16x32xf32>
    %438 = tpu.matmul %435, %437, %cst_237 {dimension_numbers = #tpu.dot_dimension_numbers<[1], [0], [0], [1], [0, 0, 1, 1], [], []>} : vector<16x32xf32>, vector<32x32xf32>, vector<16x32xf32> -> vector<16x32xf32>
    %c0_238 = arith.constant 0 : index
    %c0_239 = arith.constant 0 : index
    %c0_240 = arith.constant 0 : index
    %439 = vector.load %arg21[%c0_238, %c0_239, %c0_240] : memref<3x1x32xf32, #tpu.memory_space<vmem>>, vector<1x1x32xf32>
    %440 = vector.shape_cast %439 : vector<1x1x32xf32> to vector<1x32xf32>
    %441 = vector.broadcast %440 : vector<1x32xf32> to vector<16x32xf32>
    %442 = arith.addf %438, %441 : vector<16x32xf32>
    %cst_241 = arith.constant 0.000000e+00 : f32
    %443 = vector.broadcast %cst_241 : f32 to vector<16x32xf32>
    %444 = arith.maximumf %442, %443 : vector<16x32xf32>
    %cst_242 = arith.constant dense<0.000000e+00> : vector<32xf32>
    %445 = vector.multi_reduction <add>, %444, %cst_242 [0] : vector<16x32xf32> to vector<32xf32>
    %446 = vector.shape_cast %445 : vector<32xf32> to vector<1x32xf32>
    %cst_243 = arith.constant 1.600000e+01 : f32
    %447 = vector.broadcast %cst_243 : f32 to vector<1x32xf32>
    %448 = arith.divf %446, %447 : vector<1x32xf32>
    %c0_244 = arith.constant 0 : index
    %c0_245 = arith.constant 0 : index
    %c0_246 = arith.constant 0 : index
    %449 = vector.load %arg22[%c0_244, %c0_245, %c0_246] : memref<3x32x16xf32, #tpu.memory_space<vmem>>, vector<1x32x16xf32>
    %450 = vector.shape_cast %449 : vector<1x32x16xf32> to vector<32x16xf32>
    %cst_247 = arith.constant dense<0.000000e+00> : vector<1x16xf32>
    %451 = tpu.matmul %448, %450, %cst_247 {dimension_numbers = #tpu.dot_dimension_numbers<[1], [0], [0], [1], [0, 0, 1, 1], [], []>} : vector<1x32xf32>, vector<32x16xf32>, vector<1x16xf32> -> vector<1x16xf32>
    %c0_248 = arith.constant 0 : index
    %c0_249 = arith.constant 0 : index
    %c0_250 = arith.constant 0 : index
    %452 = vector.load %arg23[%c0_248, %c0_249, %c0_250] : memref<3x1x16xf32, #tpu.memory_space<vmem>>, vector<1x1x16xf32>
    %453 = vector.shape_cast %452 : vector<1x1x16xf32> to vector<1x16xf32>
    %454 = arith.addf %451, %453 : vector<1x16xf32>
    %cst_251 = arith.constant 0.000000e+00 : f32
    %455 = vector.broadcast %cst_251 : f32 to vector<1x16xf32>
    %456 = arith.maximumf %454, %455 : vector<1x16xf32>
    %c0_252 = arith.constant 0 : index
    %c0_253 = arith.constant 0 : index
    %c0_254 = arith.constant 0 : index
    %457 = vector.load %arg24[%c0_252, %c0_253, %c0_254] : memref<3x16x32xf32, #tpu.memory_space<vmem>>, vector<1x16x32xf32>
    %458 = vector.shape_cast %457 : vector<1x16x32xf32> to vector<16x32xf32>
    %cst_255 = arith.constant dense<0.000000e+00> : vector<1x32xf32>
    %459 = tpu.matmul %456, %458, %cst_255 {dimension_numbers = #tpu.dot_dimension_numbers<[1], [0], [0], [1], [0, 0, 1, 1], [], []>} : vector<1x16xf32>, vector<16x32xf32>, vector<1x32xf32> -> vector<1x32xf32>
    %c0_256 = arith.constant 0 : index
    %c0_257 = arith.constant 0 : index
    %c0_258 = arith.constant 0 : index
    %460 = vector.load %arg25[%c0_256, %c0_257, %c0_258] : memref<3x1x32xf32, #tpu.memory_space<vmem>>, vector<1x1x32xf32>
    %461 = vector.shape_cast %460 : vector<1x1x32xf32> to vector<1x32xf32>
    %462 = arith.addf %459, %461 : vector<1x32xf32>
    %463 = arith.negf %462 : vector<1x32xf32>
    %464 = math.exp %463 : vector<1x32xf32>
    %cst_259 = arith.constant 1.000000e+00 : f32
    %465 = vector.broadcast %cst_259 : f32 to vector<1x32xf32>
    %466 = arith.addf %465, %464 : vector<1x32xf32>
    %467 = arith.divf %465, %466 : vector<1x32xf32>
    %468 = vector.broadcast %467 : vector<1x32xf32> to vector<16x32xf32>
    %469 = arith.mulf %444, %468 : vector<16x32xf32>
    %470 = arith.addf %469, %323 : vector<16x32xf32>
    %c1_260 = arith.constant 1 : index
    %c0_261 = arith.constant 0 : index
    %c0_262 = arith.constant 0 : index
    %471 = vector.load %arg16[%c1_260, %c0_261, %c0_262] : memref<3x32x32xf32, #tpu.memory_space<vmem>>, vector<1x32x32xf32>
    %472 = vector.shape_cast %471 : vector<1x32x32xf32> to vector<32x32xf32>
    %cst_263 = arith.constant dense<0.000000e+00> : vector<16x32xf32>
    %473 = tpu.matmul %470, %472, %cst_263 {dimension_numbers = #tpu.dot_dimension_numbers<[1], [0], [0], [1], [0, 0, 1, 1], [], []>} : vector<16x32xf32>, vector<32x32xf32>, vector<16x32xf32> -> vector<16x32xf32>
    %c1_264 = arith.constant 1 : index
    %c0_265 = arith.constant 0 : index
    %c0_266 = arith.constant 0 : index
    %474 = vector.load %arg17[%c1_264, %c0_265, %c0_266] : memref<3x1x32xf32, #tpu.memory_space<vmem>>, vector<1x1x32xf32>
    %475 = vector.shape_cast %474 : vector<1x1x32xf32> to vector<1x32xf32>
    %476 = vector.broadcast %475 : vector<1x32xf32> to vector<16x32xf32>
    %477 = arith.addf %473, %476 : vector<16x32xf32>
    %cst_267 = arith.constant 0.000000e+00 : f32
    %478 = vector.broadcast %cst_267 : f32 to vector<16x32xf32>
    %479 = arith.maximumf %477, %478 : vector<16x32xf32>
    %480 = vector.extract_strided_slice %479 {offsets = [0, 0], sizes = [16, 8], strides = [1, 1]} : vector<16x32xf32> to vector<16x8xf32>
    %481 = vector.extract_strided_slice %479 {offsets = [0, 8], sizes = [16, 8], strides = [1, 1]} : vector<16x32xf32> to vector<16x8xf32>
    %c3_268 = arith.constant 3 : index
    %c0_269 = arith.constant 0 : index
    %c0_270 = arith.constant 0 : index
    %482 = vector.load %arg18[%c3_268, %c0_269, %c0_270] : memref<9x24x8xf32, #tpu.memory_space<vmem>>, vector<1x24x8xf32>
    %483 = vector.shape_cast %482 : vector<1x24x8xf32> to vector<24x8xf32>
    %c3_271 = arith.constant 3 : index
    %c0_272 = arith.constant 0 : index
    %c0_273 = arith.constant 0 : index
    %484 = vector.load %arg19[%c3_271, %c0_272, %c0_273] : memref<9x1x8xf32, #tpu.memory_space<vmem>>, vector<1x1x8xf32>
    %485 = vector.shape_cast %484 : vector<1x1x8xf32> to vector<1x8xf32>
    %c3_i32 = arith.constant 3 : i32
    %486 = tpu.dynamic_rotate %481 by %c3_i32 dim 0 : vector<16x8xf32>, i32 -> vector<16x8xf32>
    %c13_i32 = arith.constant 13 : i32
    %487 = tpu.dynamic_rotate %481 by %c13_i32 dim 0 : vector<16x8xf32>, i32 -> vector<16x8xf32>
    %c0_i32_274 = arith.constant 0 : i32
    %488 = vector.broadcast %c0_i32_274 : i32 to vector<16x1xi32>
    %489 = arith.cmpi eq, %2, %488 : vector<16x1xi32>
    %490 = vector.shape_cast %489 : vector<16x1xi1> to vector<16x1xi1>
    %491 = vector.broadcast %490 : vector<16x1xi1> to vector<16x8xi1>
    %492 = arith.select %491, %487, %486 : vector<16x8xi1>, vector<16x8xf32>
    %c1_i32_275 = arith.constant 1 : i32
    %493 = vector.broadcast %c1_i32_275 : i32 to vector<16x1xi32>
    %494 = arith.cmpi eq, %2, %493 : vector<16x1xi32>
    %c15_i32_276 = arith.constant 15 : i32
    %495 = tpu.dynamic_rotate %481 by %c15_i32_276 dim 0 : vector<16x8xf32>, i32 -> vector<16x8xf32>
    %496 = vector.shape_cast %494 : vector<16x1xi1> to vector<16x1xi1>
    %497 = vector.broadcast %496 : vector<16x1xi1> to vector<16x8xi1>
    %498 = arith.select %497, %495, %492 : vector<16x8xi1>, vector<16x8xf32>
    %c2_i32_277 = arith.constant 2 : i32
    %499 = vector.broadcast %c2_i32_277 : i32 to vector<16x1xi32>
    %500 = arith.cmpi eq, %2, %499 : vector<16x1xi32>
    %c1_i32_278 = arith.constant 1 : i32
    %501 = tpu.dynamic_rotate %481 by %c1_i32_278 dim 0 : vector<16x8xf32>, i32 -> vector<16x8xf32>
    %502 = vector.shape_cast %500 : vector<16x1xi1> to vector<16x1xi1>
    %503 = vector.broadcast %502 : vector<16x1xi1> to vector<16x8xi1>
    %504 = arith.select %503, %501, %498 : vector<16x8xi1>, vector<16x8xf32>
    %c13_i32_279 = arith.constant 13 : i32
    %505 = vector.broadcast %c13_i32_279 : i32 to vector<16x1xi32>
    %506 = arith.cmpi eq, %2, %505 : vector<16x1xi32>
    %507 = vector.shape_cast %506 : vector<16x1xi1> to vector<16x1xi1>
    %508 = vector.broadcast %507 : vector<16x1xi1> to vector<16x8xi1>
    %509 = arith.select %508, %495, %487 : vector<16x8xi1>, vector<16x8xf32>
    %c14_i32_280 = arith.constant 14 : i32
    %510 = vector.broadcast %c14_i32_280 : i32 to vector<16x1xi32>
    %511 = arith.cmpi eq, %2, %510 : vector<16x1xi32>
    %512 = vector.shape_cast %511 : vector<16x1xi1> to vector<16x1xi1>
    %513 = vector.broadcast %512 : vector<16x1xi1> to vector<16x8xi1>
    %514 = arith.select %513, %501, %509 : vector<16x8xi1>, vector<16x8xf32>
    %c15_i32_281 = arith.constant 15 : i32
    %515 = vector.broadcast %c15_i32_281 : i32 to vector<16x1xi32>
    %516 = arith.cmpi eq, %2, %515 : vector<16x1xi32>
    %517 = vector.shape_cast %516 : vector<16x1xi1> to vector<16x1xi1>
    %518 = vector.broadcast %517 : vector<16x1xi1> to vector<16x8xi1>
    %519 = arith.select %518, %486, %514 : vector<16x8xi1>, vector<16x8xf32>
    %520 = tpu.concatenate %504, %481, %519 in 1 : vector<16x8xf32>, vector<16x8xf32>, vector<16x8xf32> -> vector<16x24xf32>
    %cst_282 = arith.constant dense<0.000000e+00> : vector<16x8xf32>
    %521 = tpu.matmul %520, %483, %cst_282 {dimension_numbers = #tpu.dot_dimension_numbers<[1], [0], [0], [1], [0, 0, 1, 1], [], []>} : vector<16x24xf32>, vector<24x8xf32>, vector<16x8xf32> -> vector<16x8xf32>
    %522 = vector.broadcast %485 : vector<1x8xf32> to vector<16x8xf32>
    %523 = arith.addf %521, %522 : vector<16x8xf32>
    %cst_283 = arith.constant 0.000000e+00 : f32
    %524 = vector.broadcast %cst_283 : f32 to vector<16x8xf32>
    %525 = arith.maximumf %523, %524 : vector<16x8xf32>
    %526 = vector.extract_strided_slice %479 {offsets = [0, 16], sizes = [16, 8], strides = [1, 1]} : vector<16x32xf32> to vector<16x8xf32>
    %527 = arith.addf %526, %525 : vector<16x8xf32>
    %c4 = arith.constant 4 : index
    %c0_284 = arith.constant 0 : index
    %c0_285 = arith.constant 0 : index
    %528 = vector.load %arg18[%c4, %c0_284, %c0_285] : memref<9x24x8xf32, #tpu.memory_space<vmem>>, vector<1x24x8xf32>
    %529 = vector.shape_cast %528 : vector<1x24x8xf32> to vector<24x8xf32>
    %c4_286 = arith.constant 4 : index
    %c0_287 = arith.constant 0 : index
    %c0_288 = arith.constant 0 : index
    %530 = vector.load %arg19[%c4_286, %c0_287, %c0_288] : memref<9x1x8xf32, #tpu.memory_space<vmem>>, vector<1x1x8xf32>
    %531 = vector.shape_cast %530 : vector<1x1x8xf32> to vector<1x8xf32>
    %c3_i32_289 = arith.constant 3 : i32
    %532 = tpu.dynamic_rotate %527 by %c3_i32_289 dim 0 : vector<16x8xf32>, i32 -> vector<16x8xf32>
    %c13_i32_290 = arith.constant 13 : i32
    %533 = tpu.dynamic_rotate %527 by %c13_i32_290 dim 0 : vector<16x8xf32>, i32 -> vector<16x8xf32>
    %c0_i32_291 = arith.constant 0 : i32
    %534 = vector.broadcast %c0_i32_291 : i32 to vector<16x1xi32>
    %535 = arith.cmpi eq, %2, %534 : vector<16x1xi32>
    %536 = vector.shape_cast %535 : vector<16x1xi1> to vector<16x1xi1>
    %537 = vector.broadcast %536 : vector<16x1xi1> to vector<16x8xi1>
    %538 = arith.select %537, %533, %532 : vector<16x8xi1>, vector<16x8xf32>
    %c1_i32_292 = arith.constant 1 : i32
    %539 = vector.broadcast %c1_i32_292 : i32 to vector<16x1xi32>
    %540 = arith.cmpi eq, %2, %539 : vector<16x1xi32>
    %c15_i32_293 = arith.constant 15 : i32
    %541 = tpu.dynamic_rotate %527 by %c15_i32_293 dim 0 : vector<16x8xf32>, i32 -> vector<16x8xf32>
    %542 = vector.shape_cast %540 : vector<16x1xi1> to vector<16x1xi1>
    %543 = vector.broadcast %542 : vector<16x1xi1> to vector<16x8xi1>
    %544 = arith.select %543, %541, %538 : vector<16x8xi1>, vector<16x8xf32>
    %c2_i32_294 = arith.constant 2 : i32
    %545 = vector.broadcast %c2_i32_294 : i32 to vector<16x1xi32>
    %546 = arith.cmpi eq, %2, %545 : vector<16x1xi32>
    %c1_i32_295 = arith.constant 1 : i32
    %547 = tpu.dynamic_rotate %527 by %c1_i32_295 dim 0 : vector<16x8xf32>, i32 -> vector<16x8xf32>
    %548 = vector.shape_cast %546 : vector<16x1xi1> to vector<16x1xi1>
    %549 = vector.broadcast %548 : vector<16x1xi1> to vector<16x8xi1>
    %550 = arith.select %549, %547, %544 : vector<16x8xi1>, vector<16x8xf32>
    %c13_i32_296 = arith.constant 13 : i32
    %551 = vector.broadcast %c13_i32_296 : i32 to vector<16x1xi32>
    %552 = arith.cmpi eq, %2, %551 : vector<16x1xi32>
    %553 = vector.shape_cast %552 : vector<16x1xi1> to vector<16x1xi1>
    %554 = vector.broadcast %553 : vector<16x1xi1> to vector<16x8xi1>
    %555 = arith.select %554, %541, %533 : vector<16x8xi1>, vector<16x8xf32>
    %c14_i32_297 = arith.constant 14 : i32
    %556 = vector.broadcast %c14_i32_297 : i32 to vector<16x1xi32>
    %557 = arith.cmpi eq, %2, %556 : vector<16x1xi32>
    %558 = vector.shape_cast %557 : vector<16x1xi1> to vector<16x1xi1>
    %559 = vector.broadcast %558 : vector<16x1xi1> to vector<16x8xi1>
    %560 = arith.select %559, %547, %555 : vector<16x8xi1>, vector<16x8xf32>
    %c15_i32_298 = arith.constant 15 : i32
    %561 = vector.broadcast %c15_i32_298 : i32 to vector<16x1xi32>
    %562 = arith.cmpi eq, %2, %561 : vector<16x1xi32>
    %563 = vector.shape_cast %562 : vector<16x1xi1> to vector<16x1xi1>
    %564 = vector.broadcast %563 : vector<16x1xi1> to vector<16x8xi1>
    %565 = arith.select %564, %532, %560 : vector<16x8xi1>, vector<16x8xf32>
    %566 = tpu.concatenate %550, %527, %565 in 1 : vector<16x8xf32>, vector<16x8xf32>, vector<16x8xf32> -> vector<16x24xf32>
    %cst_299 = arith.constant dense<0.000000e+00> : vector<16x8xf32>
    %567 = tpu.matmul %566, %529, %cst_299 {dimension_numbers = #tpu.dot_dimension_numbers<[1], [0], [0], [1], [0, 0, 1, 1], [], []>} : vector<16x24xf32>, vector<24x8xf32>, vector<16x8xf32> -> vector<16x8xf32>
    %568 = vector.broadcast %531 : vector<1x8xf32> to vector<16x8xf32>
    %569 = arith.addf %567, %568 : vector<16x8xf32>
    %cst_300 = arith.constant 0.000000e+00 : f32
    %570 = vector.broadcast %cst_300 : f32 to vector<16x8xf32>
    %571 = arith.maximumf %569, %570 : vector<16x8xf32>
    %572 = vector.extract_strided_slice %479 {offsets = [0, 24], sizes = [16, 8], strides = [1, 1]} : vector<16x32xf32> to vector<16x8xf32>
    %573 = arith.addf %572, %571 : vector<16x8xf32>
    %c5 = arith.constant 5 : index
    %c0_301 = arith.constant 0 : index
    %c0_302 = arith.constant 0 : index
    %574 = vector.load %arg18[%c5, %c0_301, %c0_302] : memref<9x24x8xf32, #tpu.memory_space<vmem>>, vector<1x24x8xf32>
    %575 = vector.shape_cast %574 : vector<1x24x8xf32> to vector<24x8xf32>
    %c5_303 = arith.constant 5 : index
    %c0_304 = arith.constant 0 : index
    %c0_305 = arith.constant 0 : index
    %576 = vector.load %arg19[%c5_303, %c0_304, %c0_305] : memref<9x1x8xf32, #tpu.memory_space<vmem>>, vector<1x1x8xf32>
    %577 = vector.shape_cast %576 : vector<1x1x8xf32> to vector<1x8xf32>
    %c3_i32_306 = arith.constant 3 : i32
    %578 = tpu.dynamic_rotate %573 by %c3_i32_306 dim 0 : vector<16x8xf32>, i32 -> vector<16x8xf32>
    %c13_i32_307 = arith.constant 13 : i32
    %579 = tpu.dynamic_rotate %573 by %c13_i32_307 dim 0 : vector<16x8xf32>, i32 -> vector<16x8xf32>
    %c0_i32_308 = arith.constant 0 : i32
    %580 = vector.broadcast %c0_i32_308 : i32 to vector<16x1xi32>
    %581 = arith.cmpi eq, %2, %580 : vector<16x1xi32>
    %582 = vector.shape_cast %581 : vector<16x1xi1> to vector<16x1xi1>
    %583 = vector.broadcast %582 : vector<16x1xi1> to vector<16x8xi1>
    %584 = arith.select %583, %579, %578 : vector<16x8xi1>, vector<16x8xf32>
    %c1_i32_309 = arith.constant 1 : i32
    %585 = vector.broadcast %c1_i32_309 : i32 to vector<16x1xi32>
    %586 = arith.cmpi eq, %2, %585 : vector<16x1xi32>
    %c15_i32_310 = arith.constant 15 : i32
    %587 = tpu.dynamic_rotate %573 by %c15_i32_310 dim 0 : vector<16x8xf32>, i32 -> vector<16x8xf32>
    %588 = vector.shape_cast %586 : vector<16x1xi1> to vector<16x1xi1>
    %589 = vector.broadcast %588 : vector<16x1xi1> to vector<16x8xi1>
    %590 = arith.select %589, %587, %584 : vector<16x8xi1>, vector<16x8xf32>
    %c2_i32_311 = arith.constant 2 : i32
    %591 = vector.broadcast %c2_i32_311 : i32 to vector<16x1xi32>
    %592 = arith.cmpi eq, %2, %591 : vector<16x1xi32>
    %c1_i32_312 = arith.constant 1 : i32
    %593 = tpu.dynamic_rotate %573 by %c1_i32_312 dim 0 : vector<16x8xf32>, i32 -> vector<16x8xf32>
    %594 = vector.shape_cast %592 : vector<16x1xi1> to vector<16x1xi1>
    %595 = vector.broadcast %594 : vector<16x1xi1> to vector<16x8xi1>
    %596 = arith.select %595, %593, %590 : vector<16x8xi1>, vector<16x8xf32>
    %c13_i32_313 = arith.constant 13 : i32
    %597 = vector.broadcast %c13_i32_313 : i32 to vector<16x1xi32>
    %598 = arith.cmpi eq, %2, %597 : vector<16x1xi32>
    %599 = vector.shape_cast %598 : vector<16x1xi1> to vector<16x1xi1>
    %600 = vector.broadcast %599 : vector<16x1xi1> to vector<16x8xi1>
    %601 = arith.select %600, %587, %579 : vector<16x8xi1>, vector<16x8xf32>
    %c14_i32_314 = arith.constant 14 : i32
    %602 = vector.broadcast %c14_i32_314 : i32 to vector<16x1xi32>
    %603 = arith.cmpi eq, %2, %602 : vector<16x1xi32>
    %604 = vector.shape_cast %603 : vector<16x1xi1> to vector<16x1xi1>
    %605 = vector.broadcast %604 : vector<16x1xi1> to vector<16x8xi1>
    %606 = arith.select %605, %593, %601 : vector<16x8xi1>, vector<16x8xf32>
    %c15_i32_315 = arith.constant 15 : i32
    %607 = vector.broadcast %c15_i32_315 : i32 to vector<16x1xi32>
    %608 = arith.cmpi eq, %2, %607 : vector<16x1xi32>
    %609 = vector.shape_cast %608 : vector<16x1xi1> to vector<16x1xi1>
    %610 = vector.broadcast %609 : vector<16x1xi1> to vector<16x8xi1>
    %611 = arith.select %610, %578, %606 : vector<16x8xi1>, vector<16x8xf32>
    %612 = tpu.concatenate %596, %573, %611 in 1 : vector<16x8xf32>, vector<16x8xf32>, vector<16x8xf32> -> vector<16x24xf32>
    %cst_316 = arith.constant dense<0.000000e+00> : vector<16x8xf32>
    %613 = tpu.matmul %612, %575, %cst_316 {dimension_numbers = #tpu.dot_dimension_numbers<[1], [0], [0], [1], [0, 0, 1, 1], [], []>} : vector<16x24xf32>, vector<24x8xf32>, vector<16x8xf32> -> vector<16x8xf32>
    %614 = vector.broadcast %577 : vector<1x8xf32> to vector<16x8xf32>
    %615 = arith.addf %613, %614 : vector<16x8xf32>
    %cst_317 = arith.constant 0.000000e+00 : f32
    %616 = vector.broadcast %cst_317 : f32 to vector<16x8xf32>
    %617 = arith.maximumf %615, %616 : vector<16x8xf32>
    %618 = tpu.concatenate %480, %525, %571, %617 in 1 : vector<16x8xf32>, vector<16x8xf32>, vector<16x8xf32>, vector<16x8xf32> -> vector<16x32xf32>
    %c1_318 = arith.constant 1 : index
    %c0_319 = arith.constant 0 : index
    %c0_320 = arith.constant 0 : index
    %619 = vector.load %arg20[%c1_318, %c0_319, %c0_320] : memref<3x32x32xf32, #tpu.memory_space<vmem>>, vector<1x32x32xf32>
    %620 = vector.shape_cast %619 : vector<1x32x32xf32> to vector<32x32xf32>
    %cst_321 = arith.constant dense<0.000000e+00> : vector<16x32xf32>
    %621 = tpu.matmul %618, %620, %cst_321 {dimension_numbers = #tpu.dot_dimension_numbers<[1], [0], [0], [1], [0, 0, 1, 1], [], []>} : vector<16x32xf32>, vector<32x32xf32>, vector<16x32xf32> -> vector<16x32xf32>
    %c1_322 = arith.constant 1 : index
    %c0_323 = arith.constant 0 : index
    %c0_324 = arith.constant 0 : index
    %622 = vector.load %arg21[%c1_322, %c0_323, %c0_324] : memref<3x1x32xf32, #tpu.memory_space<vmem>>, vector<1x1x32xf32>
    %623 = vector.shape_cast %622 : vector<1x1x32xf32> to vector<1x32xf32>
    %624 = vector.broadcast %623 : vector<1x32xf32> to vector<16x32xf32>
    %625 = arith.addf %621, %624 : vector<16x32xf32>
    %cst_325 = arith.constant 0.000000e+00 : f32
    %626 = vector.broadcast %cst_325 : f32 to vector<16x32xf32>
    %627 = arith.maximumf %625, %626 : vector<16x32xf32>
    %cst_326 = arith.constant dense<0.000000e+00> : vector<32xf32>
    %628 = vector.multi_reduction <add>, %627, %cst_326 [0] : vector<16x32xf32> to vector<32xf32>
    %629 = vector.shape_cast %628 : vector<32xf32> to vector<1x32xf32>
    %cst_327 = arith.constant 1.600000e+01 : f32
    %630 = vector.broadcast %cst_327 : f32 to vector<1x32xf32>
    %631 = arith.divf %629, %630 : vector<1x32xf32>
    %c1_328 = arith.constant 1 : index
    %c0_329 = arith.constant 0 : index
    %c0_330 = arith.constant 0 : index
    %632 = vector.load %arg22[%c1_328, %c0_329, %c0_330] : memref<3x32x16xf32, #tpu.memory_space<vmem>>, vector<1x32x16xf32>
    %633 = vector.shape_cast %632 : vector<1x32x16xf32> to vector<32x16xf32>
    %cst_331 = arith.constant dense<0.000000e+00> : vector<1x16xf32>
    %634 = tpu.matmul %631, %633, %cst_331 {dimension_numbers = #tpu.dot_dimension_numbers<[1], [0], [0], [1], [0, 0, 1, 1], [], []>} : vector<1x32xf32>, vector<32x16xf32>, vector<1x16xf32> -> vector<1x16xf32>
    %c1_332 = arith.constant 1 : index
    %c0_333 = arith.constant 0 : index
    %c0_334 = arith.constant 0 : index
    %635 = vector.load %arg23[%c1_332, %c0_333, %c0_334] : memref<3x1x16xf32, #tpu.memory_space<vmem>>, vector<1x1x16xf32>
    %636 = vector.shape_cast %635 : vector<1x1x16xf32> to vector<1x16xf32>
    %637 = arith.addf %634, %636 : vector<1x16xf32>
    %cst_335 = arith.constant 0.000000e+00 : f32
    %638 = vector.broadcast %cst_335 : f32 to vector<1x16xf32>
    %639 = arith.maximumf %637, %638 : vector<1x16xf32>
    %c1_336 = arith.constant 1 : index
    %c0_337 = arith.constant 0 : index
    %c0_338 = arith.constant 0 : index
    %640 = vector.load %arg24[%c1_336, %c0_337, %c0_338] : memref<3x16x32xf32, #tpu.memory_space<vmem>>, vector<1x16x32xf32>
    %641 = vector.shape_cast %640 : vector<1x16x32xf32> to vector<16x32xf32>
    %cst_339 = arith.constant dense<0.000000e+00> : vector<1x32xf32>
    %642 = tpu.matmul %639, %641, %cst_339 {dimension_numbers = #tpu.dot_dimension_numbers<[1], [0], [0], [1], [0, 0, 1, 1], [], []>} : vector<1x16xf32>, vector<16x32xf32>, vector<1x32xf32> -> vector<1x32xf32>
    %c1_340 = arith.constant 1 : index
    %c0_341 = arith.constant 0 : index
    %c0_342 = arith.constant 0 : index
    %643 = vector.load %arg25[%c1_340, %c0_341, %c0_342] : memref<3x1x32xf32, #tpu.memory_space<vmem>>, vector<1x1x32xf32>
    %644 = vector.shape_cast %643 : vector<1x1x32xf32> to vector<1x32xf32>
    %645 = arith.addf %642, %644 : vector<1x32xf32>
    %646 = arith.negf %645 : vector<1x32xf32>
    %647 = math.exp %646 : vector<1x32xf32>
    %cst_343 = arith.constant 1.000000e+00 : f32
    %648 = vector.broadcast %cst_343 : f32 to vector<1x32xf32>
    %649 = arith.addf %648, %647 : vector<1x32xf32>
    %650 = arith.divf %648, %649 : vector<1x32xf32>
    %651 = vector.broadcast %650 : vector<1x32xf32> to vector<16x32xf32>
    %652 = arith.mulf %627, %651 : vector<16x32xf32>
    %653 = arith.addf %652, %470 : vector<16x32xf32>
    %c2_344 = arith.constant 2 : index
    %c0_345 = arith.constant 0 : index
    %c0_346 = arith.constant 0 : index
    %654 = vector.load %arg16[%c2_344, %c0_345, %c0_346] : memref<3x32x32xf32, #tpu.memory_space<vmem>>, vector<1x32x32xf32>
    %655 = vector.shape_cast %654 : vector<1x32x32xf32> to vector<32x32xf32>
    %cst_347 = arith.constant dense<0.000000e+00> : vector<16x32xf32>
    %656 = tpu.matmul %653, %655, %cst_347 {dimension_numbers = #tpu.dot_dimension_numbers<[1], [0], [0], [1], [0, 0, 1, 1], [], []>} : vector<16x32xf32>, vector<32x32xf32>, vector<16x32xf32> -> vector<16x32xf32>
    %c2_348 = arith.constant 2 : index
    %c0_349 = arith.constant 0 : index
    %c0_350 = arith.constant 0 : index
    %657 = vector.load %arg17[%c2_348, %c0_349, %c0_350] : memref<3x1x32xf32, #tpu.memory_space<vmem>>, vector<1x1x32xf32>
    %658 = vector.shape_cast %657 : vector<1x1x32xf32> to vector<1x32xf32>
    %659 = vector.broadcast %658 : vector<1x32xf32> to vector<16x32xf32>
    %660 = arith.addf %656, %659 : vector<16x32xf32>
    %cst_351 = arith.constant 0.000000e+00 : f32
    %661 = vector.broadcast %cst_351 : f32 to vector<16x32xf32>
    %662 = arith.maximumf %660, %661 : vector<16x32xf32>
    %663 = vector.extract_strided_slice %662 {offsets = [0, 0], sizes = [16, 8], strides = [1, 1]} : vector<16x32xf32> to vector<16x8xf32>
    %664 = vector.extract_strided_slice %662 {offsets = [0, 8], sizes = [16, 8], strides = [1, 1]} : vector<16x32xf32> to vector<16x8xf32>
    %c6 = arith.constant 6 : index
    %c0_352 = arith.constant 0 : index
    %c0_353 = arith.constant 0 : index
    %665 = vector.load %arg18[%c6, %c0_352, %c0_353] : memref<9x24x8xf32, #tpu.memory_space<vmem>>, vector<1x24x8xf32>
    %666 = vector.shape_cast %665 : vector<1x24x8xf32> to vector<24x8xf32>
    %c6_354 = arith.constant 6 : index
    %c0_355 = arith.constant 0 : index
    %c0_356 = arith.constant 0 : index
    %667 = vector.load %arg19[%c6_354, %c0_355, %c0_356] : memref<9x1x8xf32, #tpu.memory_space<vmem>>, vector<1x1x8xf32>
    %668 = vector.shape_cast %667 : vector<1x1x8xf32> to vector<1x8xf32>
    %c4_i32 = arith.constant 4 : i32
    %669 = tpu.dynamic_rotate %664 by %c4_i32 dim 0 : vector<16x8xf32>, i32 -> vector<16x8xf32>
    %c12_i32 = arith.constant 12 : i32
    %670 = tpu.dynamic_rotate %664 by %c12_i32 dim 0 : vector<16x8xf32>, i32 -> vector<16x8xf32>
    %c0_i32_357 = arith.constant 0 : i32
    %671 = vector.broadcast %c0_i32_357 : i32 to vector<16x1xi32>
    %672 = arith.cmpi eq, %2, %671 : vector<16x1xi32>
    %673 = vector.shape_cast %672 : vector<16x1xi1> to vector<16x1xi1>
    %674 = vector.broadcast %673 : vector<16x1xi1> to vector<16x8xi1>
    %675 = arith.select %674, %670, %669 : vector<16x8xi1>, vector<16x8xf32>
    %c1_i32_358 = arith.constant 1 : i32
    %676 = vector.broadcast %c1_i32_358 : i32 to vector<16x1xi32>
    %677 = arith.cmpi eq, %2, %676 : vector<16x1xi32>
    %c14_i32_359 = arith.constant 14 : i32
    %678 = tpu.dynamic_rotate %664 by %c14_i32_359 dim 0 : vector<16x8xf32>, i32 -> vector<16x8xf32>
    %679 = vector.shape_cast %677 : vector<16x1xi1> to vector<16x1xi1>
    %680 = vector.broadcast %679 : vector<16x1xi1> to vector<16x8xi1>
    %681 = arith.select %680, %678, %675 : vector<16x8xi1>, vector<16x8xf32>
    %c2_i32_360 = arith.constant 2 : i32
    %682 = vector.broadcast %c2_i32_360 : i32 to vector<16x1xi32>
    %683 = arith.cmpi eq, %2, %682 : vector<16x1xi32>
    %684 = vector.shape_cast %683 : vector<16x1xi1> to vector<16x1xi1>
    %685 = vector.broadcast %684 : vector<16x1xi1> to vector<16x8xi1>
    %686 = arith.select %685, %664, %681 : vector<16x8xi1>, vector<16x8xf32>
    %c3_i32_361 = arith.constant 3 : i32
    %687 = vector.broadcast %c3_i32_361 : i32 to vector<16x1xi32>
    %688 = arith.cmpi eq, %2, %687 : vector<16x1xi32>
    %c2_i32_362 = arith.constant 2 : i32
    %689 = tpu.dynamic_rotate %664 by %c2_i32_362 dim 0 : vector<16x8xf32>, i32 -> vector<16x8xf32>
    %690 = vector.shape_cast %688 : vector<16x1xi1> to vector<16x1xi1>
    %691 = vector.broadcast %690 : vector<16x1xi1> to vector<16x8xi1>
    %692 = arith.select %691, %689, %686 : vector<16x8xi1>, vector<16x8xf32>
    %c12_i32_363 = arith.constant 12 : i32
    %693 = vector.broadcast %c12_i32_363 : i32 to vector<16x1xi32>
    %694 = arith.cmpi eq, %2, %693 : vector<16x1xi32>
    %695 = vector.shape_cast %694 : vector<16x1xi1> to vector<16x1xi1>
    %696 = vector.broadcast %695 : vector<16x1xi1> to vector<16x8xi1>
    %697 = arith.select %696, %678, %670 : vector<16x8xi1>, vector<16x8xf32>
    %c13_i32_364 = arith.constant 13 : i32
    %698 = vector.broadcast %c13_i32_364 : i32 to vector<16x1xi32>
    %699 = arith.cmpi eq, %2, %698 : vector<16x1xi32>
    %700 = vector.shape_cast %699 : vector<16x1xi1> to vector<16x1xi1>
    %701 = vector.broadcast %700 : vector<16x1xi1> to vector<16x8xi1>
    %702 = arith.select %701, %664, %697 : vector<16x8xi1>, vector<16x8xf32>
    %c14_i32_365 = arith.constant 14 : i32
    %703 = vector.broadcast %c14_i32_365 : i32 to vector<16x1xi32>
    %704 = arith.cmpi eq, %2, %703 : vector<16x1xi32>
    %705 = vector.shape_cast %704 : vector<16x1xi1> to vector<16x1xi1>
    %706 = vector.broadcast %705 : vector<16x1xi1> to vector<16x8xi1>
    %707 = arith.select %706, %689, %702 : vector<16x8xi1>, vector<16x8xf32>
    %c15_i32_366 = arith.constant 15 : i32
    %708 = vector.broadcast %c15_i32_366 : i32 to vector<16x1xi32>
    %709 = arith.cmpi eq, %2, %708 : vector<16x1xi32>
    %710 = vector.shape_cast %709 : vector<16x1xi1> to vector<16x1xi1>
    %711 = vector.broadcast %710 : vector<16x1xi1> to vector<16x8xi1>
    %712 = arith.select %711, %669, %707 : vector<16x8xi1>, vector<16x8xf32>
    %713 = tpu.concatenate %692, %664, %712 in 1 : vector<16x8xf32>, vector<16x8xf32>, vector<16x8xf32> -> vector<16x24xf32>
    %cst_367 = arith.constant dense<0.000000e+00> : vector<16x8xf32>
    %714 = tpu.matmul %713, %666, %cst_367 {dimension_numbers = #tpu.dot_dimension_numbers<[1], [0], [0], [1], [0, 0, 1, 1], [], []>} : vector<16x24xf32>, vector<24x8xf32>, vector<16x8xf32> -> vector<16x8xf32>
    %715 = vector.broadcast %668 : vector<1x8xf32> to vector<16x8xf32>
    %716 = arith.addf %714, %715 : vector<16x8xf32>
    %cst_368 = arith.constant 0.000000e+00 : f32
    %717 = vector.broadcast %cst_368 : f32 to vector<16x8xf32>
    %718 = arith.maximumf %716, %717 : vector<16x8xf32>
    %719 = vector.extract_strided_slice %662 {offsets = [0, 16], sizes = [16, 8], strides = [1, 1]} : vector<16x32xf32> to vector<16x8xf32>
    %720 = arith.addf %719, %718 : vector<16x8xf32>
    %c7 = arith.constant 7 : index
    %c0_369 = arith.constant 0 : index
    %c0_370 = arith.constant 0 : index
    %721 = vector.load %arg18[%c7, %c0_369, %c0_370] : memref<9x24x8xf32, #tpu.memory_space<vmem>>, vector<1x24x8xf32>
    %722 = vector.shape_cast %721 : vector<1x24x8xf32> to vector<24x8xf32>
    %c7_371 = arith.constant 7 : index
    %c0_372 = arith.constant 0 : index
    %c0_373 = arith.constant 0 : index
    %723 = vector.load %arg19[%c7_371, %c0_372, %c0_373] : memref<9x1x8xf32, #tpu.memory_space<vmem>>, vector<1x1x8xf32>
    %724 = vector.shape_cast %723 : vector<1x1x8xf32> to vector<1x8xf32>
    %c4_i32_374 = arith.constant 4 : i32
    %725 = tpu.dynamic_rotate %720 by %c4_i32_374 dim 0 : vector<16x8xf32>, i32 -> vector<16x8xf32>
    %c12_i32_375 = arith.constant 12 : i32
    %726 = tpu.dynamic_rotate %720 by %c12_i32_375 dim 0 : vector<16x8xf32>, i32 -> vector<16x8xf32>
    %c0_i32_376 = arith.constant 0 : i32
    %727 = vector.broadcast %c0_i32_376 : i32 to vector<16x1xi32>
    %728 = arith.cmpi eq, %2, %727 : vector<16x1xi32>
    %729 = vector.shape_cast %728 : vector<16x1xi1> to vector<16x1xi1>
    %730 = vector.broadcast %729 : vector<16x1xi1> to vector<16x8xi1>
    %731 = arith.select %730, %726, %725 : vector<16x8xi1>, vector<16x8xf32>
    %c1_i32_377 = arith.constant 1 : i32
    %732 = vector.broadcast %c1_i32_377 : i32 to vector<16x1xi32>
    %733 = arith.cmpi eq, %2, %732 : vector<16x1xi32>
    %c14_i32_378 = arith.constant 14 : i32
    %734 = tpu.dynamic_rotate %720 by %c14_i32_378 dim 0 : vector<16x8xf32>, i32 -> vector<16x8xf32>
    %735 = vector.shape_cast %733 : vector<16x1xi1> to vector<16x1xi1>
    %736 = vector.broadcast %735 : vector<16x1xi1> to vector<16x8xi1>
    %737 = arith.select %736, %734, %731 : vector<16x8xi1>, vector<16x8xf32>
    %c2_i32_379 = arith.constant 2 : i32
    %738 = vector.broadcast %c2_i32_379 : i32 to vector<16x1xi32>
    %739 = arith.cmpi eq, %2, %738 : vector<16x1xi32>
    %740 = vector.shape_cast %739 : vector<16x1xi1> to vector<16x1xi1>
    %741 = vector.broadcast %740 : vector<16x1xi1> to vector<16x8xi1>
    %742 = arith.select %741, %720, %737 : vector<16x8xi1>, vector<16x8xf32>
    %c3_i32_380 = arith.constant 3 : i32
    %743 = vector.broadcast %c3_i32_380 : i32 to vector<16x1xi32>
    %744 = arith.cmpi eq, %2, %743 : vector<16x1xi32>
    %c2_i32_381 = arith.constant 2 : i32
    %745 = tpu.dynamic_rotate %720 by %c2_i32_381 dim 0 : vector<16x8xf32>, i32 -> vector<16x8xf32>
    %746 = vector.shape_cast %744 : vector<16x1xi1> to vector<16x1xi1>
    %747 = vector.broadcast %746 : vector<16x1xi1> to vector<16x8xi1>
    %748 = arith.select %747, %745, %742 : vector<16x8xi1>, vector<16x8xf32>
    %c12_i32_382 = arith.constant 12 : i32
    %749 = vector.broadcast %c12_i32_382 : i32 to vector<16x1xi32>
    %750 = arith.cmpi eq, %2, %749 : vector<16x1xi32>
    %751 = vector.shape_cast %750 : vector<16x1xi1> to vector<16x1xi1>
    %752 = vector.broadcast %751 : vector<16x1xi1> to vector<16x8xi1>
    %753 = arith.select %752, %734, %726 : vector<16x8xi1>, vector<16x8xf32>
    %c13_i32_383 = arith.constant 13 : i32
    %754 = vector.broadcast %c13_i32_383 : i32 to vector<16x1xi32>
    %755 = arith.cmpi eq, %2, %754 : vector<16x1xi32>
    %756 = vector.shape_cast %755 : vector<16x1xi1> to vector<16x1xi1>
    %757 = vector.broadcast %756 : vector<16x1xi1> to vector<16x8xi1>
    %758 = arith.select %757, %720, %753 : vector<16x8xi1>, vector<16x8xf32>
    %c14_i32_384 = arith.constant 14 : i32
    %759 = vector.broadcast %c14_i32_384 : i32 to vector<16x1xi32>
    %760 = arith.cmpi eq, %2, %759 : vector<16x1xi32>
    %761 = vector.shape_cast %760 : vector<16x1xi1> to vector<16x1xi1>
    %762 = vector.broadcast %761 : vector<16x1xi1> to vector<16x8xi1>
    %763 = arith.select %762, %745, %758 : vector<16x8xi1>, vector<16x8xf32>
    %c15_i32_385 = arith.constant 15 : i32
    %764 = vector.broadcast %c15_i32_385 : i32 to vector<16x1xi32>
    %765 = arith.cmpi eq, %2, %764 : vector<16x1xi32>
    %766 = vector.shape_cast %765 : vector<16x1xi1> to vector<16x1xi1>
    %767 = vector.broadcast %766 : vector<16x1xi1> to vector<16x8xi1>
    %768 = arith.select %767, %725, %763 : vector<16x8xi1>, vector<16x8xf32>
    %769 = tpu.concatenate %748, %720, %768 in 1 : vector<16x8xf32>, vector<16x8xf32>, vector<16x8xf32> -> vector<16x24xf32>
    %cst_386 = arith.constant dense<0.000000e+00> : vector<16x8xf32>
    %770 = tpu.matmul %769, %722, %cst_386 {dimension_numbers = #tpu.dot_dimension_numbers<[1], [0], [0], [1], [0, 0, 1, 1], [], []>} : vector<16x24xf32>, vector<24x8xf32>, vector<16x8xf32> -> vector<16x8xf32>
    %771 = vector.broadcast %724 : vector<1x8xf32> to vector<16x8xf32>
    %772 = arith.addf %770, %771 : vector<16x8xf32>
    %cst_387 = arith.constant 0.000000e+00 : f32
    %773 = vector.broadcast %cst_387 : f32 to vector<16x8xf32>
    %774 = arith.maximumf %772, %773 : vector<16x8xf32>
    %775 = vector.extract_strided_slice %662 {offsets = [0, 24], sizes = [16, 8], strides = [1, 1]} : vector<16x32xf32> to vector<16x8xf32>
    %776 = arith.addf %775, %774 : vector<16x8xf32>
    %c8 = arith.constant 8 : index
    %c0_388 = arith.constant 0 : index
    %c0_389 = arith.constant 0 : index
    %777 = vector.load %arg18[%c8, %c0_388, %c0_389] : memref<9x24x8xf32, #tpu.memory_space<vmem>>, vector<1x24x8xf32>
    %778 = vector.shape_cast %777 : vector<1x24x8xf32> to vector<24x8xf32>
    %c8_390 = arith.constant 8 : index
    %c0_391 = arith.constant 0 : index
    %c0_392 = arith.constant 0 : index
    %779 = vector.load %arg19[%c8_390, %c0_391, %c0_392] : memref<9x1x8xf32, #tpu.memory_space<vmem>>, vector<1x1x8xf32>
    %780 = vector.shape_cast %779 : vector<1x1x8xf32> to vector<1x8xf32>
    %c4_i32_393 = arith.constant 4 : i32
    %781 = tpu.dynamic_rotate %776 by %c4_i32_393 dim 0 : vector<16x8xf32>, i32 -> vector<16x8xf32>
    %c12_i32_394 = arith.constant 12 : i32
    %782 = tpu.dynamic_rotate %776 by %c12_i32_394 dim 0 : vector<16x8xf32>, i32 -> vector<16x8xf32>
    %c0_i32_395 = arith.constant 0 : i32
    %783 = vector.broadcast %c0_i32_395 : i32 to vector<16x1xi32>
    %784 = arith.cmpi eq, %2, %783 : vector<16x1xi32>
    %785 = vector.shape_cast %784 : vector<16x1xi1> to vector<16x1xi1>
    %786 = vector.broadcast %785 : vector<16x1xi1> to vector<16x8xi1>
    %787 = arith.select %786, %782, %781 : vector<16x8xi1>, vector<16x8xf32>
    %c1_i32_396 = arith.constant 1 : i32
    %788 = vector.broadcast %c1_i32_396 : i32 to vector<16x1xi32>
    %789 = arith.cmpi eq, %2, %788 : vector<16x1xi32>
    %c14_i32_397 = arith.constant 14 : i32
    %790 = tpu.dynamic_rotate %776 by %c14_i32_397 dim 0 : vector<16x8xf32>, i32 -> vector<16x8xf32>
    %791 = vector.shape_cast %789 : vector<16x1xi1> to vector<16x1xi1>
    %792 = vector.broadcast %791 : vector<16x1xi1> to vector<16x8xi1>
    %793 = arith.select %792, %790, %787 : vector<16x8xi1>, vector<16x8xf32>
    %c2_i32_398 = arith.constant 2 : i32
    %794 = vector.broadcast %c2_i32_398 : i32 to vector<16x1xi32>
    %795 = arith.cmpi eq, %2, %794 : vector<16x1xi32>
    %796 = vector.shape_cast %795 : vector<16x1xi1> to vector<16x1xi1>
    %797 = vector.broadcast %796 : vector<16x1xi1> to vector<16x8xi1>
    %798 = arith.select %797, %776, %793 : vector<16x8xi1>, vector<16x8xf32>
    %c3_i32_399 = arith.constant 3 : i32
    %799 = vector.broadcast %c3_i32_399 : i32 to vector<16x1xi32>
    %800 = arith.cmpi eq, %2, %799 : vector<16x1xi32>
    %c2_i32_400 = arith.constant 2 : i32
    %801 = tpu.dynamic_rotate %776 by %c2_i32_400 dim 0 : vector<16x8xf32>, i32 -> vector<16x8xf32>
    %802 = vector.shape_cast %800 : vector<16x1xi1> to vector<16x1xi1>
    %803 = vector.broadcast %802 : vector<16x1xi1> to vector<16x8xi1>
    %804 = arith.select %803, %801, %798 : vector<16x8xi1>, vector<16x8xf32>
    %c12_i32_401 = arith.constant 12 : i32
    %805 = vector.broadcast %c12_i32_401 : i32 to vector<16x1xi32>
    %806 = arith.cmpi eq, %2, %805 : vector<16x1xi32>
    %807 = vector.shape_cast %806 : vector<16x1xi1> to vector<16x1xi1>
    %808 = vector.broadcast %807 : vector<16x1xi1> to vector<16x8xi1>
    %809 = arith.select %808, %790, %782 : vector<16x8xi1>, vector<16x8xf32>
    %c13_i32_402 = arith.constant 13 : i32
    %810 = vector.broadcast %c13_i32_402 : i32 to vector<16x1xi32>
    %811 = arith.cmpi eq, %2, %810 : vector<16x1xi32>
    %812 = vector.shape_cast %811 : vector<16x1xi1> to vector<16x1xi1>
    %813 = vector.broadcast %812 : vector<16x1xi1> to vector<16x8xi1>
    %814 = arith.select %813, %776, %809 : vector<16x8xi1>, vector<16x8xf32>
    %c14_i32_403 = arith.constant 14 : i32
    %815 = vector.broadcast %c14_i32_403 : i32 to vector<16x1xi32>
    %816 = arith.cmpi eq, %2, %815 : vector<16x1xi32>
    %817 = vector.shape_cast %816 : vector<16x1xi1> to vector<16x1xi1>
    %818 = vector.broadcast %817 : vector<16x1xi1> to vector<16x8xi1>
    %819 = arith.select %818, %801, %814 : vector<16x8xi1>, vector<16x8xf32>
    %c15_i32_404 = arith.constant 15 : i32
    %820 = vector.broadcast %c15_i32_404 : i32 to vector<16x1xi32>
    %821 = arith.cmpi eq, %2, %820 : vector<16x1xi32>
    %822 = vector.shape_cast %821 : vector<16x1xi1> to vector<16x1xi1>
    %823 = vector.broadcast %822 : vector<16x1xi1> to vector<16x8xi1>
    %824 = arith.select %823, %781, %819 : vector<16x8xi1>, vector<16x8xf32>
    %825 = tpu.concatenate %804, %776, %824 in 1 : vector<16x8xf32>, vector<16x8xf32>, vector<16x8xf32> -> vector<16x24xf32>
    %cst_405 = arith.constant dense<0.000000e+00> : vector<16x8xf32>
    %826 = tpu.matmul %825, %778, %cst_405 {dimension_numbers = #tpu.dot_dimension_numbers<[1], [0], [0], [1], [0, 0, 1, 1], [], []>} : vector<16x24xf32>, vector<24x8xf32>, vector<16x8xf32> -> vector<16x8xf32>
    %827 = vector.broadcast %780 : vector<1x8xf32> to vector<16x8xf32>
    %828 = arith.addf %826, %827 : vector<16x8xf32>
    %cst_406 = arith.constant 0.000000e+00 : f32
    %829 = vector.broadcast %cst_406 : f32 to vector<16x8xf32>
    %830 = arith.maximumf %828, %829 : vector<16x8xf32>
    %831 = tpu.concatenate %663, %718, %774, %830 in 1 : vector<16x8xf32>, vector<16x8xf32>, vector<16x8xf32>, vector<16x8xf32> -> vector<16x32xf32>
    %c2_407 = arith.constant 2 : index
    %c0_408 = arith.constant 0 : index
    %c0_409 = arith.constant 0 : index
    %832 = vector.load %arg20[%c2_407, %c0_408, %c0_409] : memref<3x32x32xf32, #tpu.memory_space<vmem>>, vector<1x32x32xf32>
    %833 = vector.shape_cast %832 : vector<1x32x32xf32> to vector<32x32xf32>
    %cst_410 = arith.constant dense<0.000000e+00> : vector<16x32xf32>
    %834 = tpu.matmul %831, %833, %cst_410 {dimension_numbers = #tpu.dot_dimension_numbers<[1], [0], [0], [1], [0, 0, 1, 1], [], []>} : vector<16x32xf32>, vector<32x32xf32>, vector<16x32xf32> -> vector<16x32xf32>
    %c2_411 = arith.constant 2 : index
    %c0_412 = arith.constant 0 : index
    %c0_413 = arith.constant 0 : index
    %835 = vector.load %arg21[%c2_411, %c0_412, %c0_413] : memref<3x1x32xf32, #tpu.memory_space<vmem>>, vector<1x1x32xf32>
    %836 = vector.shape_cast %835 : vector<1x1x32xf32> to vector<1x32xf32>
    %837 = vector.broadcast %836 : vector<1x32xf32> to vector<16x32xf32>
    %838 = arith.addf %834, %837 : vector<16x32xf32>
    %cst_414 = arith.constant 0.000000e+00 : f32
    %839 = vector.broadcast %cst_414 : f32 to vector<16x32xf32>
    %840 = arith.maximumf %838, %839 : vector<16x32xf32>
    %cst_415 = arith.constant dense<0.000000e+00> : vector<32xf32>
    %841 = vector.multi_reduction <add>, %840, %cst_415 [0] : vector<16x32xf32> to vector<32xf32>
    %842 = vector.shape_cast %841 : vector<32xf32> to vector<1x32xf32>
    %cst_416 = arith.constant 1.600000e+01 : f32
    %843 = vector.broadcast %cst_416 : f32 to vector<1x32xf32>
    %844 = arith.divf %842, %843 : vector<1x32xf32>
    %c2_417 = arith.constant 2 : index
    %c0_418 = arith.constant 0 : index
    %c0_419 = arith.constant 0 : index
    %845 = vector.load %arg22[%c2_417, %c0_418, %c0_419] : memref<3x32x16xf32, #tpu.memory_space<vmem>>, vector<1x32x16xf32>
    %846 = vector.shape_cast %845 : vector<1x32x16xf32> to vector<32x16xf32>
    %cst_420 = arith.constant dense<0.000000e+00> : vector<1x16xf32>
    %847 = tpu.matmul %844, %846, %cst_420 {dimension_numbers = #tpu.dot_dimension_numbers<[1], [0], [0], [1], [0, 0, 1, 1], [], []>} : vector<1x32xf32>, vector<32x16xf32>, vector<1x16xf32> -> vector<1x16xf32>
    %c2_421 = arith.constant 2 : index
    %c0_422 = arith.constant 0 : index
    %c0_423 = arith.constant 0 : index
    %848 = vector.load %arg23[%c2_421, %c0_422, %c0_423] : memref<3x1x16xf32, #tpu.memory_space<vmem>>, vector<1x1x16xf32>
    %849 = vector.shape_cast %848 : vector<1x1x16xf32> to vector<1x16xf32>
    %850 = arith.addf %847, %849 : vector<1x16xf32>
    %cst_424 = arith.constant 0.000000e+00 : f32
    %851 = vector.broadcast %cst_424 : f32 to vector<1x16xf32>
    %852 = arith.maximumf %850, %851 : vector<1x16xf32>
    %c2_425 = arith.constant 2 : index
    %c0_426 = arith.constant 0 : index
    %c0_427 = arith.constant 0 : index
    %853 = vector.load %arg24[%c2_425, %c0_426, %c0_427] : memref<3x16x32xf32, #tpu.memory_space<vmem>>, vector<1x16x32xf32>
    %854 = vector.shape_cast %853 : vector<1x16x32xf32> to vector<16x32xf32>
    %cst_428 = arith.constant dense<0.000000e+00> : vector<1x32xf32>
    %855 = tpu.matmul %852, %854, %cst_428 {dimension_numbers = #tpu.dot_dimension_numbers<[1], [0], [0], [1], [0, 0, 1, 1], [], []>} : vector<1x16xf32>, vector<16x32xf32>, vector<1x32xf32> -> vector<1x32xf32>
    %c2_429 = arith.constant 2 : index
    %c0_430 = arith.constant 0 : index
    %c0_431 = arith.constant 0 : index
    %856 = vector.load %arg25[%c2_429, %c0_430, %c0_431] : memref<3x1x32xf32, #tpu.memory_space<vmem>>, vector<1x1x32xf32>
    %857 = vector.shape_cast %856 : vector<1x1x32xf32> to vector<1x32xf32>
    %858 = arith.addf %855, %857 : vector<1x32xf32>
    %859 = arith.negf %858 : vector<1x32xf32>
    %860 = math.exp %859 : vector<1x32xf32>
    %cst_432 = arith.constant 1.000000e+00 : f32
    %861 = vector.broadcast %cst_432 : f32 to vector<1x32xf32>
    %862 = arith.addf %861, %860 : vector<1x32xf32>
    %863 = arith.divf %861, %862 : vector<1x32xf32>
    %864 = vector.broadcast %863 : vector<1x32xf32> to vector<16x32xf32>
    %865 = arith.mulf %840, %864 : vector<16x32xf32>
    %866 = arith.addf %865, %653 : vector<16x32xf32>
    %867 = tpu.concatenate %470, %653, %866 in 1 : vector<16x32xf32>, vector<16x32xf32>, vector<16x32xf32> -> vector<16x96xf32>
    %c0_433 = arith.constant 0 : index
    %c0_434 = arith.constant 0 : index
    %868 = vector.load %arg26[%c0_433, %c0_434] : memref<96x96xf32, #tpu.memory_space<vmem>>, vector<96x96xf32>
    %cst_435 = arith.constant dense<0.000000e+00> : vector<16x96xf32>
    %869 = tpu.matmul %867, %868, %cst_435 {dimension_numbers = #tpu.dot_dimension_numbers<[1], [0], [0], [1], [0, 0, 1, 1], [], []>} : vector<16x96xf32>, vector<96x96xf32>, vector<16x96xf32> -> vector<16x96xf32>
    %c0_436 = arith.constant 0 : index
    %c0_437 = arith.constant 0 : index
    %870 = vector.load %arg27[%c0_436, %c0_437] : memref<1x96xf32, #tpu.memory_space<vmem>>, vector<1x96xf32>
    %871 = vector.broadcast %870 : vector<1x96xf32> to vector<16x96xf32>
    %872 = arith.addf %869, %871 : vector<16x96xf32>
    %cst_438 = arith.constant 0.000000e+00 : f32
    %873 = vector.broadcast %cst_438 : f32 to vector<16x96xf32>
    %874 = arith.maximumf %872, %873 : vector<16x96xf32>
    %cst_439 = arith.constant dense<0.000000e+00> : vector<96xf32>
    %875 = vector.multi_reduction <add>, %874, %cst_439 [0] : vector<16x96xf32> to vector<96xf32>
    %876 = vector.shape_cast %875 : vector<96xf32> to vector<1x96xf32>
    %cst_440 = arith.constant 6.250000e-02 : f32
    %877 = vector.broadcast %cst_440 : f32 to vector<1x96xf32>
    %878 = arith.mulf %876, %877 : vector<1x96xf32>
    %879 = vector.broadcast %878 : vector<1x96xf32> to vector<16x96xf32>
    %880 = arith.subf %874, %879 : vector<16x96xf32>
    %881 = arith.mulf %880, %880 : vector<16x96xf32>
    %cst_441 = arith.constant dense<0.000000e+00> : vector<96xf32>
    %882 = vector.multi_reduction <add>, %881, %cst_441 [0] : vector<16x96xf32> to vector<96xf32>
    %883 = vector.shape_cast %882 : vector<96xf32> to vector<1x96xf32>
    %cst_442 = arith.constant 6.250000e-02 : f32
    %884 = vector.broadcast %cst_442 : f32 to vector<1x96xf32>
    %885 = arith.mulf %883, %884 : vector<1x96xf32>
    %cst_443 = arith.constant 9.99999996E-13 : f32
    %886 = vector.broadcast %cst_443 : f32 to vector<1x96xf32>
    %887 = arith.maximumf %885, %886 : vector<1x96xf32>
    %888 = math.sqrt %887 : vector<1x96xf32>
    %c0_444 = arith.constant 0 : index
    %c0_445 = arith.constant 0 : index
    %889 = vector.load %arg28[%c0_444, %c0_445] : memref<288x16xf32, #tpu.memory_space<vmem>>, vector<288x16xf32>
    %890 = vector.extract_strided_slice %889 {offsets = [0, 0], sizes = [96, 16], strides = [1, 1]} : vector<288x16xf32> to vector<96x16xf32>
    %cst_446 = arith.constant dense<0.000000e+00> : vector<16x16xf32>
    %891 = tpu.matmul %874, %890, %cst_446 {dimension_numbers = #tpu.dot_dimension_numbers<[1], [0], [0], [1], [0, 0, 1, 1], [], []>} : vector<16x96xf32>, vector<96x16xf32>, vector<16x16xf32> -> vector<16x16xf32>
    %892 = tpu.concatenate %878, %888 in 1 : vector<1x96xf32>, vector<1x96xf32> -> vector<1x192xf32>
    %893 = vector.extract_strided_slice %889 {offsets = [96, 0], sizes = [192, 16], strides = [1, 1]} : vector<288x16xf32> to vector<192x16xf32>
    %cst_447 = arith.constant dense<0.000000e+00> : vector<1x16xf32>
    %894 = tpu.matmul %892, %893, %cst_447 {dimension_numbers = #tpu.dot_dimension_numbers<[1], [0], [0], [1], [0, 0, 1, 1], [], []>} : vector<1x192xf32>, vector<192x16xf32>, vector<1x16xf32> -> vector<1x16xf32>
    %c0_448 = arith.constant 0 : index
    %c0_449 = arith.constant 0 : index
    %895 = vector.load %arg29[%c0_448, %c0_449] : memref<1x16xf32, #tpu.memory_space<vmem>>, vector<1x16xf32>
    %896 = arith.addf %894, %895 : vector<1x16xf32>
    %897 = vector.broadcast %896 : vector<1x16xf32> to vector<16x16xf32>
    %898 = arith.addf %891, %897 : vector<16x16xf32>
    %cst_450 = arith.constant 0.000000e+00 : f32
    %899 = vector.broadcast %cst_450 : f32 to vector<16x16xf32>
    %900 = arith.maximumf %898, %899 : vector<16x16xf32>
    %901 = math.tanh %900 : vector<16x16xf32>
    %c0_451 = arith.constant 0 : index
    %c0_452 = arith.constant 0 : index
    %902 = vector.load %arg30[%c0_451, %c0_452] : memref<16x96xf32, #tpu.memory_space<vmem>>, vector<16x96xf32>
    %cst_453 = arith.constant dense<0.000000e+00> : vector<16x96xf32>
    %903 = tpu.matmul %901, %902, %cst_453 {dimension_numbers = #tpu.dot_dimension_numbers<[1], [0], [0], [1], [0, 0, 1, 1], [], []>} : vector<16x16xf32>, vector<16x96xf32>, vector<16x96xf32> -> vector<16x96xf32>
    %c0_454 = arith.constant 0 : index
    %c0_455 = arith.constant 0 : index
    %904 = vector.load %arg31[%c0_454, %c0_455] : memref<1x96xf32, #tpu.memory_space<vmem>>, vector<1x96xf32>
    %905 = vector.broadcast %904 : vector<1x96xf32> to vector<16x96xf32>
    %906 = arith.addf %903, %905 : vector<16x96xf32>
    %cst_456 = arith.constant dense<0xFF800000> : vector<96xf32>
    %907 = vector.multi_reduction <maximumf>, %906, %cst_456 [0] : vector<16x96xf32> to vector<96xf32>
    %908 = vector.shape_cast %907 : vector<96xf32> to vector<1x96xf32>
    %909 = vector.broadcast %908 : vector<1x96xf32> to vector<16x96xf32>
    %910 = arith.subf %906, %909 : vector<16x96xf32>
    %911 = math.exp %910 : vector<16x96xf32>
    %cst_457 = arith.constant dense<0.000000e+00> : vector<96xf32>
    %912 = vector.multi_reduction <add>, %911, %cst_457 [0] : vector<16x96xf32> to vector<96xf32>
    %913 = vector.shape_cast %912 : vector<96xf32> to vector<1x96xf32>
    %cst_458 = arith.constant 1.000000e+00 : f32
    %914 = vector.broadcast %cst_458 : f32 to vector<1x96xf32>
    %915 = arith.divf %914, %913 : vector<1x96xf32>
    %916 = vector.broadcast %915 : vector<1x96xf32> to vector<16x96xf32>
    %917 = arith.mulf %911, %916 : vector<16x96xf32>
    %918 = arith.mulf %917, %874 : vector<16x96xf32>
    %cst_459 = arith.constant dense<0.000000e+00> : vector<96xf32>
    %919 = vector.multi_reduction <add>, %918, %cst_459 [0] : vector<16x96xf32> to vector<96xf32>
    %920 = vector.shape_cast %919 : vector<96xf32> to vector<1x96xf32>
    %921 = vector.broadcast %920 : vector<1x96xf32> to vector<16x96xf32>
    %922 = arith.subf %874, %921 : vector<16x96xf32>
    %923 = arith.mulf %917, %922 : vector<16x96xf32>
    %924 = arith.mulf %923, %922 : vector<16x96xf32>
    %cst_460 = arith.constant dense<0.000000e+00> : vector<96xf32>
    %925 = vector.multi_reduction <add>, %924, %cst_460 [0] : vector<16x96xf32> to vector<96xf32>
    %926 = vector.shape_cast %925 : vector<96xf32> to vector<1x96xf32>
    %cst_461 = arith.constant 9.99999996E-13 : f32
    %927 = vector.broadcast %cst_461 : f32 to vector<1x96xf32>
    %928 = arith.maximumf %926, %927 : vector<1x96xf32>
    %929 = math.sqrt %928 : vector<1x96xf32>
    %930 = tpu.concatenate %920, %929 in 1 : vector<1x96xf32>, vector<1x96xf32> -> vector<1x192xf32>
    %c0_462 = arith.constant 0 : index
    %c0_463 = arith.constant 0 : index
    %931 = vector.load %arg32[%c0_462, %c0_463] : memref<192x24xf32, #tpu.memory_space<vmem>>, vector<192x24xf32>
    %cst_464 = arith.constant dense<0.000000e+00> : vector<1x24xf32>
    %932 = tpu.matmul %930, %931, %cst_464 {dimension_numbers = #tpu.dot_dimension_numbers<[1], [0], [0], [1], [0, 0, 1, 1], [], []>} : vector<1x192xf32>, vector<192x24xf32>, vector<1x24xf32> -> vector<1x24xf32>
    %c0_465 = arith.constant 0 : index
    %c0_466 = arith.constant 0 : index
    %933 = vector.load %arg33[%c0_465, %c0_466] : memref<1x24xf32, #tpu.memory_space<vmem>>, vector<1x24xf32>
    %934 = arith.addf %932, %933 : vector<1x24xf32>
    %c0_467 = arith.constant 0 : index
    %c0_468 = arith.constant 0 : index
    %c0_469 = arith.constant 0 : index
    %935 = vector.load %arg34[%c0_467, %c0_468, %c0_469] : memref<1x1x24xf32, #tpu.memory_space<vmem>>, vector<1x1x24xf32>
    %936 = vector.shape_cast %935 : vector<1x1x24xf32> to vector<1x24xf32>
    %937 = vector.shape_cast %934 : vector<1x24xf32> to vector<1x1x24xf32>
    tpu.vector_store %arg34[%c0_467, %c0_468, %c0_469], %937 {strides = array<i32>} : memref<1x1x24xf32, #tpu.memory_space<vmem>>, vector<1x1x24xf32>,
    return
  }
  func.func @transform_0(%arg0: i32) -> (i32, i32, i32) {
    %c0_i32 = arith.constant 0 : i32
    %c0_i32_0 = arith.constant 0 : i32
    %c0_i32_1 = arith.constant 0 : i32
    return %arg0, %c0_i32, %c0_i32_0 : i32, i32, i32
  }
  func.func @transform_1(%arg0: i32) -> (i32, i32) {
    %c0_i32 = arith.constant 0 : i32
    %c0_i32_0 = arith.constant 0 : i32
    %c0_i32_1 = arith.constant 0 : i32
    return %c0_i32, %c0_i32_0 : i32, i32
  }
  func.func @transform_2(%arg0: i32) -> (i32, i32) {
    %c0_i32 = arith.constant 0 : i32
    %c0_i32_0 = arith.constant 0 : i32
    %c0_i32_1 = arith.constant 0 : i32
    return %c0_i32, %c0_i32_0 : i32, i32
  }
  func.func @transform_3(%arg0: i32) -> (i32, i32) {
    %c0_i32 = arith.constant 0 : i32
    %c0_i32_0 = arith.constant 0 : i32
    %c0_i32_1 = arith.constant 0 : i32
    return %c0_i32, %c0_i32_0 : i32, i32
  }
  func.func @transform_4(%arg0: i32) -> (i32, i32) {
    %c0_i32 = arith.constant 0 : i32
    %c0_i32_0 = arith.constant 0 : i32
    %c0_i32_1 = arith.constant 0 : i32
    return %c0_i32, %c0_i32_0 : i32, i32
  }
  func.func @transform_5(%arg0: i32) -> (i32, i32, i32) {
    %c0_i32 = arith.constant 0 : i32
    %c0_i32_0 = arith.constant 0 : i32
    %c0_i32_1 = arith.constant 0 : i32
    %c0_i32_2 = arith.constant 0 : i32
    return %c0_i32, %c0_i32_0, %c0_i32_1 : i32, i32, i32
  }
  func.func @transform_6(%arg0: i32) -> (i32, i32, i32) {
    %c0_i32 = arith.constant 0 : i32
    %c0_i32_0 = arith.constant 0 : i32
    %c0_i32_1 = arith.constant 0 : i32
    %c0_i32_2 = arith.constant 0 : i32
    return %c0_i32, %c0_i32_0, %c0_i32_1 : i32, i32, i32
  }
  func.func @transform_7(%arg0: i32) -> (i32, i32, i32) {
    %c0_i32 = arith.constant 0 : i32
    %c0_i32_0 = arith.constant 0 : i32
    %c0_i32_1 = arith.constant 0 : i32
    %c0_i32_2 = arith.constant 0 : i32
    return %c0_i32, %c0_i32_0, %c0_i32_1 : i32, i32, i32
  }
  func.func @transform_8(%arg0: i32) -> (i32, i32, i32) {
    %c0_i32 = arith.constant 0 : i32
    %c0_i32_0 = arith.constant 0 : i32
    %c0_i32_1 = arith.constant 0 : i32
    %c0_i32_2 = arith.constant 0 : i32
    return %c0_i32, %c0_i32_0, %c0_i32_1 : i32, i32, i32
  }
  func.func @transform_9(%arg0: i32) -> (i32, i32, i32) {
    %c0_i32 = arith.constant 0 : i32
    %c0_i32_0 = arith.constant 0 : i32
    %c0_i32_1 = arith.constant 0 : i32
    %c0_i32_2 = arith.constant 0 : i32
    return %c0_i32, %c0_i32_0, %c0_i32_1 : i32, i32, i32
  }
  func.func @transform_10(%arg0: i32) -> (i32, i32, i32) {
    %c0_i32 = arith.constant 0 : i32
    %c0_i32_0 = arith.constant 0 : i32
    %c0_i32_1 = arith.constant 0 : i32
    %c0_i32_2 = arith.constant 0 : i32
    return %c0_i32, %c0_i32_0, %c0_i32_1 : i32, i32, i32
  }
  func.func @transform_11(%arg0: i32) -> (i32, i32, i32) {
    %c0_i32 = arith.constant 0 : i32
    %c0_i32_0 = arith.constant 0 : i32
    %c0_i32_1 = arith.constant 0 : i32
    %c0_i32_2 = arith.constant 0 : i32
    return %c0_i32, %c0_i32_0, %c0_i32_1 : i32, i32, i32
  }
  func.func @transform_12(%arg0: i32) -> (i32, i32, i32) {
    %c0_i32 = arith.constant 0 : i32
    %c0_i32_0 = arith.constant 0 : i32
    %c0_i32_1 = arith.constant 0 : i32
    %c0_i32_2 = arith.constant 0 : i32
    return %c0_i32, %c0_i32_0, %c0_i32_1 : i32, i32, i32
  }
  func.func @transform_13(%arg0: i32) -> (i32, i32) {
    %c0_i32 = arith.constant 0 : i32
    %c0_i32_0 = arith.constant 0 : i32
    %c0_i32_1 = arith.constant 0 : i32
    return %c0_i32, %c0_i32_0 : i32, i32
  }
  func.func @transform_14(%arg0: i32) -> (i32, i32) {
    %c0_i32 = arith.constant 0 : i32
    %c0_i32_0 = arith.constant 0 : i32
    %c0_i32_1 = arith.constant 0 : i32
    return %c0_i32, %c0_i32_0 : i32, i32
  }
  func.func @transform_15(%arg0: i32) -> (i32, i32, i32) {
    %c0_i32 = arith.constant 0 : i32
    %c0_i32_0 = arith.constant 0 : i32
    %c0_i32_1 = arith.constant 0 : i32
    %c0_i32_2 = arith.constant 0 : i32
    return %c0_i32, %c0_i32_0, %c0_i32_1 : i32, i32, i32
  }
  func.func @transform_16(%arg0: i32) -> (i32, i32, i32) {
    %c0_i32 = arith.constant 0 : i32
    %c0_i32_0 = arith.constant 0 : i32
    %c0_i32_1 = arith.constant 0 : i32
    %c0_i32_2 = arith.constant 0 : i32
    return %c0_i32, %c0_i32_0, %c0_i32_1 : i32, i32, i32
  }
  func.func @transform_17(%arg0: i32) -> (i32, i32, i32) {
    %c0_i32 = arith.constant 0 : i32
    %c0_i32_0 = arith.constant 0 : i32
    %c0_i32_1 = arith.constant 0 : i32
    %c0_i32_2 = arith.constant 0 : i32
    return %c0_i32, %c0_i32_0, %c0_i32_1 : i32, i32, i32
  }
  func.func @transform_18(%arg0: i32) -> (i32, i32, i32) {
    %c0_i32 = arith.constant 0 : i32
    %c0_i32_0 = arith.constant 0 : i32
    %c0_i32_1 = arith.constant 0 : i32
    %c0_i32_2 = arith.constant 0 : i32
    return %c0_i32, %c0_i32_0, %c0_i32_1 : i32, i32, i32
  }
  func.func @transform_19(%arg0: i32) -> (i32, i32, i32) {
    %c0_i32 = arith.constant 0 : i32
    %c0_i32_0 = arith.constant 0 : i32
    %c0_i32_1 = arith.constant 0 : i32
    %c0_i32_2 = arith.constant 0 : i32
    return %c0_i32, %c0_i32_0, %c0_i32_1 : i32, i32, i32
  }
  func.func @transform_20(%arg0: i32) -> (i32, i32, i32) {
    %c0_i32 = arith.constant 0 : i32
    %c0_i32_0 = arith.constant 0 : i32
    %c0_i32_1 = arith.constant 0 : i32
    %c0_i32_2 = arith.constant 0 : i32
    return %c0_i32, %c0_i32_0, %c0_i32_1 : i32, i32, i32
  }
  func.func @transform_21(%arg0: i32) -> (i32, i32, i32) {
    %c0_i32 = arith.constant 0 : i32
    %c0_i32_0 = arith.constant 0 : i32
    %c0_i32_1 = arith.constant 0 : i32
    %c0_i32_2 = arith.constant 0 : i32
    return %c0_i32, %c0_i32_0, %c0_i32_1 : i32, i32, i32
  }
  func.func @transform_22(%arg0: i32) -> (i32, i32, i32) {
    %c0_i32 = arith.constant 0 : i32
    %c0_i32_0 = arith.constant 0 : i32
    %c0_i32_1 = arith.constant 0 : i32
    %c0_i32_2 = arith.constant 0 : i32
    return %c0_i32, %c0_i32_0, %c0_i32_1 : i32, i32, i32
  }
  func.func @transform_23(%arg0: i32) -> (i32, i32, i32) {
    %c0_i32 = arith.constant 0 : i32
    %c0_i32_0 = arith.constant 0 : i32
    %c0_i32_1 = arith.constant 0 : i32
    %c0_i32_2 = arith.constant 0 : i32
    return %c0_i32, %c0_i32_0, %c0_i32_1 : i32, i32, i32
  }
  func.func @transform_24(%arg0: i32) -> (i32, i32, i32) {
    %c0_i32 = arith.constant 0 : i32
    %c0_i32_0 = arith.constant 0 : i32
    %c0_i32_1 = arith.constant 0 : i32
    %c0_i32_2 = arith.constant 0 : i32
    return %c0_i32, %c0_i32_0, %c0_i32_1 : i32, i32, i32
  }
  func.func @transform_25(%arg0: i32) -> (i32, i32) {
    %c0_i32 = arith.constant 0 : i32
    %c0_i32_0 = arith.constant 0 : i32
    %c0_i32_1 = arith.constant 0 : i32
    return %c0_i32, %c0_i32_0 : i32, i32
  }
  func.func @transform_26(%arg0: i32) -> (i32, i32) {
    %c0_i32 = arith.constant 0 : i32
    %c0_i32_0 = arith.constant 0 : i32
    %c0_i32_1 = arith.constant 0 : i32
    return %c0_i32, %c0_i32_0 : i32, i32
  }
  func.func @transform_27(%arg0: i32) -> (i32, i32) {
    %c0_i32 = arith.constant 0 : i32
    %c0_i32_0 = arith.constant 0 : i32
    %c0_i32_1 = arith.constant 0 : i32
    return %c0_i32, %c0_i32_0 : i32, i32
  }
  func.func @transform_28(%arg0: i32) -> (i32, i32) {
    %c0_i32 = arith.constant 0 : i32
    %c0_i32_0 = arith.constant 0 : i32
    %c0_i32_1 = arith.constant 0 : i32
    return %c0_i32, %c0_i32_0 : i32, i32
  }
  func.func @transform_29(%arg0: i32) -> (i32, i32) {
    %c0_i32 = arith.constant 0 : i32
    %c0_i32_0 = arith.constant 0 : i32
    %c0_i32_1 = arith.constant 0 : i32
    return %c0_i32, %c0_i32_0 : i32, i32
  }
  func.func @transform_30(%arg0: i32) -> (i32, i32) {
    %c0_i32 = arith.constant 0 : i32
    %c0_i32_0 = arith.constant 0 : i32
    %c0_i32_1 = arith.constant 0 : i32
    return %c0_i32, %c0_i32_0 : i32, i32
  }
  func.func @transform_31(%arg0: i32) -> (i32, i32) {
    %c0_i32 = arith.constant 0 : i32
    %c0_i32_0 = arith.constant 0 : i32
    %c0_i32_1 = arith.constant 0 : i32
    return %c0_i32, %c0_i32_0 : i32, i32
  }
  func.func @transform_32(%arg0: i32) -> (i32, i32) {
    %c0_i32 = arith.constant 0 : i32
    %c0_i32_0 = arith.constant 0 : i32
    %c0_i32_1 = arith.constant 0 : i32
    return %c0_i32, %c0_i32_0 : i32, i32
  }
  func.func @transform_33(%arg0: i32) -> (i32, i32, i32) {
    %c0_i32 = arith.constant 0 : i32
    %c0_i32_0 = arith.constant 0 : i32
    %c0_i32_1 = arith.constant 0 : i32
    return %arg0, %c0_i32, %c0_i32_0 : i32, i32, i32
  }
}

</mosaic_0001>

<bundles_post_ra>
// kernel: forward.1
= control target key start
LH: loop header
LB: loop body
LE: loop exit
PB: predicated region body
PF: predicated region fallthrough
CT: control target
= control target key end

     0   :  { %s6612_s6 = smov 1   ;;  %s6613_s10 = smov 2   ;;  %s8422_s0 = inlined_call_operand.smem [shape: u32[34], index: -1, kind: input, shape index: {}] }
   0x1   :  { %s6697_s5 = sld [smem:[%s8422_s0]]   ;;  %s6614_s14 = smov 3  }
   0x2   :  { %s6702_s9 = sld [smem:[%s8422_s0 + %s6612_s6]]   ;;  %s6615_s18 = smov 4  }
   0x3   :  { %s6707_s13 = sld [smem:[%s8422_s0 + %s6613_s10]]   ;;  %s6616_s22 = smov 5  }
   0x4   :  { %s6712_s17 = sld [smem:[%s8422_s0 + %s6614_s14]]   ;;  %s6617_s26 = smov 6  }
   0x5   :  { %s6717_s21 = sld [smem:[%s8422_s0 + %s6615_s18]]   ;;  %s6618_s30 = smov 7  }
   0x6   :  { %s6722_s25 = sld [smem:[%s8422_s0 + %s6616_s22]]   ;;  %s6619_s4 = smov 8  }
   0x7   :  { %8473 = sst [smem:[#allocation64_spill]] %s6697_s5  ;;  %s6620_s10 = smov 9  }
   0x8   :  { %8474 = sst [smem:[#allocation65_spill]] %s6702_s9  ;;  %s6621_s15 = smov 10  }
   0x9   :  { %8475 = sst [smem:[#allocation66_spill]] %s6707_s13  ;;  %s6622_s20 = smov 11  }
   0xa   :  { %s6727_s29 = sld [smem:[%s8422_s0 + %s6617_s26]]   ;;  %s6623_s26 = smov 12  }
   0xb   :  { %8476 = sst [smem:[#allocation67_spill]] %s6717_s21  ;;  %s6624_s1 = smov 13  }
   0xc   :  { %s6732_s3 = sld [smem:[%s8422_s0 + %s6618_s30]]   ;;  %s6625_s7 = smov 14  }
   0xd   :  { %s6737_s8 = sld [smem:[%s8422_s0 + %s6619_s4]]   ;;  %s6627_s22 = smov 16  }
   0xe   :  { %s6742_s14 = sld [smem:[%s8422_s0 + %s6620_s10]]   ;;  %s6628_s28 = smov 17  }
   0xf   :  { %s6747_s19 = sld [smem:[%s8422_s0 + %s6621_s15]]   ;;  %s6626_s15 = smov 15  }
  0x10   :  { %8477 = sst [smem:[#allocation68_spill]] %s6727_s29 }
  0x11   :  { %s6752_s24 = sld [smem:[%s8422_s0 + %s6622_s20]]  }
  0x12   :  { %8478 = sst [smem:[#allocation69_spill]] %s6732_s3 }
  0x13   :  { %8479 = sst [smem:[#allocation70_spill]] %s6737_s8 }
  0x14   :  { %8480 = sst [smem:[#allocation71_spill]] %s6742_s14 }
  0x15   :  { %8481 = sst [smem:[#allocation72_spill]] %s6747_s19 }
  0x16   :  { %s6757_s30 = sld [smem:[%s8422_s0 + %s6623_s26]]  }
  0x17   :  { %s6762_s6 = sld [smem:[%s8422_s0 + %s6624_s1]]  }
  0x18   :  { %s6767_s12 = sld [smem:[%s8422_s0 + %s6625_s7]]   ;;  %s6629_s7 = smov 18  }
  0x19   :  { %s6772_s20 = sld [smem:[%s8422_s0 + %s6626_s15]]   ;;  %s6630_s15 = smov 19  }
  0x1a   :  { %s6777_s27 = sld [smem:[%s8422_s0 + %s6627_s22]]   ;;  %s6631_s22 = smov 20  }
  0x1b   :  { %s6782_s4 = sld [smem:[%s8422_s0 + %s6628_s28]]   ;;  %s6632_s28 = smov 21  }
  0x1c   :  { %8482 = sst [smem:[#allocation73_spill]] %s6757_s30 }
  0x1d   :  { %8483 = sst [smem:[#allocation74_spill]] %s6762_s6 }
  0x1e   :  { %8484 = sst [smem:[#allocation75_spill]] %s6767_s12 }
  0x1f   :  { %s6787_s5 = sld [smem:[%s8422_s0 + %s6629_s7]]   ;;  %s6633_s7 = smov 22  }
  0x20   :  { %8485 = sst [smem:[#allocation76_spill]] %s6777_s27 }
  0x21   :  { %8486 = sst [smem:[#allocation77_spill]] %s6782_s4 }
  0x22   :  { %s6792_s12 = sld [smem:[%s8422_s0 + %s6630_s15]]   ;;  %s6634_s15 = smov 23  }
  0x23   :  { %s6797_s27 = sld [smem:[%s8422_s0 + %s6631_s22]]   ;;  %s6635_s22 = smov 24  }
  0x24   :  { %s6802_s30 = sld [smem:[%s8422_s0 + %s6632_s28]]   ;;  %s6636_s28 = smov 25  }
  0x25   :  { %8487 = sst [smem:[#allocation78_spill]] %s6787_s5 }
  0x26   :  { %s6807_s5 = sld [smem:[%s8422_s0 + %s6633_s7]]   ;;  %s6637_s7 = smov 26  }
  0x27   :  { %s6817_s19 = sld [smem:[%s8422_s0 + %s6635_s22]]   ;;  %s6639_s22 = smov 28  }
  0x28   :  { %8488 = sst [smem:[#allocation79_spill]] %s6792_s12 }
  0x29   :  { %s6812_s12 = sld [smem:[%s8422_s0 + %s6634_s15]]   ;;  %s6638_s15 = smov 27  }
  0x2a   :  { %8489 = sst [smem:[#allocation80_spill]] %s6802_s30 }
  0x2b   :  { %s6822_s30 = sld [smem:[%s8422_s0 + %s6636_s28]]   ;;  %s6640_s28 = smov 29  }
  0x2c   :  { %8490 = sst [smem:[#allocation81_spill]] %s6807_s5 }
  0x2d   :  { %s6827_s8 = sld [smem:[%s8422_s0 + %s6637_s7]]   ;;  %s6641_s7 = smov 30  }
  0x2e   :  { %s6837_s29 = sld [smem:[%s8422_s0 + %s6639_s22]]   ;;  %s6643_s22 = smov 32  }
  0x2f   :  { %8491 = sst [smem:[#allocation82_spill]] %s6812_s12 }
  0x30   :  { %s6832_s12 = sld [smem:[%s8422_s0 + %s6638_s15]]   ;;  %s6642_s15 = smov 31  }
  0x31   :  { %8492 = sst [smem:[#allocation83_spill]] %s6822_s30 }
  0x32   :  { %s6842_s30 = sld [smem:[%s8422_s0 + %s6640_s28]]   ;;  %s6644_s28 = smov 33  }
  0x33   :  { %8493 = sst [smem:[#allocation84_spill]] %s6827_s8 }
  0x34   :  { %s6847_s21 = sld [smem:[%s8422_s0 + %s6641_s7]]  }
  0x35   :  { %s6857_s13 = sld [smem:[%s8422_s0 + %s6643_s22]]  }
  0x36   :  { %8494 = sst [smem:[#allocation85_spill]] %s6832_s12 }
  0x37   :  { %s6852_s12 = sld [smem:[%s8422_s0 + %s6642_s15]]  }
  0x38   :  { %8495 = sst [smem:[#allocation86_spill]] %s6842_s30 }
  0x39   :  { %s6862_s30 = sld [smem:[%s8422_s0 + %s6644_s28]]  }
  0x3a   :  { %8496 = sst [smem:[#allocation87_spill]] %s6847_s21 }
  0x3b   :  { %8497 = sst [smem:[#allocation88_spill]] %s6857_s13 }
  0x3f   :  { %8498 = sst [smem:[#allocation89_spill]] %s6862_s30 }
  0x40   :  { %72 = vsyncpa [#allocation3], 0 }
  0x41   :  { %74 = vsyncpa [#allocation3 + $0x1], 0 }
  0x42   :  { %75 = vsyncpa [#allocation6], 0 }
  0x43   :  { %76 = vsyncpa [#allocation9], 0 }
  0x44   :  { %77 = vsyncpa [#allocation12], 0 }
  0x45   :  { %78 = vsyncpa [#allocation15], 0 }
  0x46   :  { %79 = vsyncpa [#allocation18], 0 }
  0x47   :  { %80 = vsyncpa [#allocation21], 0 }
  0x48   :  { %81 = vsyncpa [#allocation24], 0 }
  0x49   :  { %82 = vsyncpa [#allocation27], 0 }
  0x4a   :  { %83 = vsyncpa [#allocation30], 0 }
  0x4b   :  { %84 = vsyncpa [#allocation33], 0 }
  0x4c   :  { %85 = vsyncpa [#allocation36], 0 }
  0x4d   :  { %86 = vsyncpa [#allocation39], 0 }
  0x4e   :  { %87 = vsyncpa [#allocation42], 0 }
  0x4f   :  { %88 = vsyncpa [#allocation45], 0 }
  0x50   :  { %89 = vsyncpa [#allocation4], 0 }
  0x51   :  { %91 = vsyncpa [#allocation4 + $0x1], 0  ;;  %s6864_s0 = smov 0   ;;  %s6866_s7 = smov 0  }
  0x52   :  { %s6868_s10 = smov 0   ;;  %s6870_s11 = smov 0  }
  0x53 LB: > { %s8499_s14 = sld [smem:[#allocation71_spill]]  ;;  %s6885_s15 = sadd.s32 4294967295, %s6610_s11   ;;  %s6606_s10 = sphi %s6868_s10, %s8583_s10   ;;  %s6602_s7 = sphi %s6866_s7, %s8582_s7   ;;  %s6598_s0 = sphi %s6864_s0, %s8581_s0   ;;  %s6610_s11 = sphi %s6870_s11, %s8579_s11  }
  0x54   : > { %s8500_s8 = sld [smem:[#allocation84_spill]]  ;;  %s5150_s16 = sadd.s32 4294967294, %s6610_s11  }
  0x55   : > { %s8501_s6 = sld [smem:[#allocation74_spill]]  ;;  %s6889_s18 = sadd.s32 1, %s6610_s11  }
  0x56   : > { %s8502_s5 = sld [smem:[#allocation81_spill]]  ;;  %s104_s22 = sadd.s32 1, %s6606_s10 }
  0x57   : > { %s8503_s4 = sld [smem:[#allocation77_spill]]  ;;  %s101_s23 = ssub.s32 %s6610_s11, %s6889_s18 }
  0x58   : > { %s8504_s3 = sld [smem:[#allocation69_spill]]  ;;  %p111_p0 = scmp.ne.s32.totalorder %s6606_s10, %s6602_s7 }
  0x59   : > { %s8505_s9 = sld [smem:[#allocation65_spill]]  ;;  %p102_p1 = scmp.eq.s32.totalorder %s101_s23, 0 }
  0x5a   : > { %8506 = sst [smem:[#allocation90_spill]] %s6598_s0  ;;  %p112_p2 = scmp.eq.s32.totalorder %s6610_s11, 0 }
  0x5b   : > { %8507 = sst [smem:[#allocation91_spill]] %s6889_s18  ;;  %p117_p3 = scmp.ne.s32.totalorder %s6602_s7, %s6598_s0 }
  0x5c   : > { %p8471_p4 = scmp.eq.s32.totalorder %s6885_s15, 0  ;;  %p6903_p5 = por %p112_p2, %p111_p0 }
  0x5d   : > { %s6901_s26 = scalar_select %p102_p1, %s6606_s10, %s104_s22  }
  0x5e   : > { %p6909_p6 = por %p8471_p4, %p117_p3  ;;  %p813_p7 = scmp.eq.s32.totalorder %s6885_s15, 1 }
  0x5f   : > { %8508 = sst [smem:[#allocation92_spill]] %s6901_s26  ;;  %p819_p8 = scmp.eq.s32.totalorder %s5150_s16, 1 }
  0x60   : > { %s8510_s1 = scalar_select %p6909_p6, 1, 0 }
  0x61   : > { %p5151_p9 = scmp.ge.s32.totalorder %s6610_s11, 1  ;;  %p826_p10 = scmp.lt.s32.totalorder %s6610_s11, 3 }
  0x62   : > { %8511 = sst [smem:[#allocation93_spill]] %s8510_s1  ;;  %p6916_p11 = por %p813_p7, %p111_p0 }
  0x63   : > { %p6920_p12 = por %p819_p8, %p117_p3  ;;  %p6924_p13 = pnand %p5151_p9, %p826_p10 }
  0x64   : > { %s8512_s2 = scalar_select %p6916_p11, 1, 0 }
  0x65   : > { %s8514_s22 = scalar_select %p6920_p12, 1, 0 }
  0x66   : > { %8513 = sst [smem:[#allocation94_spill]] %s8512_s2  ;;  %830 = sbr.rel (%p6924_p13) target bundleno = 471 (0x1d7), region = 12 }
  0x67   : > { %8515 = sst [smem:[#allocation95_spill]] %s8514_s22  ;;  %s837_s16 = sshll.u32 (!%p6924_p13), %s8505_s9, 4  ;;  %s838_s16 = int_to_ptr.hbm [resolvable:$true] %s837_s16 }
  0x68   : > { %s6645_s26 = smov (!%p6924_p13), [#allocation5]   ;;  %s5674_s0 = sshra.s32 (!%p6924_p13), %s838_s16, 4  ;;  %s5675_s0 = int_to_ptr.hbm [resolvable:$true] %s5674_s0 }
  0x69   : > { %s839_s18 = sshll.u32 (!%p6924_p13), %s6645_s26, 4  ;;  %s5676_s2 = scalar_lea.hbm (!%p6924_p13), %s5675_s0, 48  ;;  %s840_s18 = int_to_ptr.vmem [resolvable:$true] %s839_s18 }
  0x6a   : > { %p5677_p0 = scmp.ne.s32.totalorder (!%p6924_p13), %s5675_s0, %s5676_s2  ;;  %s5680_s22 = scalar_lea.hbm (!%p6924_p13), %s8505_s9, 48 }
  0x6b   : > { %p5681_p3 = scmp.lt.s32.totalorder %s5675_s0, %s8505_s9  ;;  %p5682_p7 = scmp.lt.s32.totalorder %s5680_s22, %s5676_s2 }
  0x6c   : > { %p5678_p1 = pnand %p5677_p0, %p8471_p4 }
  0x6d   : > { %p5683_p8 = por %p5682_p7, %p5681_p3 }
  0x6e   : > { %p5679_p2 = pneg %p5678_p1 }
  0x70   : > { %p5684_p9 = pnand %p5683_p8, %p5679_p2 }
  0x72   : > { %5687 = shalt.err (!%p5684_p9)
}
  0x73   : > { %s8449_s13 = smov 128   ;;  %s8451_s26 = smov 8  }
  0x74   : > { %5313 = dma.hbm_to_vmem [thread:$0]  (%p8471_p4), %s838_s16, 768, %s840_s18, [#allocation6], %s8449_s13, %s8449_s13, %s8451_s26  }
  0x75   : > { %s863_s30 = sshll.u32 %s6712_s17, 4  ;;  %s6648_s0 = smov [#allocation8]   ;;  %s864_s30 = int_to_ptr.hbm [resolvable:$true] %s863_s30 }
  0x76   : > { %s865_s2 = sshll.u32 %s6648_s0, 4  ;;  %s889_s22 = sshll.u32 %s6722_s25, 4  ;;  %s866_s2 = int_to_ptr.vmem [resolvable:$true] %s865_s2  ;;  %s890_s22 = int_to_ptr.hbm [resolvable:$true] %s889_s22 }
  0x77   : > { %s5702_s9 = sshra.s32 %s864_s30, 4  ;;  %s5708_s1 = scalar_lea.hbm %s6712_s17, 192  ;;  %s5703_s9 = int_to_ptr.hbm [resolvable:$true] %s5702_s9 }
  0x78   : > { %s5704_s21 = scalar_lea.hbm %s5703_s9, 192  ;;  %p5709_p2 = scmp.lt.s32.totalorder %s5703_s9, %s6712_s17 }
  0x79   : > { %p5705_p10 = scmp.ne.s32.totalorder %s5703_s9, %s5704_s21  ;;  %p5710_p3 = scmp.lt.s32.totalorder %s5708_s1, %s5704_s21 }
  0x7b   : > { %p5706_p0 = pnand %p5705_p10, %p8471_p4  ;;  %p5711_p7 = por %p5710_p3, %p5709_p2 }
  0x7d   : > { %p5707_p1 = pneg %p5706_p0 }
  0x7f   : > { %p5712_p8 = pnand %p5711_p7, %p5707_p1 }
  0x81   : > { %5715 = shalt.err (!%p5712_p8)
}
  0x82   : > { %5317 = dma.hbm_to_vmem [thread:$0]  (%p8471_p4), %s864_s30, 3072, %s866_s2, [#allocation9], %s8449_s13, %s8449_s13, %s8451_s26  }
  0x83   : > { %s6649_s18 = smov [#allocation11]   ;;  %s917_s0 = sshll.u32 %s8504_s3, 4  ;;  %s6952_s0 = int_to_ptr.hbm [resolvable:$true] %s917_s0 }
  0x84   : > { %s891_s16 = sshll.u32 %s6649_s18, 4  ;;  %s5730_s9 = sshra.s32 %s890_s22, 4  ;;  %s892_s16 = int_to_ptr.vmem [resolvable:$true] %s891_s16  ;;  %s5731_s9 = int_to_ptr.hbm [resolvable:$true] %s5730_s9 }
  0x85   : > { %s5732_s21 = scalar_lea.hbm %s5731_s9, 72  ;;  %s5736_s1 = scalar_lea.hbm %s6722_s25, 72 }
  0x86   : > { %p5733_p9 = scmp.ne.s32.totalorder %s5731_s9, %s5732_s21  ;;  %p5737_p1 = scmp.lt.s32.totalorder %s5731_s9, %s6722_s25 }
  0x87   : > { %p5738_p2 = scmp.lt.s32.totalorder %s5736_s1, %s5732_s21 }
  0x88   : > { %p5734_p10 = pnand %p5733_p9, %p8471_p4 }
  0x89   : > { %p5739_p3 = por %p5738_p2, %p5737_p1 }
  0x8a   : > { %p5735_p0 = pneg %p5734_p10 }
  0x8c   : > { %p5740_p7 = pnand %p5739_p3, %p5735_p0 }
  0x8e   : > { %5743 = shalt.err (!%p5740_p7)
}
  0x8f   : > { %5321 = dma.hbm_to_vmem [thread:$0]  (%p8471_p4), %s890_s22, 1152, %s892_s16, [#allocation12], %s8449_s13, %s8449_s13, %s8451_s26  }
  0x90   : > { %s945_s30 = sshll.u32 %s8499_s14, 4  ;;  %s6650_s2 = smov [#allocation14]   ;;  %s6964_s30 = int_to_ptr.hbm [resolvable:$true] %s945_s30 }
  0x91   : > { %s919_s18 = sshll.u32 %s6650_s2, 4  ;;  %s5758_s9 = sshra.s32 %s6952_s0, 4  ;;  %s920_s18 = int_to_ptr.vmem [resolvable:$true] %s919_s18  ;;  %s5759_s9 = int_to_ptr.hbm [resolvable:$true] %s5758_s9 }
  0x92   : > { %s5760_s21 = scalar_lea.hbm %s5759_s9, 32  ;;  %s5764_s1 = scalar_lea.hbm %s8504_s3, 32 }
  0x93   : > { %p5761_p8 = scmp.ne.s32.totalorder %s5759_s9, %s5760_s21  ;;  %p5765_p0 = scmp.lt.s32.totalorder %s5759_s9, %s8504_s3 }
  0x94   : > { %p5766_p1 = scmp.lt.s32.totalorder %s5764_s1, %s5760_s21 }
  0x95   : > { %p5762_p9 = pnand %p5761_p8, %p8471_p4 }
  0x96   : > { %p5767_p2 = por %p5766_p1, %p5765_p0 }
  0x97   : > { %p5763_p10 = pneg %p5762_p9 }
  0x99   : > { %p5768_p3 = pnand %p5767_p2, %p5763_p10 }
  0x9b   : > { %5771 = shalt.err (!%p5768_p3)
}
  0x9c   : > { %5325 = dma.hbm_to_vmem [thread:$0]  (%p8471_p4), %s6952_s0, 512, %s920_s18, [#allocation15], %s8449_s13, %s8449_s13, %s8451_s26  }
  0x9d   : > { %s6651_s22 = smov [#allocation17]   ;;  %s973_s2 = sshll.u32 %s6752_s24, 4  ;;  %s6978_s2 = int_to_ptr.hbm [resolvable:$true] %s973_s2 }
  0x9e   : > { %s947_s16 = sshll.u32 %s6651_s22, 4  ;;  %s5786_s9 = sshra.s32 %s6964_s30, 4  ;;  %s948_s16 = int_to_ptr.vmem [resolvable:$true] %s947_s16  ;;  %s5787_s9 = int_to_ptr.hbm [resolvable:$true] %s5786_s9 }
  0x9f   : > { %s5788_s21 = scalar_lea.hbm %s5787_s9, 32  ;;  %s5792_s1 = scalar_lea.hbm %s8499_s14, 32 }
  0xa0   : > { %p5789_p7 = scmp.ne.s32.totalorder %s5787_s9, %s5788_s21  ;;  %p5793_p10 = scmp.lt.s32.totalorder %s5787_s9, %s8499_s14 }
  0xa1   : > { %p5794_p0 = scmp.lt.s32.totalorder %s5792_s1, %s5788_s21 }
  0xa2   : > { %p5790_p8 = pnand %p5789_p7, %p8471_p4 }
  0xa3   : > { %p5795_p1 = por %p5794_p0, %p5793_p10 }
  0xa4   : > { %p5791_p9 = pneg %p5790_p8 }
  0xa6   : > { %p5796_p2 = pnand %p5795_p1, %p5791_p9 }
  0xa8   : > { %5799 = shalt.err (!%p5796_p2)
}
  0xa9   : > { %5329 = dma.hbm_to_vmem [thread:$0]  (%p8471_p4), %s6964_s30, 512, %s948_s16, [#allocation18], %s8449_s13, %s8449_s13, %s8451_s26  }
  0xaa   : > { %s1001_s0 = sshll.u32 %s8501_s6, 4  ;;  %s6652_s18 = smov [#allocation20]   ;;  %s6992_s0 = int_to_ptr.hbm [resolvable:$true] %s1001_s0 }
  0xab   : > { %s975_s22 = sshll.u32 %s6652_s18, 4  ;;  %s5814_s9 = sshra.s32 %s6978_s2, 4  ;;  %s976_s22 = int_to_ptr.vmem [resolvable:$true] %s975_s22  ;;  %s5815_s9 = int_to_ptr.hbm [resolvable:$true] %s5814_s9 }
  0xac   : > { %s5816_s21 = scalar_lea.hbm %s5815_s9, 96  ;;  %s5820_s1 = scalar_lea.hbm %s6752_s24, 96 }
  0xad   : > { %p5817_p3 = scmp.ne.s32.totalorder %s5815_s9, %s5816_s21  ;;  %p5821_p9 = scmp.lt.s32.totalorder %s5815_s9, %s6752_s24 }
  0xae   : > { %p5822_p10 = scmp.lt.s32.totalorder %s5820_s1, %s5816_s21 }
  0xaf   : > { %p5818_p7 = pnand %p5817_p3, %p8471_p4 }
  0xb0   : > { %p5823_p0 = por %p5822_p10, %p5821_p9 }
  0xb1   : > { %p5819_p8 = pneg %p5818_p7 }
  0xb3   : > { %p5824_p1 = pnand %p5823_p0, %p5819_p8 }
  0xb5   : > { %5827 = shalt.err (!%p5824_p1)
}
  0xb6   : > { %5333 = dma.hbm_to_vmem [thread:$0]  (%p8471_p4), %s6978_s2, 1536, %s976_s22, [#allocation21], %s8449_s13, %s8449_s13, %s8451_s26  }
  0xb7   : > { %s6653_s30 = smov [#allocation23]   ;;  %s1027_s18 = sshll.u32 %s6772_s20, 4  ;;  %s7006_s18 = int_to_ptr.hbm [resolvable:$true] %s1027_s18 }
  0xb8   : > { %s1003_s16 = sshll.u32 %s6653_s30, 4  ;;  %s5842_s9 = sshra.s32 %s6992_s0, 4  ;;  %s1004_s16 = int_to_ptr.vmem [resolvable:$true] %s1003_s16  ;;  %s5843_s9 = int_to_ptr.hbm [resolvable:$true] %s5842_s9 }
  0xb9   : > { %s5844_s21 = scalar_lea.hbm %s5843_s9, 32  ;;  %s5848_s1 = scalar_lea.hbm %s8501_s6, 32 }
  0xba   : > { %p5845_p2 = scmp.ne.s32.totalorder %s5843_s9, %s5844_s21  ;;  %p5849_p8 = scmp.lt.s32.totalorder %s5843_s9, %s8501_s6 }
  0xbb   : > { %p5850_p9 = scmp.lt.s32.totalorder %s5848_s1, %s5844_s21 }
  0xbc   : > { %p5846_p3 = pnand %p5845_p2, %p8471_p4 }
  0xbd   : > { %p5851_p10 = por %p5850_p9, %p5849_p8 }
  0xbe   : > { %p5847_p7 = pneg %p5846_p3 }
  0xc0   : > { %p5852_p0 = pnand %p5851_p10, %p5847_p7 }
  0xc2   : > { %5855 = shalt.err (!%p5852_p0)
}
  0xc3   : > { %5337 = dma.hbm_to_vmem [thread:$0]  (%p8471_p4), %s6992_s0, 512, %s1004_s16, [#allocation24], %s8449_s13, %s8449_s13, %s8451_s26  }
  0xc4   : > { %s1055_s2 = sshll.u32 %s8503_s4, 4  ;;  %s6654_s22 = smov [#allocation26]   ;;  %s7020_s2 = int_to_ptr.hbm [resolvable:$true] %s1055_s2 }
  0xc5   : > { %s1029_s30 = sshll.u32 %s6654_s22, 4  ;;  %s5870_s9 = sshra.s32 %s7006_s18, 4  ;;  %s1030_s30 = int_to_ptr.vmem [resolvable:$true] %s1029_s30  ;;  %s5871_s9 = int_to_ptr.hbm [resolvable:$true] %s5870_s9 }
  0xc6   : > { %s5872_s21 = scalar_lea.hbm %s5871_s9, 96  ;;  %s5876_s1 = scalar_lea.hbm %s6772_s20, 96 }
  0xc7   : > { %p5873_p1 = scmp.ne.s32.totalorder %s5871_s9, %s5872_s21  ;;  %p5877_p7 = scmp.lt.s32.totalorder %s5871_s9, %s6772_s20 }
  0xc8   : > { %p5878_p8 = scmp.lt.s32.totalorder %s5876_s1, %s5872_s21 }
  0xc9   : > { %p5874_p2 = pnand %p5873_p1, %p8471_p4 }
  0xca   : > { %p5879_p9 = por %p5878_p8, %p5877_p7 }
  0xcb   : > { %p5875_p3 = pneg %p5874_p2 }
  0xcd   : > { %p5880_p10 = pnand %p5879_p9, %p5875_p3 }
  0xcf   : > { %5883 = shalt.err (!%p5880_p10)
}
  0xd0   : > { %5341 = dma.hbm_to_vmem [thread:$0]  (%p8471_p4), %s7006_s18, 1536, %s1030_s30, [#allocation27], %s8449_s13, %s8449_s13, %s8451_s26  }
  0xd1   : > { %s6655_s0 = smov [#allocation29]   ;;  %s5898_s22 = sshra.s32 %s7020_s2, 4  ;;  %s5899_s22 = int_to_ptr.hbm [resolvable:$true] %s5898_s22 }
  0xd2   : > { %s1057_s16 = sshll.u32 %s6655_s0, 4  ;;  %s5900_s9 = scalar_lea.hbm %s5899_s22, 216  ;;  %s1058_s16 = int_to_ptr.vmem [resolvable:$true] %s1057_s16 }
  0xd3   : > { %p5901_p0 = scmp.ne.s32.totalorder %s5899_s22, %s5900_s9  ;;  %s5904_s21 = scalar_lea.hbm %s8503_s4, 216 }
  0xd4   : > { %p5905_p3 = scmp.lt.s32.totalorder %s5899_s22, %s8503_s4  ;;  %p5906_p7 = scmp.lt.s32.totalorder %s5904_s21, %s5900_s9 }
  0xd5   : > { %p5902_p1 = pnand %p5901_p0, %p8471_p4 }
  0xd6   : > { %p5907_p8 = por %p5906_p7, %p5905_p3 }
  0xd7   : > { %p5903_p2 = pneg %p5902_p1 }
  0xd9   : > { %p5908_p9 = pnand %p5907_p8, %p5903_p2 }
  0xdb   : > { %5911 = shalt.err (!%p5908_p9)
}
  0xdc   : > { %5345 = dma.hbm_to_vmem [thread:$0]  (%p8471_p4), %s7020_s2, 3456, %s1058_s16, [#allocation30], %s8449_s13, %s8449_s13, %s8451_s26  }
  0xdd   : > { %s1086_s18 = sshll.u32 %s6797_s27, 4  ;;  %s6656_s30 = smov [#allocation32]   ;;  %s1087_s18 = int_to_ptr.hbm [resolvable:$true] %s1086_s18 }
  0xde   : > { %s1088_s1 = sshll.u32 %s6656_s30, 4  ;;  %s1114_s0 = sshll.u32 %s8502_s5, 4  ;;  %s1089_s1 = int_to_ptr.vmem [resolvable:$true] %s1088_s1  ;;  %s1115_s0 = int_to_ptr.hbm [resolvable:$true] %s1114_s0 }
  0xdf   : > { %s5926_s22 = sshra.s32 %s1087_s18, 4  ;;  %s5932_s21 = scalar_lea.hbm %s6797_s27, 3  ;;  %s5927_s22 = int_to_ptr.hbm [resolvable:$true] %s5926_s22 }
  0xe0   : > { %s5928_s9 = scalar_lea.hbm %s5927_s22, 3  ;;  %p5933_p2 = scmp.lt.s32.totalorder %s5927_s22, %s6797_s27 }
  0xe1   : > { %p5929_p10 = scmp.ne.s32.totalorder %s5927_s22, %s5928_s9  ;;  %p5934_p3 = scmp.lt.s32.totalorder %s5932_s21, %s5928_s9 }
  0xe3   : > { %p5930_p0 = pnand %p5929_p10, %p8471_p4  ;;  %p5935_p7 = por %p5934_p3, %p5933_p2 }
  0xe5   : > { %p5931_p1 = pneg %p5930_p0 }
  0xe7   : > { %p5936_p8 = pnand %p5935_p7, %p5931_p1 }
  0xe9   : > { %5939 = shalt.err (!%p5936_p8)
}
  0xea   : > { %s8453_s2 = smov 16   ;;  %s8455_s16 = smov 1  }
  0xeb   : > { %5349 = dma.hbm_to_vmem [thread:$0]  (%p8471_p4), %s1087_s18, 48, %s1089_s1, [#allocation33], %s8453_s2, %s8453_s2, %s8455_s16  }
  0xec   : > { %s6659_s30 = smov [#allocation35]   ;;  %s1142_s22 = sshll.u32 %s6817_s19, 4  ;;  %s7056_s22 = int_to_ptr.hbm [resolvable:$true] %s1142_s22 }
  0xed   : > { %s1116_s13 = sshll.u32 %s6659_s30, 4  ;;  %s5954_s9 = sshra.s32 %s1115_s0, 4  ;;  %s1117_s13 = int_to_ptr.vmem [resolvable:$true] %s1116_s13  ;;  %s5955_s9 = int_to_ptr.hbm [resolvable:$true] %s5954_s9 }
  0xee   : > { %s5956_s21 = scalar_lea.hbm %s5955_s9, 3  ;;  %s5960_s26 = scalar_lea.hbm %s8502_s5, 3 }
  0xef   : > { %p5957_p9 = scmp.ne.s32.totalorder %s5955_s9, %s5956_s21  ;;  %p5961_p1 = scmp.lt.s32.totalorder %s5955_s9, %s8502_s5 }
  0xf0   : > { %p5962_p2 = scmp.lt.s32.totalorder %s5960_s26, %s5956_s21 }
  0xf1   : > { %p5958_p10 = pnand %p5957_p9, %p8471_p4 }
  0xf2   : > { %p5963_p3 = por %p5962_p2, %p5961_p1 }
  0xf3   : > { %p5959_p0 = pneg %p5958_p10 }
  0xf5   : > { %p5964_p7 = pnand %p5963_p3, %p5959_p0 }
  0xf7   : > { %5967 = shalt.err (!%p5964_p7)
}
  0xf8   : > { %5353 = dma.hbm_to_vmem [thread:$0]  (%p8471_p4), %s1115_s0, 48, %s1117_s13, [#allocation36], %s8453_s2, %s8453_s2, %s8455_s16  }
  0xf9   : > { %s1171_s18 = sshll.u32 %s8500_s8, 4  ;;  %s6660_s1 = smov [#allocation38]   ;;  %s7068_s18 = int_to_ptr.hbm [resolvable:$true] %s1171_s18 }
  0xfa   : > { %s1144_s30 = sshll.u32 %s6660_s1, 4  ;;  %s5982_s26 = sshra.s32 %s7056_s22, 4  ;;  %s1145_s30 = int_to_ptr.vmem [resolvable:$true] %s1144_s30  ;;  %s5983_s26 = int_to_ptr.hbm [resolvable:$true] %s5982_s26 }
  0xfb   : > { %s5984_s9 = scalar_lea.hbm %s5983_s26, 3  ;;  %s5988_s21 = scalar_lea.hbm %s6817_s19, 3 }
  0xfc   : > { %p5985_p8 = scmp.ne.s32.totalorder %s5983_s26, %s5984_s9  ;;  %p5989_p0 = scmp.lt.s32.totalorder %s5983_s26, %s6817_s19 }
  0xfd   : > { %p5990_p1 = scmp.lt.s32.totalorder %s5988_s21, %s5984_s9 }
  0xfe   : > { %p5986_p9 = pnand %p5985_p8, %p8471_p4 }
  0xff   : > { %p5991_p2 = por %p5990_p1, %p5989_p0 }
 0x100   : > { %p5987_p10 = pneg %p5986_p9 }
 0x102   : > { %p5992_p3 = pnand %p5991_p2, %p5987_p10 }
 0x104   : > { %5995 = shalt.err (!%p5992_p3)
}
 0x105   : > { %5357 = dma.hbm_to_vmem [thread:$0]  (%p8471_p4), %s7056_s22, 48, %s1145_s30, [#allocation39], %s8453_s2, %s8453_s2, %s8455_s16  }
 0x106   : > { %s6661_s13 = smov [#allocation41]   ;;  %s1197_s1 = sshll.u32 %s6837_s29, 4  ;;  %s7082_s1 = int_to_ptr.hbm [resolvable:$true] %s1197_s1 }
 0x107   : > { %s1173_s0 = sshll.u32 %s6661_s13, 4  ;;  %s6010_s26 = sshra.s32 %s7068_s18, 4  ;;  %s1174_s0 = int_to_ptr.vmem [resolvable:$true] %s1173_s0  ;;  %s6011_s26 = int_to_ptr.hbm [resolvable:$true] %s6010_s26 }
 0x108   : > { %s6012_s9 = scalar_lea.hbm %s6011_s26, 1  ;;  %s6016_s21 = scalar_lea.hbm %s8500_s8, 1 }
 0x109   : > { %p6013_p7 = scmp.ne.s32.totalorder %s6011_s26, %s6012_s9  ;;  %p6017_p10 = scmp.lt.s32.totalorder %s6011_s26, %s8500_s8 }
 0x10a   : > { %p6018_p0 = scmp.lt.s32.totalorder %s6016_s21, %s6012_s9 }
 0x10b   : > { %p6014_p8 = pnand %p6013_p7, %p8471_p4 }
 0x10c   : > { %p6019_p1 = por %p6018_p0, %p6017_p10 }
 0x10d   : > { %p6015_p9 = pneg %p6014_p8 }
 0x10f   : > { %p6020_p2 = pnand %p6019_p1, %p6015_p9 }
 0x111   : > { %6023 = shalt.err (!%p6020_p2)
}
 0x112   : > { %s8517_s22 = sld [smem:[#allocation66_spill]]  ;;  %s6662_s13 = smov [#allocation44]  }
 0x113   : > { %5361 = dma.hbm_to_vmem [thread:$0]  (%p8471_p4), %s7068_s18, 16, %s1174_s0, [#allocation42]  }
 0x114   : > { %s1199_s2 = sshll.u32 %s6662_s13, 4  ;;  %s6038_s26 = sshra.s32 %s7082_s1, 4  ;;  %s1200_s2 = int_to_ptr.vmem [resolvable:$true] %s1199_s2  ;;  %s6039_s26 = int_to_ptr.hbm [resolvable:$true] %s6038_s26 }
 0x115   : > { %s6040_s9 = scalar_lea.hbm %s6039_s26, 1  ;;  %s6044_s21 = scalar_lea.hbm %s6837_s29, 1 }
 0x116   : > { %p6041_p3 = scmp.ne.s32.totalorder %s6039_s26, %s6040_s9  ;;  %p6045_p9 = scmp.lt.s32.totalorder %s6039_s26, %s6837_s29 }
 0x117   : > { %p6046_p10 = scmp.lt.s32.totalorder %s6044_s21, %s6040_s9 }
 0x118   : > { %s852_s30 = sshll.u32 %s8517_s22, 4  ;;  %p6042_p7 = pnand %p6041_p3, %p8471_p4  ;;  %s7093_s30 = int_to_ptr.hbm [resolvable:$true] %s852_s30 }
 0x119   : > { %p6047_p0 = por %p6046_p10, %p6045_p9 }
 0x11a   : > { %p6043_p8 = pneg %p6042_p7 }
 0x11c   : > { %p6048_p1 = pnand %p6047_p0, %p6043_p8 }
 0x11e   : > { %6051 = shalt.err (!%p6048_p1)
}
 0x11f   : > { %s8518_s18 = sld [smem:[#allocation67_spill]]  ;;  %s6663_s0 = smov [#allocation7]  }
 0x120   : > { %5365 = dma.hbm_to_vmem [thread:$0]  (%p8471_p4), %s7082_s1, 16, %s1200_s2, [#allocation45]  }
 0x121   : > { %s854_s13 = sshll.u32 %s6663_s0, 4  ;;  %s6066_s26 = sshra.s32 %s7093_s30, 4  ;;  %s855_s13 = int_to_ptr.vmem [resolvable:$true] %s854_s13  ;;  %s6067_s26 = int_to_ptr.hbm [resolvable:$true] %s6066_s26 }
 0x122   : > { %s6068_s9 = scalar_lea.hbm %s6067_s26, 1  ;;  %s6072_s21 = scalar_lea.hbm %s8517_s22, 1 }
 0x123   : > { %p6069_p2 = scmp.ne.s32.totalorder %s6067_s26, %s6068_s9  ;;  %p6073_p8 = scmp.lt.s32.totalorder %s6067_s26, %s8517_s22 }
 0x124   : > { %p6074_p9 = scmp.lt.s32.totalorder %s6072_s21, %s6068_s9 }
 0x125   : > { %s878_s16 = sshll.u32 %s8518_s18, 4  ;;  %p6070_p3 = pnand %p6069_p2, %p8471_p4  ;;  %s7104_s16 = int_to_ptr.hbm [resolvable:$true] %s878_s16 }
 0x126   : > { %p6075_p10 = por %p6074_p9, %p6073_p8 }
 0x127   : > { %p6071_p7 = pneg %p6070_p3 }
 0x129   : > { %p6076_p0 = pnand %p6075_p10, %p6071_p7 }
 0x12b   : > { %6079 = shalt.err (!%p6076_p0)
}
 0x12c   : > { %s8519_s2 = sld [smem:[#allocation68_spill]]  ;;  %s6664_s0 = smov [#allocation10]  }
 0x12d   : > { %5315 = dma.hbm_to_vmem [thread:$0]  (%p8471_p4), %s7093_s30, 16, %s855_s13, [#allocation6]  }
 0x12e   : > { %s880_s3 = sshll.u32 %s6664_s0, 4  ;;  %s6094_s26 = sshra.s32 %s7104_s16, 4  ;;  %s881_s3 = int_to_ptr.vmem [resolvable:$true] %s880_s3  ;;  %s6095_s26 = int_to_ptr.hbm [resolvable:$true] %s6094_s26 }
 0x12f   : > { %s6096_s9 = scalar_lea.hbm %s6095_s26, 1  ;;  %s6100_s21 = scalar_lea.hbm %s8518_s18, 1 }
 0x130   : > { %p6097_p1 = scmp.ne.s32.totalorder %s6095_s26, %s6096_s9  ;;  %p6101_p7 = scmp.lt.s32.totalorder %s6095_s26, %s8518_s18 }
 0x131   : > { %p6102_p8 = scmp.lt.s32.totalorder %s6100_s21, %s6096_s9 }
 0x132   : > { %s903_s1 = sshll.u32 %s8519_s2, 4  ;;  %p6098_p2 = pnand %p6097_p1, %p8471_p4  ;;  %s7115_s1 = int_to_ptr.hbm [resolvable:$true] %s903_s1 }
 0x133   : > { %p6103_p9 = por %p6102_p8, %p6101_p7 }
 0x134   : > { %p6099_p3 = pneg %p6098_p2 }
 0x136   : > { %p6104_p10 = pnand %p6103_p9, %p6099_p3 }
 0x138   : > { %6107 = shalt.err (!%p6104_p10)
}
 0x139   : > { %s8520_s30 = sld [smem:[#allocation70_spill]]  ;;  %s6665_s13 = smov [#allocation13]  }
 0x13a   : > { %5319 = dma.hbm_to_vmem [thread:$0]  (%p8471_p4), %s7104_s16, 16, %s881_s3, [#allocation9]  }
 0x13b   : > { %s905_s0 = sshll.u32 %s6665_s13, 4  ;;  %s6122_s26 = sshra.s32 %s7115_s1, 4  ;;  %s906_s0 = int_to_ptr.vmem [resolvable:$true] %s905_s0  ;;  %s6123_s26 = int_to_ptr.hbm [resolvable:$true] %s6122_s26 }
 0x13c   : > { %s6124_s9 = scalar_lea.hbm %s6123_s26, 3  ;;  %s6128_s21 = scalar_lea.hbm %s8519_s2, 3 }
 0x13d   : > { %p6125_p0 = scmp.ne.s32.totalorder %s6123_s26, %s6124_s9  ;;  %p6129_p3 = scmp.lt.s32.totalorder %s6123_s26, %s8519_s2 }
 0x13e   : > { %p6130_p7 = scmp.lt.s32.totalorder %s6128_s21, %s6124_s9 }
 0x13f   : > { %s931_s4 = sshll.u32 %s8520_s30, 4  ;;  %p6126_p1 = pnand %p6125_p0, %p8471_p4  ;;  %s7126_s4 = int_to_ptr.hbm [resolvable:$true] %s931_s4 }
 0x140   : > { %p6131_p8 = por %p6130_p7, %p6129_p3 }
 0x141   : > { %p6127_p2 = pneg %p6126_p1 }
 0x143   : > { %p6132_p9 = pnand %p6131_p8, %p6127_p2 }
 0x145   : > { %6135 = shalt.err (!%p6132_p9)
}
 0x146   : > { %s8521_s3 = smov 1   ;;  %s8522_s16 = smov 16  }
 0x147   : > { %s8523_s13 = sld [smem:[#allocation72_spill]]  ;;  %s6666_s6 = smov [#allocation16]  }
 0x148   : > { %5323 = dma.hbm_to_vmem [thread:$0]  (%p8471_p4), %s7115_s1, 48, %s906_s0, [#allocation12], %s8522_s16, %s8522_s16, %s8521_s3  }
 0x149   : > { %s933_s8 = sshll.u32 %s6666_s6, 4  ;;  %s6150_s26 = sshra.s32 %s7126_s4, 4  ;;  %s934_s8 = int_to_ptr.vmem [resolvable:$true] %s933_s8  ;;  %s6151_s26 = int_to_ptr.hbm [resolvable:$true] %s6150_s26 }
 0x14a   : > { %s6152_s9 = scalar_lea.hbm %s6151_s26, 4  ;;  %s6156_s21 = scalar_lea.hbm %s8520_s30, 4 }
 0x14b   : > { %p6153_p10 = scmp.ne.s32.totalorder %s6151_s26, %s6152_s9  ;;  %p6157_p2 = scmp.lt.s32.totalorder %s6151_s26, %s8520_s30 }
 0x14c   : > { %p6158_p3 = scmp.lt.s32.totalorder %s6156_s21, %s6152_s9 }
 0x14d   : > { %s959_s5 = sshll.u32 %s8523_s13, 4  ;;  %p6154_p0 = pnand %p6153_p10, %p8471_p4  ;;  %s7140_s5 = int_to_ptr.hbm [resolvable:$true] %s959_s5 }
 0x14e   : > { %p6159_p7 = por %p6158_p3, %p6157_p2 }
 0x14f   : > { %p6155_p1 = pneg %p6154_p0 }
 0x151   : > { %p6160_p8 = pnand %p6159_p7, %p6155_p1 }
 0x153   : > { %6163 = shalt.err (!%p6160_p8)
}
 0x154   : > { %s8524_s6 = sld [smem:[#allocation73_spill]]  ;;  %s6667_s1 = smov [#allocation19]  }
 0x155   : > { %5327 = dma.hbm_to_vmem [thread:$0]  (%p8471_p4), %s7126_s4, 64, %s934_s8, [#allocation15], %s8522_s16, %s8522_s16, %s8521_s3  }
 0x156   : > { %s961_s0 = sshll.u32 %s6667_s1, 4  ;;  %s6178_s26 = sshra.s32 %s7140_s5, 4  ;;  %s962_s0 = int_to_ptr.vmem [resolvable:$true] %s961_s0  ;;  %s6179_s26 = int_to_ptr.hbm [resolvable:$true] %s6178_s26 }
 0x157   : > { %s6180_s9 = scalar_lea.hbm %s6179_s26, 4  ;;  %s6184_s21 = scalar_lea.hbm %s8523_s13, 4 }
 0x158   : > { %p6181_p9 = scmp.ne.s32.totalorder %s6179_s26, %s6180_s9  ;;  %p6185_p1 = scmp.lt.s32.totalorder %s6179_s26, %s8523_s13 }
 0x159   : > { %p6186_p2 = scmp.lt.s32.totalorder %s6184_s21, %s6180_s9 }
 0x15a   : > { %s987_s2 = sshll.u32 %s8524_s6, 4  ;;  %p6182_p10 = pnand %p6181_p9, %p8471_p4  ;;  %s7154_s2 = int_to_ptr.hbm [resolvable:$true] %s987_s2 }
 0x15b   : > { %p6187_p3 = por %p6186_p2, %p6185_p1 }
 0x15c   : > { %p6183_p0 = pneg %p6182_p10 }
 0x15e   : > { %p6188_p7 = pnand %p6187_p3, %p6183_p0 }
 0x160   : > { %6191 = shalt.err (!%p6188_p7)
}
 0x161   : > { %s8525_s8 = sld [smem:[#allocation75_spill]]  ;;  %s6668_s1 = smov [#allocation22]  }
 0x162   : > { %5331 = dma.hbm_to_vmem [thread:$0]  (%p8471_p4), %s7140_s5, 64, %s962_s0, [#allocation18], %s8522_s16, %s8522_s16, %s8521_s3  }
 0x163   : > { %s989_s14 = sshll.u32 %s6668_s1, 4  ;;  %s6206_s26 = sshra.s32 %s7154_s2, 4  ;;  %s990_s14 = int_to_ptr.vmem [resolvable:$true] %s989_s14  ;;  %s6207_s26 = int_to_ptr.hbm [resolvable:$true] %s6206_s26 }
 0x164   : > { %s6208_s9 = scalar_lea.hbm %s6207_s26, 4  ;;  %s6212_s21 = scalar_lea.hbm %s8524_s6, 4 }
 0x165   : > { %p6209_p8 = scmp.ne.s32.totalorder %s6207_s26, %s6208_s9  ;;  %p6213_p0 = scmp.lt.s32.totalorder %s6207_s26, %s8524_s6 }
 0x166   : > { %p6214_p1 = scmp.lt.s32.totalorder %s6212_s21, %s6208_s9 }
 0x167   : > { %s1016_s4 = sshll.u32 %s8525_s8, 4  ;;  %p6210_p9 = pnand %p6209_p8, %p8471_p4  ;;  %s7168_s4 = int_to_ptr.hbm [resolvable:$true] %s1016_s4 }
 0x168   : > { %p6215_p2 = por %p6214_p1, %p6213_p0 }
 0x169   : > { %p6211_p10 = pneg %p6210_p9 }
 0x16b   : > { %p6216_p3 = pnand %p6215_p2, %p6211_p10 }
 0x16d   : > { %6219 = shalt.err (!%p6216_p3)
}
 0x16e   : > { %s8526_s5 = sld [smem:[#allocation76_spill]]  ;;  %s6669_s0 = smov [#allocation25]  }
 0x16f   : > { %5335 = dma.hbm_to_vmem [thread:$0]  (%p8471_p4), %s7154_s2, 64, %s990_s14, [#allocation21], %s8522_s16, %s8522_s16, %s8521_s3  }
 0x170   : > { %s1018_s1 = sshll.u32 %s6669_s0, 4  ;;  %s6234_s26 = sshra.s32 %s7168_s4, 4  ;;  %s1019_s1 = int_to_ptr.vmem [resolvable:$true] %s1018_s1  ;;  %s6235_s26 = int_to_ptr.hbm [resolvable:$true] %s6234_s26 }
 0x171   : > { %s6236_s9 = scalar_lea.hbm %s6235_s26, 1  ;;  %s6240_s21 = scalar_lea.hbm %s8525_s8, 1 }
 0x172   : > { %p6237_p7 = scmp.ne.s32.totalorder %s6235_s26, %s6236_s9  ;;  %p6241_p10 = scmp.lt.s32.totalorder %s6235_s26, %s8525_s8 }
 0x173   : > { %p6242_p0 = scmp.lt.s32.totalorder %s6240_s21, %s6236_s9 }
 0x174   : > { %s1041_s13 = sshll.u32 %s8526_s5, 4  ;;  %p6238_p8 = pnand %p6237_p7, %p8471_p4  ;;  %s7182_s13 = int_to_ptr.hbm [resolvable:$true] %s1041_s13 }
 0x175   : > { %p6243_p1 = por %p6242_p0, %p6241_p10 }
 0x176   : > { %p6239_p9 = pneg %p6238_p8 }
 0x178   : > { %p6244_p2 = pnand %p6243_p1, %p6239_p9 }
 0x17a   : > { %6247 = shalt.err (!%p6244_p2)
}
 0x17b   : > { %s8527_s14 = sld [smem:[#allocation79_spill]]  ;;  %s6670_s0 = smov [#allocation28]  }
 0x17c   : > { %5339 = dma.hbm_to_vmem [thread:$0]  (%p8471_p4), %s7168_s4, 16, %s1019_s1, [#allocation24]  }
 0x17d   : > { %s1043_s6 = sshll.u32 %s6670_s0, 4  ;;  %s6262_s26 = sshra.s32 %s7182_s13, 4  ;;  %s1044_s6 = int_to_ptr.vmem [resolvable:$true] %s1043_s6  ;;  %s6263_s26 = int_to_ptr.hbm [resolvable:$true] %s6262_s26 }
 0x17e   : > { %s6264_s9 = scalar_lea.hbm %s6263_s26, 3  ;;  %s6268_s21 = scalar_lea.hbm %s8526_s5, 3 }
 0x17f   : > { %p6265_p3 = scmp.ne.s32.totalorder %s6263_s26, %s6264_s9  ;;  %p6269_p9 = scmp.lt.s32.totalorder %s6263_s26, %s8526_s5 }
 0x180   : > { %p6270_p10 = scmp.lt.s32.totalorder %s6268_s21, %s6264_s9 }
 0x181   : > { %s1072_s2 = sshll.u32 %s8527_s14, 4  ;;  %p6266_p7 = pnand %p6265_p3, %p8471_p4  ;;  %s7193_s2 = int_to_ptr.hbm [resolvable:$true] %s1072_s2 }
 0x182   : > { %p6271_p0 = por %p6270_p10, %p6269_p9 }
 0x183   : > { %p6267_p8 = pneg %p6266_p7 }
 0x185   : > { %p6272_p1 = pnand %p6271_p0, %p6267_p8 }
 0x187   : > { %6275 = shalt.err (!%p6272_p1)
}
 0x188   : > { %s8528_s4 = sld [smem:[#allocation80_spill]]  ;;  %s6671_s1 = smov [#allocation31]  }
 0x189   : > { %5343 = dma.hbm_to_vmem [thread:$0]  (%p8471_p4), %s7182_s13, 48, %s1044_s6, [#allocation27], %s8522_s16, %s8522_s16, %s8521_s3  }
 0x18a   : > { %s1074_s0 = sshll.u32 %s6671_s1, 4  ;;  %s6290_s26 = sshra.s32 %s7193_s2, 4  ;;  %s1075_s0 = int_to_ptr.vmem [resolvable:$true] %s1074_s0  ;;  %s6291_s26 = int_to_ptr.hbm [resolvable:$true] %s6290_s26 }
 0x18b   : > { %s6292_s9 = scalar_lea.hbm %s6291_s26, 96  ;;  %s6296_s21 = scalar_lea.hbm %s8527_s14, 96 }
 0x18c   : > { %p6293_p2 = scmp.ne.s32.totalorder %s6291_s26, %s6292_s9  ;;  %p6297_p8 = scmp.lt.s32.totalorder %s6291_s26, %s8527_s14 }
 0x18d   : > { %p6298_p9 = scmp.lt.s32.totalorder %s6296_s21, %s6292_s9 }
 0x18e   : > { %s1100_s8 = sshll.u32 %s8528_s4, 4  ;;  %p6294_p3 = pnand %p6293_p2, %p8471_p4  ;;  %s7207_s8 = int_to_ptr.hbm [resolvable:$true] %s1100_s8 }
 0x18f   : > { %p6299_p10 = por %p6298_p9, %p6297_p8 }
 0x190   : > { %p6295_p7 = pneg %p6294_p3 }
 0x192   : > { %p6300_p0 = pnand %p6299_p10, %p6295_p7 }
 0x194   : > { %6303 = shalt.err (!%p6300_p0)
}
 0x195   : > { %s8529_s3 = smov 8   ;;  %s8530_s16 = smov 128  }
 0x196   : > { %s8531_s13 = sld [smem:[#allocation82_spill]]  ;;  %s6672_s1 = smov [#allocation34]  }
 0x197   : > { %5347 = dma.hbm_to_vmem [thread:$0]  (%p8471_p4), %s7193_s2, 1536, %s1075_s0, [#allocation30], %s8530_s16, %s8530_s16, %s8529_s3  }
 0x198   : > { %s1102_s5 = sshll.u32 %s6672_s1, 4  ;;  %s6318_s26 = sshra.s32 %s7207_s8, 4  ;;  %s1103_s5 = int_to_ptr.vmem [resolvable:$true] %s1102_s5  ;;  %s6319_s26 = int_to_ptr.hbm [resolvable:$true] %s6318_s26 }
 0x199   : > { %s6320_s9 = scalar_lea.hbm %s6319_s26, 96  ;;  %s6324_s21 = scalar_lea.hbm %s8528_s4, 96 }
 0x19a   : > { %p6321_p1 = scmp.ne.s32.totalorder %s6319_s26, %s6320_s9  ;;  %p6325_p7 = scmp.lt.s32.totalorder %s6319_s26, %s8528_s4 }
 0x19b   : > { %p6326_p8 = scmp.lt.s32.totalorder %s6324_s21, %s6320_s9 }
 0x19c   : > { %s1128_s6 = sshll.u32 %s8531_s13, 4  ;;  %p6322_p2 = pnand %p6321_p1, %p8471_p4  ;;  %s7221_s6 = int_to_ptr.hbm [resolvable:$true] %s1128_s6 }
 0x19d   : > { %p6327_p9 = por %p6326_p8, %p6325_p7 }
 0x19e   : > { %p6323_p3 = pneg %p6322_p2 }
 0x1a0   : > { %p6328_p10 = pnand %p6327_p9, %p6323_p3 }
 0x1a2   : > { %6331 = shalt.err (!%p6328_p10)
}
 0x1a3   : > { %s8532_s2 = sld [smem:[#allocation83_spill]]  ;;  %s6673_s0 = smov [#allocation37]  }
 0x1a4   : > { %5351 = dma.hbm_to_vmem [thread:$0]  (%p8471_p4), %s7207_s8, 1536, %s1103_s5, [#allocation33], %s8530_s16, %s8530_s16, %s8529_s3  }
 0x1a5   : > { %s1130_s1 = sshll.u32 %s6673_s0, 4  ;;  %s6346_s26 = sshra.s32 %s7221_s6, 4  ;;  %s1131_s1 = int_to_ptr.vmem [resolvable:$true] %s1130_s1  ;;  %s6347_s26 = int_to_ptr.hbm [resolvable:$true] %s6346_s26 }
 0x1a6   : > { %s6348_s9 = scalar_lea.hbm %s6347_s26, 48  ;;  %s6352_s21 = scalar_lea.hbm %s8531_s13, 48 }
 0x1a7   : > { %p6349_p0 = scmp.ne.s32.totalorder %s6347_s26, %s6348_s9  ;;  %p6353_p3 = scmp.lt.s32.totalorder %s6347_s26, %s8531_s13 }
 0x1a8   : > { %p6354_p7 = scmp.lt.s32.totalorder %s6352_s21, %s6348_s9 }
 0x1a9   : > { %s1156_s14 = sshll.u32 %s8532_s2, 4  ;;  %p6350_p1 = pnand %p6349_p0, %p8471_p4  ;;  %s7235_s14 = int_to_ptr.hbm [resolvable:$true] %s1156_s14 }
 0x1aa   : > { %p6355_p8 = por %p6354_p7, %p6353_p3 }
 0x1ab   : > { %p6351_p2 = pneg %p6350_p1 }
 0x1ad   : > { %p6356_p9 = pnand %p6355_p8, %p6351_p2 }
 0x1af   : > { %6359 = shalt.err (!%p6356_p9)
}
 0x1b0   : > { %s8533_s8 = sld [smem:[#allocation85_spill]]  ;;  %s6674_s0 = smov [#allocation40]  }
 0x1b1   : > { %5355 = dma.hbm_to_vmem [thread:$0]  (%p8471_p4), %s7221_s6, 768, %s1131_s1, [#allocation36], %s8530_s16, %s8530_s16, %s8529_s3  }
 0x1b2   : > { %s1158_s4 = sshll.u32 %s6674_s0, 4  ;;  %s6374_s26 = sshra.s32 %s7235_s14, 4  ;;  %s1159_s4 = int_to_ptr.vmem [resolvable:$true] %s1158_s4  ;;  %s6375_s26 = int_to_ptr.hbm [resolvable:$true] %s6374_s26 }
 0x1b3   : > { %s6376_s9 = scalar_lea.hbm %s6375_s26, 96  ;;  %s6380_s21 = scalar_lea.hbm %s8532_s2, 96 }
 0x1b4   : > { %p6377_p10 = scmp.ne.s32.totalorder %s6375_s26, %s6376_s9  ;;  %p6381_p2 = scmp.lt.s32.totalorder %s6375_s26, %s8532_s2 }
 0x1b5   : > { %p6382_p3 = scmp.lt.s32.totalorder %s6380_s21, %s6376_s9 }
 0x1b6   : > { %s1182_s5 = sshll.u32 %s8533_s8, 4  ;;  %p6378_p0 = pnand %p6377_p10, %p8471_p4  ;;  %s7249_s5 = int_to_ptr.hbm [resolvable:$true] %s1182_s5 }
 0x1b7   : > { %p6383_p7 = por %p6382_p3, %p6381_p2 }
 0x1b8   : > { %p6379_p1 = pneg %p6378_p0 }
 0x1ba   : > { %p6384_p8 = pnand %p6383_p7, %p6379_p1 }
 0x1bc   : > { %6387 = shalt.err (!%p6384_p8)
}
 0x1bd   : > { %5359 = dma.hbm_to_vmem [thread:$0]  (%p8471_p4), %s7235_s14, 1536, %s1159_s4, [#allocation39], %s8530_s16, %s8530_s16, %s8529_s3  }
 0x1be   : > { %s6675_s6 = smov [#allocation43]   ;;  %s1214_s0 = sshll.u32 %s6852_s12, 4  ;;  %s1215_s0 = int_to_ptr.hbm [resolvable:$true] %s1214_s0 }
 0x1bf   : > { %s1184_s1 = sshll.u32 %s6675_s6, 4  ;;  %s6402_s26 = sshra.s32 %s7249_s5, 4  ;;  %s1185_s1 = int_to_ptr.vmem [resolvable:$true] %s1184_s1  ;;  %s6403_s26 = int_to_ptr.hbm [resolvable:$true] %s6402_s26 }
 0x1c0   : > { %s6404_s9 = scalar_lea.hbm %s6403_s26, 288  ;;  %s6408_s21 = scalar_lea.hbm %s8533_s8, 288 }
 0x1c1   : > { %p6405_p9 = scmp.ne.s32.totalorder %s6403_s26, %s6404_s9  ;;  %p6409_p1 = scmp.lt.s32.totalorder %s6403_s26, %s8533_s8 }
 0x1c2   : > { %p6410_p2 = scmp.lt.s32.totalorder %s6408_s21, %s6404_s9 }
 0x1c3   : > { %p6406_p10 = pnand %p6405_p9, %p8471_p4 }
 0x1c4   : > { %p6411_p3 = por %p6410_p2, %p6409_p1 }
 0x1c5   : > { %p6407_p0 = pneg %p6406_p10 }
 0x1c7   : > { %p6412_p7 = pnand %p6411_p3, %p6407_p0 }
 0x1c9   : > { %6415 = shalt.err (!%p6412_p7)
}
 0x1ca   : > { %5363 = dma.hbm_to_vmem [thread:$0]  (%p8471_p4), %s7249_s5, 4608, %s1185_s1, [#allocation42], %s8530_s16, %s8530_s16, %s8529_s3  }
 0x1cb   : > { %s6676_s14 = smov [#allocation46]   ;;  %s6430_s6 = sshra.s32 %s1215_s0, 4  ;;  %s6431_s6 = int_to_ptr.hbm [resolvable:$true] %s6430_s6 }
 0x1cc   : > { %s1216_s4 = sshll.u32 %s6676_s14, 4  ;;  %s6432_s26 = scalar_lea.hbm %s6431_s6, 192  ;;  %s1217_s4 = int_to_ptr.vmem [resolvable:$true] %s1216_s4 }
 0x1cd   : > { %p6433_p8 = scmp.ne.s32.totalorder %s6431_s6, %s6432_s26  ;;  %s6436_s9 = scalar_lea.hbm %s6852_s12, 192 }
 0x1ce   : > { %p6437_p0 = scmp.lt.s32.totalorder %s6431_s6, %s6852_s12  ;;  %p6438_p1 = scmp.lt.s32.totalorder %s6436_s9, %s6432_s26 }
 0x1cf   : > { %p6434_p9 = pnand %p6433_p8, %p8471_p4 }
 0x1d0   : > { %p6439_p2 = por %p6438_p1, %p6437_p0 }
 0x1d1   : > { %p6435_p10 = pneg %p6434_p9 }
 0x1d3   : > { %p6440_p3 = pnand %p6439_p2, %p6435_p10 }
 0x1d5   : > { %6443 = shalt.err (!%p6440_p3)
}
 0x1d6   : > { %5367 = dma.hbm_to_vmem [thread:$0]  (%p8471_p4), %s1215_s0, 3072, %s1217_s4, [#allocation45], %s8530_s16, %s8530_s16, %s8529_s3  }
 0x1d7 PF: > { %s8534_s5 = sld [smem:[#allocation64_spill]]  ;;  %p5464_p8 = scmp.lt.s32.totalorder %s6610_s11, 2 }
 0x1d8   : > { %s1233_s1 = sand.u32 1, %s6606_s10   ;;  %s5303_s21 = sshll.u32 %s6610_s11, 4 }
 0x1d9   : > { %s5181_s14 = sshll.u32 %s1233_s1, 4  ;;  %p7290_p9 = pnand %p5464_p8, %p6903_p5 }
 0x1da   : > { %s1237_s9 = scalar_lea.vmem [#allocation2], %s5181_s14  ;;  %s1234_s16 = scalar_lea.sflag [#allocation3], %s1233_s1 }
 0x1db   : > { %s1245_s2 = sshll.u32 %s1237_s9, 4  ;;  %p6462_p0 = pneg %p7290_p9  ;;  %s1246_s2 = int_to_ptr.vmem [resolvable:$true] %s1245_s2 }
 0x1dd   : > { %s1242_s6 = scalar_lea.hbm %s8534_s5, %s5303_s21  ;;  %s6465_s21 = scalar_lea.hbm %s8534_s5, 32 }
 0x1de   : > { %s1243_s26 = sshll.u32 %s1242_s6, 4  ;;  %s1244_s26 = int_to_ptr.hbm [resolvable:$true] %s1243_s26 }
 0x1df   : > { %s6458_s0 = sshra.s32 %s1244_s26, 4  ;;  %s6459_s0 = int_to_ptr.hbm [resolvable:$true] %s6458_s0 }
 0x1e0   : > { %s6460_s4 = scalar_lea.hbm %s6459_s0, 16  ;;  %p6466_p3 = scmp.lt.s32.totalorder %s6459_s0, %s8534_s5 }
 0x1e1   : > { %p6461_p10 = scmp.ne.s32.totalorder %s6459_s0, %s6460_s4  ;;  %p6467_p7 = scmp.lt.s32.totalorder %s6465_s21, %s6460_s4 }
 0x1e3   : > { %p6463_p1 = pnand %p6462_p0, %p6461_p10  ;;  %p6468_p4 = por %p6467_p7, %p6466_p3 }
 0x1e5   : > { %p6464_p2 = pneg %p6463_p1 }
 0x1e7   : > { %p6469_p12 = pnand %p6468_p4, %p6464_p2 }
 0x1e9   : > { %6472 = shalt.err (!%p6469_p12)
}
 0x1ea   : > { %s6677_s28 = smov 128   ;;  %s6678_s14 = smov 8  }
 0x1eb   : > { %5431 = dma.hbm_to_vmem [thread:$0]  (!%p7290_p9), %s1244_s26, 256, %s1246_s2, %s1234_s16, %s6677_s28, %s6677_s28, %s6678_s14  }
 0x1ec   : > { %1257 = sbr.rel (%p6924_p13) target bundleno = 12686 (0x318e), region = 152  ;;  %s7303_s6 = sand.u32 (!%p6924_p13), 1, %s6602_s7  }
 0x1ed   : > { %s5185_s9 = sshll.u32 (!%p6924_p13), %s7303_s6, 4  ;;  %s1260_s0 = scalar_lea.sflag (!%p6924_p13), [#allocation3], %s7303_s6 }
 0x1ee   : > { %s7307_s4 = scalar_lea.vmem (!%p6924_p13), [#allocation2], %s5185_s9 }
 0x1f1   : > { %6533 = dma.done.wait (%p6909_p6), %s1260_s0, 256  }
 0x1f2   : > { %6535 = vsyncadd (%p6909_p6), %s1260_s0, 4294967040  ;;  %p8537_p4 = scmp.eq.s32.totalorder %s6885_s15, 0 }
 0x1f4   : > { %6537 = dma.done.wait (%p8537_p4), [#allocation6], 784   ;;  %p8538_p5 = pmov %p8537_p4 }
 0x1f5   : > { %p8539_p12 = pmov %p8537_p4 }
 0x1f6   : > { %6539 = vsyncadd (%p8538_p5), [#allocation6], 4294966512 }
 0x1f7   : > { %6541 = dma.done.wait (%p8539_p12), [#allocation9], 3088   ;;  %p8540_p13 = pmov %p8537_p4 }
 0x1f8   : > { %p8541_p7 = pmov %p8537_p4 }
 0x1f9   : > { %6543 = vsyncadd (%p8540_p13), [#allocation9], 4294964208 }
 0x1fa   : > { %6545 = dma.done.wait (%p8541_p7), [#allocation12], 1200   ;;  %p8542_p8 = pmov %p8537_p4 }
 0x1fb   : > { %p8543_p6 = pmov %p8537_p4 }
 0x1fc   : > { %6547 = vsyncadd (%p8542_p8), [#allocation12], 4294966096 }
 0x1fd   : > { %6549 = dma.done.wait (%p8543_p6), [#allocation15], 576   ;;  %p8544_p9 = pmov %p8537_p4 }
 0x1fe   : > { %p8545_p10 = pmov %p8537_p4 }
 0x1ff   : > { %6551 = vsyncadd (%p8544_p9), [#allocation15], 4294966720 }
 0x200   : > { %6553 = dma.done.wait (%p8545_p10), [#allocation18], 576   ;;  %p8546_p0 = pmov %p8537_p4 }
 0x202   : > { %6555 = vsyncadd (%p8546_p0), [#allocation18], 4294966720  ;;  %p8547_p1 = pmov %p8546_p0 }
 0x203   : > { %p8548_p2 = pmov %p8546_p0 }
 0x204   : > { %6557 = dma.done.wait (%p8547_p1), [#allocation21], 1600  }
 0x205   : > { %6559 = vsyncadd (%p8548_p2), [#allocation21], 4294965696  ;;  %p8549_p3 = pmov %p8546_p0 }
 0x206   : > { %p8550_p4 = pmov %p8546_p0 }
 0x207   : > { %6561 = dma.done.wait (%p8549_p3), [#allocation24], 528  }
 0x208   : > { %6563 = vsyncadd (%p8550_p4), [#allocation24], 4294966768  ;;  %p8551_p5 = pmov %p8546_p0 }
 0x209   : > { %p8552_p12 = pmov %p8546_p0 }
 0x20a   : > { %6565 = dma.done.wait (%p8551_p5), [#allocation27], 1584  }
 0x20b   : > { %6567 = vsyncadd (%p8552_p12), [#allocation27], 4294965712  ;;  %p8553_p13 = pmov %p8546_p0 }
 0x20c   : > { %p8554_p7 = pmov %p8546_p0 }
 0x20d   : > { %6569 = dma.done.wait (%p8553_p13), [#allocation30], 4992  }
 0x20e   : > { %6571 = vsyncadd (%p8554_p7), [#allocation30], 4294962304  ;;  %p8555_p8 = pmov %p8546_p0 }
 0x20f   : > { %p8556_p6 = pmov %p8546_p0 }
 0x210   : > { %6573 = dma.done.wait (%p8555_p8), [#allocation33], 1584  }
 0x211   : > { %6575 = vsyncadd (%p8556_p6), [#allocation33], 4294965712  ;;  %p8557_p9 = pmov %p8546_p0 }
 0x212   : > { %p8558_p10 = pmov %p8546_p0 }
 0x213   : > { %6577 = dma.done.wait (%p8557_p9), [#allocation36], 816  }
 0x214   : > { %6579 = vsyncadd (%p8558_p10), [#allocation36], 4294966480 }
 0x215   : > { %6581 = dma.done.wait (%p8546_p0), [#allocation39], 1584   ;;  %p8559_p1 = pmov %p8546_p0 }
 0x216   : > { %p8560_p2 = pmov %p8546_p0 }
 0x217   : > { %6583 = vsyncadd (%p8559_p1), [#allocation39], 4294965712 }
 0x218   : > { %6585 = dma.done.wait (%p8560_p2), [#allocation42], 4624   ;;  %p8561_p3 = pmov %p8546_p0 }
 0x219   : > { %p8562_p4 = pmov %p8546_p0 }
 0x21a   : > { %6587 = vsyncadd (%p8561_p3), [#allocation42], 4294962672 }
 0x21b   : > { %6589 = dma.done.wait (%p8562_p4), [#allocation45], 3088   ;;  %p8563_p5 = pmov %p8546_p0 }
 0x21c   : > { %v1488_v0 = vlaneseq  ;;  %v1486_v3 = vld [vmem:[%s7307_s4] sm:$0xff]  ;;  %v1487_v4 = vld [vmem:[%s7307_s4 + $0x8] sm:$0xff]  ;;  %s6679_s23 = smov 16   ;;  %s6680_s2 = smov 32   ;;  %vm1540_vm4 = vcmask 130048   ;;  %vm1543_vm5 = vcmask 261120  }
 0x21d   : > { %6591 = vsyncadd (%p8563_p5), [#allocation45], 4294964208  ;;  %v1496_v5 = vld [vmem:[#allocation5 + $0x28] sm:$0xff]  ;;  %1526 = vrot.lane.b32.xlu0 %v1486_v3, %s6679_s23  ;;  %v1513_v6 = vrot.slane %v1486_v3, 1  ;;  %1528 = vrot.lane.b32.xlu1 %v1487_v4, %s6679_s23  ;;  %v1514_v7 = vrot.slane %v1487_v4, 1  ;;  %v1500_v11 = vrot.slane %v1486_v3, 7 }
 0x21e   : > { %v7369_v1 = vshrl.u32 %v1488_v0, 7  ;;  %1566 = vmatpush.msra.mxu0 %v1496_v5  ;;  %v1501_v12 = vrot.slane %v1487_v4, 7  ;;  %v1495_v14 = vld [vmem:[#allocation5 + $0x20] sm:$0xff]  ;;  %v1494_v16 = vld [vmem:[#allocation5 + $0x18] sm:$0xff]  ;;  %v1493_v17 = vld [vmem:[#allocation5 + $0x10] sm:$0xff]  ;;  %vm1549_vm6 = vcmask 392192  }
 0x21f   : > { %v1492_v18 = vld [vmem:[#allocation5 + $0x8] sm:$0xff]  ;;  %v1491_v19 = vld [vmem:[#allocation5] sm:$0xff]  ;;  %v7409_v32 = vld [vmem:[#allocation8 + $0xa0] sm:$0xff]  ;;  %s6681_s26 = smov 64   ;;  %vm8472_vm7 = vcmask 523264   ;;  %s6683_s3 = smov 120  }
 0x220   : > { %v7372_v2 = vadd.s32 8, %v7369_v1  ;;  %vm1515_vm0 = vcmp.lt.s32.totalorder %v7369_v1, 7  ;;  %vm1502_vm2 = vcmp.lt.s32.totalorder %v7369_v1, 1  ;;  %1567 = vmatpush.msra.mxu0 %v1495_v14  ;;  %vm1498_vm3 = vcmp.ge.s32.totalorder %v7369_v1, 1  ;;  %v7400_v29 = vld [vmem:[#allocation8 + $0xb8] sm:$0xff]  ;;  %v7403_v30 = vld [vmem:[#allocation8 + $0xb0] sm:$0xff] }
 0x221   : > { %v1517_v8 = vsel %vm1515_vm0, %v1514_v7, %v1513_v6  ;;  %v1516_v10 = vsel %vm1515_vm0, %v1513_v6, %v1514_v7  ;;  %v1504_v13 = vsel %vm1502_vm2, %v1501_v12, %v1500_v11  ;;  %v1503_v15 = vsel %vm1502_vm2, %v1500_v11, %v1501_v12  ;;  %5304 = vmatpush.msra.mxu2 %v7400_v29  ;;  %v7406_v31 = vld [vmem:[#allocation8 + $0xa8] sm:$0xff]  ;;  %v7412_v33 = vld [vmem:[#allocation8 + $0x98] sm:$0xff]  ;;  %v7415_v34 = vld [vmem:[#allocation8 + $0x90] sm:$0xff]  ;;  %s6684_s16 = smov 112   ;;  %s6685_s21 = smov 8  }
 0x222   : > { %vm1512_vm1 = vcmp.lt.s32.totalorder %v7372_v2, 15  ;;  %1568 = vmatpush.msra.mxu0 %v1494_v16  ;;  %v1509_v22 = vsel %vm1498_vm3, %v1504_v13, 0.0  ;;  %v1598_v35 = vld [vmem:[#allocation8 + $0x88] sm:$0xff]  ;;  %v1597_v36 = vld [vmem:[#allocation8 + $0x80] sm:$0xff]  ;;  %v1596_v37 = vld [vmem:[#allocation8 + $0x78] sm:$0xff]  ;;  %v6682_v16 = vmov 16.0  }
 0x223   : > { %v1523_v9 = vsel %vm1512_vm1, %v1517_v8, 0.0  ;;  %5305 = vmatpush.msra.mxu2 %v7403_v30  ;;  %v1595_v38 = vld [vmem:[#allocation8 + $0x70] sm:$0xff]  ;;  %1638 = vmatpush.msra.mxu1 %v1596_v37  ;;  %v1594_v39 = vld [vmem:[#allocation8 + $0x68] sm:$0xff]  ;;  %v1593_v40 = vld [vmem:[#allocation8 + $0x60] sm:$0xff]  ;;  %5630 = vrcp.f32 %v6682_v16  ;;  %vm1718_vm8 = vcmask 64512   ;;  %vm1726_vm10 = vcmask 195584  }
 0x224   : > { %1569 = vmatpush.msra.mxu0 %v1493_v17  ;;  %v1592_v41 = vld [vmem:[#allocation8 + $0x58] sm:$0xff]  ;;  %v1591_v42 = vld [vmem:[#allocation8 + $0x50] sm:$0xff]  ;;  %v1590_v43 = vld [vmem:[#allocation8 + $0x48] sm:$0xff]  ;;  %vm2036_vm15 = vcmp.eq.s32.totalorder %v7369_v1, 0  ;;  %s6686_s28 = smov 24   ;;  %s6687_s14 = smov 104  }
 0x225   : > { %1534 = vrot.lane.b32.xlu0 %v1516_v10, %s6680_s2  ;;  %1536 = vrot.lane.b32.xlu1 %v1523_v9, %s6680_s2  ;;  %v5603_v44 = vld [vmem:[#allocation7] ss:$0 sm:$0xff]  ;;  %v1589_v45 = vld [vmem:[#allocation8 + $0x40] sm:$0xff]  ;;  %v1587_v49 = vld [vmem:[#allocation8 + $0x30] sm:$0xff]  ;;  %s8564_s1 = sld [smem:[#allocation78_spill]]  ;;  %s6688_s9 = smov 96  }
 0x226   : > { %1570 = vmatpush.msra.mxu0 %v1492_v18  ;;  %5306 = vmatpush.msra.mxu2 %v7406_v31  ;;  %v1588_v46 = vld [vmem:[#allocation8 + $0x38] sm:$0xff]  ;;  %v1586_v51 = vld [vmem:[#allocation8 + $0x28] sm:$0xff]  ;;  %v1585_v52 = vld [vmem:[#allocation8 + $0x20] sm:$0xff]  ;;  %s8567_s0 = sld [smem:[#allocation86_spill]] }
 0x227   : > { %1639 = vmatpush.msra.mxu1 %v1595_v38  ;;  %v1584_v53 = vld [vmem:[#allocation8 + $0x18] sm:$0xff]  ;;  %v1583_v56 = vld [vmem:[#allocation8 + $0x10] sm:$0xff]  ;;  %v1582_v58 = vld [vmem:[#allocation8 + $0x8] sm:$0xff] }
 0x228   : > { %1571 = vmatpush.msra.mxu0 %v1491_v19  ;;  %5307 = vmatpush.msra.mxu2 %v7409_v32  ;;  %v1581_v6 = vld [vmem:[#allocation8] sm:$0xff]  ;;  %v1951_v12 = vld [vmem:[#allocation14] sm:$0xff] }
 0x229   : > { %1640 = vmatpush.msra.mxu1 %v1594_v39  ;;  %v5604_v14 = vld [vmem:[#allocation10] ss:$0 sm:$0xff] }
 0x22a   : > { %5308 = vmatpush.msra.mxu2 %v7412_v33 }
 0x22b   : > { %1641 = vmatpush.msra.mxu1 %v1593_v40 }
 0x22c   : > { %5309 = vmatpush.msra.mxu2 %v7415_v34  ;;  %s8568_s4 = smov %s8567_s0 }
 0x22d   : > { %1642 = vmatpush.msra.mxu1 %v1592_v41 }
 0x22e   : > { %5310 = vmatpush.msra.mxu2 %v1598_v35 }
 0x22f   : > { %1643 = vmatpush.msra.mxu1 %v1591_v42 }
 0x230   : > { %5311 = vmatpush.msra.mxu2 %v1597_v36 }
 0x231   : > { %1644 = vmatpush.msra.mxu1 %v1590_v43 }
 0x232   : > { %1971 = vmatpush.msrb.mxu2 %v1951_v12 }
 0x233   : > { %1645 = vmatpush.msra.mxu1 %v1589_v45 }
 0x235   : > { %1646 = vmatpush.msra.mxu1 %v1588_v46 }
 0x237   : > { %1647 = vmatpush.msra.mxu1 %v1587_v49  ;;  %v1687_v49 = vld [vmem:[#allocation11 + $0x8] sm:$0xff] }
 0x239   : > { %1648 = vmatpush.msra.mxu1 %v1586_v51 }
 0x23b   : > { %1649 = vmatpush.msra.mxu1 %v1585_v52 }
 0x23d   : > { %1650 = vmatpush.msra.mxu1 %v1584_v53 }
 0x23f   : > { %1651 = vmatpush.msra.mxu1 %v1583_v56 }
 0x241   : > { %1652 = vmatpush.msra.mxu1 %v1582_v58 }
 0x243   : > { %1653 = vmatpush.msra.mxu1 %v1581_v6 }
 0x245   : > { %1669 = vmatpush.msrb.mxu1 %v7400_v29 }
 0x247   : > { %1670 = vmatpush.msrb.mxu1 %v7403_v30 }
 0x249   : > { %1671 = vmatpush.msrb.mxu1 %v7406_v31 }
 0x24b   : > { %1672 = vmatpush.msrb.mxu1 %v7409_v32 }
 0x24d   : > { %1673 = vmatpush.msrb.mxu1 %v7412_v33 }
 0x24f   : > { %1674 = vmatpush.msrb.mxu1 %v7415_v34 }
 0x251   : > { %1675 = vmatpush.msrb.mxu1 %v1598_v35 }
 0x253   : > { %1676 = vmatpush.msrb.mxu1 %v1597_v36 }
 0x28f   : > { %v1527_v20 = vpop.permute.xlu0 %1526  ;;  %v1529_v21 = vpop.permute.xlu1 %1528 }
 0x290   : > { %v1541_v23 = vsel %vm1540_vm4, %v1509_v22, %v1527_v20  ;;  %v1542_v26 = vsel %vm1540_vm4, %v1503_v15, %v1529_v21  ;;  %v5631_v21 = vpop.eup %5630 }
 0x291   : > { %vm1948_vm9 = vweird.f32 %v5631_v21 }
 0x297   : > { %v1535_v24 = vpop.permute.xlu0 %1534  ;;  %v1537_v27 = vpop.permute.xlu1 %1536 }
 0x298   : > { %v1544_v25 = vsel %vm1543_vm5, %v1541_v23, %v1535_v24  ;;  %v1545_v28 = vsel %vm1543_vm5, %v1542_v26, %v1537_v27 }
 0x299   : > { %5214 = vmatmul.msk.f32.vlgmr.msra.gmra.mxu0 %vm1549_vm6, %v1544_v25  ;;  %v1944_v25 = vmul.f32 16.0, %v5631_v21 }
 0x29b   : > { %v1945_v29 = vsub.f32 1.0, %v1944_v25 }
 0x29d   : > { %v1946_v32 = vmul.f32 %v5631_v21, %v1945_v29 }
 0x29f   : > { %v1947_v35 = vadd.f32 %v5631_v21, %v1946_v32 }
 0x2a1   : > { %5215 = vmatmul.msk.f32.gmra.mxu0 %vm1549_vm6, %v1545_v28  ;;  %v7454_v38 = vsel %vm1948_vm9, %v5631_v21, %v1947_v35  ;;  %v1769_v21 = vld [vmem:[#allocation11 + $0x18] sm:$0xff]  ;;  %vm2045_vm6 = vcmp.eq.s32.totalorder %v7372_v2, 15 }
 0x316   : > { %v1573_v47 = vpop.f32.mrf.mxu0 }
 0x317   : > { %v1574_v48 = vadd.f32 %v5603_v44, %v1573_v47 }
 0x319   : > { %v1579_v50 = vmax.f32 %v1574_v48, 0.0  ;;  %v1688_v48 = vld [vmem:[#allocation11 + $0x10] sm:$0xff] }
 0x31a   : > { %1746 = vmatpush.msra.mxu3 %v1688_v48 }
 0x31b   : > { %1620 = vrot.lane.b32.xlu2 %v1579_v50, %s6681_s26  ;;  %v1606_v59 = vrot.slane %v1579_v50, 7  ;;  %v1612_v60 = vrot.slane %v1579_v50, 1  ;;  %v1686_v50 = vld [vmem:[#allocation11] sm:$0xff] }
 0x31c   : > { %1747 = vmatpush.msra.mxu3 %v1687_v49 }
 0x31e   : > { %v1576_v54 = vpop.f32.mrf.mxu0  ;;  %1748 = vmatpush.msra.mxu3 %v1686_v50 }
 0x31f   : > { %v1577_v55 = vadd.f32 %v5603_v44, %v1576_v54 }
 0x321   : > { %v1580_v57 = vmax.f32 %v1577_v55, 0.0 }
 0x323   : > { %v1607_v61 = vrot.slane %v1580_v57, 7  ;;  %v1613_v62 = vrot.slane %v1580_v57, 1  ;;  %1622 = vrot.lane.b32.xlu2 %v1580_v57, %s6681_s26 }
 0x325   : > { %v1615_v63 = vsel %vm1515_vm0, %v1613_v62, %v1612_v60  ;;  %v1609_v0 = vsel %vm1502_vm2, %v1607_v61, %v1606_v59  ;;  %v1608_v3 = vsel %vm1502_vm2, %v1606_v59, %v1607_v61  ;;  %v1614_v4 = vsel %vm1515_vm0, %v1612_v60, %v1613_v62  ;;  %v5605_v62 = vld [vmem:[#allocation13] ss:$0 sm:$0xff] }
 0x326   : > { %v1617_v5 = vsel %vm1512_vm1, %v1615_v63, 0.0  ;;  %v1610_v8 = vsel %vm1498_vm3, %v1609_v0, 0.0 }
 0x327   : > { %5217 = vmatmul.msk.f32.vlgmr.msra.gmra.mxu2 %vm8472_vm7, %v1617_v5 }
 0x375   : > { %v1621_v7 = vpop.permute.xlu2 %1620 }
 0x376   : > { %v1627_v9 = vsel %vm8472_vm7, %v1610_v8, %v1621_v7 }
 0x377   : > { %1654 = vmatmul.f32.vlgmr.msra.gmra.mxu1 %v1627_v9 }
 0x37d   : > { %v1623_v10 = vpop.permute.xlu2 %1622 }
 0x37e   : > { %v1628_v11 = vsel %vm8472_vm7, %v1608_v3, %v1623_v10 }
 0x37f   : > { %1657 = vmatmul.f32.gmra.mxu1 %v1628_v11 }
 0x387   : > { %5216 = vmatmul.msk.f32.vlgmr.msrb.gmra.mxu1 %vm8472_vm7, %v1614_v4 }
 0x3aa   : > { %v1681_v18 = vpop.f32.mrf.mxu2 }
 0x3f4   : > { %v1655_v13 = vpop.f32.mrf.mxu1 }
 0x3f5   : > { %v1656_v22 = vadd.f32 %v5604_v14, %v1655_v13 }
 0x3fc   : > { %v1658_v15 = vpop.f32.mrf.mxu1 }
 0x3fd   : > { %v1659_v17 = vadd.f32 %v5604_v14, %v1658_v15 }
 0x3ff   : > { %v1682_v19 = vadd.f32 %v1681_v18, %v1659_v17  ;;  %v1771_v18 = vld [vmem:[#allocation11 + $0x28] sm:$0xff] }
 0x400   : > { %1834 = vmatpush.msrb.mxu3 %v1771_v18  ;;  %v2026_v18 = vld [vmem:[#allocation20 + $0x10] sm:$0xff] }
 0x401   : > { %v7442_v20 = vmax.f32 %v1682_v19, 0.0  ;;  %v1770_v19 = vld [vmem:[#allocation11 + $0x20] sm:$0xff]  ;;  %2094 = vmatpush.msra.mxu2 %v2026_v18 }
 0x402   : > { %1835 = vmatpush.msrb.mxu3 %v1770_v19  ;;  %v2025_v19 = vld [vmem:[#allocation20 + $0x8] sm:$0xff] }
 0x403   : > { %1694 = vrot.lane.b32.xlu1 %v7442_v20, %s6683_s3  ;;  %v1935_v28 = vsel %vm1718_vm8, %v7442_v20, 0.0  ;;  %2095 = vmatpush.msra.mxu2 %v2025_v19 }
 0x404   : > { %v1678_v23 = vpop.f32.mrf.mxu1  ;;  %1836 = vmatpush.msrb.mxu3 %v1769_v21  ;;  %v2024_v21 = vld [vmem:[#allocation20] sm:$0xff] }
 0x405   : > { %v1679_v24 = vadd.f32 %v1678_v23, %v1656_v22  ;;  %v1977_v22 = vld [vmem:[#allocation17] sm:$0xff]  ;;  %2096 = vmatpush.msra.mxu2 %v2024_v21 }
 0x407   : > { %v7446_v26 = vmax.f32 %v1679_v24, 0.0 }
 0x409   : > { %1692 = vrot.lane.b32.xlu0 %v7446_v26, %s6683_s3  ;;  %v1934_v27 = vsel %vm1718_vm8, %v7446_v26, 0.0 }
 0x40a   : > { %v1936_v30 = vadd.f32 %v1935_v28, %v1934_v27 }
 0x40c   : > { %v1937_v31 = vrot.slane %v1936_v30, 4 }
 0x40e   : > { %v1938_v33 = vadd.f32 %v1937_v31, %v1936_v30 }
 0x410   : > { %v1939_v34 = vrot.slane %v1938_v33, 2 }
 0x412   : > { %v1940_v36 = vadd.f32 %v1939_v34, %v1938_v33 }
 0x414   : > { %v1941_v37 = vrot.slane %v1940_v36, 1 }
 0x416   : > { %v1942_v39 = vadd.f32 %v1941_v37, %v1940_v36  ;;  %v1952_v36 = vld [vmem:[#allocation16] sm:$0x1] }
 0x418   : > { %v1950_v40 = vmul.f32 %v7454_v38, %v1942_v39 }
 0x41a   : > { %5224 = vmatmul.msk.f32.vlgmr.msrb.gmra.mxu2 %vm1718_vm8, %v1950_v40 }
 0x475   : > { %v1695_v41 = vpop.permute.xlu1 %1694 }
 0x476   : > { %v1705_v43 = vrot.slane %v1695_v41, 1  ;;  %v1699_v52 = vrot.slane %v1695_v41, 7 }
 0x47b   : > { %v1693_v42 = vpop.permute.xlu0 %1692 }
 0x47c   : > { %v1704_v44 = vrot.slane %v1693_v42, 1  ;;  %v1698_v51 = vrot.slane %v1693_v42, 7 }
 0x47e   : > { %v1706_v45 = vsel %vm1515_vm0, %v1704_v44, %v1705_v43  ;;  %v1707_v46 = vsel %vm1515_vm0, %v1705_v43, %v1704_v44  ;;  %v1701_v53 = vsel %vm1502_vm2, %v1699_v52, %v1698_v51  ;;  %v1700_v58 = vsel %vm1502_vm2, %v1698_v51, %v1699_v52  ;;  %v1978_v44 = vld [vmem:[#allocation19] sm:$0x1] }
 0x47f   : > { %1712 = vrot.lane.b32.xlu2 %v1706_v45, %s6679_s23  ;;  %v1709_v47 = vsel %vm1512_vm1, %v1707_v46, 0.0  ;;  %v1702_v54 = vsel %vm1498_vm3, %v1701_v53, 0.0  ;;  %v1720_v60 = vsel %vm1718_vm8, %v1700_v58, %v7442_v20 }
 0x480   : > { %1714 = vrot.lane.b32.xlu0 %v1709_v47, %s6679_s23  ;;  %v1719_v56 = vsel %vm1718_vm8, %v1702_v54, %v7446_v26 }
 0x49d   : > { %v1973_v37 = vpop.f32.mrf.mxu2 }
 0x49e   : > { %v1974_v40 = vadd.f32 %v1973_v37, %v1952_v36 }
 0x4a0   : > { %v1976_v41 = vmax.f32 %v1974_v40, 0.0 }
 0x4d9   : > { %v1713_v55 = vpop.permute.xlu2 %1712 }
 0x4da   : > { %v1721_v57 = vsel %vm1540_vm4, %v1719_v56, %v1713_v55 }
 0x4db   : > { %5218 = vmatmul.msk.f32.vlgmr.msra.gmra.mxu3 %vm1726_vm10, %v1721_v57 }
 0x4dc   : > { %1997 = vmatpush.msra.mxu3 %v1977_v22 }
 0x4f2   : > { %v1715_v59 = vpop.permute.xlu0 %1714 }
 0x4f3   : > { %v1722_v61 = vsel %vm1540_vm4, %v1720_v60, %v1715_v59 }
 0x4f4   : > { %5219 = vmatmul.msk.f32.gmra.mxu3 %vm1726_vm10, %v1722_v61 }
 0x55e   : > { %v1750_v63 = vpop.f32.mrf.mxu3 }
 0x55f   : > { %v1751_v0 = vadd.f32 %v5605_v62, %v1750_v63  ;;  %v5606_v63 = vld [vmem:[#allocation13 + $0x1] ss:$0 sm:$0xff] }
 0x561   : > { %v7480_v3 = vmax.f32 %v1751_v0, 0.0 }
 0x563   : > { %1760 = vrot.lane.b32.xlu1 %v7480_v3, %s6679_s23 }
 0x577   : > { %v1753_v4 = vpop.f32.mrf.mxu3 }
 0x578   : > { %v1754_v5 = vadd.f32 %v5605_v62, %v1753_v4 }
 0x57a   : > { %v7484_v6 = vmax.f32 %v1754_v5, 0.0 }
 0x57c   : > { %1762 = vrot.lane.b32.xlu2 %v7484_v6, %s6679_s23 }
 0x5d5   : > { %v1761_v7 = vpop.permute.xlu1 %1760 }
 0x5d6   : > { %v1766_v8 = vadd.f32 %v1761_v7, %v7446_v26  ;;  %v1763_v9 = vpop.permute.xlu2 %1762 }
 0x5d7   : > { %v1767_v10 = vadd.f32 %v1763_v9, %v7442_v20 }
 0x5d8   : > { %1776 = vrot.lane.b32.xlu0 %v1766_v8, %s6684_s16  ;;  %1794 = vrot.lane.b32.xlu2 %v1766_v8, %s6683_s3 }
 0x5d9   : > { %1778 = vrot.lane.b32.xlu1 %v1767_v10, %s6684_s16 }
 0x5e1   : > { %1796 = vrot.lane.b32.xlu1 %v1767_v10, %s6683_s3 }
 0x632   : > { %v1795_v28 = vpop.permute.xlu2 %1794 }
 0x64a   : > { %v1777_v11 = vpop.permute.xlu0 %1776 }
 0x64b   : > { %v1788_v12 = vrot.slane %v1777_v11, 1  ;;  %v1779_v13 = vpop.permute.xlu1 %1778  ;;  %v1782_v23 = vrot.slane %v1777_v11, 7 }
 0x64c   : > { %v1789_v14 = vrot.slane %v1779_v13, 1  ;;  %v1783_v24 = vrot.slane %v1779_v13, 7 }
 0x64e   : > { %v1790_v15 = vsel %vm1515_vm0, %v1788_v12, %v1789_v14  ;;  %v1791_v16 = vsel %vm1515_vm0, %v1789_v14, %v1788_v12  ;;  %v1785_v25 = vsel %vm1502_vm2, %v1783_v24, %v1782_v23  ;;  %v1784_v34 = vsel %vm1502_vm2, %v1782_v23, %v1783_v24 }
 0x64f   : > { %1802 = vrot.lane.b32.xlu0 %v1790_v15, %s6679_s23  ;;  %v1793_v17 = vsel %vm1512_vm1, %v1791_v16, 0.0  ;;  %v1786_v27 = vsel %vm1498_vm3, %v1785_v25, 0.0 }
 0x650   : > { %1804 = vrot.lane.b32.xlu2 %v1793_v17, %s6679_s23  ;;  %v1808_v30 = vsel %vm1718_vm8, %v1786_v27, %v1795_v28 }
 0x653   : > { %v1797_v32 = vpop.permute.xlu1 %1796 }
 0x654   : > { %v1809_v35 = vsel %vm1718_vm8, %v1784_v34, %v1797_v32 }
 0x6aa   : > { %v1805_v33 = vpop.permute.xlu2 %1804 }
 0x6ab   : > { %v1811_v39 = vsel %vm1540_vm4, %v1809_v35, %v1805_v33 }
 0x6c1   : > { %v1803_v29 = vpop.permute.xlu0 %1802 }
 0x6c2   : > { %v1810_v31 = vsel %vm1540_vm4, %v1808_v30, %v1803_v29 }
 0x6c3   : > { %5220 = vmatmul.msk.f32.vlgmr.msrb.gmra.mxu3 %vm1726_vm10, %v1810_v31 }
 0x6cb   : > { %5221 = vmatmul.msk.f32.gmra.mxu3 %vm1726_vm10, %v1811_v39 }
 0x6d3   : > { %5225 = vmatmul.msk.f32.vlgmr.msra.gmra.mxu3 %vm1718_vm8, %v1976_v41 }
 0x746   : > { %v1838_v42 = vpop.f32.mrf.mxu3 }
 0x747   : > { %v1839_v14 = vadd.f32 %v5606_v63, %v1838_v42 }
 0x749   : > { %v7539_v17 = vmax.f32 %v1839_v14, 0.0 }
 0x74e   : > { %v1841_v43 = vpop.f32.mrf.mxu3 }
 0x74f   : > { %v1842_v8 = vadd.f32 %v5606_v63, %v1841_v43  ;;  %v1859_v43 = vld [vmem:[#allocation11 + $0x40] sm:$0xff] }
 0x750   : > { %1922 = vmatpush.msrb.mxu0 %v1859_v43 }
 0x751   : > { %v7532_v15 = vmax.f32 %v1842_v8, 0.0 }
 0x756   : > { %v1999_v45 = vpop.f32.mrf.mxu3 }
 0x757   : > { %v2000_v46 = vadd.f32 %v1999_v45, %v1978_v44  ;;  %v1858_v44 = vld [vmem:[#allocation11 + $0x38] sm:$0xff]  ;;  %v1857_v45 = vld [vmem:[#allocation11 + $0x30] sm:$0xff] }
 0x758   : > { %1923 = vmatpush.msrb.mxu0 %v1858_v44 }
 0x759   : > { %v5226_v47 = vmul.f32 -1.442695, %v2000_v46 }
 0x75a   : > { %1924 = vmatpush.msrb.mxu0 %v1857_v45 }
 0x75b   : > { %5632 = vpow2.f32 %v5226_v47 }
 0x761   : > { %v5633_v48 = vpop.eup %5632 }
 0x762   : > { %v2005_v49 = vadd.f32 1.0, %v5633_v48  ;;  %v2119_v48 = vld [vmem:[#allocation14 + $0x8] sm:$0xff] }
 0x763   : > { %2140 = vmatpush.msra.mxu0 %v2119_v48 }
 0x764   : > { %5634 = vrcp.f32 %v2005_v49  ;;  %v2017_v53 = vand.u32 2147483648, %v2005_v49  ;;  %v2015_v55 = vand.u32 2147483647, %v2005_v49  ;;  %vm2011_vm12 = vweird.f32 %v2005_v49 }
 0x766   : > { %v2018_v57 = vor.u32 1.1754944e-38, %v2017_v53  ;;  %vm2016_vm14 = vcmp.eq.f32.partialorder %v2015_v55, 8.507059e+37 }
 0x76a   : > { %v5635_v50 = vpop.eup %5634 }
 0x76b   : > { %v2007_v51 = vmul.f32 %v5635_v50, %v2005_v49  ;;  %vm2012_vm11 = vweird.f32 %v5635_v50  ;;  %v5607_v49 = vld [vmem:[#allocation22] ss:$0 sm:$0xff] }
 0x76c   : > { %vm2013_vm13 = vmor %vm2011_vm12, %vm2012_vm11 }
 0x76d   : > { %v2008_v52 = vsub.f32 1.0, %v2007_v51 }
 0x76f   : > { %v2009_v54 = vmul.f32 %v5635_v50, %v2008_v52 }
 0x771   : > { %v2010_v56 = vadd.f32 %v5635_v50, %v2009_v54 }
 0x773   : > { %v2014_v58 = vsel %vm2013_vm13, %v5635_v50, %v2010_v56 }
 0x774   : > { %v2019_v59 = vsel %vm2016_vm14, %v2018_v57, %v2014_v58 }
 0x775   : > { %v2021_v60 = vperm.slane %v2019_v59, 0 }
 0x777   : > { %v2023_v61 = vmul.f32 %v2021_v60, %v7442_v20  ;;  %v2022_v62 = vmul.f32 %v2021_v60, %v7446_v26 }
 0x779   : > { %2056 = vrot.lane.b32.xlu2 %v2023_v61, %s6685_s21  ;;  %2054 = vrot.lane.b32.xlu0 %v2022_v62, %s6685_s21  ;;  %v2032_v0 = vrot.slane %v2022_v62, 1  ;;  %v2033_v4 = vrot.slane %v2023_v61, 1  ;;  %v2028_v5 = vrot.slane %v2022_v62, 7  ;;  %v2029_v7 = vrot.slane %v2023_v61, 7 }
 0x77b   : > { %v2034_v9 = vsel %vm1515_vm0, %v2032_v0, %v2033_v4  ;;  %v2031_v10 = vsel %vm1502_vm2, %v2029_v7, %v2028_v5  ;;  %v2030_v12 = vsel %vm1502_vm2, %v2028_v5, %v2029_v7  ;;  %v2035_v13 = vsel %vm1515_vm0, %v2033_v4, %v2032_v0 }
 0x77c   : > { %2062 = vrot.lane.b32.xlu1 %v2034_v9, %s6679_s23  ;;  %v2042_v11 = vsel %vm2036_vm15, %v2034_v9, %v2031_v10  ;;  %v2051_v16 = vsel %vm2045_vm6, %v2030_v12, %v2035_v13 }
 0x781   : > { %1850 = vrot.lane.b32.xlu2 %v7532_v15, %s6686_s28  ;;  %2064 = vrot.lane.b32.xlu0 %v2051_v16, %s6679_s23 }
 0x784   : > { %1848 = vrot.lane.b32.xlu1 %v7539_v17, %s6686_s28 }
 0x7d3   : > { %v2057_v22 = vpop.permute.xlu2 %2056 }
 0x7d4   : > { %v2069_v31 = vsel %vm1718_vm8, %v2030_v12, %v2057_v22  ;;  %v2147_v22 = vld [vmem:[#allocation17 + $0x8] sm:$0xff] }
 0x7d5   : > { %2168 = vmatpush.msrb.mxu3 %v2147_v22 }
 0x7db   : > { %v1851_v23 = vpop.permute.xlu2 %1850 }
 0x7dc   : > { %v1855_v24 = vadd.f32 %v1851_v23, %v7442_v20 }
 0x7de   : > { %1866 = vrot.lane.b32.xlu1 %v1855_v24, %s6687_s14 }
 0x7e6   : > { %1884 = vrot.lane.b32.xlu1 %v1855_v24, %s6684_s16 }
 0x7eb   : > { %v2055_v25 = vpop.permute.xlu0 %2054 }
 0x7ec   : > { %v2068_v27 = vsel %vm1718_vm8, %v2042_v11, %v2055_v25  ;;  %v2121_v25 = vld [vmem:[#allocation16 + $0x1] sm:$0x1] }
 0x7ee   : > { %v2063_v28 = vpop.permute.xlu1 %2062 }
 0x7ef   : > { %v2070_v29 = vsel %vm1540_vm4, %v2068_v27, %v2063_v28 }
 0x7f0   : > { %5227 = vmatmul.msk.f32.vlgmr.msra.gmra.mxu2 %vm1726_vm10, %v2070_v29 }
 0x7f3   : > { %v2065_v30 = vpop.permute.xlu0 %2064 }
 0x7f4   : > { %v2071_v34 = vsel %vm1540_vm4, %v2069_v31, %v2065_v30  ;;  %v2149_v30 = vld [vmem:[#allocation19 + $0x1] sm:$0x1] }
 0x7f6   : > { %v1849_v32 = vpop.permute.xlu1 %1848 }
 0x7f7   : > { %v1854_v33 = vadd.f32 %v1849_v32, %v7446_v26 }
 0x7f8   : > { %5228 = vmatmul.msk.f32.gmra.mxu2 %vm1726_vm10, %v2071_v34 }
 0x7f9   : > { %1882 = vrot.lane.b32.xlu2 %v1854_v33, %s6684_s16  ;;  %1864 = vrot.lane.b32.xlu0 %v1854_v33, %s6687_s14 }
 0x850   : > { %v1867_v35 = vpop.permute.xlu1 %1866 }
 0x851   : > { %v1877_v37 = vrot.slane %v1867_v35, 1  ;;  %v1871_v60 = vrot.slane %v1867_v35, 7 }
 0x853   : > { %v1883_v4 = vpop.permute.xlu2 %1882 }
 0x858   : > { %v1885_v13 = vpop.permute.xlu1 %1884 }
 0x86b   : > { %v1865_v36 = vpop.permute.xlu0 %1864 }
 0x86c   : > { %v1876_v39 = vrot.slane %v1865_v36, 1  ;;  %v1870_v59 = vrot.slane %v1865_v36, 7 }
 0x86e   : > { %v1878_v40 = vsel %vm1515_vm0, %v1876_v39, %v1877_v37  ;;  %v1879_v41 = vsel %vm1515_vm0, %v1877_v37, %v1876_v39  ;;  %v1873_v62 = vsel %vm1502_vm2, %v1871_v60, %v1870_v59  ;;  %v1872_v11 = vsel %vm1502_vm2, %v1870_v59, %v1871_v60 }
 0x86f   : > { %1890 = vrot.lane.b32.xlu0 %v1878_v40, %s6679_s23  ;;  %v1881_v42 = vsel %vm1512_vm1, %v1879_v41, 0.0  ;;  %v1874_v0 = vsel %vm1498_vm3, %v1873_v62, 0.0  ;;  %v1897_v16 = vsel %vm1718_vm8, %v1872_v11, %v1885_v13 }
 0x870   : > { %1892 = vrot.lane.b32.xlu2 %v1881_v42, %s6679_s23  ;;  %v1896_v8 = vsel %vm1718_vm8, %v1874_v0, %v1883_v4  ;;  %v2198_v0 = vld [vmem:[#allocation20 + $0x28] sm:$0xff]  ;;  %v2197_v4 = vld [vmem:[#allocation20 + $0x20] sm:$0xff] }
 0x871   : > { %2255 = vmatpush.msra.mxu1 %v2198_v0 }
 0x873   : > { %v2098_v46 = vpop.f32.mrf.mxu2  ;;  %2256 = vmatpush.msra.mxu1 %v2197_v4 }
 0x874   : > { %v7565_v51 = vadd.f32 %v5607_v49, %v2098_v46 }
 0x876   : > { %v2104_v53 = vmax.f32 %v7565_v51, 0.0 }
 0x878   : > { %v2106_v55 = vadd.f32 %v2104_v53, %v7480_v3 }
 0x87a   : > { %v2108_v57 = vsel %vm1718_vm8, %v2106_v55, 0.0 }
 0x87b   : > { %v2101_v47 = vpop.f32.mrf.mxu2 }
 0x87c   : > { %v7563_v50 = vadd.f32 %v5607_v49, %v2101_v47 }
 0x87e   : > { %v2105_v52 = vmax.f32 %v7563_v50, 0.0 }
 0x880   : > { %v2107_v54 = vadd.f32 %v2105_v52, %v7484_v6 }
 0x882   : > { %v2109_v56 = vsel %vm1718_vm8, %v2107_v54, 0.0 }
 0x883   : > { %v2110_v58 = vadd.f32 %v2109_v56, %v2108_v57 }
 0x885   : > { %v2111_v61 = vrot.slane %v2110_v58, 4 }
 0x887   : > { %v2112_v63 = vadd.f32 %v2111_v61, %v2110_v58 }
 0x889   : > { %v2113_v5 = vrot.slane %v2112_v63, 2 }
 0x88b   : > { %v2114_v10 = vadd.f32 %v2113_v5, %v2112_v63  ;;  %v2196_v5 = vld [vmem:[#allocation20 + $0x18] sm:$0xff] }
 0x88c   : > { %2257 = vmatpush.msra.mxu1 %v2196_v5 }
 0x88d   : > { %v2115_v14 = vrot.slane %v2114_v10, 1 }
 0x88f   : > { %v2116_v19 = vadd.f32 %v2115_v14, %v2114_v10 }
 0x891   : > { %v2117_v21 = vmul.f32 %v2116_v19, %v7454_v38 }
 0x8ca   : > { %v1893_v12 = vpop.permute.xlu2 %1892 }
 0x8cb   : > { %v1899_v18 = vsel %vm1540_vm4, %v1897_v16, %v1893_v12  ;;  %v2280_v16 = vld [vmem:[#allocation14 + $0x10] sm:$0xff] }
 0x8e1   : > { %v1891_v7 = vpop.permute.xlu0 %1890 }
 0x8e2   : > { %v1898_v9 = vsel %vm1540_vm4, %v1896_v8, %v1891_v7 }
 0x8e3   : > { %5222 = vmatmul.msk.f32.vlgmr.msrb.gmra.mxu0 %vm1726_vm10, %v1898_v9 }
 0x8e4   : > { %2301 = vmatpush.msrb.mxu0 %v2280_v16 }
 0x8eb   : > { %5223 = vmatmul.msk.f32.gmra.mxu0 %vm1726_vm10, %v1899_v18  ;;  %v5609_v18 = vld [vmem:[#allocation22 + $0x1] ss:$0 sm:$0xff] }
 0x8f3   : > { %5229 = vmatmul.msk.f32.vlgmr.msra.gmra.mxu0 %vm1718_vm8, %v2117_v21  ;;  %v2308_v21 = vld [vmem:[#allocation17 + $0x10] sm:$0xff] }
 0x8f4   : > { %2329 = vmatpush.msra.mxu3 %v2308_v21 }
 0x960   : > { %v7591_v23 = vpop.f32.mrf.mxu0 }
 0x968   : > { %v7593_v24 = vpop.f32.mrf.mxu0 }
 0x970   : > { %v2142_v27 = vpop.f32.mrf.mxu0 }
 0x971   : > { %v2143_v28 = vadd.f32 %v2142_v27, %v2121_v25 }
 0x973   : > { %v2145_v29 = vmax.f32 %v2143_v28, 0.0 }
 0x975   : > { %5230 = vmatmul.msk.f32.vlgmr.msrb.gmra.mxu3 %vm1718_vm8, %v2145_v29 }
 0x9f8   : > { %v2170_v31 = vpop.f32.mrf.mxu3 }
 0x9f9   : > { %v2171_v32 = vadd.f32 %v2170_v31, %v2149_v30 }
 0x9fb   : > { %v5231_v33 = vmul.f32 -1.442695, %v2171_v32 }
 0x9fd   : > { %5636 = vpow2.f32 %v5231_v33 }
 0xa03   : > { %v5637_v34 = vpop.eup %5636 }
 0xa04   : > { %v2176_v35 = vadd.f32 1.0, %v5637_v34 }
 0xa06   : > { %5638 = vrcp.f32 %v2176_v35  ;;  %v2188_v40 = vand.u32 2147483648, %v2176_v35  ;;  %v2186_v42 = vand.u32 2147483647, %v2176_v35  ;;  %vm2182_vm3 = vweird.f32 %v2176_v35 }
 0xa08   : > { %v2189_v44 = vor.u32 1.1754944e-38, %v2188_v40  ;;  %vm2187_vm11 = vcmp.eq.f32.partialorder %v2186_v42, 8.507059e+37 }
 0xa0c   : > { %v5639_v36 = vpop.eup %5638 }
 0xa0d   : > { %v2178_v37 = vmul.f32 %v5639_v36, %v2176_v35  ;;  %vm2183_vm1 = vweird.f32 %v5639_v36 }
 0xa0e   : > { %vm2184_vm9 = vmor %vm2182_vm3, %vm2183_vm1 }
 0xa0f   : > { %v2179_v39 = vsub.f32 1.0, %v2178_v37 }
 0xa11   : > { %v2180_v41 = vmul.f32 %v5639_v36, %v2179_v39 }
 0xa13   : > { %v2181_v43 = vadd.f32 %v5639_v36, %v2180_v41 }
 0xa15   : > { %v2185_v45 = vsel %vm2184_vm9, %v5639_v36, %v2181_v43  ;;  %v2282_v43 = vld [vmem:[#allocation16 + $0x2] sm:$0x1] }
 0xa16   : > { %v2190_v46 = vsel %vm2187_vm11, %v2189_v44, %v2185_v45 }
 0xa17   : > { %v2192_v47 = vperm.slane %v2190_v46, 0 }
 0xa19   : > { %v2194_v48 = vmul.f32 %v2192_v47, %v2107_v54  ;;  %v2193_v49 = vmul.f32 %v2192_v47, %v2106_v55  ;;  %v2310_v47 = vld [vmem:[#allocation19 + $0x2] sm:$0x1] }
 0xa1b   : > { %2217 = vrot.lane.b32.xlu2 %v2194_v48, %s6685_s21  ;;  %2215 = vrot.lane.b32.xlu0 %v2193_v49, %s6685_s21  ;;  %v2205_v56 = vrot.slane %v2193_v49, 1  ;;  %v2206_v57 = vrot.slane %v2194_v48, 1  ;;  %v2201_v58 = vrot.slane %v2193_v49, 7  ;;  %v2202_v59 = vrot.slane %v2194_v48, 7 }
 0xa1d   : > { %v2207_v60 = vsel %vm1515_vm0, %v2205_v56, %v2206_v57  ;;  %v2204_v61 = vsel %vm1502_vm2, %v2202_v59, %v2201_v58  ;;  %v2203_v55 = vsel %vm1502_vm2, %v2201_v58, %v2202_v59  ;;  %v2208_v62 = vsel %vm1515_vm0, %v2206_v57, %v2205_v56 }
 0xa1e   : > { %2223 = vrot.lane.b32.xlu1 %v2207_v60, %s6679_s23  ;;  %v2209_v54 = vsel %vm2036_vm15, %v2207_v60, %v2204_v61  ;;  %v2212_v63 = vsel %vm2045_vm6, %v2203_v55, %v2208_v62 }
 0xa23   : > { %2225 = vrot.lane.b32.xlu0 %v2212_v63, %s6679_s23 }
 0xa75   : > { %v2218_v11 = vpop.permute.xlu2 %2217 }
 0xa76   : > { %v2230_v13 = vsel %vm1718_vm8, %v2203_v55, %v2218_v11 }
 0xa8d   : > { %v2216_v7 = vpop.permute.xlu0 %2215 }
 0xa8e   : > { %v2229_v8 = vsel %vm1718_vm8, %v2209_v54, %v2216_v7 }
 0xa90   : > { %v2224_v9 = vpop.permute.xlu1 %2223 }
 0xa91   : > { %v2231_v10 = vsel %vm1540_vm4, %v2229_v8, %v2224_v9 }
 0xa92   : > { %5232 = vmatmul.msk.f32.vlgmr.msra.gmra.mxu1 %vm1726_vm10, %v2231_v10 }
 0xa95   : > { %v2226_v12 = vpop.permute.xlu0 %2225 }
 0xa96   : > { %v2232_v14 = vsel %vm1540_vm4, %v2230_v13, %v2226_v12 }
 0xa9a   : > { %5233 = vmatmul.msk.f32.gmra.mxu1 %vm1726_vm10, %v2232_v14 }
 0xb0f   : > { %v2259_v19 = vpop.f32.mrf.mxu1 }
 0xb10   : > { %v7618_v22 = vadd.f32 %v5609_v18, %v2259_v19 }
 0xb12   : > { %v2265_v25 = vmax.f32 %v7618_v22, 0.0  ;;  %v2520_v22 = vld [vmem:[#allocation20 + $0x58] sm:$0xff] }
 0xb13   : > { %2577 = vmatpush.msrb.mxu1 %v2520_v22 }
 0xb14   : > { %v2267_v29 = vadd.f32 %v2265_v25, %v7539_v17 }
 0xb16   : > { %v2269_v32 = vsel %vm1718_vm8, %v2267_v29, 0.0 }
 0xb17   : > { %v2262_v27 = vpop.f32.mrf.mxu1 }
 0xb18   : > { %v7621_v28 = vadd.f32 %v5609_v18, %v2262_v27 }
 0xb1a   : > { %v2266_v30 = vmax.f32 %v7621_v28, 0.0 }
 0xb1c   : > { %v2268_v31 = vadd.f32 %v2266_v30, %v7532_v15 }
 0xb1e   : > { %v2270_v33 = vsel %vm1718_vm8, %v2268_v31, 0.0 }
 0xb1f   : > { %v2271_v34 = vadd.f32 %v2270_v33, %v2269_v32  ;;  %v2357_v32 = vld [vmem:[#allocation20 + $0x30] sm:$0xff] }
 0xb21   : > { %v2272_v35 = vrot.slane %v2271_v34, 4 }
 0xb23   : > { %v2273_v36 = vadd.f32 %v2272_v35, %v2271_v34 }
 0xb25   : > { %v2274_v37 = vrot.slane %v2273_v36, 2 }
 0xb27   : > { %v2275_v39 = vadd.f32 %v2274_v37, %v2273_v36 }
 0xb29   : > { %v2276_v40 = vrot.slane %v2275_v39, 1 }
 0xb2b   : > { %v2277_v41 = vadd.f32 %v2276_v40, %v2275_v39 }
 0xb2d   : > { %v2278_v42 = vmul.f32 %v2277_v41, %v7454_v38 }
 0xb2f   : > { %5234 = vmatmul.msk.f32.vlgmr.msrb.gmra.mxu0 %vm1718_vm8, %v2278_v42  ;;  %v2441_v42 = vld [vmem:[#allocation14 + $0x18] sm:$0xff] }
 0xb30   : > { %2462 = vmatpush.msra.mxu0 %v2441_v42 }
 0xbac   : > { %v2303_v44 = vpop.f32.mrf.mxu0 }
 0xbad   : > { %v2304_v45 = vadd.f32 %v2303_v44, %v2282_v43  ;;  %v5610_v43 = vld [vmem:[#allocation22 + $0x2] ss:$0 sm:$0xff] }
 0xbaf   : > { %v2306_v46 = vmax.f32 %v2304_v45, 0.0  ;;  %v2469_v45 = vld [vmem:[#allocation17 + $0x18] sm:$0xff] }
 0xbb0   : > { %2490 = vmatpush.msrb.mxu3 %v2469_v45 }
 0xbb1   : > { %5235 = vmatmul.msk.f32.vlgmr.msra.gmra.mxu3 %vm1718_vm8, %v2306_v46  ;;  %v5608_v46 = vld [vmem:[#allocation13 + $0x2] ss:$0 sm:$0xff] }
 0xc34   : > { %v2331_v48 = vpop.f32.mrf.mxu3 }
 0xc35   : > { %v2332_v49 = vadd.f32 %v2331_v48, %v2310_v47  ;;  %v7660_v48 = vadd.f32 %v5608_v46, %v7591_v23 }
 0xc37   : > { %v5236_v56 = vmul.f32 -1.442695, %v2332_v49  ;;  %v7663_v49 = vadd.f32 %v5608_v46, %v7593_v24 }
 0xc39   : > { %5640 = vpow2.f32 %v5236_v56 }
 0xc3f   : > { %v5641_v57 = vpop.eup %5640 }
 0xc40   : > { %v2337_v58 = vadd.f32 1.0, %v5641_v57 }
 0xc42   : > { %5642 = vrcp.f32 %v2337_v58  ;;  %v2349_v54 = vand.u32 2147483648, %v2337_v58  ;;  %v2347_v62 = vand.u32 2147483647, %v2337_v58  ;;  %vm2343_vm13 = vweird.f32 %v2337_v58 }
 0xc44   : > { %v2350_v0 = vor.u32 1.1754944e-38, %v2349_v54  ;;  %vm2348_vm1 = vcmp.eq.f32.partialorder %v2347_v62, 8.507059e+37 }
 0xc48   : > { %v5643_v59 = vpop.eup %5642 }
 0xc49   : > { %v2339_v60 = vmul.f32 %v5643_v59, %v2337_v58  ;;  %vm2344_vm12 = vweird.f32 %v5643_v59  ;;  %v1932_v58 = vmax.f32 %v7660_v48, 0.0 }
 0xc4a   : > { %vm2345_vm14 = vmor %vm2343_vm13, %vm2344_vm12  ;;  %vm2742_vm13 = vcmp.lt.s32.totalorder %v7369_v1, 6 }
 0xc4b   : > { %v2340_v61 = vsub.f32 1.0, %v2339_v60  ;;  %v1933_v60 = vmax.f32 %v7663_v49, 0.0 }
 0xc4d   : > { %v2341_v55 = vmul.f32 %v5643_v59, %v2340_v61 }
 0xc4f   : > { %v2342_v63 = vadd.f32 %v5643_v59, %v2341_v55 }
 0xc51   : > { %v2346_v4 = vsel %vm2345_vm14, %v5643_v59, %v2342_v63  ;;  %vm2737_vm14 = vcmp.lt.s32.totalorder %v7369_v1, 2 }
 0xc52   : > { %v2351_v5 = vsel %vm2348_vm1, %v2350_v0, %v2346_v4  ;;  %vm2764_vm1 = vcmp.eq.s32.totalorder %v7372_v2, 14 }
 0xc53   : > { %v2353_v7 = vperm.slane %v2351_v5, 0 }
 0xc55   : > { %v2355_v8 = vmul.f32 %v2353_v7, %v2268_v31  ;;  %v2354_v9 = vmul.f32 %v2353_v7, %v2267_v29  ;;  %v2359_v29 = vld [vmem:[#allocation20 + $0x40] sm:$0xff]  ;;  %v2358_v31 = vld [vmem:[#allocation20 + $0x38] sm:$0xff] }
 0xc56   : > { %2416 = vmatpush.msrb.mxu2 %v2359_v29 }
 0xc57   : > { %2378 = vrot.lane.b32.xlu0 %v2355_v8, %s6685_s21  ;;  %2376 = vrot.lane.b32.xlu1 %v2354_v9, %s6685_s21  ;;  %v2366_v10 = vrot.slane %v2354_v9, 1  ;;  %v2367_v11 = vrot.slane %v2355_v8, 1  ;;  %v2362_v12 = vrot.slane %v2354_v9, 7  ;;  %v2363_v13 = vrot.slane %v2355_v8, 7 }
 0xc58   : > { %2417 = vmatpush.msrb.mxu2 %v2358_v31 }
 0xc59   : > { %v2368_v14 = vsel %vm1515_vm0, %v2366_v10, %v2367_v11  ;;  %v2365_v16 = vsel %vm1502_vm2, %v2363_v13, %v2362_v12  ;;  %v2364_v19 = vsel %vm1502_vm2, %v2362_v12, %v2363_v13  ;;  %v2369_v21 = vsel %vm1515_vm0, %v2367_v11, %v2366_v10  ;;  %v2443_v10 = vld [vmem:[#allocation16 + $0x3] sm:$0x1] }
 0xc5a   : > { %2384 = vrot.lane.b32.xlu2 %v2368_v14, %s6679_s23  ;;  %v2370_v18 = vsel %vm2036_vm15, %v2368_v14, %v2365_v16  ;;  %v2373_v27 = vsel %vm2045_vm6, %v2364_v19, %v2369_v21  ;;  %2418 = vmatpush.msrb.mxu2 %v2357_v32  ;;  %v2471_v14 = vld [vmem:[#allocation19 + $0x3] sm:$0x1] }
 0xc5f   : > { %2386 = vrot.lane.b32.xlu1 %v2373_v27, %s6679_s23 }
 0xcb4   : > { %v2385_v34 = vpop.permute.xlu2 %2384 }
 0xcc9   : > { %v2377_v33 = vpop.permute.xlu1 %2376  ;;  %v2379_v37 = vpop.permute.xlu0 %2378 }
 0xcca   : > { %v2390_v35 = vsel %vm1718_vm8, %v2370_v18, %v2377_v33  ;;  %v2391_v39 = vsel %vm1718_vm8, %v2364_v19, %v2379_v37 }
 0xccb   : > { %v2392_v36 = vsel %vm1540_vm4, %v2390_v35, %v2385_v34 }
 0xccc   : > { %5237 = vmatmul.msk.f32.vlgmr.msrb.gmra.mxu2 %vm1726_vm10, %v2392_v36 }
 0xcd1   : > { %v2387_v40 = vpop.permute.xlu1 %2386 }
 0xcd2   : > { %v2393_v41 = vsel %vm1540_vm4, %v2391_v39, %v2387_v40 }
 0xcd4   : > { %5238 = vmatmul.msk.f32.gmra.mxu2 %vm1726_vm10, %v2393_v41 }
 0xd4f   : > { %v2420_v44 = vpop.f32.mrf.mxu2 }
 0xd50   : > { %v7657_v47 = vadd.f32 %v5610_v43, %v2420_v44 }
 0xd52   : > { %v2426_v56 = vmax.f32 %v7657_v47, 0.0  ;;  %v2518_v47 = vld [vmem:[#allocation20 + $0x48] sm:$0xff] }
 0xd54   : > { %v2428_v61 = vadd.f32 %v2426_v56, %v1932_v58 }
 0xd56   : > { %v2430_v24 = vsel %vm1718_vm8, %v2428_v61, 0.0 }
 0xd57   : > { %v2423_v57 = vpop.f32.mrf.mxu2 }
 0xd58   : > { %v2424_v59 = vadd.f32 %v5610_v43, %v2423_v57 }
 0xd5a   : > { %v2427_v54 = vmax.f32 %v2424_v59, 0.0 }
 0xd5c   : > { %v2429_v23 = vadd.f32 %v2427_v54, %v1933_v60 }
 0xd5e   : > { %v2431_v55 = vsel %vm1718_vm8, %v2429_v23, 0.0 }
 0xd5f   : > { %v2432_v62 = vadd.f32 %v2431_v55, %v2430_v24 }
 0xd61   : > { %v2433_v63 = vrot.slane %v2432_v62, 4 }
 0xd63   : > { %v2434_v0 = vadd.f32 %v2433_v63, %v2432_v62  ;;  %v5611_v63 = vld [vmem:[#allocation22 + $0x3] ss:$0 sm:$0xff] }
 0xd65   : > { %v2435_v4 = vrot.slane %v2434_v0, 2 }
 0xd67   : > { %v2436_v5 = vadd.f32 %v2435_v4, %v2434_v0  ;;  %v2648_v0 = vld [vmem:[#allocation23 + $0x18] sm:$0xff]  ;;  %v2647_v4 = vld [vmem:[#allocation23 + $0x10] sm:$0xff] }
 0xd68   : > { %2671 = vmatpush.msrb.mxu0 %v2648_v0 }
 0xd69   : > { %v2437_v7 = vrot.slane %v2436_v5, 1 }
 0xd6a   : > { %2672 = vmatpush.msrb.mxu0 %v2647_v4 }
 0xd6b   : > { %v2438_v8 = vadd.f32 %v2437_v7, %v2436_v5  ;;  %v2646_v5 = vld [vmem:[#allocation23 + $0x8] sm:$0xff] }
 0xd6c   : > { %2673 = vmatpush.msrb.mxu0 %v2646_v5 }
 0xd6d   : > { %v2439_v9 = vmul.f32 %v2438_v8, %v7454_v38 }
 0xd6f   : > { %5239 = vmatmul.msk.f32.vlgmr.msra.gmra.mxu0 %vm1718_vm8, %v2439_v9  ;;  %v2645_v9 = vld [vmem:[#allocation23] sm:$0xff] }
 0xd70   : > { %2674 = vmatpush.msrb.mxu0 %v2645_v9 }
 0xdec   : > { %v2464_v11 = vpop.f32.mrf.mxu0 }
 0xded   : > { %v2465_v12 = vadd.f32 %v2464_v11, %v2443_v10 }
 0xdef   : > { %v2467_v13 = vmax.f32 %v2465_v12, 0.0 }
 0xdf1   : > { %5240 = vmatmul.msk.f32.vlgmr.msrb.gmra.mxu3 %vm1718_vm8, %v2467_v13 }
 0xe74   : > { %v2492_v16 = vpop.f32.mrf.mxu3 }
 0xe75   : > { %v2493_v18 = vadd.f32 %v2492_v16, %v2471_v14  ;;  %v2687_v16 = vld [vmem:[#allocation26 + $0x18] sm:$0xff] }
 0xe76   : > { %2710 = vmatpush.msra.mxu3 %v2687_v16 }
 0xe77   : > { %v5241_v19 = vmul.f32 -1.442695, %v2493_v18  ;;  %v2686_v18 = vld [vmem:[#allocation26 + $0x10] sm:$0xff] }
 0xe78   : > { %2711 = vmatpush.msra.mxu3 %v2686_v18 }
 0xe79   : > { %5644 = vpow2.f32 %v5241_v19 }
 0xe7f   : > { %v5645_v21 = vpop.eup %5644 }
 0xe80   : > { %v2498_v27 = vadd.f32 1.0, %v5645_v21 }
 0xe82   : > { %5646 = vrcp.f32 %v2498_v27  ;;  %v2510_v33 = vand.u32 2147483648, %v2498_v27  ;;  %v2508_v35 = vand.u32 2147483647, %v2498_v27  ;;  %vm2504_vm9 = vweird.f32 %v2498_v27 }
 0xe84   : > { %v2511_v37 = vor.u32 1.1754944e-38, %v2510_v33  ;;  %vm2509_vm12 = vcmp.eq.f32.partialorder %v2508_v35, 8.507059e+37  ;;  %v2684_v33 = vld [vmem:[#allocation26] sm:$0xff] }
 0xe88   : > { %v5647_v29 = vpop.eup %5646 }
 0xe89   : > { %v2500_v31 = vmul.f32 %v5647_v29, %v2498_v27  ;;  %vm2505_vm3 = vweird.f32 %v5647_v29 }
 0xe8a   : > { %vm2506_vm11 = vmor %vm2504_vm9, %vm2505_vm3  ;;  %vm2747_vm3 = vcmp.eq.s32.totalorder %v7369_v1, 1 }
 0xe8b   : > { %v2501_v32 = vsub.f32 1.0, %v2500_v31 }
 0xe8d   : > { %v2502_v34 = vmul.f32 %v5647_v29, %v2501_v32 }
 0xe8f   : > { %v2503_v36 = vadd.f32 %v5647_v29, %v2502_v34 }
 0xe91   : > { %v2507_v39 = vsel %vm2506_vm11, %v5647_v29, %v2503_v36  ;;  %v5612_v36 = vld [vmem:[#allocation25] ss:$0 sm:$0xff] }
 0xe92   : > { %v2512_v40 = vsel %vm2509_vm12, %v2511_v37, %v2507_v39 }
 0xe93   : > { %v2514_v41 = vperm.slane %v2512_v40, 0 }
 0xe95   : > { %v2516_v42 = vmul.f32 %v2514_v41, %v2429_v23  ;;  %v2515_v43 = vmul.f32 %v2514_v41, %v2428_v61 }
 0xe97   : > { %2539 = vrot.lane.b32.xlu1 %v2516_v42, %s6685_s21  ;;  %2537 = vrot.lane.b32.xlu2 %v2515_v43, %s6685_s21  ;;  %v2527_v44 = vrot.slane %v2515_v43, 1  ;;  %v2528_v45 = vrot.slane %v2516_v42, 1  ;;  %v2523_v46 = vrot.slane %v2515_v43, 7  ;;  %v2524_v57 = vrot.slane %v2516_v42, 7 }
 0xe99   : > { %v2529_v59 = vsel %vm1515_vm0, %v2527_v44, %v2528_v45  ;;  %v2526_v24 = vsel %vm1502_vm2, %v2524_v57, %v2523_v46  ;;  %v2525_v61 = vsel %vm1502_vm2, %v2523_v46, %v2524_v57  ;;  %v2530_v55 = vsel %vm1515_vm0, %v2528_v45, %v2527_v44 }
 0xe9a   : > { %2545 = vrot.lane.b32.xlu0 %v2529_v59, %s6679_s23  ;;  %v2531_v23 = vsel %vm2036_vm15, %v2529_v59, %v2526_v24  ;;  %v2534_v62 = vsel %vm2045_vm6, %v2525_v61, %v2530_v55 }
 0xe9f   : > { %2599 = vrot.lane.b32.xlu1 %v2426_v56, %s6679_s23  ;;  %2547 = vrot.lane.b32.xlu2 %v2534_v62, %s6679_s23 }
 0xea2   : > { %2591 = vrot.lane.b32.xlu0 %v2265_v25, %s6685_s21  ;;  %v2519_v25 = vld [vmem:[#allocation20 + $0x50] sm:$0xff] }
 0xea3   : > { %2578 = vmatpush.msrb.mxu1 %v2519_v25 }
 0xea5   : > { %2579 = vmatpush.msrb.mxu1 %v2518_v47 }
 0xea7   : > { %2601 = vrot.lane.b32.xlu1 %v2427_v54, %s6679_s23 }
 0xeaa   : > { %2593 = vrot.lane.b32.xlu0 %v2266_v30, %s6685_s21 }
 0xeaf   : > { %2625 = vrot.lane.b32.xlu1 %v7539_v17, %s6679_s23 }
 0xeb2   : > { %2619 = vrot.lane.b32.xlu0 %v7480_v3, %s6685_s21 }
 0xeb7   : > { %2627 = vrot.lane.b32.xlu1 %v7532_v15, %s6679_s23 }
 0xeba   : > { %2621 = vrot.lane.b32.xlu0 %v7484_v6, %s6685_s21 }
 0xef1   : > { %v2538_v28 = vpop.permute.xlu2 %2537 }
 0xef2   : > { %v2551_v30 = vsel %vm1718_vm8, %v2531_v23, %v2538_v28 }
 0xef9   : > { %v2548_v54 = vpop.permute.xlu2 %2547 }
 0xf09   : > { %v2540_v3 = vpop.permute.xlu1 %2539 }
 0xf0a   : > { %v2552_v15 = vsel %vm1718_vm8, %v2525_v61, %v2540_v3  ;;  %v5613_v61 = vld [vmem:[#allocation28] ss:$0 sm:$0xff] }
 0xf0b   : > { %v2554_v6 = vsel %vm1540_vm4, %v2552_v15, %v2548_v54 }
 0xf0c   : > { %v2546_v56 = vpop.permute.xlu0 %2545 }
 0xf0d   : > { %v2553_v17 = vsel %vm1540_vm4, %v2551_v30, %v2546_v56 }
 0xf0e   : > { %5242 = vmatmul.msk.f32.vlgmr.msrb.gmra.mxu1 %vm1726_vm10, %v2553_v17 }
 0xf11   : > { %v2600_v19 = vpop.permute.xlu1 %2599 }
 0xf14   : > { %v2592_v14 = vpop.permute.xlu0 %2591 }
 0xf15   : > { %v2613_v21 = vsel %vm1718_vm8, %v2104_v53, %v2592_v14  ;;  %v2685_v53 = vld [vmem:[#allocation26 + $0x8] sm:$0xff] }
 0xf16   : > { %5243 = vmatmul.msk.f32.gmra.mxu1 %vm1726_vm10, %v2554_v6  ;;  %v2615_v27 = vsel %vm1540_vm4, %v2613_v21, %v2600_v19  ;;  %2712 = vmatpush.msra.mxu3 %v2685_v53  ;;  %v2724_v14 = vld [vmem:[#allocation29 + $0x8] sm:$0xff]  ;;  %v2723_v19 = vld [vmem:[#allocation29] sm:$0xff] }
 0xf18   : > { %2713 = vmatpush.msra.mxu3 %v2684_v33 }
 0xf8b   : > { %v2581_v7 = vpop.f32.mrf.mxu1 }
 0xf8c   : > { %v2582_v8 = vadd.f32 %v5611_v63, %v2581_v7 }
 0xf8e   : > { %v2587_v10 = vmax.f32 %v2582_v8, 0.0 }
 0xf90   : > { %2607 = vrot.lane.b32.xlu2 %v2587_v10, %s6686_s28 }
 0xf93   : > { %v2584_v11 = vpop.f32.mrf.mxu1 }
 0xf94   : > { %v2585_v12 = vadd.f32 %v5611_v63, %v2584_v11 }
 0xf96   : > { %v2588_v13 = vmax.f32 %v2585_v12, 0.0 }
 0xf98   : > { %2609 = vrot.lane.b32.xlu2 %v2588_v13, %s6686_s28  ;;  %v2725_v13 = vld [vmem:[#allocation29 + $0x10] sm:$0xff] }
 0xf99   : > { %2831 = vmatpush.msra.mxu2 %v2725_v13  ;;  %v5615_v13 = vld [vmem:[%s8564_s1 + $0x1] ss:$0 sm:$0xff] }
 0xf9b   : > { %2832 = vmatpush.msra.mxu2 %v2724_v14 }
 0xf9d   : > { %2833 = vmatpush.msra.mxu2 %v2723_v19 }
 0xfa0   : > { %2633 = vrot.lane.b32.xlu2 %v1932_v58, %s6686_s28  ;;  %v2594_v58 = vpop.permute.xlu0 %2593 }
 0xfa1   : > { %v2614_v49 = vsel %vm1718_vm8, %v2105_v52, %v2594_v58 }
 0xfa8   : > { %2635 = vrot.lane.b32.xlu2 %v1933_v60, %s6686_s28  ;;  %v2602_v60 = vpop.permute.xlu1 %2601  ;;  %v2620_v34 = vpop.permute.xlu0 %2619 }
 0xfa9   : > { %v2616_v32 = vsel %vm1540_vm4, %v2614_v49, %v2602_v60  ;;  %v2639_v50 = vsel %vm1718_vm8, %v7446_v26, %v2620_v34 }
 0xfb0   : > { %v2626_v37 = vpop.permute.xlu1 %2625  ;;  %v2622_v42 = vpop.permute.xlu0 %2621 }
 0xfb1   : > { %v2641_v39 = vsel %vm1540_vm4, %v2639_v50, %v2626_v37  ;;  %v2640_v44 = vsel %vm1718_vm8, %v7442_v20, %v2622_v42 }
 0xfb8   : > { %v2628_v46 = vpop.permute.xlu1 %2627 }
 0xfb9   : > { %v2642_v26 = vsel %vm1540_vm4, %v2640_v44, %v2628_v46 }
 0xfea   : > { %v2608_v29 = vpop.permute.xlu2 %2607 }
 0xfeb   : > { %v2617_v48 = vsel %vm1726_vm10, %v2615_v27, %v2608_v29 }
 0xfec   : > { %5244 = vmatmul.msk.f32.vlgmr.msrb.gmra.mxu0 %vm1543_vm5, %v2617_v48 }
 0xff2   : > { %v2610_v31 = vpop.permute.xlu2 %2609 }
 0xff3   : > { %v2618_v51 = vsel %vm1726_vm10, %v2616_v32, %v2610_v31  ;;  %v5614_v32 = vld [vmem:[%s8564_s1] ss:$0 sm:$0xff] }
 0xff4   : > { %5245 = vmatmul.msk.f32.gmra.mxu0 %vm1543_vm5, %v2618_v51 }
 0xffa   : > { %v2634_v35 = vpop.permute.xlu2 %2633 }
 0xffb   : > { %v2643_v41 = vsel %vm1726_vm10, %v2641_v39, %v2634_v35 }
0x1002   : > { %v2636_v45 = vpop.permute.xlu2 %2635 }
0x1003   : > { %v2644_v24 = vsel %vm1726_vm10, %v2642_v26, %v2636_v45 }
0x1069   : > { %v2676_v52 = vpop.f32.mrf.mxu0 }
0x106a   : > { %v2677_v40 = vadd.f32 %v5612_v36, %v2676_v52 }
0x106c   : > { %v7743_v43 = vadd.f32 %v2677_v40, %v2643_v41 }
0x106e   : > { %5246 = vmatmul.msk.f32.vlgmr.msra.gmra.mxu3 %vm1543_vm5, %v7743_v43 }
0x1071   : > { %v2679_v57 = vpop.f32.mrf.mxu0 }
0x1072   : > { %v2680_v59 = vadd.f32 %v5612_v36, %v2679_v57 }
0x1074   : > { %v7751_v23 = vadd.f32 %v2680_v59, %v2644_v24 }
0x1076   : > { %5247 = vmatmul.msk.f32.gmra.mxu3 %vm1543_vm5, %v7751_v23 }
0x10f1   : > { %v2715_v55 = vpop.f32.mrf.mxu3 }
0x10f2   : > { %v2716_v62 = vadd.f32 %v5613_v61, %v2715_v55 }
0x10f4   : > { %v7755_v22 = vmax.f32 %v2716_v62, 0.0 }
0x10f6   : > { %2729 = vrot.lane.b32.xlu0 %v7755_v22, %s6683_s3 }
0x10f9   : > { %v2718_v20 = vpop.f32.mrf.mxu3 }
0x10fa   : > { %v2719_v25 = vadd.f32 %v5613_v61, %v2718_v20 }
0x10fc   : > { %v7759_v47 = vmax.f32 %v2719_v25, 0.0 }
0x10fe   : > { %2731 = vrot.lane.b32.xlu1 %v7759_v47, %s6683_s3 }
0x1168   : > { %v2730_v28 = vpop.permute.xlu0 %2729 }
0x1169   : > { %v2735_v56 = vrot.slane %v2730_v28, 6  ;;  %v2740_v17 = vrot.slane %v2730_v28, 2 }
0x1170   : > { %v2732_v30 = vpop.permute.xlu1 %2731 }
0x1171   : > { %v2736_v3 = vrot.slane %v2732_v30, 6  ;;  %v2741_v15 = vrot.slane %v2732_v30, 2 }
0x1173   : > { %v2744_v54 = vsel %vm2742_vm13, %v2741_v15, %v2740_v17  ;;  %v2743_v6 = vsel %vm2742_vm13, %v2740_v17, %v2741_v15  ;;  %v2739_v63 = vsel %vm2737_vm14, %v2736_v3, %v2735_v56  ;;  %v2738_v4 = vsel %vm2737_vm14, %v2735_v56, %v2736_v3  ;;  %v2856_v56 = vld [vmem:[#allocation29 + $0x28] sm:$0xff]  ;;  %v2855_v17 = vld [vmem:[#allocation29 + $0x20] sm:$0xff]  ;;  %v2854_v3 = vld [vmem:[#allocation29 + $0x18] sm:$0xff] }
0x1174   : > { %2773 = vrot.lane.b32.xlu0 %v2744_v54, %s6685_s21  ;;  %2771 = vrot.lane.b32.xlu2 %v2743_v6, %s6685_s21  ;;  %v2745_v0 = vsel %vm2036_vm15, %v2743_v6, %v2739_v63 }
0x1175   : > { %2755 = vrot.lane.b32.xlu1 %v2745_v0, %s6685_s21  ;;  %2955 = vmatpush.msra.mxu1 %v2856_v56 }
0x1177   : > { %2956 = vmatpush.msra.mxu1 %v2855_v17 }
0x1179   : > { %2957 = vmatpush.msra.mxu1 %v2854_v3 }
0x117c   : > { %2757 = vrot.lane.b32.xlu0 %v2738_v4, %s6685_s21 }
0x11ce   : > { %v2772_v5 = vpop.permute.xlu2 %2771 }
0x11cf   : > { %2781 = vrot.lane.b32.xlu2 %v2772_v5, %s6683_s3 }
0x11e6   : > { %v2774_v7 = vpop.permute.xlu0 %2773 }
0x11e7   : > { %v2756_v8 = vpop.permute.xlu1 %2755  ;;  %v2778_v9 = vsel %vm2764_vm1, %v7759_v47, %v2774_v7 }
0x11e8   : > { %2783 = vrot.lane.b32.xlu1 %v2778_v9, %s6683_s3  ;;  %v2761_v10 = vsel %vm2747_vm3, %v7755_v22, %v2756_v8 }
0x11e9   : > { %2791 = vrot.lane.b32.xlu2 %v2761_v10, %s6683_s3 }
0x11ee   : > { %v2758_v11 = vpop.permute.xlu0 %2757 }
0x11f0   : > { %2793 = vrot.lane.b32.xlu1 %v2758_v11, %s6683_s3 }
0x1229   : > { %v2782_v12 = vpop.permute.xlu2 %2781 }
0x122a   : > { %2799 = vrot.lane.b32.xlu0 %v2782_v12, %s6679_s23 }
0x1243   : > { %v2792_v21 = vpop.permute.xlu2 %2791 }
0x1244   : > { %v2805_v27 = vsel %vm1718_vm8, %v2792_v21, %v7755_v22 }
0x125a   : > { %v2784_v16 = vpop.permute.xlu1 %2783 }
0x125b   : > { %v2788_v18 = vsel %vm2045_vm6, %v2738_v4, %v2784_v16 }
0x125c   : > { %2801 = vrot.lane.b32.xlu2 %v2788_v18, %s6679_s23 }
0x1262   : > { %v2794_v58 = vpop.permute.xlu1 %2793 }
0x1263   : > { %v2806_v49 = vsel %vm1718_vm8, %v2794_v58, %v7759_v47 }
0x129c   : > { %v2800_v29 = vpop.permute.xlu0 %2799 }
0x129d   : > { %v2807_v48 = vsel %vm1540_vm4, %v2805_v27, %v2800_v29 }
0x129e   : > { %5248 = vmatmul.msk.f32.vlgmr.msra.gmra.mxu2 %vm1726_vm10, %v2807_v48 }
0x12b6   : > { %v2802_v60 = vpop.permute.xlu2 %2801 }
0x12b7   : > { %v2808_v31 = vsel %vm1540_vm4, %v2806_v49, %v2802_v60 }
0x12b8   : > { %5249 = vmatmul.msk.f32.gmra.mxu2 %vm1726_vm10, %v2808_v31 }
0x1321   : > { %v2835_v51 = vpop.f32.mrf.mxu2 }
0x1322   : > { %v7804_v53 = vadd.f32 %v5614_v32, %v2835_v51 }
0x1324   : > { %v2841_v33 = vmax.f32 %v7804_v53, 0.0  ;;  %v2978_v53 = vld [vmem:[#allocation29 + $0x30] sm:$0xff] }
0x1326   : > { %2845 = vrot.lane.b32.xlu0 %v2841_v33, %s6679_s23 }
0x133b   : > { %v2838_v34 = vpop.f32.mrf.mxu2 }
0x133c   : > { %v7810_v35 = vadd.f32 %v5614_v32, %v2838_v34 }
0x133e   : > { %v2842_v36 = vmax.f32 %v7810_v35, 0.0 }
0x1340   : > { %2847 = vrot.lane.b32.xlu1 %v2842_v36, %s6679_s23 }
0x1398   : > { %v2846_v37 = vpop.permute.xlu0 %2845 }
0x1399   : > { %v2851_v50 = vadd.f32 %v2846_v37, %v7755_v22 }
0x139b   : > { %2861 = vrot.lane.b32.xlu2 %v2851_v50, %s6684_s16 }
0x13b2   : > { %v2848_v52 = vpop.permute.xlu1 %2847 }
0x13b3   : > { %v2852_v39 = vadd.f32 %v2848_v52, %v7759_v47 }
0x13b5   : > { %2863 = vrot.lane.b32.xlu0 %v2852_v39, %s6684_s16 }
0x13f5   : > { %v2862_v40 = vpop.permute.xlu2 %2861 }
0x13f6   : > { %v2867_v42 = vrot.slane %v2862_v40, 6  ;;  %v2871_v44 = vrot.slane %v2862_v40, 2 }
0x1427   : > { %v2864_v41 = vpop.permute.xlu0 %2863 }
0x1428   : > { %v2868_v45 = vrot.slane %v2864_v41, 6  ;;  %v2872_v46 = vrot.slane %v2864_v41, 2 }
0x142a   : > { %v2874_v57 = vsel %vm2742_vm13, %v2872_v46, %v2871_v44  ;;  %v2873_v26 = vsel %vm2742_vm13, %v2871_v44, %v2872_v46  ;;  %v2870_v59 = vsel %vm2737_vm14, %v2868_v45, %v2867_v42  ;;  %v2869_v61 = vsel %vm2737_vm14, %v2867_v42, %v2868_v45 }
0x142b   : > { %2891 = vrot.lane.b32.xlu2 %v2874_v57, %s6679_s23  ;;  %2889 = vrot.lane.b32.xlu1 %v2873_v26, %s6679_s23  ;;  %v2875_v24 = vsel %vm2036_vm15, %v2873_v26, %v2870_v59 }
0x142c   : > { %2879 = vrot.lane.b32.xlu0 %v2875_v24, %s6679_s23  ;;  %v2980_v24 = vld [vmem:[#allocation29 + $0x40] sm:$0xff] }
0x142d   : > { %3079 = vmatpush.msra.mxu0 %v2980_v24 }
0x1433   : > { %2881 = vrot.lane.b32.xlu2 %v2869_v61, %s6679_s23 }
0x143b   : > { %2915 = vrot.lane.b32.xlu2 %v2851_v50, %s6683_s3 }
0x1443   : > { %2917 = vrot.lane.b32.xlu2 %v2852_v39, %s6683_s3 }
0x1485   : > { %v2892_v55 = vpop.permute.xlu2 %2891 }
0x1486   : > { %v2896_v62 = vsel %vm2764_vm1, %v2852_v39, %v2892_v55 }
0x1487   : > { %2901 = vrot.lane.b32.xlu0 %v2896_v62, %s6684_s16 }
0x148d   : > { %v2882_v30 = vpop.permute.xlu2 %2881 }
0x1495   : > { %v2916_v0 = vpop.permute.xlu2 %2915 }
0x149d   : > { %v2890_v20 = vpop.permute.xlu1 %2889  ;;  %v2918_v9 = vpop.permute.xlu2 %2917 }
0x149e   : > { %2899 = vrot.lane.b32.xlu1 %v2890_v20, %s6684_s16  ;;  %v2880_v25 = vpop.permute.xlu0 %2879 }
0x149f   : > { %v2885_v28 = vsel %vm2747_vm3, %v2851_v50, %v2880_v25 }
0x14a6   : > { %2909 = vrot.lane.b32.xlu1 %v2885_v28, %s6684_s16 }
0x14ae   : > { %2911 = vrot.lane.b32.xlu1 %v2882_v30, %s6684_s16 }
0x14f9   : > { %v2902_v54 = vpop.permute.xlu0 %2901 }
0x14fa   : > { %v2906_v6 = vsel %vm2045_vm6, %v2869_v61, %v2902_v54  ;;  %v2979_v61 = vld [vmem:[#allocation29 + $0x38] sm:$0xff] }
0x14fb   : > { %3080 = vmatpush.msra.mxu0 %v2979_v61 }
0x14fd   : > { %3081 = vmatpush.msra.mxu0 %v2978_v53 }
0x1510   : > { %v2900_v15 = vpop.permute.xlu1 %2899 }
0x1511   : > { %2923 = vrot.lane.b32.xlu0 %v2900_v15, %s6679_s23  ;;  %v5616_v15 = vld [vmem:[%s8564_s1 + $0x2] ss:$0 sm:$0xff] }
0x1518   : > { %v2910_v63 = vpop.permute.xlu1 %2909 }
0x1519   : > { %2925 = vrot.lane.b32.xlu0 %v2906_v6, %s6679_s23  ;;  %v2929_v4 = vsel %vm1718_vm8, %v2910_v63, %v2916_v0  ;;  %v3120_v0 = vld [vmem:[#allocation31 + $0x18] sm:$0xff] }
0x151a   : > { %3143 = vmatpush.msrb.mxu3 %v3120_v0 }
0x1520   : > { %v2912_v8 = vpop.permute.xlu1 %2911 }
0x1521   : > { %v2930_v10 = vsel %vm1718_vm8, %v2912_v8, %v2918_v9 }
0x1583   : > { %v2924_v5 = vpop.permute.xlu0 %2923 }
0x1584   : > { %v2931_v7 = vsel %vm1540_vm4, %v2929_v4, %v2924_v5  ;;  %v3119_v4 = vld [vmem:[#allocation31 + $0x10] sm:$0xff]  ;;  %v3118_v5 = vld [vmem:[#allocation31 + $0x8] sm:$0xff] }
0x1585   : > { %5251 = vmatmul.msk.f32.vlgmr.msra.gmra.mxu1 %vm1726_vm10, %v2931_v7  ;;  %3144 = vmatpush.msrb.mxu3 %v3119_v4 }
0x1587   : > { %3145 = vmatpush.msrb.mxu3 %v3118_v5 }
0x158b   : > { %v2926_v11 = vpop.permute.xlu0 %2925 }
0x158c   : > { %v2932_v12 = vsel %vm1540_vm4, %v2930_v10, %v2926_v11  ;;  %v3117_v10 = vld [vmem:[#allocation31] sm:$0xff] }
0x158d   : > { %5252 = vmatmul.msk.f32.gmra.mxu1 %vm1726_vm10, %v2932_v12  ;;  %3146 = vmatpush.msrb.mxu3 %v3117_v10 }
0x1602   : > { %v2959_v14 = vpop.f32.mrf.mxu1 }
0x1603   : > { %v2960_v16 = vadd.f32 %v5615_v13, %v2959_v14 }
0x1605   : > { %v2965_v18 = vmax.f32 %v2960_v16, 0.0 }
0x1607   : > { %2969 = vrot.lane.b32.xlu1 %v2965_v18, %s6686_s28 }
0x160a   : > { %v2962_v19 = vpop.f32.mrf.mxu1 }
0x160b   : > { %v2963_v21 = vadd.f32 %v5615_v13, %v2962_v19 }
0x160d   : > { %v2966_v27 = vmax.f32 %v2963_v21, 0.0 }
0x160f   : > { %2971 = vrot.lane.b32.xlu2 %v2966_v27, %s6686_s28 }
0x1669   : > { %v2972_v29 = vpop.permute.xlu2 %2971 }
0x166a   : > { %v2976_v48 = vadd.f32 %v2972_v29, %v7759_v47 }
0x166c   : > { %2987 = vrot.lane.b32.xlu1 %v2976_v48, %s6687_s14 }
0x1679   : > { %v2970_v58 = vpop.permute.xlu1 %2969 }
0x167a   : > { %v2975_v49 = vadd.f32 %v2970_v58, %v7755_v22 }
0x167c   : > { %2985 = vrot.lane.b32.xlu0 %v2975_v49, %s6687_s14 }
0x16de   : > { %v2988_v60 = vpop.permute.xlu1 %2987 }
0x16df   : > { %v2992_v32 = vrot.slane %v2988_v60, 6  ;;  %v2996_v51 = vrot.slane %v2988_v60, 2  ;;  %v3167_v60 = vld [vmem:[#allocation34 + $0x8] sm:$0xff] }
0x16ee   : > { %v2986_v31 = vpop.permute.xlu0 %2985 }
0x16ef   : > { %v2991_v34 = vrot.slane %v2986_v31, 6  ;;  %v2995_v37 = vrot.slane %v2986_v31, 2  ;;  %v3166_v31 = vld [vmem:[#allocation34] sm:$0xff] }
0x16f1   : > { %v2998_v50 = vsel %vm2742_vm13, %v2996_v51, %v2995_v37  ;;  %v2997_v52 = vsel %vm2742_vm13, %v2995_v37, %v2996_v51  ;;  %v2994_v39 = vsel %vm2737_vm14, %v2992_v32, %v2991_v34  ;;  %v2993_v41 = vsel %vm2737_vm14, %v2991_v34, %v2992_v32  ;;  %v3196_v32 = vld [vmem:[#allocation37 + $0x8] sm:$0xff]  ;;  %v3195_v51 = vld [vmem:[#allocation37] sm:$0xff]  ;;  %v5617_v34 = vld [vmem:[#allocation32] ss:$0 sm:$0xff] }
0x16f2   : > { %3015 = vrot.lane.b32.xlu0 %v2998_v50, %s6686_s28  ;;  %3013 = vrot.lane.b32.xlu2 %v2997_v52, %s6686_s28  ;;  %v2999_v40 = vsel %vm2036_vm15, %v2997_v52, %v2994_v39 }
0x16f3   : > { %3003 = vrot.lane.b32.xlu1 %v2999_v40, %s6686_s28  ;;  %3215 = vmatpush.msrb.mxu1 %v3196_v32 }
0x16f5   : > { %3216 = vmatpush.msrb.mxu1 %v3195_v51 }
0x16fa   : > { %3005 = vrot.lane.b32.xlu0 %v2993_v41, %s6686_s28 }
0x1702   : > { %3039 = vrot.lane.b32.xlu0 %v2975_v49, %s6684_s16 }
0x170a   : > { %3041 = vrot.lane.b32.xlu0 %v2976_v48, %s6684_s16 }
0x1712   : > { %3097 = vrot.lane.b32.xlu0 %v2965_v18, %s6679_s23 }
0x171a   : > { %3099 = vrot.lane.b32.xlu0 %v2966_v27, %s6679_s23 }
0x174c   : > { %v3014_v42 = vpop.permute.xlu2 %3013 }
0x174d   : > { %3023 = vrot.lane.b32.xlu2 %v3014_v42, %s6687_s14 }
0x1764   : > { %v3016_v44 = vpop.permute.xlu0 %3015 }
0x1765   : > { %v3004_v45 = vpop.permute.xlu1 %3003  ;;  %v3020_v46 = vsel %vm2764_vm1, %v2976_v48, %v3016_v44 }
0x1766   : > { %3025 = vrot.lane.b32.xlu1 %v3020_v46, %s6687_s14  ;;  %v3009_v57 = vsel %vm2747_vm3, %v2975_v49, %v3004_v45  ;;  %v3168_v49 = vld [vmem:[#allocation34 + $0x10] sm:$0xff] }
0x1767   : > { %3033 = vrot.lane.b32.xlu2 %v3009_v57, %s6687_s14 }
0x176c   : > { %v3006_v26 = vpop.permute.xlu0 %3005 }
0x176f   : > { %3035 = vrot.lane.b32.xlu2 %v3006_v26, %s6687_s14 }
0x1774   : > { %v3040_v20 = vpop.permute.xlu0 %3039 }
0x1777   : > { %3091 = vrot.lane.b32.xlu2 %v2841_v33, %s6685_s21 }
0x177c   : > { %v3042_v30 = vpop.permute.xlu0 %3041 }
0x177f   : > { %3093 = vrot.lane.b32.xlu2 %v2842_v36, %s6685_s21 }
0x1784   : > { %v3098_v13 = vpop.permute.xlu0 %3097 }
0x178c   : > { %v3100_v27 = vpop.permute.xlu0 %3099 }
0x17a7   : > { %v3024_v59 = vpop.permute.xlu2 %3023 }
0x17a8   : > { %3047 = vrot.lane.b32.xlu1 %v3024_v59, %s6679_s23 }
0x17c1   : > { %v3034_v33 = vpop.permute.xlu2 %3033 }
0x17c2   : > { %v3053_v35 = vsel %vm1718_vm8, %v3034_v33, %v3040_v20  ;;  %v3249_v20 = vld [vmem:[#allocation26 + $0x38] sm:$0xff] }
0x17c9   : > { %v3036_v28 = vpop.permute.xlu2 %3035 }
0x17ca   : > { %v3054_v56 = vsel %vm1718_vm8, %v3036_v28, %v3042_v30  ;;  %v3246_v28 = vld [vmem:[#allocation26 + $0x20] sm:$0xff] }
0x17d1   : > { %v3092_v11 = vpop.permute.xlu2 %3091 }
0x17d2   : > { %v3111_v12 = vsel %vm1718_vm8, %v7755_v22, %v3092_v11  ;;  %v3169_v22 = vld [vmem:[#allocation34 + $0x18] sm:$0xff] }
0x17d3   : > { %v3113_v14 = vsel %vm1540_vm4, %v3111_v12, %v3098_v13  ;;  %3186 = vmatpush.msrb.mxu2 %v3169_v22 }
0x17d5   : > { %3187 = vmatpush.msrb.mxu2 %v3168_v49 }
0x17d7   : > { %3188 = vmatpush.msrb.mxu2 %v3167_v60 }
0x17d8   : > { %v3026_v55 = vpop.permute.xlu1 %3025 }
0x17d9   : > { %v3030_v62 = vsel %vm2045_vm6, %v2993_v41, %v3026_v55  ;;  %v3094_v19 = vpop.permute.xlu2 %3093  ;;  %3189 = vmatpush.msrb.mxu2 %v3166_v31  ;;  %v3170_v55 = vld [vmem:[#allocation35] sm:$0x1] }
0x17da   : > { %3049 = vrot.lane.b32.xlu1 %v3030_v62, %s6679_s23  ;;  %v3112_v21 = vsel %vm1718_vm8, %v7759_v47, %v3094_v19 }
0x17db   : > { %v3114_v48 = vsel %vm1540_vm4, %v3112_v21, %v3100_v27  ;;  %3273 = vmatpush.msra.mxu2 %v3249_v20 }
0x181a   : > { %v3048_v36 = vpop.permute.xlu1 %3047 }
0x181b   : > { %v3055_v25 = vsel %vm1540_vm4, %v3053_v35, %v3048_v36  ;;  %v3248_v35 = vld [vmem:[#allocation26 + $0x30] sm:$0xff]  ;;  %v3247_v36 = vld [vmem:[#allocation26 + $0x28] sm:$0xff] }
0x181c   : > { %5254 = vmatmul.msk.f32.vlgmr.msra.gmra.mxu0 %vm1726_vm10, %v3055_v25  ;;  %v3197_v25 = vld [vmem:[#allocation38] sm:$0x1]  ;;  %3274 = vmatpush.msra.mxu2 %v3248_v35 }
0x181e   : > { %3275 = vmatpush.msra.mxu2 %v3247_v36 }
0x1820   : > { %3276 = vmatpush.msra.mxu2 %v3246_v28  ;;  %v5619_v28 = vld [vmem:[%s8564_s1 + $0x3] ss:$0 sm:$0xff] }
0x184c   : > { %v3050_v17 = vpop.permute.xlu1 %3049 }
0x184d   : > { %v3056_v3 = vsel %vm1540_vm4, %v3054_v56, %v3050_v17 }
0x184e   : > { %5255 = vmatmul.msk.f32.gmra.mxu0 %vm1726_vm10, %v3056_v3 }
0x1899   : > { %v3083_v54 = vpop.f32.mrf.mxu0 }
0x189a   : > { %v3084_v6 = vadd.f32 %v5616_v15, %v3083_v54 }
0x189c   : > { %v3089_v63 = vmax.f32 %v3084_v6, 0.0 }
0x189e   : > { %3105 = vrot.lane.b32.xlu1 %v3089_v63, %s6686_s28 }
0x18cb   : > { %v3086_v7 = vpop.f32.mrf.mxu0 }
0x18cc   : > { %v3087_v8 = vadd.f32 %v5616_v15, %v3086_v7 }
0x18ce   : > { %v3090_v9 = vmax.f32 %v3087_v8, 0.0 }
0x18d0   : > { %3107 = vrot.lane.b32.xlu1 %v3090_v9, %s6686_s28 }
0x1910   : > { %v3106_v16 = vpop.permute.xlu1 %3105 }
0x1911   : > { %v3115_v18 = vsel %vm1726_vm10, %v3113_v14, %v3106_v16 }
0x1912   : > { %5256 = vmatmul.msk.f32.vlgmr.msrb.gmra.mxu3 %vm1543_vm5, %v3115_v18  ;;  %v5618_v18 = vld [vmem:[#allocation28 + $0x1] ss:$0 sm:$0xff] }
0x1942   : > { %v3108_v29 = vpop.permute.xlu1 %3107 }
0x1943   : > { %v3116_v58 = vsel %vm1726_vm10, %v3114_v48, %v3108_v29 }
0x1944   : > { %5257 = vmatmul.msk.f32.gmra.mxu3 %vm1543_vm5, %v3116_v58 }
0x1995   : > { %v3148_v47 = vpop.f32.mrf.mxu3 }
0x1996   : > { %v3149_v37 = vadd.f32 %v5617_v34, %v3148_v47 }
0x1998   : > { %v3154_v52 = vmax.f32 %v3149_v37, 0.0 }
0x199a   : > { %v3156_v41 = vsel %vm1543_vm5, %v3154_v52, 0.0 }
0x19c7   : > { %v3151_v50 = vpop.f32.mrf.mxu3 }
0x19c8   : > { %v3152_v39 = vadd.f32 %v5617_v34, %v3151_v50 }
0x19ca   : > { %v3155_v40 = vmax.f32 %v3152_v39, 0.0 }
0x19cc   : > { %v3157_v42 = vsel %vm1543_vm5, %v3155_v40, 0.0 }
0x19cd   : > { %v3158_v44 = vadd.f32 %v3157_v42, %v3156_v41 }
0x19cf   : > { %v3159_v45 = vrot.slane %v3158_v44, 4 }
0x19d1   : > { %v3160_v46 = vadd.f32 %v3159_v45, %v3158_v44 }
0x19d3   : > { %v3161_v57 = vrot.slane %v3160_v46, 2 }
0x19d5   : > { %v3162_v26 = vadd.f32 %v3161_v57, %v3160_v46 }
0x19d7   : > { %v3163_v59 = vrot.slane %v3162_v26, 1 }
0x19d9   : > { %v3164_v24 = vadd.f32 %v3163_v59, %v3162_v26 }
0x19db   : > { %v3165_v61 = vmul.f32 %v3164_v24, %v7454_v38 }
0x19dd   : > { %5258 = vmatmul.msk.f32.vlgmr.msrb.gmra.mxu2 %vm1543_vm5, %v3165_v61  ;;  %v3289_v61 = vld [vmem:[#allocation29 + $0x58] sm:$0xff] }
0x19de   : > { %3376 = vmatpush.msrb.mxu0 %v3289_v61 }
0x1a60   : > { %v3191_v62 = vpop.f32.mrf.mxu2 }
0x1a61   : > { %v3192_v53 = vadd.f32 %v3191_v62, %v3170_v55  ;;  %v3288_v55 = vld [vmem:[#allocation29 + $0x50] sm:$0xff]  ;;  %v3287_v62 = vld [vmem:[#allocation29 + $0x48] sm:$0xff] }
0x1a62   : > { %3377 = vmatpush.msrb.mxu0 %v3288_v55 }
0x1a63   : > { %v3194_v33 = vmax.f32 %v3192_v53, 0.0 }
0x1a64   : > { %3378 = vmatpush.msrb.mxu0 %v3287_v62 }
0x1a65   : > { %5259 = vmatmul.msk.f32.vlgmr.msrb.gmra.mxu1 %vm1540_vm4, %v3194_v33 }
0x1ae2   : > { %v3218_v30 = vpop.f32.mrf.mxu1 }
0x1ae3   : > { %v3219_v56 = vadd.f32 %v3218_v30, %v3197_v25 }
0x1ae5   : > { %v5260_v17 = vmul.f32 -1.442695, %v3219_v56 }
0x1ae7   : > { %5648 = vpow2.f32 %v5260_v17 }
0x1aed   : > { %v5649_v3 = vpop.eup %5648 }
0x1aee   : > { %v3224_v15 = vadd.f32 1.0, %v5649_v3 }
0x1af0   : > { %5650 = vrcp.f32 %v3224_v15  ;;  %v3236_v0 = vand.u32 2147483648, %v3224_v15  ;;  %v3234_v5 = vand.u32 2147483647, %v3224_v15  ;;  %vm3230_vm11 = vweird.f32 %v3224_v15 }
0x1af2   : > { %v3237_v8 = vor.u32 1.1754944e-38, %v3236_v0  ;;  %vm3235_vm7 = vcmp.eq.f32.partialorder %v3234_v5, 8.507059e+37  ;;  %v3401_v5 = vld [vmem:[#allocation29 + $0x70] sm:$0xff] }
0x1af3   : > { %3480 = vmatpush.msra.mxu3 %v3401_v5 }
0x1af6   : > { %v5651_v54 = vpop.eup %5650 }
0x1af7   : > { %v3226_v6 = vmul.f32 %v5651_v54, %v3224_v15  ;;  %vm3231_vm9 = vweird.f32 %v5651_v54 }
0x1af8   : > { %vm3232_vm12 = vmor %vm3230_vm11, %vm3231_vm9  ;;  %vm3307_vm9 = vcmp.lt.s32.totalorder %v7369_v1, 5  ;;  %vm3331_vm11 = vcmp.eq.s32.totalorder %v7372_v2, 13 }
0x1af9   : > { %v3227_v63 = vsub.f32 1.0, %v3226_v6 }
0x1afb   : > { %v3228_v4 = vmul.f32 %v5651_v54, %v3227_v63 }
0x1afd   : > { %v3229_v7 = vadd.f32 %v5651_v54, %v3228_v4 }
0x1aff   : > { %v3233_v9 = vsel %vm3232_vm12, %v5651_v54, %v3229_v7  ;;  %vm3318_vm12 = vcmp.eq.s32.totalorder %v7369_v1, 2  ;;  %v3400_v7 = vld [vmem:[#allocation29 + $0x68] sm:$0xff] }
0x1b00   : > { %v3238_v10 = vsel %vm3235_vm7, %v3237_v8, %v3233_v9  ;;  %vm3302_vm7 = vcmp.lt.s32.totalorder %v7369_v1, 3  ;;  %3481 = vmatpush.msra.mxu3 %v3400_v7 }
0x1b01   : > { %v3240_v11 = vperm.slane %v3238_v10, 0 }
0x1b03   : > { %v3241_v12 = vmul.f32 %v3240_v11, %v3154_v52  ;;  %v3242_v14 = vmul.f32 %v3240_v11, %v3155_v40 }
0x1b05   : > { %v7922_v13 = vadd.f32 %v3241_v12, %v7743_v43  ;;  %v7927_v16 = vadd.f32 %v3242_v14, %v7751_v23 }
0x1b07   : > { %5261 = vmatmul.msk.f32.vlgmr.msra.gmra.mxu2 %vm1543_vm5, %v7922_v13 }
0x1b0f   : > { %5262 = vmatmul.msk.f32.gmra.mxu2 %vm1543_vm5, %v7927_v16 }
0x1b8a   : > { %v3278_v19 = vpop.f32.mrf.mxu2 }
0x1b8b   : > { %v3279_v21 = vadd.f32 %v5618_v18, %v3278_v19 }
0x1b8d   : > { %v7931_v27 = vmax.f32 %v3279_v21, 0.0 }
0x1b8f   : > { %3294 = vrot.lane.b32.xlu2 %v7931_v27, %s6683_s3 }
0x1b92   : > { %v3281_v43 = vpop.f32.mrf.mxu2 }
0x1b93   : > { %v3282_v29 = vadd.f32 %v5618_v18, %v3281_v43 }
0x1b95   : > { %v7935_v48 = vmax.f32 %v3282_v29, 0.0 }
0x1b97   : > { %3296 = vrot.lane.b32.xlu0 %v7935_v48, %s6683_s3 }
0x1be9   : > { %v3295_v23 = vpop.permute.xlu2 %3294 }
0x1bea   : > { %v3300_v58 = vrot.slane %v3295_v23, 5  ;;  %v3305_v22 = vrot.slane %v3295_v23, 3  ;;  %v3312_v49 = vrot.slane %v3295_v23, 1  ;;  %v3320_v34 = vrot.slane %v3295_v23, 7 }
0x1c09   : > { %v3297_v60 = vpop.permute.xlu0 %3296 }
0x1c0a   : > { %v3301_v31 = vrot.slane %v3297_v60, 5  ;;  %v3306_v32 = vrot.slane %v3297_v60, 3  ;;  %v3313_v51 = vrot.slane %v3297_v60, 1  ;;  %v3321_v47 = vrot.slane %v3297_v60, 7 }
0x1c0c   : > { %v3308_v37 = vsel %vm3307_vm9, %v3305_v22, %v3306_v32  ;;  %v3314_v50 = vsel %vm1515_vm0, %v3312_v49, %v3313_v51  ;;  %v3304_v52 = vsel %vm3302_vm7, %v3301_v31, %v3300_v58  ;;  %v3309_v40 = vsel %vm3307_vm9, %v3306_v32, %v3305_v22 }
0x1c0d   : > { %3344 = vrot.lane.b32.xlu1 %v3308_v37, %s6679_s23  ;;  %v3310_v39 = vsel %vm2036_vm15, %v3308_v37, %v3304_v52  ;;  %v3315_v41 = vsel %vm1515_vm0, %v3313_v51, %v3312_v49  ;;  %v3322_v42 = vsel %vm1502_vm2, %v3320_v34, %v3321_v47  ;;  %v3323_v46 = vsel %vm1502_vm2, %v3321_v47, %v3320_v34 }
0x1c0e   : > { %v3316_v44 = vsel %vm2747_vm3, %v3314_v50, %v3310_v39  ;;  %v3337_v45 = vsel %vm3331_vm11, %v3315_v41, %v3309_v40  ;;  %v3303_v57 = vsel %vm3302_vm7, %v3300_v58, %v3301_v31  ;;  %v3399_v39 = vld [vmem:[#allocation29 + $0x60] sm:$0xff] }
0x1c0f   : > { %v3339_v26 = vsel %vm2764_vm1, %v3322_v42, %v3337_v45  ;;  %v3328_v59 = vsel %vm3318_vm12, %v3323_v46, %v3316_v44  ;;  %v3351_v36 = vsel %vm1718_vm8, %v3303_v57, %v7935_v48  ;;  %3482 = vmatpush.msra.mxu3 %v3399_v39 }
0x1c10   : > { %v3341_v24 = vsel %vm2045_vm6, %v3303_v57, %v3339_v26  ;;  %v3350_v33 = vsel %vm1718_vm8, %v3328_v59, %v7931_v27  ;;  %v5620_v59 = vld [vmem:[%s8564_s1 + $0x4] ss:$0 sm:$0xff] }
0x1c11   : > { %3346 = vrot.lane.b32.xlu2 %v3341_v24, %s6679_s23 }
0x1c6b   : > { %v3347_v35 = vpop.permute.xlu2 %3346 }
0x1c6c   : > { %v3353_v25 = vsel %vm1540_vm4, %v3351_v36, %v3347_v35 }
0x1c7f   : > { %v3345_v53 = vpop.permute.xlu1 %3344 }
0x1c80   : > { %v3352_v20 = vsel %vm1540_vm4, %v3350_v33, %v3345_v53 }
0x1c81   : > { %5264 = vmatmul.msk.f32.vlgmr.msrb.gmra.mxu0 %vm1726_vm10, %v3352_v20 }
0x1c89   : > { %5265 = vmatmul.msk.f32.gmra.mxu0 %vm1726_vm10, %v3353_v25 }
0x1cfe   : > { %v3380_v30 = vpop.f32.mrf.mxu0 }
0x1cff   : > { %v7982_v56 = vadd.f32 %v5619_v28, %v3380_v30  ;;  %v3504_v30 = vld [vmem:[#allocation29 + $0x80] sm:$0xff] }
0x1d01   : > { %v3386_v17 = vmax.f32 %v7982_v56, 0.0 }
0x1d03   : > { %3390 = vrot.lane.b32.xlu0 %v3386_v17, %s6679_s23 }
0x1d06   : > { %v3383_v3 = vpop.f32.mrf.mxu0 }
0x1d07   : > { %v7988_v15 = vadd.f32 %v5619_v28, %v3383_v3  ;;  %v3505_v28 = vld [vmem:[#allocation29 + $0x88] sm:$0xff]  ;;  %v3503_v3 = vld [vmem:[#allocation29 + $0x78] sm:$0xff] }
0x1d08   : > { %3584 = vmatpush.msra.mxu1 %v3505_v28 }
0x1d09   : > { %v3387_v54 = vmax.f32 %v7988_v15, 0.0  ;;  %v3625_v15 = vld [vmem:[#allocation31 + $0x30] sm:$0xff] }
0x1d0a   : > { %3585 = vmatpush.msra.mxu1 %v3504_v30  ;;  %v3676_v30 = vld [vmem:[#allocation34 + $0x30] sm:$0xff] }
0x1d0b   : > { %3392 = vrot.lane.b32.xlu1 %v3387_v54, %s6679_s23 }
0x1d0c   : > { %3586 = vmatpush.msra.mxu1 %v3503_v3  ;;  %v3675_v3 = vld [vmem:[#allocation34 + $0x28] sm:$0xff] }
0x1d75   : > { %v3391_v6 = vpop.permute.xlu0 %3390 }
0x1d76   : > { %v3396_v63 = vadd.f32 %v3391_v6, %v7931_v27 }
0x1d78   : > { %3406 = vrot.lane.b32.xlu2 %v3396_v63, %s6684_s16  ;;  %3440 = vrot.lane.b32.xlu1 %v3396_v63, %s6683_s3 }
0x1d7d   : > { %v3393_v0 = vpop.permute.xlu1 %3392 }
0x1d7e   : > { %v3397_v4 = vadd.f32 %v3393_v0, %v7935_v48 }
0x1d80   : > { %3408 = vrot.lane.b32.xlu0 %v3397_v4, %s6684_s16 }
0x1d88   : > { %3442 = vrot.lane.b32.xlu0 %v3397_v4, %s6683_s3 }
0x1dd2   : > { %v3407_v8 = vpop.permute.xlu2 %3406 }
0x1dd3   : > { %v3412_v9 = vrot.slane %v3407_v8, 5  ;;  %v3416_v10 = vrot.slane %v3407_v8, 3  ;;  %v3422_v11 = vrot.slane %v3407_v8, 1  ;;  %v3428_v43 = vrot.slane %v3407_v8, 7 }
0x1dea   : > { %v3441_v40 = vpop.permute.xlu1 %3440 }
0x1df2   : > { %v3409_v12 = vpop.permute.xlu0 %3408 }
0x1df3   : > { %v3413_v14 = vrot.slane %v3409_v12, 5  ;;  %v3417_v18 = vrot.slane %v3409_v12, 3  ;;  %v3423_v19 = vrot.slane %v3409_v12, 1  ;;  %v3429_v21 = vrot.slane %v3409_v12, 7 }
0x1df5   : > { %v3418_v29 = vsel %vm3307_vm9, %v3416_v10, %v3417_v18  ;;  %v3424_v23 = vsel %vm1515_vm0, %v3422_v11, %v3423_v19  ;;  %v3415_v58 = vsel %vm3302_vm7, %v3413_v14, %v3412_v9  ;;  %v3419_v49 = vsel %vm3307_vm9, %v3417_v18, %v3416_v10 }
0x1df6   : > { %3448 = vrot.lane.b32.xlu2 %v3418_v29, %s6679_s23  ;;  %v3420_v22 = vsel %vm2036_vm15, %v3418_v29, %v3415_v58  ;;  %v3425_v60 = vsel %vm1515_vm0, %v3423_v19, %v3422_v11  ;;  %v3430_v31 = vsel %vm1502_vm2, %v3428_v43, %v3429_v21  ;;  %v3431_v47 = vsel %vm1502_vm2, %v3429_v21, %v3428_v43 }
0x1df7   : > { %v3426_v32 = vsel %vm2747_vm3, %v3424_v23, %v3420_v22  ;;  %v3435_v51 = vsel %vm3331_vm11, %v3425_v60, %v3419_v49  ;;  %v3414_v34 = vsel %vm3302_vm7, %v3412_v9, %v3413_v14 }
0x1df8   : > { %v3437_v37 = vsel %vm2764_vm1, %v3430_v31, %v3435_v51  ;;  %v3432_v50 = vsel %vm3318_vm12, %v3431_v47, %v3426_v32 }
0x1df9   : > { %v3439_v52 = vsel %vm2045_vm6, %v3414_v34, %v3437_v37  ;;  %v3454_v42 = vsel %vm1718_vm8, %v3432_v50, %v3441_v40  ;;  %v3623_v40 = vld [vmem:[#allocation31 + $0x20] sm:$0xff] }
0x1dfa   : > { %3450 = vrot.lane.b32.xlu1 %v3439_v52, %s6679_s23  ;;  %v3443_v45 = vpop.permute.xlu0 %3442 }
0x1dfb   : > { %v3455_v46 = vsel %vm1718_vm8, %v3414_v34, %v3443_v45 }
0x1e50   : > { %v3449_v41 = vpop.permute.xlu2 %3448 }
0x1e51   : > { %v3456_v44 = vsel %vm1540_vm4, %v3454_v42, %v3449_v41  ;;  %v5621_v41 = vld [vmem:[%s8564_s1 + $0x5] ss:$0 sm:$0xff] }
0x1e52   : > { %5267 = vmatmul.msk.f32.vlgmr.msra.gmra.mxu3 %vm1726_vm10, %v3456_v44 }
0x1e6c   : > { %v3451_v57 = vpop.permute.xlu1 %3450 }
0x1e6d   : > { %v3457_v26 = vsel %vm1540_vm4, %v3455_v46, %v3451_v57 }
0x1e6e   : > { %5268 = vmatmul.msk.f32.gmra.mxu3 %vm1726_vm10, %v3457_v26 }
0x1ed5   : > { %v3484_v24 = vpop.f32.mrf.mxu3 }
0x1ed6   : > { %v3485_v61 = vadd.f32 %v5620_v59, %v3484_v24 }
0x1ed8   : > { %v3490_v55 = vmax.f32 %v3485_v61, 0.0 }
0x1eda   : > { %3494 = vrot.lane.b32.xlu2 %v3490_v55, %s6686_s28 }
0x1ef1   : > { %v3487_v62 = vpop.f32.mrf.mxu3 }
0x1ef2   : > { %v3488_v53 = vadd.f32 %v5620_v59, %v3487_v62 }
0x1ef4   : > { %v3491_v33 = vmax.f32 %v3488_v53, 0.0 }
0x1ef6   : > { %3496 = vrot.lane.b32.xlu0 %v3491_v33, %s6686_s28 }
0x1f34   : > { %v3495_v20 = vpop.permute.xlu2 %3494 }
0x1f35   : > { %v3500_v35 = vadd.f32 %v3495_v20, %v7931_v27 }
0x1f37   : > { %3510 = vrot.lane.b32.xlu1 %v3500_v35, %s6687_s14  ;;  %3544 = vrot.lane.b32.xlu0 %v3500_v35, %s6684_s16 }
0x1f68   : > { %v3497_v36 = vpop.permute.xlu0 %3496 }
0x1f69   : > { %v3501_v25 = vadd.f32 %v3497_v36, %v7935_v48 }
0x1f6b   : > { %3512 = vrot.lane.b32.xlu2 %v3501_v25, %s6687_s14 }
0x1f73   : > { %3546 = vrot.lane.b32.xlu2 %v3501_v25, %s6684_s16 }
0x1f7b   : > { %3602 = vrot.lane.b32.xlu2 %v3490_v55, %s6679_s23 }
0x1f83   : > { %3604 = vrot.lane.b32.xlu2 %v3491_v33, %s6679_s23 }
0x1fa9   : > { %v3511_v6 = vpop.permute.xlu1 %3510  ;;  %v3545_v51 = vpop.permute.xlu0 %3544 }
0x1faa   : > { %v3516_v63 = vrot.slane %v3511_v6, 5  ;;  %v3520_v0 = vrot.slane %v3511_v6, 3  ;;  %v3526_v4 = vrot.slane %v3511_v6, 1  ;;  %v3532_v11 = vrot.slane %v3511_v6, 7  ;;  %v3674_v6 = vld [vmem:[#allocation34 + $0x20] sm:$0xff] }
0x1fc5   : > { %v3513_v5 = vpop.permute.xlu2 %3512 }
0x1fc6   : > { %v3517_v7 = vrot.slane %v3513_v5, 5  ;;  %v3521_v8 = vrot.slane %v3513_v5, 3  ;;  %v3527_v9 = vrot.slane %v3513_v5, 1  ;;  %v3533_v10 = vrot.slane %v3513_v5, 7 }
0x1fc8   : > { %v3522_v12 = vsel %vm3307_vm9, %v3520_v0, %v3521_v8  ;;  %v3528_v14 = vsel %vm1515_vm0, %v3526_v4, %v3527_v9  ;;  %v3519_v18 = vsel %vm3302_vm7, %v3517_v7, %v3516_v63  ;;  %v3523_v21 = vsel %vm3307_vm9, %v3521_v8, %v3520_v0  ;;  %v3705_v0 = vld [vmem:[#allocation37 + $0x10] sm:$0xff] }
0x1fc9   : > { %3552 = vrot.lane.b32.xlu1 %v3522_v12, %s6679_s23  ;;  %v3524_v19 = vsel %vm2036_vm15, %v3522_v12, %v3519_v18  ;;  %v3529_v43 = vsel %vm1515_vm0, %v3527_v9, %v3526_v4  ;;  %v3534_v29 = vsel %vm1502_vm2, %v3532_v11, %v3533_v10  ;;  %v3535_v22 = vsel %vm1502_vm2, %v3533_v10, %v3532_v11  ;;  %v5622_v4 = vld [vmem:[#allocation32 + $0x1] ss:$0 sm:$0xff] }
0x1fca   : > { %v3530_v23 = vsel %vm2747_vm3, %v3528_v14, %v3524_v19  ;;  %v3539_v58 = vsel %vm3331_vm11, %v3529_v43, %v3523_v21  ;;  %v3518_v49 = vsel %vm3302_vm7, %v3516_v63, %v3517_v7  ;;  %v3706_v63 = vld [vmem:[#allocation37 + $0x18] sm:$0xff] }
0x1fcb   : > { %v3541_v60 = vsel %vm2764_vm1, %v3534_v29, %v3539_v58  ;;  %v3536_v31 = vsel %vm3318_vm12, %v3535_v22, %v3530_v23  ;;  %3726 = vmatpush.msrb.mxu3 %v3706_v63  ;;  %v3679_v22 = vld [vmem:[#allocation35 + $0x1] sm:$0x1] }
0x1fcc   : > { %v3543_v32 = vsel %vm2045_vm6, %v3518_v49, %v3541_v60  ;;  %v3558_v34 = vsel %vm1718_vm8, %v3536_v31, %v3545_v51  ;;  %v3759_v51 = vld [vmem:[#allocation26 + $0x50] sm:$0xff] }
0x1fcd   : > { %3554 = vrot.lane.b32.xlu0 %v3543_v32, %s6679_s23  ;;  %v3547_v50 = vpop.permute.xlu2 %3546  ;;  %3727 = vmatpush.msrb.mxu3 %v3705_v0  ;;  %v3760_v32 = vld [vmem:[#allocation26 + $0x58] sm:$0xff] }
0x1fce   : > { %v3559_v39 = vsel %vm1718_vm8, %v3518_v49, %v3547_v50  ;;  %3784 = vmatpush.msrb.mxu1 %v3760_v32 }
0x1fd0   : > { %3785 = vmatpush.msrb.mxu1 %v3759_v51 }
0x1fd1   : > { %3596 = vrot.lane.b32.xlu1 %v3386_v17, %s6685_s21  ;;  %v3626_v17 = vld [vmem:[#allocation31 + $0x38] sm:$0xff] }
0x1fd2   : > { %3650 = vmatpush.msrb.mxu2 %v3626_v17 }
0x1fd4   : > { %3651 = vmatpush.msrb.mxu2 %v3625_v15 }
0x1fd5   : > { %v3603_v24 = vpop.permute.xlu2 %3602 }
0x1fd9   : > { %3598 = vrot.lane.b32.xlu1 %v3387_v54, %s6685_s21  ;;  %v3624_v54 = vld [vmem:[#allocation31 + $0x28] sm:$0xff] }
0x1fda   : > { %3652 = vmatpush.msrb.mxu2 %v3624_v54 }
0x1fdc   : > { %3653 = vmatpush.msrb.mxu2 %v3623_v40 }
0x1fdd   : > { %v3605_v35 = vpop.permute.xlu2 %3604 }
0x203b   : > { %v3553_v47 = vpop.permute.xlu1 %3552 }
0x203c   : > { %v3560_v37 = vsel %vm1540_vm4, %v3558_v34, %v3553_v47  ;;  %v3758_v47 = vld [vmem:[#allocation26 + $0x48] sm:$0xff]  ;;  %v3708_v34 = vld [vmem:[#allocation38 + $0x1] sm:$0x1] }
0x203d   : > { %5270 = vmatmul.msk.f32.vlgmr.msra.gmra.mxu1 %vm1726_vm10, %v3560_v37  ;;  %v3757_v37 = vld [vmem:[#allocation26 + $0x40] sm:$0xff] }
0x203e   : > { %3786 = vmatpush.msrb.mxu1 %v3758_v47 }
0x203f   : > { %v3555_v52 = vpop.permute.xlu0 %3554 }
0x2040   : > { %v3561_v56 = vsel %vm1540_vm4, %v3559_v39, %v3555_v52  ;;  %3787 = vmatpush.msrb.mxu1 %v3757_v37 }
0x2043   : > { %v3597_v59 = vpop.permute.xlu1 %3596 }
0x2044   : > { %v3616_v61 = vsel %vm1718_vm8, %v7931_v27, %v3597_v59  ;;  %v3677_v27 = vld [vmem:[#allocation34 + $0x38] sm:$0xff] }
0x2045   : > { %5271 = vmatmul.msk.f32.gmra.mxu1 %vm1726_vm10, %v3561_v56  ;;  %v3618_v55 = vsel %vm1540_vm4, %v3616_v61, %v3603_v24  ;;  %3695 = vmatpush.msra.mxu0 %v3677_v27 }
0x2047   : > { %3696 = vmatpush.msra.mxu0 %v3676_v30 }
0x2049   : > { %3697 = vmatpush.msra.mxu0 %v3675_v3 }
0x204b   : > { %v3599_v33 = vpop.permute.xlu1 %3598  ;;  %3698 = vmatpush.msra.mxu0 %v3674_v6 }
0x204c   : > { %v3617_v20 = vsel %vm1718_vm8, %v7935_v48, %v3599_v33 }
0x204d   : > { %v3619_v25 = vsel %vm1540_vm4, %v3617_v20, %v3605_v35 }
0x20ba   : > { %v3588_v42 = vpop.f32.mrf.mxu1 }
0x20bb   : > { %v3589_v44 = vadd.f32 %v5621_v41, %v3588_v42 }
0x20bd   : > { %v3594_v45 = vmax.f32 %v3589_v44, 0.0 }
0x20bf   : > { %3610 = vrot.lane.b32.xlu0 %v3594_v45, %s6686_s28 }
0x20c2   : > { %v3591_v46 = vpop.f32.mrf.mxu1 }
0x20c3   : > { %v3592_v57 = vadd.f32 %v5621_v41, %v3591_v46 }
0x20c5   : > { %v3595_v26 = vmax.f32 %v3592_v57, 0.0 }
0x20c7   : > { %3612 = vrot.lane.b32.xlu0 %v3595_v26, %s6686_s28 }
0x2131   : > { %v3611_v62 = vpop.permute.xlu0 %3610 }
0x2132   : > { %v3620_v53 = vsel %vm1726_vm10, %v3618_v55, %v3611_v62 }
0x2133   : > { %5272 = vmatmul.msk.f32.vlgmr.msrb.gmra.mxu2 %vm1543_vm5, %v3620_v53  ;;  %v5623_v53 = vld [vmem:[#allocation28 + $0x2] ss:$0 sm:$0xff] }
0x2139   : > { %v3613_v36 = vpop.permute.xlu0 %3612 }
0x213a   : > { %v3621_v28 = vsel %vm1726_vm10, %v3619_v25, %v3613_v36 }
0x213b   : > { %5273 = vmatmul.msk.f32.gmra.mxu2 %vm1543_vm5, %v3621_v28 }
0x21b6   : > { %v3655_v48 = vpop.f32.mrf.mxu2 }
0x21b7   : > { %v3656_v5 = vadd.f32 %v5622_v4, %v3655_v48 }
0x21b9   : > { %v3661_v8 = vmax.f32 %v3656_v5, 0.0 }
0x21bb   : > { %v3663_v11 = vsel %vm1543_vm5, %v3661_v8, 0.0 }
0x21be   : > { %v3658_v7 = vpop.f32.mrf.mxu2 }
0x21bf   : > { %v3659_v9 = vadd.f32 %v5622_v4, %v3658_v7 }
0x21c1   : > { %v3662_v10 = vmax.f32 %v3659_v9, 0.0 }
0x21c3   : > { %v3664_v12 = vsel %vm1543_vm5, %v3662_v10, 0.0 }
0x21c4   : > { %v3665_v14 = vadd.f32 %v3664_v12, %v3663_v11 }
0x21c6   : > { %v3666_v18 = vrot.slane %v3665_v14, 4 }
0x21c8   : > { %v3667_v19 = vadd.f32 %v3666_v18, %v3665_v14 }
0x21ca   : > { %v3668_v21 = vrot.slane %v3667_v19, 2 }
0x21cc   : > { %v3669_v43 = vadd.f32 %v3668_v21, %v3667_v19 }
0x21ce   : > { %v3670_v29 = vrot.slane %v3669_v43, 1 }
0x21d0   : > { %v3671_v23 = vadd.f32 %v3670_v29, %v3669_v43 }
0x21d2   : > { %v3672_v58 = vmul.f32 %v3671_v23, %v7454_v38 }
0x21d4   : > { %5274 = vmatmul.msk.f32.vlgmr.msra.gmra.mxu0 %vm1543_vm5, %v3672_v58  ;;  %v3800_v58 = vld [vmem:[#allocation29 + $0xa0] sm:$0xff] }
0x21d5   : > { %3918 = vmatpush.msrb.mxu0 %v3800_v58 }
0x2251   : > { %v3700_v49 = vpop.f32.mrf.mxu0 }
0x2252   : > { %v3701_v60 = vadd.f32 %v3700_v49, %v3679_v22  ;;  %v3799_v22 = vld [vmem:[#allocation29 + $0x98] sm:$0xff]  ;;  %v3798_v49 = vld [vmem:[#allocation29 + $0x90] sm:$0xff] }
0x2253   : > { %3919 = vmatpush.msrb.mxu0 %v3799_v22 }
0x2254   : > { %v3703_v31 = vmax.f32 %v3701_v60, 0.0 }
0x2255   : > { %3920 = vmatpush.msrb.mxu0 %v3798_v49  ;;  %v3941_v49 = vld [vmem:[#allocation29 + $0xa8] sm:$0xff] }
0x2256   : > { %5275 = vmatmul.msk.f32.vlgmr.msrb.gmra.mxu3 %vm1540_vm4, %v3703_v31 }
0x22d9   : > { %v3729_v50 = vpop.f32.mrf.mxu3 }
0x22da   : > { %v3730_v52 = vadd.f32 %v3729_v50, %v3708_v34 }
0x22dc   : > { %v5276_v39 = vmul.f32 -1.442695, %v3730_v52 }
0x22de   : > { %5652 = vpow2.f32 %v5276_v39 }
0x22e4   : > { %v5653_v56 = vpop.eup %5652 }
0x22e5   : > { %v3735_v17 = vadd.f32 1.0, %v5653_v56 }
0x22e7   : > { %5654 = vrcp.f32 %v3735_v17  ;;  %v3747_v41 = vand.u32 2147483648, %v3735_v17  ;;  %v3745_v44 = vand.u32 2147483647, %v3735_v17  ;;  %vm3741_vm2 = vweird.f32 %v3735_v17 }
0x22e9   : > { %v3748_v46 = vor.u32 1.1754944e-38, %v3747_v41  ;;  %vm3746_vm9 = vcmp.eq.f32.partialorder %v3745_v44, 8.507059e+37 }
0x22ed   : > { %v5655_v15 = vpop.eup %5654 }
0x22ee   : > { %v3737_v54 = vmul.f32 %v5655_v15, %v3735_v17  ;;  %vm3742_vm0 = vweird.f32 %v5655_v15 }
0x22ef   : > { %vm3743_vm7 = vmor %vm3741_vm2, %vm3742_vm0  ;;  %vm3813_vm0 = vcmp.lt.s32.totalorder %v7369_v1, 4  ;;  %vm3855_vm2 = vcmp.eq.s32.totalorder %v7372_v2, 12 }
0x22f0   : > { %v3738_v40 = vsub.f32 1.0, %v3737_v54 }
0x22f2   : > { %v3739_v42 = vmul.f32 %v5655_v15, %v3738_v40  ;;  %v5624_v40 = vld [vmem:[%s8564_s1 + $0x6] ss:$0 sm:$0xff] }
0x22f4   : > { %v3740_v45 = vadd.f32 %v5655_v15, %v3739_v42 }
0x22f6   : > { %v3744_v57 = vsel %vm3743_vm7, %v5655_v15, %v3740_v45  ;;  %vm3834_vm7 = vcmp.eq.s32.totalorder %v7369_v1, 3  ;;  %v4231_v1 = vld [vmem:[#allocation31 + $0x50] sm:$0xff] }
0x22f7   : > { %v3749_v26 = vsel %vm3746_vm9, %v3748_v46, %v3744_v57 }
0x22f8   : > { %v3751_v59 = vperm.slane %v3749_v26, 0 }
0x22fa   : > { %v3752_v24 = vmul.f32 %v3751_v59, %v3661_v8  ;;  %v3753_v55 = vmul.f32 %v3751_v59, %v3662_v10 }
0x22fc   : > { %v8108_v61 = vadd.f32 %v3752_v24, %v7922_v13  ;;  %v8113_v62 = vadd.f32 %v3753_v55, %v7927_v16 }
0x22fe   : > { %5277 = vmatmul.msk.f32.vlgmr.msrb.gmra.mxu1 %vm1543_vm5, %v8108_v61 }
0x2306   : > { %5278 = vmatmul.msk.f32.gmra.mxu1 %vm1543_vm5, %v8113_v62 }
0x237b   : > { %v3789_v33 = vpop.f32.mrf.mxu1 }
0x237c   : > { %v3790_v20 = vadd.f32 %v5623_v53, %v3789_v33 }
0x237e   : > { %v8117_v35 = vmax.f32 %v3790_v20, 0.0 }
0x2380   : > { %3805 = vrot.lane.b32.xlu1 %v8117_v35, %s6683_s3 }
0x2383   : > { %v3792_v36 = vpop.f32.mrf.mxu1 }
0x2384   : > { %v3793_v25 = vadd.f32 %v5623_v53, %v3792_v36 }
0x2386   : > { %v8121_v28 = vmax.f32 %v3793_v25, 0.0 }
0x2388   : > { %3807 = vrot.lane.b32.xlu2 %v8121_v28, %s6683_s3 }
0x23e2   : > { %v3808_v27 = vpop.permute.xlu2 %3807 }
0x23e3   : > { %v3812_v30 = vrot.slane %v3808_v27, 4  ;;  %v3819_v6 = vrot.slane %v3808_v27, 2  ;;  %v3837_v4 = vrot.slane %v3808_v27, 6 }
0x23f2   : > { %v3806_v3 = vpop.permute.xlu1 %3805 }
0x23f3   : > { %v3811_v63 = vrot.slane %v3806_v3, 4  ;;  %v3818_v0 = vrot.slane %v3806_v3, 2  ;;  %v3836_v48 = vrot.slane %v3806_v3, 6 }
0x23f5   : > { %v3814_v5 = vsel %vm3813_vm0, %v3811_v63, %v3812_v30  ;;  %v3815_v7 = vsel %vm3813_vm0, %v3812_v30, %v3811_v63  ;;  %v3821_v8 = vsel %vm2742_vm13, %v3819_v6, %v3818_v0  ;;  %v3820_v9 = vsel %vm2742_vm13, %v3818_v0, %v3819_v6 }
0x23f6   : > { %3864 = vrot.lane.b32.xlu0 %v3814_v5, %s6685_s21  ;;  %v3861_v10 = vsel %vm3855_vm2, %v3821_v8, %v3815_v7  ;;  %v3816_v11 = vsel %vm2036_vm15, %v3814_v5, %v3815_v7  ;;  %v3839_v12 = vsel %vm2737_vm14, %v3837_v4, %v3836_v48  ;;  %v3838_v31 = vsel %vm2737_vm14, %v3836_v48, %v3837_v4 }
0x23f7   : > { %3866 = vrot.lane.b32.xlu1 %v3861_v10, %s6685_s21  ;;  %v3822_v14 = vsel %vm2747_vm3, %v3820_v9, %v3816_v11 }
0x23f8   : > { %3826 = vrot.lane.b32.xlu2 %v3822_v14, %s6685_s21 }
0x2400   : > { %3828 = vrot.lane.b32.xlu2 %v3814_v5, %s6685_s21 }
0x2452   : > { %v3827_v18 = vpop.permute.xlu2 %3826 }
0x2453   : > { %v3832_v23 = vsel %vm3318_vm12, %v8117_v35, %v3827_v18 }
0x245a   : > { %v3829_v19 = vpop.permute.xlu2 %3828 }
0x245b   : > { %3848 = vrot.lane.b32.xlu2 %v3829_v19, %s6683_s3 }
0x2468   : > { %v3865_v21 = vpop.permute.xlu0 %3864 }
0x2469   : > { %v3867_v43 = vpop.permute.xlu1 %3866  ;;  %3874 = vrot.lane.b32.xlu0 %v3865_v21, %s6683_s3  ;;  %v3943_v21 = vld [vmem:[#allocation29 + $0xb8] sm:$0xff] }
0x246a   : > { %v3871_v29 = vsel %vm3331_vm11, %v8121_v28, %v3867_v43  ;;  %v3942_v43 = vld [vmem:[#allocation29 + $0xb0] sm:$0xff]  ;;  %4054 = vmatpush.msra.mxu3 %v3943_v21 }
0x246b   : > { %3876 = vrot.lane.b32.xlu1 %v3871_v29, %s6683_s3 }
0x246c   : > { %4055 = vmatpush.msra.mxu3 %v3942_v43 }
0x246e   : > { %4056 = vmatpush.msra.mxu3 %v3941_v49 }
0x2471   : > { %3846 = vrot.lane.b32.xlu0 %v3832_v23, %s6683_s3 }
0x24b5   : > { %v3849_v56 = vpop.permute.xlu2 %3848 }
0x24b6   : > { %v3893_v15 = vsel %vm1718_vm8, %v3849_v56, %v8121_v28 }
0x24db   : > { %v3875_v60 = vpop.permute.xlu0 %3874 }
0x24dc   : > { %3886 = vrot.lane.b32.xlu1 %v3875_v60, %s6679_s23 }
0x24dd   : > { %v3877_v32 = vpop.permute.xlu1 %3876 }
0x24de   : > { %v3881_v51 = vsel %vm2764_vm1, %v3838_v31, %v3877_v32 }
0x24df   : > { %v3883_v47 = vsel %vm2045_vm6, %v3814_v5, %v3881_v51 }
0x24e0   : > { %3888 = vrot.lane.b32.xlu0 %v3883_v47, %s6679_s23 }
0x24e3   : > { %v3847_v34 = vpop.permute.xlu0 %3846 }
0x24e4   : > { %v3852_v37 = vsel %vm3834_vm7, %v3839_v12, %v3847_v34 }
0x24e5   : > { %v3892_v52 = vsel %vm1718_vm8, %v3852_v37, %v8117_v35 }
0x254e   : > { %v3887_v50 = vpop.permute.xlu1 %3886 }
0x254f   : > { %v3894_v39 = vsel %vm1540_vm4, %v3892_v52, %v3887_v50 }
0x2550   : > { %5280 = vmatmul.msk.f32.vlgmr.msrb.gmra.mxu0 %vm1726_vm10, %v3894_v39 }
0x2552   : > { %v3889_v17 = vpop.permute.xlu0 %3888 }
0x2553   : > { %v3895_v54 = vsel %vm1540_vm4, %v3893_v15, %v3889_v17  ;;  %v5625_v17 = vld [vmem:[%s8564_s1 + $0x7] ss:$0 sm:$0xff] }
0x2558   : > { %5281 = vmatmul.msk.f32.gmra.mxu0 %vm1726_vm10, %v3895_v54 }
0x25cd   : > { %v3922_v41 = vpop.f32.mrf.mxu0 }
0x25ce   : > { %v8177_v42 = vadd.f32 %v5624_v40, %v3922_v41 }
0x25d0   : > { %v3928_v44 = vmax.f32 %v8177_v42, 0.0 }
0x25d2   : > { %3932 = vrot.lane.b32.xlu1 %v3928_v44, %s6679_s23 }
0x25d5   : > { %v3925_v45 = vpop.f32.mrf.mxu0 }
0x25d6   : > { %v8183_v46 = vadd.f32 %v5624_v40, %v3925_v45 }
0x25d8   : > { %v3929_v57 = vmax.f32 %v8183_v46, 0.0  ;;  %v4079_v46 = vld [vmem:[#allocation29 + $0xd0] sm:$0xff] }
0x25d9   : > { %4190 = vmatpush.msra.mxu2 %v4079_v46 }
0x25da   : > { %3934 = vrot.lane.b32.xlu2 %v3929_v57, %s6679_s23 }
0x2634   : > { %v3935_v26 = vpop.permute.xlu2 %3934 }
0x2635   : > { %v3939_v59 = vadd.f32 %v3935_v26, %v8121_v28 }
0x2637   : > { %3950 = vrot.lane.b32.xlu1 %v3939_v59, %s6684_s16 }
0x2644   : > { %v3933_v24 = vpop.permute.xlu1 %3932 }
0x2645   : > { %v3938_v55 = vadd.f32 %v3933_v24, %v8117_v35 }
0x2647   : > { %3948 = vrot.lane.b32.xlu0 %v3938_v55, %s6684_s16 }
0x26a9   : > { %v3951_v53 = vpop.permute.xlu1 %3950 }
0x26aa   : > { %v3955_v33 = vrot.slane %v3951_v53, 4  ;;  %v3961_v36 = vrot.slane %v3951_v53, 2  ;;  %v3977_v3 = vrot.slane %v3951_v53, 6 }
0x26b9   : > { %v3949_v20 = vpop.permute.xlu0 %3948 }
0x26ba   : > { %v3954_v25 = vrot.slane %v3949_v20, 4  ;;  %v3960_v27 = vrot.slane %v3949_v20, 2  ;;  %v3976_v30 = vrot.slane %v3949_v20, 6 }
0x26bc   : > { %v3956_v6 = vsel %vm3813_vm0, %v3954_v25, %v3955_v33  ;;  %v3957_v63 = vsel %vm3813_vm0, %v3955_v33, %v3954_v25  ;;  %v3963_v0 = vsel %vm2742_vm13, %v3961_v36, %v3960_v27  ;;  %v3962_v48 = vsel %vm2742_vm13, %v3960_v27, %v3961_v36 }
0x26bd   : > { %3994 = vrot.lane.b32.xlu2 %v3956_v6, %s6679_s23  ;;  %v3991_v4 = vsel %vm3855_vm2, %v3963_v0, %v3957_v63  ;;  %v3958_v5 = vsel %vm2036_vm15, %v3956_v6, %v3957_v63  ;;  %v3979_v7 = vsel %vm2737_vm14, %v3977_v3, %v3976_v30  ;;  %v3978_v29 = vsel %vm2737_vm14, %v3976_v30, %v3977_v3 }
0x26be   : > { %3996 = vrot.lane.b32.xlu0 %v3991_v4, %s6679_s23  ;;  %v3964_v8 = vsel %vm2747_vm3, %v3962_v48, %v3958_v5 }
0x26bf   : > { %3968 = vrot.lane.b32.xlu1 %v3964_v8, %s6679_s23 }
0x26c7   : > { %3970 = vrot.lane.b32.xlu1 %v3956_v6, %s6679_s23 }
0x2717   : > { %v3995_v9 = vpop.permute.xlu2 %3994 }
0x2718   : > { %4004 = vrot.lane.b32.xlu2 %v3995_v9, %s6684_s16 }
0x2730   : > { %v3997_v10 = vpop.permute.xlu0 %3996 }
0x2731   : > { %v4001_v11 = vsel %vm3331_vm11, %v3939_v59, %v3997_v10  ;;  %v3969_v12 = vpop.permute.xlu1 %3968 }
0x2732   : > { %v3974_v14 = vsel %vm3318_vm12, %v3938_v55, %v3969_v12  ;;  %4006 = vrot.lane.b32.xlu0 %v4001_v11, %s6684_s16 }
0x2733   : > { %3982 = vrot.lane.b32.xlu2 %v3974_v14, %s6684_s16 }
0x2739   : > { %v3971_v18 = vpop.permute.xlu1 %3970 }
0x273a   : > { %4014 = vrot.lane.b32.xlu0 %v3938_v55, %s6683_s3 }
0x273b   : > { %3984 = vrot.lane.b32.xlu2 %v3971_v18, %s6684_s16 }
0x2742   : > { %4016 = vrot.lane.b32.xlu0 %v3939_v59, %s6683_s3 }
0x2772   : > { %v4005_v19 = vpop.permute.xlu2 %4004 }
0x2773   : > { %4022 = vrot.lane.b32.xlu1 %v4005_v19, %s6679_s23 }
0x278d   : > { %v3983_v60 = vpop.permute.xlu2 %3982 }
0x278e   : > { %v3988_v32 = vsel %vm3834_vm7, %v3979_v7, %v3983_v60 }
0x2795   : > { %v3985_v50 = vpop.permute.xlu2 %3984 }
0x27a4   : > { %v4007_v23 = vpop.permute.xlu0 %4006 }
0x27a5   : > { %v4011_v58 = vsel %vm2764_vm1, %v3978_v29, %v4007_v23  ;;  %v4077_v23 = vld [vmem:[#allocation29 + $0xc0] sm:$0xff] }
0x27a6   : > { %v4013_v22 = vsel %vm2045_vm6, %v3956_v6, %v4011_v58 }
0x27a7   : > { %4024 = vrot.lane.b32.xlu1 %v4013_v22, %s6679_s23 }
0x27ac   : > { %v4015_v31 = vpop.permute.xlu0 %4014 }
0x27ad   : > { %v4028_v51 = vsel %vm1718_vm8, %v3988_v32, %v4015_v31 }
0x27b4   : > { %v4017_v37 = vpop.permute.xlu0 %4016 }
0x27b5   : > { %v4029_v52 = vsel %vm1718_vm8, %v3985_v50, %v4017_v37  ;;  %v4232_v50 = vld [vmem:[#allocation31 + $0x58] sm:$0xff] }
0x27b6   : > { %4256 = vmatpush.msra.mxu1 %v4232_v50 }
0x27b8   : > { %4257 = vmatpush.msra.mxu1 %v4231_v1  ;;  %v4386_v1 = vld [vmem:[#allocation40 + $0x30] sm:$0xff] }
0x27e5   : > { %v4023_v47 = vpop.permute.xlu1 %4022 }
0x27e6   : > { %v4030_v34 = vsel %vm1540_vm4, %v4028_v51, %v4023_v47 }
0x27e7   : > { %5283 = vmatmul.msk.f32.vlgmr.msra.gmra.mxu3 %vm1726_vm10, %v4030_v34 }
0x2819   : > { %v4025_v39 = vpop.permute.xlu1 %4024 }
0x281a   : > { %v4031_v56 = vsel %vm1540_vm4, %v4029_v52, %v4025_v39  ;;  %v4230_v52 = vld [vmem:[#allocation31 + $0x48] sm:$0xff]  ;;  %v4229_v39 = vld [vmem:[#allocation31 + $0x40] sm:$0xff] }
0x281b   : > { %5284 = vmatmul.msk.f32.gmra.mxu3 %vm1726_vm10, %v4031_v56  ;;  %4258 = vmatpush.msra.mxu1 %v4230_v52  ;;  %v5626_v56 = vld [vmem:[%s8564_s1 + $0x8] ss:$0 sm:$0xff]  ;;  %v4385_v52 = vld [vmem:[#allocation40 + $0x28] sm:$0xff] }
0x281d   : > { %4259 = vmatpush.msra.mxu1 %v4229_v39  ;;  %v4384_v39 = vld [vmem:[#allocation40 + $0x20] sm:$0xff] }
0x286a   : > { %v4058_v15 = vpop.f32.mrf.mxu3 }
0x286b   : > { %v4059_v54 = vadd.f32 %v5625_v17, %v4058_v15 }
0x286d   : > { %v4064_v40 = vmax.f32 %v4059_v54, 0.0 }
0x286f   : > { %4068 = vrot.lane.b32.xlu2 %v4064_v40, %s6686_s28 }
0x289e   : > { %v4061_v41 = vpop.f32.mrf.mxu3 }
0x289f   : > { %v4062_v45 = vadd.f32 %v5625_v17, %v4061_v41 }
0x28a1   : > { %v4065_v26 = vmax.f32 %v4062_v45, 0.0 }
0x28a3   : > { %4070 = vrot.lane.b32.xlu0 %v4065_v26, %s6686_s28 }
0x28c9   : > { %v4069_v59 = vpop.permute.xlu2 %4068 }
0x28ca   : > { %v4074_v24 = vadd.f32 %v4069_v59, %v8117_v35 }
0x28cc   : > { %4084 = vrot.lane.b32.xlu1 %v4074_v24, %s6687_s14 }
0x2915   : > { %v4071_v55 = vpop.permute.xlu0 %4070 }
0x2916   : > { %v4075_v53 = vadd.f32 %v4071_v55, %v8121_v28 }
0x2918   : > { %4086 = vrot.lane.b32.xlu2 %v4075_v53, %s6687_s14 }
0x293e   : > { %v4085_v33 = vpop.permute.xlu1 %4084 }
0x293f   : > { %v4090_v20 = vrot.slane %v4085_v33, 4  ;;  %v4096_v25 = vrot.slane %v4085_v33, 2  ;;  %v4112_v6 = vrot.slane %v4085_v33, 6 }
0x2972   : > { %v4087_v36 = vpop.permute.xlu2 %4086 }
0x2973   : > { %v4091_v27 = vrot.slane %v4087_v36, 4  ;;  %v4097_v30 = vrot.slane %v4087_v36, 2  ;;  %v4113_v3 = vrot.slane %v4087_v36, 6 }
0x2975   : > { %v4092_v63 = vsel %vm3813_vm0, %v4090_v20, %v4091_v27  ;;  %v4093_v0 = vsel %vm3813_vm0, %v4091_v27, %v4090_v20  ;;  %v4099_v48 = vsel %vm2742_vm13, %v4097_v30, %v4096_v25  ;;  %v4098_v4 = vsel %vm2742_vm13, %v4096_v25, %v4097_v30 }
0x2976   : > { %4130 = vrot.lane.b32.xlu0 %v4092_v63, %s6686_s28  ;;  %v4127_v5 = vsel %vm3855_vm2, %v4099_v48, %v4093_v0  ;;  %v4094_v7 = vsel %vm2036_vm15, %v4092_v63, %v4093_v0  ;;  %v4115_v8 = vsel %vm2737_vm14, %v4113_v3, %v4112_v6  ;;  %v4114_v29 = vsel %vm2737_vm14, %v4112_v6, %v4113_v3  ;;  %v4282_v6 = vld [vmem:[#allocation34 + $0x50] sm:$0xff]  ;;  %v4280_v0 = vld [vmem:[#allocation34 + $0x40] sm:$0xff] }
0x2977   : > { %4132 = vrot.lane.b32.xlu1 %v4127_v5, %s6686_s28  ;;  %v4100_v9 = vsel %vm2747_vm3, %v4098_v4, %v4094_v7  ;;  %v4312_v48 = vld [vmem:[#allocation37 + $0x28] sm:$0xff]  ;;  %v4311_v4 = vld [vmem:[#allocation37 + $0x20] sm:$0xff]  ;;  %v5627_v5 = vld [vmem:[#allocation32 + $0x2] ss:$0 sm:$0xff]  ;;  %vm4396_vm13 = vcmask 785408   ;;  %vm8565_vm14 = vcmask 523264  }
0x2978   : > { %4104 = vrot.lane.b32.xlu2 %v4100_v9, %s6686_s28  ;;  %4332 = vmatpush.msrb.mxu3 %v4312_v48  ;;  %v4472_v48 = vld [vmem:[#allocation43 + $0x38] sm:$0xff] }
0x297a   : > { %4333 = vmatpush.msrb.mxu3 %v4311_v4  ;;  %v4471_v4 = vld [vmem:[#allocation43 + $0x30] sm:$0xff] }
0x2980   : > { %4106 = vrot.lane.b32.xlu2 %v4092_v63, %s6686_s28 }
0x29d2   : > { %v4105_v14 = vpop.permute.xlu2 %4104 }
0x29d3   : > { %v4110_v18 = vsel %vm3318_vm12, %v4074_v24, %v4105_v14 }
0x29da   : > { %v4107_v19 = vpop.permute.xlu2 %4106 }
0x29e8   : > { %v4131_v10 = vpop.permute.xlu0 %4130 }
0x29e9   : > { %v4133_v11 = vpop.permute.xlu1 %4132  ;;  %4140 = vrot.lane.b32.xlu0 %v4131_v10, %s6687_s14 }
0x29ea   : > { %v4137_v12 = vsel %vm3331_vm11, %v4075_v53, %v4133_v11 }
0x29eb   : > { %4142 = vrot.lane.b32.xlu1 %v4137_v12, %s6687_s14 }
0x29f1   : > { %4118 = vrot.lane.b32.xlu0 %v4110_v18, %s6687_s14 }
0x29f3   : > { %4150 = vrot.lane.b32.xlu1 %v4074_v24, %s6684_s16 }
0x29f9   : > { %4120 = vrot.lane.b32.xlu0 %v4107_v19, %s6687_s14 }
0x29fb   : > { %4152 = vrot.lane.b32.xlu1 %v4075_v53, %s6684_s16 }
0x2a01   : > { %4202 = vrot.lane.b32.xlu0 %v3928_v44, %s6685_s21 }
0x2a03   : > { %4208 = vrot.lane.b32.xlu1 %v4064_v40, %s6679_s23 }
0x2a09   : > { %4204 = vrot.lane.b32.xlu0 %v3929_v57, %s6685_s21  ;;  %v4078_v57 = vld [vmem:[#allocation29 + $0xc8] sm:$0xff]  ;;  %s1485_s21 = scalar_lea.vmem [#allocation47], %s7303_s6 }
0x2a0a   : > { %4191 = vmatpush.msra.mxu2 %v4078_v57  ;;  %v4285_v57 = vld [vmem:[#allocation35 + $0x2] sm:$0x1] }
0x2a0b   : > { %4210 = vrot.lane.b32.xlu1 %v4065_v26, %s6679_s23 }
0x2a0c   : > { %4192 = vmatpush.msra.mxu2 %v4077_v23 }
0x2a11   : > { %4362 = vrot.lane.b32.xlu0 %v8108_v61, %s6680_s2 }
0x2a5b   : > { %v4141_v21 = vpop.permute.xlu0 %4140 }
0x2a5c   : > { %4158 = vrot.lane.b32.xlu2 %v4141_v21, %s6679_s23 }
0x2a5d   : > { %v4143_v43 = vpop.permute.xlu1 %4142 }
0x2a5e   : > { %v4147_v42 = vsel %vm2764_vm1, %v4114_v29, %v4143_v43  ;;  %vm8566_vm1 = vmmov %vm8565_vm14 }
0x2a5f   : > { %v4149_v44 = vsel %vm2045_vm6, %v4092_v63, %v4147_v42  ;;  %v4281_v63 = vld [vmem:[#allocation34 + $0x48] sm:$0xff]  ;;  %vm8569_vm11 = vmmov %vm8566_vm1 }
0x2a63   : > { %v4119_v58 = vpop.permute.xlu0 %4118 }
0x2a64   : > { %4160 = vrot.lane.b32.xlu2 %v4149_v44, %s6679_s23  ;;  %v4124_v49 = vsel %vm3834_vm7, %v4115_v8, %v4119_v58  ;;  %s8570_s23 = sld [smem:[#allocation87_spill]] }
0x2a65   : > { %v4151_v22 = vpop.permute.xlu1 %4150 }
0x2a66   : > { %v4164_v60 = vsel %vm1718_vm8, %v4124_v49, %v4151_v22  ;;  %v4314_v49 = vld [vmem:[#allocation38 + $0x2] sm:$0x1] }
0x2a6b   : > { %v4121_v51 = vpop.permute.xlu0 %4120 }
0x2a6d   : > { %v4153_v2 = vpop.permute.xlu1 %4152 }
0x2a6e   : > { %v4165_v47 = vsel %vm1718_vm8, %v4121_v51, %v4153_v2  ;;  %v4391_v2 = vld [vmem:[#allocation40 + $0x58] sm:$0xff]  ;;  %v4390_v51 = vld [vmem:[#allocation40 + $0x50] sm:$0xff] }
0x2a6f   : > { %4407 = vmatpush.msrb.mxu2 %v4391_v2 }
0x2a71   : > { %4408 = vmatpush.msrb.mxu2 %v4390_v51 }
0x2a73   : > { %v4203_v26 = vpop.permute.xlu0 %4202 }
0x2a74   : > { %v4222_v24 = vsel %vm1718_vm8, %v8117_v35, %v4203_v26  ;;  %v4283_v35 = vld [vmem:[#allocation34 + $0x58] sm:$0xff] }
0x2a75   : > { %v4209_v59 = vpop.permute.xlu1 %4208  ;;  %4301 = vmatpush.msra.mxu0 %v4283_v35  ;;  %v4476_v35 = vld [vmem:[#allocation43 + $0x58] sm:$0xff] }
0x2a76   : > { %v4224_v55 = vsel %vm1540_vm4, %v4222_v24, %v4209_v59  ;;  %4560 = vmatpush.msra.mxu3 %v4476_v35  ;;  %v4490_v35 = vld [vmem:[#allocation43 + $0xc8] sm:$0xff] }
0x2a77   : > { %4302 = vmatpush.msra.mxu0 %v4282_v6  ;;  %v4475_v6 = vld [vmem:[#allocation43 + $0x50] sm:$0xff] }
0x2a78   : > { %4561 = vmatpush.msra.mxu3 %v4475_v6  ;;  %v4500_v6 = vld [vmem:[#allocation43 + $0x118] sm:$0xff] }
0x2a79   : > { %4303 = vmatpush.msra.mxu0 %v4281_v63  ;;  %v4474_v63 = vld [vmem:[#allocation43 + $0x48] sm:$0xff] }
0x2a7a   : > { %4562 = vmatpush.msra.mxu3 %v4474_v63  ;;  %v4499_v63 = vld [vmem:[#allocation43 + $0x110] sm:$0xff] }
0x2a7b   : > { %v4205_v20 = vpop.permute.xlu0 %4204  ;;  %4304 = vmatpush.msra.mxu0 %v4280_v0  ;;  %v4473_v0 = vld [vmem:[#allocation43 + $0x40] sm:$0xff] }
0x2a7c   : > { %v4223_v36 = vsel %vm1718_vm8, %v8121_v28, %v4205_v20  ;;  %4563 = vmatpush.msra.mxu3 %v4473_v0  ;;  %v4489_v0 = vld [vmem:[#allocation43 + $0xc0] sm:$0xff] }
0x2a7d   : > { %v4211_v25 = vpop.permute.xlu1 %4210  ;;  %4537 = vmatpush.msrb.mxu0 %v4500_v6 }
0x2a7e   : > { %v4225_v27 = vsel %vm1540_vm4, %v4223_v36, %v4211_v25  ;;  %4564 = vmatpush.msra.mxu3 %v4472_v48  ;;  %v4498_v48 = vld [vmem:[#allocation43 + $0x108] sm:$0xff] }
0x2a7f   : > { %4538 = vmatpush.msrb.mxu0 %v4499_v63 }
0x2a80   : > { %4565 = vmatpush.msra.mxu3 %v4471_v4  ;;  %v4488_v4 = vld [vmem:[#allocation43 + $0xb8] sm:$0xff] }
0x2a81   : > { %4539 = vmatpush.msrb.mxu0 %v4498_v48 }
0x2ab6   : > { %v4159_v31 = vpop.permute.xlu2 %4158 }
0x2ab7   : > { %v4166_v32 = vsel %vm1540_vm4, %v4164_v60, %v4159_v31 }
0x2ab8   : > { %5286 = vmatmul.msk.f32.vlgmr.msra.gmra.mxu2 %vm1726_vm10, %v4166_v32 }
0x2abe   : > { %v4161_v34 = vpop.permute.xlu2 %4160 }
0x2abf   : > { %v4167_v37 = vsel %vm1540_vm4, %v4165_v47, %v4161_v34  ;;  %v4389_v47 = vld [vmem:[#allocation40 + $0x48] sm:$0xff]  ;;  %v4388_v34 = vld [vmem:[#allocation40 + $0x40] sm:$0xff] }
0x2ac0   : > { %5287 = vmatmul.msk.f32.gmra.mxu2 %vm1726_vm10, %v4167_v37  ;;  %v4387_v37 = vld [vmem:[#allocation40 + $0x38] sm:$0xff] }
0x2ac1   : > { %4409 = vmatpush.msrb.mxu2 %v4389_v47 }
0x2ac3   : > { %4410 = vmatpush.msrb.mxu2 %v4388_v34 }
0x2ac5   : > { %4411 = vmatpush.msrb.mxu2 %v4387_v37 }
0x2ac7   : > { %4412 = vmatpush.msrb.mxu2 %v4386_v1 }
0x2ac9   : > { %4413 = vmatpush.msrb.mxu2 %v4385_v52 }
0x2acb   : > { %4414 = vmatpush.msrb.mxu2 %v4384_v39 }
0x2b3b   : > { %v4194_v17 = vpop.f32.mrf.mxu2 }
0x2b3c   : > { %v4195_v15 = vadd.f32 %v5626_v56, %v4194_v17 }
0x2b3e   : > { %v4200_v54 = vmax.f32 %v4195_v15, 0.0 }
0x2b40   : > { %4216 = vrot.lane.b32.xlu2 %v4200_v54, %s6686_s28  ;;  %v4382_v54 = vld [vmem:[#allocation40 + $0x10] sm:$0xff] }
0x2b43   : > { %v4197_v40 = vpop.f32.mrf.mxu2 }
0x2b44   : > { %v4198_v41 = vadd.f32 %v5626_v56, %v4197_v40  ;;  %v4383_v56 = vld [vmem:[#allocation40 + $0x18] sm:$0xff] }
0x2b45   : > { %4415 = vmatpush.msrb.mxu2 %v4383_v56 }
0x2b46   : > { %v4201_v45 = vmax.f32 %v4198_v41, 0.0  ;;  %v4381_v41 = vld [vmem:[#allocation40 + $0x8] sm:$0xff] }
0x2b47   : > { %4416 = vmatpush.msrb.mxu2 %v4382_v54 }
0x2b48   : > { %4218 = vrot.lane.b32.xlu2 %v4201_v45, %s6686_s28  ;;  %s4783_s28 = sshll.u32 %s1485_s21, 4  ;;  %s4784_s28 = int_to_ptr.vmem [resolvable:$true] %s4783_s28 }
0x2b49   : > { %4417 = vmatpush.msrb.mxu2 %v4381_v41 }
0x2b50   : > { %4364 = vrot.lane.b32.xlu2 %v8113_v62, %s6680_s2  ;;  %s8571_s2 = sld [smem:[#allocation89_spill]] }
0x2b56   : > { %s4781_s3 = scalar_lea.hbm %s8571_s2, %s6885_s15  ;;  %s6508_s15 = scalar_lea.hbm %s8571_s2, 2 }
0x2b57   : > { %s4785_s14 = sshll.u32 %s4781_s3, 4  ;;  %s4786_s14 = int_to_ptr.hbm [resolvable:$true] %s4785_s14 }
0x2b9a   : > { %v4217_v53 = vpop.permute.xlu2 %4216 }
0x2b9b   : > { %v4226_v33 = vsel %vm1726_vm10, %v4224_v55, %v4217_v53 }
0x2b9c   : > { %5288 = vmatmul.msk.f32.vlgmr.msra.gmra.mxu1 %vm1543_vm5, %v4226_v33 }
0x2ba2   : > { %v4219_v30 = vpop.permute.xlu2 %4218 }
0x2ba3   : > { %v4227_v3 = vsel %vm1726_vm10, %v4225_v27, %v4219_v30 }
0x2ba4   : > { %5289 = vmatmul.msk.f32.gmra.mxu1 %vm1543_vm5, %v4227_v3  ;;  %v4380_v3 = vld [vmem:[#allocation40] sm:$0xff] }
0x2ba5   : > { %4418 = vmatpush.msrb.mxu2 %v4380_v3  ;;  %v4491_v3 = vld [vmem:[#allocation43 + $0xd0] sm:$0xff] }
0x2c19   : > { %v4261_v28 = vpop.f32.mrf.mxu1 }
0x2c1a   : > { %v8317_v7 = vadd.f32 %v5627_v5, %v4261_v28  ;;  %v4468_v28 = vld [vmem:[#allocation43 + $0x18] sm:$0xff] }
0x2c1c   : > { %v4267_v9 = vmax.f32 %v8317_v7, 0.0 }
0x2c1e   : > { %v4269_v12 = vsel %vm1543_vm5, %v4267_v9, 0.0 }
0x2c21   : > { %v4264_v8 = vpop.f32.mrf.mxu1 }
0x2c22   : > { %v8320_v10 = vadd.f32 %v5627_v5, %v4264_v8  ;;  %v4363_v5 = vpop.permute.xlu0 %4362 }
0x2c23   : > { %v4376_v7 = vsel %vm1543_vm5, %v7922_v13, %v4363_v5  ;;  %v5628_v13 = vld [vmem:[#allocation41] ss:$0 sm:$0xff]  ;;  %v4486_v5 = vld [vmem:[#allocation43 + $0xa8] sm:$0xff] }
0x2c24   : > { %v4268_v11 = vmax.f32 %v8320_v10, 0.0  ;;  %v4365_v10 = vpop.permute.xlu2 %4364 }
0x2c26   : > { %v4270_v14 = vsel %vm1543_vm5, %v4268_v11, 0.0 }
0x2c27   : > { %v4271_v18 = vadd.f32 %v4270_v14, %v4269_v12  ;;  %v4377_v12 = vsel %vm1543_vm5, %v7927_v16, %v4365_v10  ;;  %v4484_v10 = vld [vmem:[#allocation43 + $0x98] sm:$0xff] }
0x2c29   : > { %v4272_v19 = vrot.slane %v4271_v18, 4 }
0x2c2b   : > { %v4273_v21 = vadd.f32 %v4272_v19, %v4271_v18  ;;  %v4467_v18 = vld [vmem:[#allocation43 + $0x10] sm:$0xff]  ;;  %v4466_v19 = vld [vmem:[#allocation43 + $0x8] sm:$0xff] }
0x2c2d   : > { %v4274_v43 = vrot.slane %v4273_v21, 2 }
0x2c2f   : > { %v4275_v29 = vadd.f32 %v4274_v43, %v4273_v21  ;;  %v4465_v21 = vld [vmem:[#allocation43] sm:$0xff] }
0x2c31   : > { %v4276_v42 = vrot.slane %v4275_v29, 1 }
0x2c33   : > { %v4277_v44 = vadd.f32 %v4276_v42, %v4275_v29 }
0x2c35   : > { %v4278_v46 = vmul.f32 %v4277_v44, %v7454_v38 }
0x2c37   : > { %5290 = vmatmul.msk.f32.vlgmr.msra.gmra.mxu0 %vm1543_vm5, %v4278_v46 }
0x2cb4   : > { %v4306_v23 = vpop.f32.mrf.mxu0 }
0x2cb5   : > { %v4307_v58 = vadd.f32 %v4306_v23, %v4285_v57 }
0x2cb7   : > { %v4309_v22 = vmax.f32 %v4307_v58, 0.0 }
0x2cb9   : > { %5291 = vmatmul.msk.f32.vlgmr.msrb.gmra.mxu3 %vm1540_vm4, %v4309_v22 }
0x2d3c   : > { %v4335_v60 = vpop.f32.mrf.mxu3 }
0x2d3d   : > { %v4336_v31 = vadd.f32 %v4335_v60, %v4314_v49 }
0x2d3f   : > { %v5292_v32 = vmul.f32 -1.442695, %v4336_v31 }
0x2d41   : > { %5656 = vpow2.f32 %v5292_v32 }
0x2d47   : > { %v5657_v38 = vpop.eup %5656 }
0x2d48   : > { %v4341_v50 = vadd.f32 1.0, %v5657_v38 }
0x2d4a   : > { %5658 = vrcp.f32 %v4341_v50  ;;  %v4353_v45 = vand.u32 2147483648, %v4341_v50  ;;  %v4351_v59 = vand.u32 2147483647, %v4341_v50  ;;  %vm4347_vm10 = vweird.f32 %v4341_v50 }
0x2d4c   : > { %v4354_v55 = vor.u32 1.1754944e-38, %v4353_v45  ;;  %vm4352_vm6 = vcmp.eq.f32.partialorder %v4351_v59, 8.507059e+37 }
0x2d50   : > { %v5659_v17 = vpop.eup %5658 }
0x2d51   : > { %v4343_v15 = vmul.f32 %v5659_v17, %v4341_v50  ;;  %vm4348_vm8 = vweird.f32 %v5659_v17 }
0x2d52   : > { %vm4349_vm15 = vmor %vm4347_vm10, %vm4348_vm8  ;;  %vm4770_vm10 = vcmask 188416  }
0x2d53   : > { %v4344_v40 = vsub.f32 1.0, %v4343_v15  ;;  %vm8573_vm8 = vmmov %vm8566_vm1 }
0x2d55   : > { %v4345_v26 = vmul.f32 %v5659_v17, %v4344_v40 }
0x2d57   : > { %v4346_v24 = vadd.f32 %v5659_v17, %v4345_v26 }
0x2d59   : > { %v4350_v53 = vsel %vm4349_vm15, %v5659_v17, %v4346_v24 }
0x2d5a   : > { %v4355_v33 = vsel %vm4352_vm6, %v4354_v55, %v4350_v53 }
0x2d5b   : > { %v4357_v20 = vperm.slane %v4355_v33, 0 }
0x2d5d   : > { %v4359_v36 = vmul.f32 %v4357_v20, %v4268_v11  ;;  %v4358_v25 = vmul.f32 %v4357_v20, %v4267_v9 }
0x2d5f   : > { %v4361_v27 = vadd.f32 %v4359_v36, %v8113_v62  ;;  %v4360_v30 = vadd.f32 %v4358_v25, %v8108_v61  ;;  %v4470_v62 = vld [vmem:[#allocation43 + $0x28] sm:$0xff]  ;;  %v4469_v61 = vld [vmem:[#allocation43 + $0x20] sm:$0xff] }
0x2d60   : > { %4566 = vmatpush.msra.mxu3 %v4470_v62  ;;  %v4497_v62 = vld [vmem:[#allocation43 + $0x100] sm:$0xff] }
0x2d61   : > { %4372 = vrot.lane.b32.xlu0 %v4361_v27, %s6681_s26  ;;  %4370 = vrot.lane.b32.xlu1 %v4360_v30, %s6681_s26  ;;  %v4492_v30 = vld [vmem:[#allocation43 + $0xd8] sm:$0xff]  ;;  %s8572_s26 = sld [smem:[#allocation88_spill]] }
0x2d62   : > { %4567 = vmatpush.msra.mxu3 %v4469_v61  ;;  %4509 = vmatpush.msrb.mxu1 %v4492_v30  ;;  %v4487_v61 = vld [vmem:[#allocation43 + $0xb0] sm:$0xff] }
0x2d63   : > { %4540 = vmatpush.msrb.mxu0 %v4497_v62 }
0x2d64   : > { %4568 = vmatpush.msra.mxu3 %v4468_v28  ;;  %4510 = vmatpush.msrb.mxu1 %v4491_v3  ;;  %v4496_v28 = vld [vmem:[#allocation43 + $0xf8] sm:$0xff] }
0x2d65   : > { %4541 = vmatpush.msrb.mxu0 %v4496_v28 }
0x2d66   : > { %4569 = vmatpush.msra.mxu3 %v4467_v18  ;;  %4511 = vmatpush.msrb.mxu1 %v4490_v35  ;;  %v4481_v18 = vld [vmem:[#allocation43 + $0x80] sm:$0xff] }
0x2d68   : > { %4570 = vmatpush.msra.mxu3 %v4466_v19  ;;  %4512 = vmatpush.msrb.mxu1 %v4489_v0  ;;  %v4480_v19 = vld [vmem:[#allocation43 + $0x78] sm:$0xff] }
0x2d6a   : > { %4571 = vmatpush.msra.mxu3 %v4465_v21  ;;  %4513 = vmatpush.msrb.mxu1 %v4488_v4  ;;  %v4479_v21 = vld [vmem:[#allocation43 + $0x70] sm:$0xff] }
0x2d6c   : > { %4514 = vmatpush.msrb.mxu1 %v4487_v61 }
0x2d6e   : > { %4515 = vmatpush.msrb.mxu1 %v4486_v5 }
0x2dd3   : > { %v4371_v8 = vpop.permute.xlu1 %4370  ;;  %v4373_v11 = vpop.permute.xlu0 %4372 }
0x2dd4   : > { %v4378_v9 = vsel %vm8565_vm14, %v4376_v7, %v4371_v8  ;;  %v4379_v14 = vsel %vm8566_vm1, %v4377_v12, %v4373_v11  ;;  %v4495_v7 = vld [vmem:[#allocation43 + $0xf0] sm:$0xff]  ;;  %v4485_v8 = vld [vmem:[#allocation43 + $0xa0] sm:$0xff] }
0x2dd5   : > { %5293 = vmatmul.msk.f32.vlgmr.msrb.gmra.mxu2 %vm4396_vm13, %v4378_v9  ;;  %v4494_v9 = vld [vmem:[#allocation43 + $0xe8] sm:$0xff]  ;;  %4542 = vmatpush.msrb.mxu0 %v4495_v7  ;;  %v4493_v11 = vld [vmem:[#allocation43 + $0xe0] sm:$0xff]  ;;  %v4483_v12 = vld [vmem:[#allocation43 + $0x90] sm:$0xff] }
0x2dd6   : > { %4516 = vmatpush.msrb.mxu1 %v4485_v8 }
0x2dd7   : > { %4543 = vmatpush.msrb.mxu0 %v4494_v9 }
0x2dd8   : > { %4517 = vmatpush.msrb.mxu1 %v4484_v10 }
0x2dd9   : > { %4544 = vmatpush.msrb.mxu0 %v4493_v11 }
0x2dda   : > { %4518 = vmatpush.msrb.mxu1 %v4483_v12 }
0x2ddd   : > { %5294 = vmatmul.msk.f32.gmra.mxu2 %vm4396_vm13, %v4379_v14  ;;  %v4482_v14 = vld [vmem:[#allocation43 + $0x88] sm:$0xff] }
0x2dde   : > { %4519 = vmatpush.msrb.mxu1 %v4482_v14 }
0x2de0   : > { %4520 = vmatpush.msrb.mxu1 %v4481_v18 }
0x2de2   : > { %4521 = vmatpush.msrb.mxu1 %v4480_v19 }
0x2de4   : > { %4522 = vmatpush.msrb.mxu1 %v4479_v21 }
0x2e58   : > { %v4420_v43 = vpop.f32.mrf.mxu2 }
0x2e59   : > { %v4421_v29 = vadd.f32 %v5628_v13, %v4420_v43  ;;  %v4477_v43 = vld [vmem:[#allocation43 + $0x60] sm:$0xff] }
0x2e5b   : > { %v8344_v42 = vmax.f32 %v4421_v29, 0.0 }
0x2e5d   : > { %5296 = vmatmul.msk.f32.vlgmr.msra.gmra.mxu3 %vm4396_vm13, %v8344_v42  ;;  %v4428_v57 = vsel %vm4396_vm13, %v8344_v42, 0.0 }
0x2e60   : > { %v4423_v44 = vpop.f32.mrf.mxu2 }
0x2e61   : > { %v4424_v16 = vadd.f32 %v5628_v13, %v4423_v44  ;;  %v4478_v13 = vld [vmem:[#allocation43 + $0x68] sm:$0xff] }
0x2e62   : > { %4523 = vmatpush.msrb.mxu1 %v4478_v13 }
0x2e63   : > { %v8348_v46 = vmax.f32 %v4424_v16, 0.0  ;;  %v4584_v16 = vld [vmem:[%s8567_s0 + $0x8] sm:$0xff]  ;;  %s6502_s0 = sshra.s32 %s4786_s14, 4  ;;  %s6503_s0 = int_to_ptr.hbm [resolvable:$true] %s6502_s0 }
0x2e64   : > { %4524 = vmatpush.msrb.mxu1 %v4477_v43  ;;  %4609 = vmatpush.msra.mxu0 %v4584_v16  ;;  %p6509_p8 = scmp.lt.s32.totalorder %s6503_s0, %s8571_s2 }
0x2e65   : > { %v4429_v23 = vsel %vm4396_vm13, %v8348_v46, 0.0  ;;  %5297 = vmatmul.msk.f32.gmra.mxu3 %vm4396_vm13, %v8348_v46 }
0x2e66   : > { %v4430_v58 = vadd.f32 %v4429_v23, %v4428_v57  ;;  %v4583_v57 = vld [vmem:[%s8568_s4] sm:$0xff]  ;;  %v4506_v23 = vld [vmem:[#allocation44] sm:$0x1] }
0x2e67   : > { %4610 = vmatpush.msra.mxu0 %v4583_v57 }
0x2e68   : > { %v4431_v22 = vrot.slane %v4430_v58, 4 }
0x2e6a   : > { %v4432_v49 = vadd.f32 %v4431_v22, %v4430_v58 }
0x2e6c   : > { %v4433_v60 = vrot.slane %v4432_v49, 2 }
0x2e6e   : > { %v4434_v31 = vadd.f32 %v4433_v60, %v4432_v49 }
0x2e70   : > { %v4435_v32 = vrot.slane %v4434_v31, 1 }
0x2e72   : > { %v4436_v2 = vadd.f32 %v4435_v32, %v4434_v31 }
0x2e74   : > { %v8356_v51 = vmul.f32 0.0625, %v4436_v2 }
0x2e76   : > { %v4438_v47 = vsub.f32 %v8344_v42, %v8356_v51  ;;  %v4439_v34 = vsub.f32 %v8348_v46, %v8356_v51 }
0x2e78   : > { %v4440_v38 = vmul.f32 %v4438_v47, %v4438_v47  ;;  %v4441_v37 = vmul.f32 %v4439_v34, %v4439_v34 }
0x2e7a   : > { %v4442_v50 = vsel %vm4396_vm13, %v4440_v38, 0.0  ;;  %v4443_v1 = vsel %vm4396_vm13, %v4441_v37, 0.0 }
0x2e7b   : > { %v4444_v52 = vadd.f32 %v4443_v1, %v4442_v50 }
0x2e7d   : > { %v4445_v39 = vrot.slane %v4444_v52, 4 }
0x2e7f   : > { %v4446_v56 = vadd.f32 %v4445_v39, %v4444_v52  ;;  %v5629_v52 = vld [vmem:[%s8570_s23] ss:$0 sm:$0xff]  ;;  %s6504_s23 = scalar_lea.hbm %s6503_s0, 1 }
0x2e80   : > { %p6505_p12 = scmp.ne.s32.totalorder %s6503_s0, %s6504_s23  ;;  %p6510_p6 = scmp.lt.s32.totalorder %s6508_s15, %s6504_s23 }
0x2e81   : > { %v4447_v17 = vrot.slane %v4446_v56, 2 }
0x2e82   : > { %p6506_p13 = pnand %p6505_p12, %p6916_p11  ;;  %p6511_p9 = por %p6510_p6, %p6509_p8 }
0x2e83   : > { %v4448_v15 = vadd.f32 %v4447_v17, %v4446_v56 }
0x2e84   : > { %p6507_p7 = pneg %p6506_p13 }
0x2e85   : > { %v4449_v54 = vrot.slane %v4448_v15, 1 }
0x2e86   : > { %p6512_p10 = pnand %p6511_p9, %p6507_p7 }
0x2e87   : > { %v4450_v40 = vadd.f32 %v4449_v54, %v4448_v15 }
0x2e89   : > { %v4451_v41 = vmul.f32 0.0625, %v4450_v40 }
0x2e8b   : > { %v4452_v45 = vmax.f32 %v4451_v41, 1e-12 }
0x2e8d   : > { %5660 = vrsqrt.f32 %v4452_v45  ;;  %vm4460_vm5 = vcmp.eq.f32.partialorder %v4452_v45, inf  ;;  %v4463_v36 = vand.u32 2147483648, %v4452_v45  ;;  %vm4462_vm3 = vcmp.eq.f32.partialorder %v4452_v45, 0.0 }
0x2e93   : > { %v5661_v26 = vpop.eup %5660 }
0x2e94   : > { %v4454_v59 = vmul.f32 %v5661_v26, %v4452_v45 }
0x2e96   : > { %v4455_v24 = vmul.f32 %v5661_v26, %v4454_v59 }
0x2e98   : > { %v4456_v55 = vmul.f32 0.5, %v4455_v24 }
0x2e9a   : > { %v4457_v53 = vsub.f32 1.5, %v4456_v55 }
0x2e9c   : > { %v4458_v33 = vmul.f32 %v5661_v26, %v4457_v53 }
0x2e9e   : > { %v4459_v20 = vmul.f32 %v4458_v33, %v4452_v45 }
0x2ea0   : > { %v4461_v25 = vsel %vm4460_vm5, %v4452_v45, %v4459_v20 }
0x2ea1   : > { %v4464_v27 = vsel %vm4462_vm3, %v4463_v36, %v4461_v25 }
0x2ea2   : > { %4502 = vrot.lane.b32.xlu1 %v4464_v27, %s6688_s9 }
0x2ee0   : > { %v4573_v58 = vpop.f32.mrf.mxu3 }
0x2ee8   : > { %v4576_v34 = vpop.f32.mrf.mxu3 }
0x2f14   : > { %v4503_v29 = vpop.permute.xlu1 %4502 }
0x2f15   : > { %v4505_v44 = vsel %vm4396_vm13, %v8356_v51, %v4503_v29  ;;  %5295 = vmatmul.msk.f32.vlgmr.msrb.gmra.mxu0 %vm8569_vm11, %v4503_v29 }
0x2f16   : > { %4525 = vmatmul.f32.vlgmr.msrb.gmra.mxu1 %v4505_v44 }
0x2f92   : > { %v4546_v60 = vpop.f32.mrf.mxu0 }
0x2f93   : > { %v4526_v22 = vpop.f32.mrf.mxu1 }
0x2f94   : > { %v4527_v49 = vadd.f32 %v4526_v22, %v4506_v23 }
0x2f96   : > { %v4547_v31 = vadd.f32 %v4546_v60, %v4527_v49 }
0x2f98   : > { %v4549_v32 = vperm.slane %v4547_v31, 0 }
0x2f9a   : > { %v4574_v2 = vadd.f32 %v4573_v58, %v4549_v32  ;;  %v4577_v38 = vadd.f32 %v4576_v34, %v4549_v32 }
0x2f9c   : > { %v4579_v47 = vmax.f32 %v4574_v2, 0.0  ;;  %v4580_v51 = vmax.f32 %v4577_v38, 0.0 }
0x2f9e   : > { %5662 = vtanh.f32 %v4579_v47 }
0x2f9f   : > { %5664 = vtanh.f32 %v4580_v51 }
0x2fa4   : > { %v5663_v37 = vpop.eup %5662 }
0x2fa5   : > { %5298 = vmatmul.msk.f32.vlgmr.msra.gmra.mxu0 %vm1540_vm4, %v5663_v37  ;;  %v5665_v50 = vpop.eup %5664 }
0x2fad   : > { %5299 = vmatmul.msk.f32.gmra.mxu0 %vm1540_vm4, %v5665_v50 }
0x3022   : > { %v4612_v1 = vpop.f32.mrf.mxu0 }
0x3023   : > { %v4613_v39 = vadd.f32 %v5629_v52, %v4612_v1 }
0x3025   : > { %v4618_v15 = vsel %vm4396_vm13, %v4613_v39, -inf }
0x302a   : > { %v4615_v56 = vpop.f32.mrf.mxu0 }
0x302b   : > { %v4616_v17 = vadd.f32 %v5629_v52, %v4615_v56  ;;  %v4718_v52 = vld [vmem:[#allocation46 + $0x78] sm:$0xff] }
0x302c   : > { %4730 = vmatpush.msra.mxu2 %v4718_v52 }
0x302d   : > { %v4619_v54 = vsel %vm4396_vm13, %v4616_v17, -inf }
0x302e   : > { %v4620_v40 = vmax.f32 %v4618_v15, %v4619_v54  ;;  %v4715_v54 = vld [vmem:[#allocation46 + $0x60] sm:$0xff] }
0x3030   : > { %v4621_v41 = vrot.slane %v4620_v40, 4 }
0x3032   : > { %v4622_v45 = vmax.f32 %v4620_v40, %v4621_v41  ;;  %v4724_v40 = vld [vmem:[#allocation46 + $0xa8] sm:$0xff] }
0x3034   : > { %v4623_v26 = vrot.slane %v4622_v45, 2 }
0x3036   : > { %v4624_v59 = vmax.f32 %v4622_v45, %v4623_v26  ;;  %v4714_v45 = vld [vmem:[#allocation46 + $0x58] sm:$0xff]  ;;  %v4723_v26 = vld [vmem:[#allocation46 + $0xa0] sm:$0xff] }
0x3038   : > { %v4625_v24 = vrot.slane %v4624_v59, 1 }
0x303a   : > { %v4626_v55 = vmax.f32 %v4624_v59, %v4625_v24  ;;  %v4713_v24 = vld [vmem:[#allocation46 + $0x50] sm:$0xff] }
0x303c   : > { %v4627_v53 = vsub.f32 %v4613_v39, %v4626_v55  ;;  %v4628_v33 = vsub.f32 %v4616_v17, %v4626_v55  ;;  %v4717_v39 = vld [vmem:[#allocation46 + $0x70] sm:$0xff]  ;;  %v4716_v17 = vld [vmem:[#allocation46 + $0x68] sm:$0xff]  ;;  %v4722_v55 = vld [vmem:[#allocation46 + $0x98] sm:$0xff] }
0x303d   : > { %4731 = vmatpush.msra.mxu2 %v4717_v39 }
0x303e   : > { %v4629_v20 = vmul.f32 1.442695, %v4627_v53  ;;  %v4631_v36 = vmul.f32 1.442695, %v4628_v33  ;;  %v4712_v33 = vld [vmem:[#allocation46 + $0x48] sm:$0xff] }
0x303f   : > { %4732 = vmatpush.msra.mxu2 %v4716_v17 }
0x3040   : > { %5666 = vpow2.f32 %v4629_v20  ;;  %v4721_v20 = vld [vmem:[#allocation46 + $0x90] sm:$0xff] }
0x3041   : > { %5668 = vpow2.f32 %v4631_v36  ;;  %4733 = vmatpush.msra.mxu2 %v4715_v54  ;;  %v4711_v36 = vld [vmem:[#allocation46 + $0x40] sm:$0xff] }
0x3043   : > { %4734 = vmatpush.msra.mxu2 %v4714_v45 }
0x3045   : > { %4735 = vmatpush.msra.mxu2 %v4713_v24 }
0x3046   : > { %v5667_v25 = vpop.eup %5666 }
0x3047   : > { %v5669_v27 = vpop.eup %5668  ;;  %v4633_v30 = vsel %vm4396_vm13, %v5667_v25, 0.0  ;;  %4736 = vmatpush.msra.mxu2 %v4712_v33 }
0x3048   : > { %v4634_v3 = vsel %vm4396_vm13, %v5669_v27, 0.0 }
0x3049   : > { %v4635_v35 = vadd.f32 %v4634_v3, %v4633_v30  ;;  %v4719_v30 = vld [vmem:[#allocation46 + $0x80] sm:$0xff]  ;;  %4737 = vmatpush.msra.mxu2 %v4711_v36  ;;  %v4709_v3 = vld [vmem:[#allocation46 + $0x30] sm:$0xff] }
0x304b   : > { %v4636_v6 = vrot.slane %v4635_v35, 4 }
0x304d   : > { %v4637_v63 = vadd.f32 %v4636_v6, %v4635_v35 }
0x304f   : > { %v4638_v0 = vrot.slane %v4637_v63, 2 }
0x3051   : > { %v4639_v48 = vadd.f32 %v4638_v0, %v4637_v63  ;;  %v4708_v63 = vld [vmem:[#allocation46 + $0x28] sm:$0xff] }
0x3053   : > { %v4640_v4 = vrot.slane %v4639_v48, 1 }
0x3055   : > { %v4641_v62 = vadd.f32 %v4640_v4, %v4639_v48  ;;  %v4707_v48 = vld [vmem:[#allocation46 + $0x20] sm:$0xff] }
0x3057   : > { %5670 = vrcp.f32 %v4641_v62  ;;  %v4653_v7 = vand.u32 2147483648, %v4641_v62  ;;  %v4651_v9 = vand.u32 2147483647, %v4641_v62  ;;  %vm4647_vm12 = vweird.f32 %v4641_v62 }
0x3059   : > { %v4654_v11 = vor.u32 1.1754944e-38, %v4653_v7  ;;  %vm4652_vm0 = vcmp.eq.f32.partialorder %v4651_v9, 8.507059e+37  ;;  %v4704_v7 = vld [vmem:[#allocation46 + $0x8] sm:$0xff] }
0x305d   : > { %v5671_v61 = vpop.eup %5670 }
0x305e   : > { %v4643_v28 = vmul.f32 %v5671_v61, %v4641_v62  ;;  %vm4648_vm4 = vweird.f32 %v5671_v61  ;;  %v4706_v62 = vld [vmem:[#allocation46 + $0x18] sm:$0xff] }
0x305f   : > { %vm4649_vm9 = vmor %vm4647_vm12, %vm4648_vm4 }
0x3060   : > { %v4644_v5 = vsub.f32 1.0, %v4643_v28  ;;  %v4705_v28 = vld [vmem:[#allocation46 + $0x10] sm:$0xff] }
0x3062   : > { %v4645_v8 = vmul.f32 %v5671_v61, %v4644_v5 }
0x3064   : > { %v4646_v10 = vadd.f32 %v5671_v61, %v4645_v8 }
0x3066   : > { %v4650_v12 = vsel %vm4649_vm9, %v5671_v61, %v4646_v10 }
0x3067   : > { %v4655_v14 = vsel %vm4652_vm0, %v4654_v11, %v4650_v12  ;;  %v4703_v12 = vld [vmem:[#allocation46] sm:$0xff] }
0x3068   : > { %v4657_v18 = vmul.f32 %v5667_v25, %v4655_v14  ;;  %v4658_v19 = vmul.f32 %v5669_v27, %v4655_v14  ;;  %v4720_v25 = vld [vmem:[#allocation46 + $0x88] sm:$0xff]  ;;  %v4710_v27 = vld [vmem:[#allocation46 + $0x38] sm:$0xff] }
0x3069   : > { %4738 = vmatpush.msra.mxu2 %v4710_v27 }
0x306a   : > { %v4659_v21 = vmul.f32 %v4657_v18, %v8344_v42  ;;  %v4660_v13 = vmul.f32 %v4658_v19, %v8348_v46 }
0x306b   : > { %4739 = vmatpush.msra.mxu2 %v4709_v3 }
0x306c   : > { %v4661_v43 = vsel %vm4396_vm13, %v4659_v21, 0.0  ;;  %v4662_v29 = vsel %vm4396_vm13, %v4660_v13, 0.0 }
0x306d   : > { %v4663_v44 = vadd.f32 %v4662_v29, %v4661_v43  ;;  %4740 = vmatpush.msra.mxu2 %v4708_v63 }
0x306f   : > { %v4664_v16 = vrot.slane %v4663_v44, 4  ;;  %4741 = vmatpush.msra.mxu2 %v4707_v48 }
0x3071   : > { %v4665_v57 = vadd.f32 %v4664_v16, %v4663_v44  ;;  %4742 = vmatpush.msra.mxu2 %v4706_v62 }
0x3073   : > { %v4666_v23 = vrot.slane %v4665_v57, 2  ;;  %4743 = vmatpush.msra.mxu2 %v4705_v28 }
0x3075   : > { %v4667_v58 = vadd.f32 %v4666_v23, %v4665_v57  ;;  %4744 = vmatpush.msra.mxu2 %v4704_v7 }
0x3077   : > { %v4668_v22 = vrot.slane %v4667_v58, 1  ;;  %4745 = vmatpush.msra.mxu2 %v4703_v12 }
0x3079   : > { %v8381_v49 = vadd.f32 %v4668_v22, %v4667_v58 }
0x307b   : > { %v4670_v60 = vsub.f32 %v8344_v42, %v8381_v49  ;;  %v4671_v31 = vsub.f32 %v8348_v46, %v8381_v49  ;;  %v4726_v42 = vld [vmem:[#allocation46 + $0xb8] sm:$0xff]  ;;  %v4725_v46 = vld [vmem:[#allocation46 + $0xb0] sm:$0xff] }
0x307c   : > { %4758 = vmatpush.msrb.mxu0 %v4726_v42 }
0x307d   : > { %v4672_v32 = vmul.f32 %v4670_v60, %v4657_v18  ;;  %v4673_v2 = vmul.f32 %v4671_v31, %v4658_v19  ;;  %v4727_v19 = vld [vmem:[%s8572_s26] sm:$0x1] }
0x307e   : > { %4759 = vmatpush.msrb.mxu0 %v4725_v46 }
0x307f   : > { %v4674_v47 = vmul.f32 %v4672_v32, %v4670_v60  ;;  %v4675_v34 = vmul.f32 %v4673_v2, %v4671_v31 }
0x3080   : > { %4760 = vmatpush.msrb.mxu0 %v4724_v40 }
0x3081   : > { %v4676_v38 = vsel %vm4396_vm13, %v4674_v47, 0.0  ;;  %v4677_v51 = vsel %vm4396_vm13, %v4675_v34, 0.0 }
0x3082   : > { %v4678_v37 = vadd.f32 %v4677_v51, %v4676_v38  ;;  %4761 = vmatpush.msrb.mxu0 %v4723_v26 }
0x3084   : > { %v4679_v50 = vrot.slane %v4678_v37, 4  ;;  %4762 = vmatpush.msrb.mxu0 %v4722_v55 }
0x3086   : > { %v4680_v1 = vadd.f32 %v4679_v50, %v4678_v37  ;;  %4763 = vmatpush.msrb.mxu0 %v4721_v20 }
0x3088   : > { %v4681_v56 = vrot.slane %v4680_v1, 2  ;;  %4764 = vmatpush.msrb.mxu0 %v4720_v25 }
0x308a   : > { %v4682_v15 = vadd.f32 %v4681_v56, %v4680_v1  ;;  %4765 = vmatpush.msrb.mxu0 %v4719_v30 }
0x308c   : > { %v4683_v41 = vrot.slane %v4682_v15, 1 }
0x308e   : > { %v4684_v59 = vadd.f32 %v4683_v41, %v4682_v15 }
0x3090   : > { %v4685_v53 = vmax.f32 %v4684_v59, 1e-12 }
0x3092   : > { %5672 = vrsqrt.f32 %v4685_v53  ;;  %vm4693_vm2 = vcmp.eq.f32.partialorder %v4685_v53, inf  ;;  %v4696_v9 = vand.u32 2147483648, %v4685_v53  ;;  %vm4695_vm7 = vcmp.eq.f32.partialorder %v4685_v53, 0.0 }
0x3098   : > { %v5673_v35 = vpop.eup %5672 }
0x3099   : > { %v4687_v6 = vmul.f32 %v5673_v35, %v4685_v53 }
0x309b   : > { %v4688_v0 = vmul.f32 %v5673_v35, %v4687_v6 }
0x309d   : > { %v4689_v4 = vmul.f32 0.5, %v4688_v0 }
0x309f   : > { %v4690_v61 = vsub.f32 1.5, %v4689_v4 }
0x30a1   : > { %v4691_v5 = vmul.f32 %v5673_v35, %v4690_v61 }
0x30a3   : > { %v4692_v8 = vmul.f32 %v4691_v5, %v4685_v53 }
0x30a5   : > { %v4694_v10 = vsel %vm4693_vm2, %v4685_v53, %v4692_v8 }
0x30a6   : > { %v4697_v11 = vsel %vm4695_vm7, %v4696_v9, %v4694_v10 }
0x30a7   : > { %4699 = vrot.lane.b32.xlu2 %v4697_v11, %s6688_s9  ;;  %s4773_s9 = scalar_lea.sflag [#allocation4], %s7303_s6 }
0x3101   : > { %v4700_v14 = vpop.permute.xlu2 %4699 }
0x3102   : > { %v4702_v18 = vsel %vm4396_vm13, %v8381_v49, %v4700_v14  ;;  %5300 = vmatmul.msk.f32.vlgmr.msrb.gmra.mxu0 %vm8573_vm8, %v4700_v14 }
0x3103   : > { %4746 = vmatmul.f32.vlgmr.msra.gmra.mxu2 %v4702_v18 }
0x317f   : > { %v4767_v43 = vpop.f32.mrf.mxu0 }
0x3186   : > { %v4747_v21 = vpop.f32.mrf.mxu2 }
0x3187   : > { %v4748_v13 = vadd.f32 %v4747_v21, %v4727_v19 }
0x3189   : > { %v4768_v29 = vadd.f32 %v4767_v43, %v4748_v13 }
0x318b   : > { %4771 = vst.msk [vmem:[%s1485_s21] sm:$0x1] %vm4770_vm10, %v4768_v29 }
0x318c   : > { %6515 = shalt.err (!%p6512_p10)
}
0x318d   : > { %5426 = dma.vmem_to_hbm [thread:$0]  (%p6916_p11), %s4784_s28, 16, %s4786_s14, %s4773_s9  }
0x318e PF: > { %s8575_s26 = sld [smem:[#allocation90_spill]]  ;;  %p8578_p1 = scmp.ge.s32.totalorder %s6610_s11, 2 }
0x318f   : > { %s8576_s3 = sld [smem:[#allocation95_spill]] }
0x3194   : > { %s4797_s6 = sand.u32 1, %s8575_s26  }
0x3195   : > { %p8577_p0 = scmp.ne.s32.totalorder %s8576_s3, 0  ;;  %s4798_s21 = scalar_lea.sflag [#allocation4], %s4797_s6 }
0x3197   : > { %p5433_p2 = pnand %p8578_p1, %p8577_p0 }
0x3199   : > { %p5434_p3 = pneg %p5433_p2 }
0x319b   : > { %6593 = dma.done.wait (%p5434_p3), %s4798_s21, 16  }
0x319c   : > { %6595 = vsyncadd (%p5434_p3), %s4798_s21, 4294967280  ;;  %s8579_s11 = sld [smem:[#allocation91_spill]]  ;;  %s8581_s0 = smov %s6602_s7 }
0x319d   : > { %s8580_s23 = sld [smem:[#allocation92_spill]]  ;;  %s8582_s7 = smov %s6606_s10 }
0x31a2   : > { %p94_p4 = scmp.ge.s32.totalorder %s8579_s11, 4  }
0x31a3   : > { %s8583_s10 = smov %s8580_s23 }
0x31a4   :  { %96 = sbr.rel (!%p94_p4) target bundleno = 83 (0x53), region = 396 }
0x31a9   :  { %4803 = vsyncpa [#allocation3], 1 }
0x31aa   :  { %4805 = vsyncpa [#allocation3 + $0x1], 1 }
0x31ab   :  { %4806 = vsyncpa [#allocation6], 1 }
0x31ac   :  { %4807 = vsyncpa [#allocation9], 1 }
0x31ad   :  { %4808 = vsyncpa [#allocation12], 1 }
0x31ae   :  { %4809 = vsyncpa [#allocation15], 1 }
0x31af   :  { %4810 = vsyncpa [#allocation18], 1 }
0x31b0   :  { %4811 = vsyncpa [#allocation21], 1 }
0x31b1   :  { %4812 = vsyncpa [#allocation24], 1 }
0x31b2   :  { %4813 = vsyncpa [#allocation27], 1 }
0x31b3   :  { %4814 = vsyncpa [#allocation30], 1 }
0x31b4   :  { %4815 = vsyncpa [#allocation33], 1 }
0x31b5   :  { %4816 = vsyncpa [#allocation36], 1 }
0x31b6   :  { %4817 = vsyncpa [#allocation39], 1 }
0x31b7   :  { %4818 = vsyncpa [#allocation42], 1 }
0x31b8   :  { %4819 = vsyncpa [#allocation45], 1 }
0x31b9   :  { %4820 = vsyncpa [#allocation4], 1 }
0x31ba   :  { %4822 = vsyncpa [#allocation4 + $0x1], 1 }

</bundles_post_ra>
